<compile_context>
chip_gen: v7x
topology: tpu7x:2x2x1
jax: 0.10.0
libtpu: 0.0.40
codegen_flags: <defaults>
</compile_context>

<pallas_src>
import math
import jax
import jax.numpy as jnp
from jax.experimental import pallas as pl
from jax.experimental.pallas import tpu as pltpu

_BN_EPS = 1e-5


# ----------------------------------------------------------------------------
# In-kernel building blocks (everything is 2-D matmuls + elementwise).
# ----------------------------------------------------------------------------
def _convt(x, a_ref, p_ref):
    """One ConvTranspose2d layer as 8 MXU matmuls.

    x:      (H*N, W*Cin)        bf16, row = ih*N + n, col = iw*Cin + ci
    a_ref:  (4, W*Cin, OW*Cout) bf16, fused (kw, channel) tap matrix per kh
    p_ref:  (4, OH*N, H*N)      f32,  0/1 row-upsample matrix per kh
    returns (OH*N, OW*Cout) f32, row = oh*N + n, col = ow*Cout + co
    """
    acc = None
    for kh in range(4):
        t = jnp.dot(x, a_ref[kh], preferred_element_type=jnp.float32)
        yk = jnp.dot(p_ref[kh], t, preferred_element_type=jnp.float32)
        acc = yk if acc is None else acc + yk
    return acc


def _bn_relu(y, s_ref, e_ref, g_ref, b_ref):
    """Training-mode BatchNorm2d + ReLU on a (rows, OW*C) f32 conv output.

    One-pass stats; per-channel reduce/broadcast via one-hot selector matmuls
    (s: (OW*C, C), e = s.T) so no in-kernel reshape is needed.
    """
    s = s_ref[...]
    e = e_ref[...]
    cnt = float(y.shape[0] * (s.shape[0] // s.shape[1]))   # = N * OH * OW
    ysum = jnp.sum(y, axis=0, keepdims=True)               # (1, OW*C)
    ysq = jnp.sum(y * y, axis=0, keepdims=True)
    csum = jnp.dot(ysum, s, preferred_element_type=jnp.float32)   # (1, C)
    csq = jnp.dot(ysq, s, preferred_element_type=jnp.float32)
    mean = csum / cnt
    var = csq / cnt - mean * mean
    scale = g_ref[...] * jax.lax.rsqrt(var + _BN_EPS)
    shift = b_ref[...] - mean * scale
    scale_f = jnp.dot(scale, e, preferred_element_type=jnp.float32)
    shift_f = jnp.dot(shift, e, preferred_element_type=jnp.float32)
    return jnp.maximum(y * scale_f + shift_f, 0.0)


def _generator_kernel(z_ref,
                      a1, p1, s1, e1, g1, b1,
                      a2, p2, s2, e2, g2, b2,
                      a3, p3, s3, e3, g3, b3,
                      a4, p4, s4, e4, g4, b4,
                      a5, p5,
                      o_ref):
    """Whole Generator forward, fully VMEM-resident, grid=(1,)."""
    x = z_ref[...]                                                     # (N, nz) bf16
    x = _bn_relu(_convt(x, a1, p1), s1, e1, g1, b1).astype(jnp.bfloat16)   # (4N, 4*C1)
    x = _bn_relu(_convt(x, a2, p2), s2, e2, g2, b2).astype(jnp.bfloat16)   # (8N, 8*C2)
    x = _bn_relu(_convt(x, a3, p3), s3, e3, g3, b3).astype(jnp.bfloat16)   # (16N, 16*C3)
    x = _bn_relu(_convt(x, a4, p4), s4, e4, g4, b4).astype(jnp.bfloat16)   # (32N, 32*C4)
    o_ref[...] = jnp.tanh(_convt(x, a5, p5))                              # (64N, 64*nc)


# ----------------------------------------------------------------------------
# pallas_call wrapper
# ----------------------------------------------------------------------------
def _full_spec(a):
    return pl.BlockSpec(a.shape, lambda i, _r=a.ndim: (0,) * _r)


def generator_forward(z, params):
    """z: (N, nz, 1, 1) NCHW; params: tuple from prepare_generator_params.
    Returns (N, nc, 64, 64) NCHW."""
    N, nz = z.shape[0], z.shape[1]
    z2 = z.reshape(N, nz).astype(jnp.bfloat16)

    out_rows = params[-1].shape[1]          # 64 * N
    out_cols = params[-2].shape[2]          # 64 * nc
    oh = out_rows // N
    nc = out_cols // oh

    y5 = pl.pallas_call(
        _generator_kernel,
        out_shape=jax.ShapeDtypeStruct((out_rows, out_cols), jnp.float32),
        grid=(1,),
        in_specs=[_full_spec(a) for a in (z2,) + tuple(params)],
        out_specs=pl.BlockSpec((out_rows, out_cols), lambda i: (0, 0)),
        compiler_params=pltpu.CompilerParams(dimension_semantics=("arbitrary",)),
    )(z2, *params)

    # Single KB-sized layout op to the required NCHW output format.
    img = y5.reshape(oh, N, oh, nc).transpose(1, 3, 0, 2)
    return img


# ----------------------------------------------------------------------------
# One-time parameter preparation (outside the jitted forward, plain JAX)
# ----------------------------------------------------------------------------
def _build_upsample_mats(w, H, N):
    """ConvTranspose2d(k=4, s=2, p=1) weight (Cin, Cout, 4, 4) on an HxH input
    -> per-kh fused tap matrix A (4, H*Cin, 2H*Cout) and 0/1 row-upsample
    matrix P (4, 2H*N, H*N)."""
    Cin, Cout, K, _ = w.shape
    OH = 2 * H
    i_idx = jnp.arange(H)
    o_idx = jnp.arange(OH)
    k_idx = jnp.arange(K)
    # mask[iw, ow, kw] = [ow == 2*iw - 1 + kw]
    mask = (o_idx[None, :, None] == 2 * i_idx[:, None, None] - 1
            + k_idx[None, None, :]).astype(w.dtype)                  # (H, OH, K)
    # A[kh, iw*Cin+ci, ow*Cout+co] = sum_kw mask[iw,ow,kw] * w[ci,co,kh,kw]
    A = jnp.einsum('iok,cdhk->hicod', mask, w).reshape(K, H * Cin, OH * Cout)
    # P[kh, oh*N+n, ih*N+m] = [oh == 2*ih - 1 + kh] * [n == m]
    rmask = jnp.transpose(mask, (1, 0, 2))                            # (OH, H, K)
    eye_n = jnp.eye(N, dtype=w.dtype)
    P = jnp.einsum('ohk,nm->konhm', rmask, eye_n).reshape(K, OH * N, H * N)
    return A, P


def prepare_generator_params(weights, gammas, betas, batch):
    """Build all constant kernel operands (done once; weights already
    spectrally normalized).  Order matches _generator_kernel's signature."""
    N = batch
    f32 = jnp.float32
    bf16 = jnp.bfloat16

    # Layer 1: ConvT(nz, C1, 4, 1, 0) on a 1x1 input (oh = kh, ow = kw).
    w1 = weights[0]
    nz, C1 = w1.shape[0], w1.shape[1]
    A1 = jnp.transpose(w1, (2, 0, 3, 1)).reshape(4, nz, 4 * C1).astype(bf16)
    P1 = (jnp.eye(4, dtype=f32)[:, :, None, None]
          * jnp.eye(N, dtype=f32)[None, None, :, :]).reshape(4, 4 * N, N)
    params = [A1, P1]

    spatial = 4                      # output spatial of conv1
    for i in range(1, 5):
        w = weights[i]
        c_prev = w.shape[0]          # channels of previous conv output
        # BatchNorm selector / expander for the previous conv output.
        S = jnp.tile(jnp.eye(c_prev, dtype=f32), (spatial, 1))        # (OW*C, C)
        params += [S, S.T,
                   gammas[i - 1].reshape(1, c_prev).astype(f32),
                   betas[i - 1].reshape(1, c_prev).astype(f32)]
        # Next stride-2 ConvT.
        A, P = _build_upsample_mats(w, spatial, N)
        params += [A.astype(bf16), P.astype(f32)]
        spatial *= 2
    return tuple(params)


# ----------------------------------------------------------------------------
# Parameter construction (deterministic, in-script)
# ----------------------------------------------------------------------------
def orthogonal_init(key, shape):
    """Matches torch.nn.init.orthogonal_: flatten to (shape[0], prod(rest))."""
    rows = shape[0]
    cols = int(math.prod(shape[1:]))
    a = jax.random.normal(key, (max(rows, cols), min(rows, cols)), jnp.float32)
    q, r = jnp.linalg.qr(a)
    q = q * jnp.sign(jnp.diagonal(r))
    if rows < cols:
        q = q.T
    return q.reshape(shape)


def spectral_norm(w, key, n_iter=1):
    """SpectralNorm forward: 1 power iteration on w.view(shape[0], -1), w/sigma."""
    h = w.shape[0]
    w2 = w.reshape(h, -1)
    u = jax.random.normal(key, (h,), jnp.float32)
    u = u / (jnp.linalg.norm(u) + 1e-12)
    v = None
    for _ in range(n_iter):
        v = w2.T @ u
        v = v / (jnp.linalg.norm(v) + 1e-12)
        u = w2 @ v
        u = u / (jnp.linalg.norm(u) + 1e-12)
    sigma = u @ (w2 @ v)
    return w / sigma


# ----------------------------------------------------------------------------
if __name__ == "__main__":
    key = jax.random.PRNGKey(0)
    nz, nc, ngf, image_size = 16, 3, 8, 64
    batch = 2

    chans = [nz, ngf * 8, ngf * 4, ngf * 2, ngf, nc]
    keys = jax.random.split(key, 11)

    weights = []
    for i in range(5):
        w = orthogonal_init(keys[i], (chans[i], chans[i + 1], 4, 4))
        weights.append(spectral_norm(w, keys[5 + i]))

    # BatchNorm2d default affine params (gamma=1, beta=0)
    gammas = [jnp.ones((chans[i + 1],), jnp.float32) for i in range(4)]
    betas = [jnp.zeros((chans[i + 1],), jnp.float32) for i in range(4)]

    z = jax.random.normal(keys[10], (batch, nz, 1, 1), jnp.float32)

    # One-time parameter preparation (spectral norm done above, constant
    # matrices here) -- not part of the per-forward hot path.
    params = prepare_generator_params(weights, gammas, betas, batch)

    fwd = jax.jit(generator_forward)
    out = jax.block_until_ready(fwd(z, params))

    assert out.shape == (batch, nc, image_size, image_size), out.shape
    assert bool(jnp.all(jnp.isfinite(out)))
    assert bool(jnp.all(jnp.abs(out) <= 1.0 + 1e-6))  # tanh range
    print("KERNEL_OK")
</pallas_src>

<mosaic_0001>
module attributes {stable_mosaic.version = 11 : i64} {
  func.func @_generator_kernel(%arg0: i32, %arg1: memref<2x16xbf16, #tpu.memory_space<vmem>>, %arg2: memref<4x16x256xbf16, #tpu.memory_space<vmem>>, %arg3: memref<4x8x2xf32, #tpu.memory_space<vmem>>, %arg4: memref<256x64xf32, #tpu.memory_space<vmem>>, %arg5: memref<64x256xf32, #tpu.memory_space<vmem>>, %arg6: memref<1x64xf32, #tpu.memory_space<vmem>>, %arg7: memref<1x64xf32, #tpu.memory_space<vmem>>, %arg8: memref<4x256x256xbf16, #tpu.memory_space<vmem>>, %arg9: memref<4x16x8xf32, #tpu.memory_space<vmem>>, %arg10: memref<256x32xf32, #tpu.memory_space<vmem>>, %arg11: memref<32x256xf32, #tpu.memory_space<vmem>>, %arg12: memref<1x32xf32, #tpu.memory_space<vmem>>, %arg13: memref<1x32xf32, #tpu.memory_space<vmem>>, %arg14: memref<4x256x256xbf16, #tpu.memory_space<vmem>>, %arg15: memref<4x32x16xf32, #tpu.memory_space<vmem>>, %arg16: memref<256x16xf32, #tpu.memory_space<vmem>>, %arg17: memref<16x256xf32, #tpu.memory_space<vmem>>, %arg18: memref<1x16xf32, #tpu.memory_space<vmem>>, %arg19: memref<1x16xf32, #tpu.memory_space<vmem>>, %arg20: memref<4x256x256xbf16, #tpu.memory_space<vmem>>, %arg21: memref<4x64x32xf32, #tpu.memory_space<vmem>>, %arg22: memref<256x8xf32, #tpu.memory_space<vmem>>, %arg23: memref<8x256xf32, #tpu.memory_space<vmem>>, %arg24: memref<1x8xf32, #tpu.memory_space<vmem>>, %arg25: memref<1x8xf32, #tpu.memory_space<vmem>>, %arg26: memref<4x256x192xbf16, #tpu.memory_space<vmem>>, %arg27: memref<4x128x64xf32, #tpu.memory_space<vmem>>, %arg28: memref<128x192xf32, #tpu.memory_space<vmem>>) attributes {dimension_semantics = [#tpu.dimension_semantics<arbitrary>], iteration_bounds = array<i64: 1>, scalar_prefetch = 0 : i64, scratch_operands = 0 : i64, tpu.core_type = #tpu.core_type<tc>, window_params = [{pipeline_mode = #tpu.pipeline_mode<synchronous>, transform_indices = @transform_0, window_bounds = array<i64: 2, 16>}, {pipeline_mode = #tpu.pipeline_mode<synchronous>, transform_indices = @transform_1, window_bounds = array<i64: 4, 16, 256>}, {pipeline_mode = #tpu.pipeline_mode<synchronous>, transform_indices = @transform_2, window_bounds = array<i64: 4, 8, 2>}, {pipeline_mode = #tpu.pipeline_mode<synchronous>, transform_indices = @transform_3, window_bounds = array<i64: 256, 64>}, {pipeline_mode = #tpu.pipeline_mode<synchronous>, transform_indices = @transform_4, window_bounds = array<i64: 64, 256>}, {pipeline_mode = #tpu.pipeline_mode<synchronous>, transform_indices = @transform_5, window_bounds = array<i64: 1, 64>}, {pipeline_mode = #tpu.pipeline_mode<synchronous>, transform_indices = @transform_6, window_bounds = array<i64: 1, 64>}, {pipeline_mode = #tpu.pipeline_mode<synchronous>, transform_indices = @transform_7, window_bounds = array<i64: 4, 256, 256>}, {pipeline_mode = #tpu.pipeline_mode<synchronous>, transform_indices = @transform_8, window_bounds = array<i64: 4, 16, 8>}, {pipeline_mode = #tpu.pipeline_mode<synchronous>, transform_indices = @transform_9, window_bounds = array<i64: 256, 32>}, {pipeline_mode = #tpu.pipeline_mode<synchronous>, transform_indices = @transform_10, window_bounds = array<i64: 32, 256>}, {pipeline_mode = #tpu.pipeline_mode<synchronous>, transform_indices = @transform_11, window_bounds = array<i64: 1, 32>}, {pipeline_mode = #tpu.pipeline_mode<synchronous>, transform_indices = @transform_12, window_bounds = array<i64: 1, 32>}, {pipeline_mode = #tpu.pipeline_mode<synchronous>, transform_indices = @transform_13, window_bounds = array<i64: 4, 256, 256>}, {pipeline_mode = #tpu.pipeline_mode<synchronous>, transform_indices = @transform_14, window_bounds = array<i64: 4, 32, 16>}, {pipeline_mode = #tpu.pipeline_mode<synchronous>, transform_indices = @transform_15, window_bounds = array<i64: 256, 16>}, {pipeline_mode = #tpu.pipeline_mode<synchronous>, transform_indices = @transform_16, window_bounds = array<i64: 16, 256>}, {pipeline_mode = #tpu.pipeline_mode<synchronous>, transform_indices = @transform_17, window_bounds = array<i64: 1, 16>}, {pipeline_mode = #tpu.pipeline_mode<synchronous>, transform_indices = @transform_18, window_bounds = array<i64: 1, 16>}, {pipeline_mode = #tpu.pipeline_mode<synchronous>, transform_indices = @transform_19, window_bounds = array<i64: 4, 256, 256>}, {pipeline_mode = #tpu.pipeline_mode<synchronous>, transform_indices = @transform_20, window_bounds = array<i64: 4, 64, 32>}, {pipeline_mode = #tpu.pipeline_mode<synchronous>, transform_indices = @transform_21, window_bounds = array<i64: 256, 8>}, {pipeline_mode = #tpu.pipeline_mode<synchronous>, transform_indices = @transform_22, window_bounds = array<i64: 8, 256>}, {pipeline_mode = #tpu.pipeline_mode<synchronous>, transform_indices = @transform_23, window_bounds = array<i64: 1, 8>}, {pipeline_mode = #tpu.pipeline_mode<synchronous>, transform_indices = @transform_24, window_bounds = array<i64: 1, 8>}, {pipeline_mode = #tpu.pipeline_mode<synchronous>, transform_indices = @transform_25, window_bounds = array<i64: 4, 256, 192>}, {pipeline_mode = #tpu.pipeline_mode<synchronous>, transform_indices = @transform_26, window_bounds = array<i64: 4, 128, 64>}, {pipeline_mode = #tpu.pipeline_mode<synchronous>, transform_indices = @transform_27, window_bounds = array<i64: 128, 192>}]} {
    %c0 = arith.constant 0 : index
    %c0_0 = arith.constant 0 : index
    %0 = vector.load %arg1[%c0, %c0_0] : memref<2x16xbf16, #tpu.memory_space<vmem>>, vector<2x16xbf16>
    %c0_1 = arith.constant 0 : index
    %c0_2 = arith.constant 0 : index
    %c0_3 = arith.constant 0 : index
    %1 = vector.load %arg2[%c0_1, %c0_2, %c0_3] : memref<4x16x256xbf16, #tpu.memory_space<vmem>>, vector<1x16x256xbf16>
    %2 = vector.shape_cast %1 : vector<1x16x256xbf16> to vector<16x256xbf16>
    %cst = arith.constant dense<0.000000e+00> : vector<2x256xf32>
    %3 = tpu.matmul %0, %2, %cst {dimension_numbers = #tpu.dot_dimension_numbers<[1], [0], [0], [1], [0, 0, 1, 1], [], []>} : vector<2x16xbf16>, vector<16x256xbf16>, vector<2x256xf32> -> vector<2x256xf32>
    %c0_4 = arith.constant 0 : index
    %c0_5 = arith.constant 0 : index
    %c0_6 = arith.constant 0 : index
    %4 = vector.load %arg3[%c0_4, %c0_5, %c0_6] : memref<4x8x2xf32, #tpu.memory_space<vmem>>, vector<1x8x2xf32>
    %5 = vector.shape_cast %4 : vector<1x8x2xf32> to vector<8x2xf32>
    %cst_7 = arith.constant dense<0.000000e+00> : vector<8x256xf32>
    %6 = tpu.matmul %5, %3, %cst_7 {dimension_numbers = #tpu.dot_dimension_numbers<[1], [0], [0], [1], [0, 0, 1, 1], [], []>} : vector<8x2xf32>, vector<2x256xf32>, vector<8x256xf32> -> vector<8x256xf32>
    %c1 = arith.constant 1 : index
    %c0_8 = arith.constant 0 : index
    %c0_9 = arith.constant 0 : index
    %7 = vector.load %arg2[%c1, %c0_8, %c0_9] : memref<4x16x256xbf16, #tpu.memory_space<vmem>>, vector<1x16x256xbf16>
    %8 = vector.shape_cast %7 : vector<1x16x256xbf16> to vector<16x256xbf16>
    %cst_10 = arith.constant dense<0.000000e+00> : vector<2x256xf32>
    %9 = tpu.matmul %0, %8, %cst_10 {dimension_numbers = #tpu.dot_dimension_numbers<[1], [0], [0], [1], [0, 0, 1, 1], [], []>} : vector<2x16xbf16>, vector<16x256xbf16>, vector<2x256xf32> -> vector<2x256xf32>
    %c1_11 = arith.constant 1 : index
    %c0_12 = arith.constant 0 : index
    %c0_13 = arith.constant 0 : index
    %10 = vector.load %arg3[%c1_11, %c0_12, %c0_13] : memref<4x8x2xf32, #tpu.memory_space<vmem>>, vector<1x8x2xf32>
    %11 = vector.shape_cast %10 : vector<1x8x2xf32> to vector<8x2xf32>
    %cst_14 = arith.constant dense<0.000000e+00> : vector<8x256xf32>
    %12 = tpu.matmul %11, %9, %cst_14 {dimension_numbers = #tpu.dot_dimension_numbers<[1], [0], [0], [1], [0, 0, 1, 1], [], []>} : vector<8x2xf32>, vector<2x256xf32>, vector<8x256xf32> -> vector<8x256xf32>
    %13 = arith.addf %6, %12 : vector<8x256xf32>
    %c2 = arith.constant 2 : index
    %c0_15 = arith.constant 0 : index
    %c0_16 = arith.constant 0 : index
    %14 = vector.load %arg2[%c2, %c0_15, %c0_16] : memref<4x16x256xbf16, #tpu.memory_space<vmem>>, vector<1x16x256xbf16>
    %15 = vector.shape_cast %14 : vector<1x16x256xbf16> to vector<16x256xbf16>
    %cst_17 = arith.constant dense<0.000000e+00> : vector<2x256xf32>
    %16 = tpu.matmul %0, %15, %cst_17 {dimension_numbers = #tpu.dot_dimension_numbers<[1], [0], [0], [1], [0, 0, 1, 1], [], []>} : vector<2x16xbf16>, vector<16x256xbf16>, vector<2x256xf32> -> vector<2x256xf32>
    %c2_18 = arith.constant 2 : index
    %c0_19 = arith.constant 0 : index
    %c0_20 = arith.constant 0 : index
    %17 = vector.load %arg3[%c2_18, %c0_19, %c0_20] : memref<4x8x2xf32, #tpu.memory_space<vmem>>, vector<1x8x2xf32>
    %18 = vector.shape_cast %17 : vector<1x8x2xf32> to vector<8x2xf32>
    %cst_21 = arith.constant dense<0.000000e+00> : vector<8x256xf32>
    %19 = tpu.matmul %18, %16, %cst_21 {dimension_numbers = #tpu.dot_dimension_numbers<[1], [0], [0], [1], [0, 0, 1, 1], [], []>} : vector<8x2xf32>, vector<2x256xf32>, vector<8x256xf32> -> vector<8x256xf32>
    %20 = arith.addf %13, %19 : vector<8x256xf32>
    %c3 = arith.constant 3 : index
    %c0_22 = arith.constant 0 : index
    %c0_23 = arith.constant 0 : index
    %21 = vector.load %arg2[%c3, %c0_22, %c0_23] : memref<4x16x256xbf16, #tpu.memory_space<vmem>>, vector<1x16x256xbf16>
    %22 = vector.shape_cast %21 : vector<1x16x256xbf16> to vector<16x256xbf16>
    %cst_24 = arith.constant dense<0.000000e+00> : vector<2x256xf32>
    %23 = tpu.matmul %0, %22, %cst_24 {dimension_numbers = #tpu.dot_dimension_numbers<[1], [0], [0], [1], [0, 0, 1, 1], [], []>} : vector<2x16xbf16>, vector<16x256xbf16>, vector<2x256xf32> -> vector<2x256xf32>
    %c3_25 = arith.constant 3 : index
    %c0_26 = arith.constant 0 : index
    %c0_27 = arith.constant 0 : index
    %24 = vector.load %arg3[%c3_25, %c0_26, %c0_27] : memref<4x8x2xf32, #tpu.memory_space<vmem>>, vector<1x8x2xf32>
    %25 = vector.shape_cast %24 : vector<1x8x2xf32> to vector<8x2xf32>
    %cst_28 = arith.constant dense<0.000000e+00> : vector<8x256xf32>
    %26 = tpu.matmul %25, %23, %cst_28 {dimension_numbers = #tpu.dot_dimension_numbers<[1], [0], [0], [1], [0, 0, 1, 1], [], []>} : vector<8x2xf32>, vector<2x256xf32>, vector<8x256xf32> -> vector<8x256xf32>
    %27 = arith.addf %20, %26 : vector<8x256xf32>
    %c0_29 = arith.constant 0 : index
    %c0_30 = arith.constant 0 : index
    %28 = vector.load %arg4[%c0_29, %c0_30] : memref<256x64xf32, #tpu.memory_space<vmem>>, vector<256x64xf32>
    %c0_31 = arith.constant 0 : index
    %c0_32 = arith.constant 0 : index
    %29 = vector.load %arg5[%c0_31, %c0_32] : memref<64x256xf32, #tpu.memory_space<vmem>>, vector<64x256xf32>
    %cst_33 = arith.constant dense<0.000000e+00> : vector<256xf32>
    %30 = vector.multi_reduction <add>, %27, %cst_33 [0] : vector<8x256xf32> to vector<256xf32>
    %31 = vector.shape_cast %30 : vector<256xf32> to vector<1x256xf32>
    %32 = arith.mulf %27, %27 : vector<8x256xf32>
    %cst_34 = arith.constant dense<0.000000e+00> : vector<256xf32>
    %33 = vector.multi_reduction <add>, %32, %cst_34 [0] : vector<8x256xf32> to vector<256xf32>
    %34 = vector.shape_cast %33 : vector<256xf32> to vector<1x256xf32>
    %cst_35 = arith.constant dense<0.000000e+00> : vector<1x64xf32>
    %35 = tpu.matmul %31, %28, %cst_35 {dimension_numbers = #tpu.dot_dimension_numbers<[1], [0], [0], [1], [0, 0, 1, 1], [], []>} : vector<1x256xf32>, vector<256x64xf32>, vector<1x64xf32> -> vector<1x64xf32>
    %cst_36 = arith.constant dense<0.000000e+00> : vector<1x64xf32>
    %36 = tpu.matmul %34, %28, %cst_36 {dimension_numbers = #tpu.dot_dimension_numbers<[1], [0], [0], [1], [0, 0, 1, 1], [], []>} : vector<1x256xf32>, vector<256x64xf32>, vector<1x64xf32> -> vector<1x64xf32>
    %cst_37 = arith.constant 3.200000e+01 : f32
    %37 = vector.broadcast %cst_37 : f32 to vector<1x64xf32>
    %38 = arith.divf %35, %37 : vector<1x64xf32>
    %cst_38 = arith.constant 3.200000e+01 : f32
    %39 = vector.broadcast %cst_38 : f32 to vector<1x64xf32>
    %40 = arith.divf %36, %39 : vector<1x64xf32>
    %41 = arith.mulf %38, %38 : vector<1x64xf32>
    %42 = arith.subf %40, %41 : vector<1x64xf32>
    %c0_39 = arith.constant 0 : index
    %c0_40 = arith.constant 0 : index
    %43 = vector.load %arg6[%c0_39, %c0_40] : memref<1x64xf32, #tpu.memory_space<vmem>>, vector<1x64xf32>
    %cst_41 = arith.constant 9.99999974E-6 : f32
    %44 = vector.broadcast %cst_41 : f32 to vector<1x64xf32>
    %45 = arith.addf %42, %44 : vector<1x64xf32>
    %46 = math.rsqrt %45 : vector<1x64xf32>
    %47 = arith.mulf %43, %46 : vector<1x64xf32>
    %c0_42 = arith.constant 0 : index
    %c0_43 = arith.constant 0 : index
    %48 = vector.load %arg7[%c0_42, %c0_43] : memref<1x64xf32, #tpu.memory_space<vmem>>, vector<1x64xf32>
    %49 = arith.mulf %38, %47 : vector<1x64xf32>
    %50 = arith.subf %48, %49 : vector<1x64xf32>
    %cst_44 = arith.constant dense<0.000000e+00> : vector<1x256xf32>
    %51 = tpu.matmul %47, %29, %cst_44 {dimension_numbers = #tpu.dot_dimension_numbers<[1], [0], [0], [1], [0, 0, 1, 1], [], []>} : vector<1x64xf32>, vector<64x256xf32>, vector<1x256xf32> -> vector<1x256xf32>
    %cst_45 = arith.constant dense<0.000000e+00> : vector<1x256xf32>
    %52 = tpu.matmul %50, %29, %cst_45 {dimension_numbers = #tpu.dot_dimension_numbers<[1], [0], [0], [1], [0, 0, 1, 1], [], []>} : vector<1x64xf32>, vector<64x256xf32>, vector<1x256xf32> -> vector<1x256xf32>
    %53 = vector.broadcast %51 : vector<1x256xf32> to vector<8x256xf32>
    %54 = arith.mulf %27, %53 : vector<8x256xf32>
    %55 = vector.broadcast %52 : vector<1x256xf32> to vector<8x256xf32>
    %56 = arith.addf %54, %55 : vector<8x256xf32>
    %cst_46 = arith.constant 0.000000e+00 : f32
    %57 = vector.broadcast %cst_46 : f32 to vector<8x256xf32>
    %58 = arith.maximumf %56, %57 : vector<8x256xf32>
    %59 = arith.truncf %58 : vector<8x256xf32> to vector<8x256xbf16>
    %c0_47 = arith.constant 0 : index
    %c0_48 = arith.constant 0 : index
    %c0_49 = arith.constant 0 : index
    %60 = vector.load %arg8[%c0_47, %c0_48, %c0_49] : memref<4x256x256xbf16, #tpu.memory_space<vmem>>, vector<1x256x256xbf16>
    %61 = vector.shape_cast %60 : vector<1x256x256xbf16> to vector<256x256xbf16>
    %cst_50 = arith.constant dense<0.000000e+00> : vector<8x256xf32>
    %62 = tpu.matmul %59, %61, %cst_50 {dimension_numbers = #tpu.dot_dimension_numbers<[1], [0], [0], [1], [0, 0, 1, 1], [], []>} : vector<8x256xbf16>, vector<256x256xbf16>, vector<8x256xf32> -> vector<8x256xf32>
    %c0_51 = arith.constant 0 : index
    %c0_52 = arith.constant 0 : index
    %c0_53 = arith.constant 0 : index
    %63 = vector.load %arg9[%c0_51, %c0_52, %c0_53] : memref<4x16x8xf32, #tpu.memory_space<vmem>>, vector<1x16x8xf32>
    %64 = vector.shape_cast %63 : vector<1x16x8xf32> to vector<16x8xf32>
    %cst_54 = arith.constant dense<0.000000e+00> : vector<16x256xf32>
    %65 = tpu.matmul %64, %62, %cst_54 {dimension_numbers = #tpu.dot_dimension_numbers<[1], [0], [0], [1], [0, 0, 1, 1], [], []>} : vector<16x8xf32>, vector<8x256xf32>, vector<16x256xf32> -> vector<16x256xf32>
    %c1_55 = arith.constant 1 : index
    %c0_56 = arith.constant 0 : index
    %c0_57 = arith.constant 0 : index
    %66 = vector.load %arg8[%c1_55, %c0_56, %c0_57] : memref<4x256x256xbf16, #tpu.memory_space<vmem>>, vector<1x256x256xbf16>
    %67 = vector.shape_cast %66 : vector<1x256x256xbf16> to vector<256x256xbf16>
    %cst_58 = arith.constant dense<0.000000e+00> : vector<8x256xf32>
    %68 = tpu.matmul %59, %67, %cst_58 {dimension_numbers = #tpu.dot_dimension_numbers<[1], [0], [0], [1], [0, 0, 1, 1], [], []>} : vector<8x256xbf16>, vector<256x256xbf16>, vector<8x256xf32> -> vector<8x256xf32>
    %c1_59 = arith.constant 1 : index
    %c0_60 = arith.constant 0 : index
    %c0_61 = arith.constant 0 : index
    %69 = vector.load %arg9[%c1_59, %c0_60, %c0_61] : memref<4x16x8xf32, #tpu.memory_space<vmem>>, vector<1x16x8xf32>
    %70 = vector.shape_cast %69 : vector<1x16x8xf32> to vector<16x8xf32>
    %cst_62 = arith.constant dense<0.000000e+00> : vector<16x256xf32>
    %71 = tpu.matmul %70, %68, %cst_62 {dimension_numbers = #tpu.dot_dimension_numbers<[1], [0], [0], [1], [0, 0, 1, 1], [], []>} : vector<16x8xf32>, vector<8x256xf32>, vector<16x256xf32> -> vector<16x256xf32>
    %72 = arith.addf %65, %71 : vector<16x256xf32>
    %c2_63 = arith.constant 2 : index
    %c0_64 = arith.constant 0 : index
    %c0_65 = arith.constant 0 : index
    %73 = vector.load %arg8[%c2_63, %c0_64, %c0_65] : memref<4x256x256xbf16, #tpu.memory_space<vmem>>, vector<1x256x256xbf16>
    %74 = vector.shape_cast %73 : vector<1x256x256xbf16> to vector<256x256xbf16>
    %cst_66 = arith.constant dense<0.000000e+00> : vector<8x256xf32>
    %75 = tpu.matmul %59, %74, %cst_66 {dimension_numbers = #tpu.dot_dimension_numbers<[1], [0], [0], [1], [0, 0, 1, 1], [], []>} : vector<8x256xbf16>, vector<256x256xbf16>, vector<8x256xf32> -> vector<8x256xf32>
    %c2_67 = arith.constant 2 : index
    %c0_68 = arith.constant 0 : index
    %c0_69 = arith.constant 0 : index
    %76 = vector.load %arg9[%c2_67, %c0_68, %c0_69] : memref<4x16x8xf32, #tpu.memory_space<vmem>>, vector<1x16x8xf32>
    %77 = vector.shape_cast %76 : vector<1x16x8xf32> to vector<16x8xf32>
    %cst_70 = arith.constant dense<0.000000e+00> : vector<16x256xf32>
    %78 = tpu.matmul %77, %75, %cst_70 {dimension_numbers = #tpu.dot_dimension_numbers<[1], [0], [0], [1], [0, 0, 1, 1], [], []>} : vector<16x8xf32>, vector<8x256xf32>, vector<16x256xf32> -> vector<16x256xf32>
    %79 = arith.addf %72, %78 : vector<16x256xf32>
    %c3_71 = arith.constant 3 : index
    %c0_72 = arith.constant 0 : index
    %c0_73 = arith.constant 0 : index
    %80 = vector.load %arg8[%c3_71, %c0_72, %c0_73] : memref<4x256x256xbf16, #tpu.memory_space<vmem>>, vector<1x256x256xbf16>
    %81 = vector.shape_cast %80 : vector<1x256x256xbf16> to vector<256x256xbf16>
    %cst_74 = arith.constant dense<0.000000e+00> : vector<8x256xf32>
    %82 = tpu.matmul %59, %81, %cst_74 {dimension_numbers = #tpu.dot_dimension_numbers<[1], [0], [0], [1], [0, 0, 1, 1], [], []>} : vector<8x256xbf16>, vector<256x256xbf16>, vector<8x256xf32> -> vector<8x256xf32>
    %c3_75 = arith.constant 3 : index
    %c0_76 = arith.constant 0 : index
    %c0_77 = arith.constant 0 : index
    %83 = vector.load %arg9[%c3_75, %c0_76, %c0_77] : memref<4x16x8xf32, #tpu.memory_space<vmem>>, vector<1x16x8xf32>
    %84 = vector.shape_cast %83 : vector<1x16x8xf32> to vector<16x8xf32>
    %cst_78 = arith.constant dense<0.000000e+00> : vector<16x256xf32>
    %85 = tpu.matmul %84, %82, %cst_78 {dimension_numbers = #tpu.dot_dimension_numbers<[1], [0], [0], [1], [0, 0, 1, 1], [], []>} : vector<16x8xf32>, vector<8x256xf32>, vector<16x256xf32> -> vector<16x256xf32>
    %86 = arith.addf %79, %85 : vector<16x256xf32>
    %c0_79 = arith.constant 0 : index
    %c0_80 = arith.constant 0 : index
    %87 = vector.load %arg10[%c0_79, %c0_80] : memref<256x32xf32, #tpu.memory_space<vmem>>, vector<256x32xf32>
    %c0_81 = arith.constant 0 : index
    %c0_82 = arith.constant 0 : index
    %88 = vector.load %arg11[%c0_81, %c0_82] : memref<32x256xf32, #tpu.memory_space<vmem>>, vector<32x256xf32>
    %cst_83 = arith.constant dense<0.000000e+00> : vector<256xf32>
    %89 = vector.multi_reduction <add>, %86, %cst_83 [0] : vector<16x256xf32> to vector<256xf32>
    %90 = vector.shape_cast %89 : vector<256xf32> to vector<1x256xf32>
    %91 = arith.mulf %86, %86 : vector<16x256xf32>
    %cst_84 = arith.constant dense<0.000000e+00> : vector<256xf32>
    %92 = vector.multi_reduction <add>, %91, %cst_84 [0] : vector<16x256xf32> to vector<256xf32>
    %93 = vector.shape_cast %92 : vector<256xf32> to vector<1x256xf32>
    %cst_85 = arith.constant dense<0.000000e+00> : vector<1x32xf32>
    %94 = tpu.matmul %90, %87, %cst_85 {dimension_numbers = #tpu.dot_dimension_numbers<[1], [0], [0], [1], [0, 0, 1, 1], [], []>} : vector<1x256xf32>, vector<256x32xf32>, vector<1x32xf32> -> vector<1x32xf32>
    %cst_86 = arith.constant dense<0.000000e+00> : vector<1x32xf32>
    %95 = tpu.matmul %93, %87, %cst_86 {dimension_numbers = #tpu.dot_dimension_numbers<[1], [0], [0], [1], [0, 0, 1, 1], [], []>} : vector<1x256xf32>, vector<256x32xf32>, vector<1x32xf32> -> vector<1x32xf32>
    %cst_87 = arith.constant 1.280000e+02 : f32
    %96 = vector.broadcast %cst_87 : f32 to vector<1x32xf32>
    %97 = arith.divf %94, %96 : vector<1x32xf32>
    %cst_88 = arith.constant 1.280000e+02 : f32
    %98 = vector.broadcast %cst_88 : f32 to vector<1x32xf32>
    %99 = arith.divf %95, %98 : vector<1x32xf32>
    %100 = arith.mulf %97, %97 : vector<1x32xf32>
    %101 = arith.subf %99, %100 : vector<1x32xf32>
    %c0_89 = arith.constant 0 : index
    %c0_90 = arith.constant 0 : index
    %102 = vector.load %arg12[%c0_89, %c0_90] : memref<1x32xf32, #tpu.memory_space<vmem>>, vector<1x32xf32>
    %cst_91 = arith.constant 9.99999974E-6 : f32
    %103 = vector.broadcast %cst_91 : f32 to vector<1x32xf32>
    %104 = arith.addf %101, %103 : vector<1x32xf32>
    %105 = math.rsqrt %104 : vector<1x32xf32>
    %106 = arith.mulf %102, %105 : vector<1x32xf32>
    %c0_92 = arith.constant 0 : index
    %c0_93 = arith.constant 0 : index
    %107 = vector.load %arg13[%c0_92, %c0_93] : memref<1x32xf32, #tpu.memory_space<vmem>>, vector<1x32xf32>
    %108 = arith.mulf %97, %106 : vector<1x32xf32>
    %109 = arith.subf %107, %108 : vector<1x32xf32>
    %cst_94 = arith.constant dense<0.000000e+00> : vector<1x256xf32>
    %110 = tpu.matmul %106, %88, %cst_94 {dimension_numbers = #tpu.dot_dimension_numbers<[1], [0], [0], [1], [0, 0, 1, 1], [], []>} : vector<1x32xf32>, vector<32x256xf32>, vector<1x256xf32> -> vector<1x256xf32>
    %cst_95 = arith.constant dense<0.000000e+00> : vector<1x256xf32>
    %111 = tpu.matmul %109, %88, %cst_95 {dimension_numbers = #tpu.dot_dimension_numbers<[1], [0], [0], [1], [0, 0, 1, 1], [], []>} : vector<1x32xf32>, vector<32x256xf32>, vector<1x256xf32> -> vector<1x256xf32>
    %112 = vector.broadcast %110 : vector<1x256xf32> to vector<16x256xf32>
    %113 = arith.mulf %86, %112 : vector<16x256xf32>
    %114 = vector.broadcast %111 : vector<1x256xf32> to vector<16x256xf32>
    %115 = arith.addf %113, %114 : vector<16x256xf32>
    %cst_96 = arith.constant 0.000000e+00 : f32
    %116 = vector.broadcast %cst_96 : f32 to vector<16x256xf32>
    %117 = arith.maximumf %115, %116 : vector<16x256xf32>
    %118 = arith.truncf %117 : vector<16x256xf32> to vector<16x256xbf16>
    %c0_97 = arith.constant 0 : index
    %c0_98 = arith.constant 0 : index
    %c0_99 = arith.constant 0 : index
    %119 = vector.load %arg14[%c0_97, %c0_98, %c0_99] : memref<4x256x256xbf16, #tpu.memory_space<vmem>>, vector<1x256x256xbf16>
    %120 = vector.shape_cast %119 : vector<1x256x256xbf16> to vector<256x256xbf16>
    %cst_100 = arith.constant dense<0.000000e+00> : vector<16x256xf32>
    %121 = tpu.matmul %118, %120, %cst_100 {dimension_numbers = #tpu.dot_dimension_numbers<[1], [0], [0], [1], [0, 0, 1, 1], [], []>} : vector<16x256xbf16>, vector<256x256xbf16>, vector<16x256xf32> -> vector<16x256xf32>
    %c0_101 = arith.constant 0 : index
    %c0_102 = arith.constant 0 : index
    %c0_103 = arith.constant 0 : index
    %122 = vector.load %arg15[%c0_101, %c0_102, %c0_103] : memref<4x32x16xf32, #tpu.memory_space<vmem>>, vector<1x32x16xf32>
    %123 = vector.shape_cast %122 : vector<1x32x16xf32> to vector<32x16xf32>
    %cst_104 = arith.constant dense<0.000000e+00> : vector<32x256xf32>
    %124 = tpu.matmul %123, %121, %cst_104 {dimension_numbers = #tpu.dot_dimension_numbers<[1], [0], [0], [1], [0, 0, 1, 1], [], []>} : vector<32x16xf32>, vector<16x256xf32>, vector<32x256xf32> -> vector<32x256xf32>
    %c1_105 = arith.constant 1 : index
    %c0_106 = arith.constant 0 : index
    %c0_107 = arith.constant 0 : index
    %125 = vector.load %arg14[%c1_105, %c0_106, %c0_107] : memref<4x256x256xbf16, #tpu.memory_space<vmem>>, vector<1x256x256xbf16>
    %126 = vector.shape_cast %125 : vector<1x256x256xbf16> to vector<256x256xbf16>
    %cst_108 = arith.constant dense<0.000000e+00> : vector<16x256xf32>
    %127 = tpu.matmul %118, %126, %cst_108 {dimension_numbers = #tpu.dot_dimension_numbers<[1], [0], [0], [1], [0, 0, 1, 1], [], []>} : vector<16x256xbf16>, vector<256x256xbf16>, vector<16x256xf32> -> vector<16x256xf32>
    %c1_109 = arith.constant 1 : index
    %c0_110 = arith.constant 0 : index
    %c0_111 = arith.constant 0 : index
    %128 = vector.load %arg15[%c1_109, %c0_110, %c0_111] : memref<4x32x16xf32, #tpu.memory_space<vmem>>, vector<1x32x16xf32>
    %129 = vector.shape_cast %128 : vector<1x32x16xf32> to vector<32x16xf32>
    %cst_112 = arith.constant dense<0.000000e+00> : vector<32x256xf32>
    %130 = tpu.matmul %129, %127, %cst_112 {dimension_numbers = #tpu.dot_dimension_numbers<[1], [0], [0], [1], [0, 0, 1, 1], [], []>} : vector<32x16xf32>, vector<16x256xf32>, vector<32x256xf32> -> vector<32x256xf32>
    %131 = arith.addf %124, %130 : vector<32x256xf32>
    %c2_113 = arith.constant 2 : index
    %c0_114 = arith.constant 0 : index
    %c0_115 = arith.constant 0 : index
    %132 = vector.load %arg14[%c2_113, %c0_114, %c0_115] : memref<4x256x256xbf16, #tpu.memory_space<vmem>>, vector<1x256x256xbf16>
    %133 = vector.shape_cast %132 : vector<1x256x256xbf16> to vector<256x256xbf16>
    %cst_116 = arith.constant dense<0.000000e+00> : vector<16x256xf32>
    %134 = tpu.matmul %118, %133, %cst_116 {dimension_numbers = #tpu.dot_dimension_numbers<[1], [0], [0], [1], [0, 0, 1, 1], [], []>} : vector<16x256xbf16>, vector<256x256xbf16>, vector<16x256xf32> -> vector<16x256xf32>
    %c2_117 = arith.constant 2 : index
    %c0_118 = arith.constant 0 : index
    %c0_119 = arith.constant 0 : index
    %135 = vector.load %arg15[%c2_117, %c0_118, %c0_119] : memref<4x32x16xf32, #tpu.memory_space<vmem>>, vector<1x32x16xf32>
    %136 = vector.shape_cast %135 : vector<1x32x16xf32> to vector<32x16xf32>
    %cst_120 = arith.constant dense<0.000000e+00> : vector<32x256xf32>
    %137 = tpu.matmul %136, %134, %cst_120 {dimension_numbers = #tpu.dot_dimension_numbers<[1], [0], [0], [1], [0, 0, 1, 1], [], []>} : vector<32x16xf32>, vector<16x256xf32>, vector<32x256xf32> -> vector<32x256xf32>
    %138 = arith.addf %131, %137 : vector<32x256xf32>
    %c3_121 = arith.constant 3 : index
    %c0_122 = arith.constant 0 : index
    %c0_123 = arith.constant 0 : index
    %139 = vector.load %arg14[%c3_121, %c0_122, %c0_123] : memref<4x256x256xbf16, #tpu.memory_space<vmem>>, vector<1x256x256xbf16>
    %140 = vector.shape_cast %139 : vector<1x256x256xbf16> to vector<256x256xbf16>
    %cst_124 = arith.constant dense<0.000000e+00> : vector<16x256xf32>
    %141 = tpu.matmul %118, %140, %cst_124 {dimension_numbers = #tpu.dot_dimension_numbers<[1], [0], [0], [1], [0, 0, 1, 1], [], []>} : vector<16x256xbf16>, vector<256x256xbf16>, vector<16x256xf32> -> vector<16x256xf32>
    %c3_125 = arith.constant 3 : index
    %c0_126 = arith.constant 0 : index
    %c0_127 = arith.constant 0 : index
    %142 = vector.load %arg15[%c3_125, %c0_126, %c0_127] : memref<4x32x16xf32, #tpu.memory_space<vmem>>, vector<1x32x16xf32>
    %143 = vector.shape_cast %142 : vector<1x32x16xf32> to vector<32x16xf32>
    %cst_128 = arith.constant dense<0.000000e+00> : vector<32x256xf32>
    %144 = tpu.matmul %143, %141, %cst_128 {dimension_numbers = #tpu.dot_dimension_numbers<[1], [0], [0], [1], [0, 0, 1, 1], [], []>} : vector<32x16xf32>, vector<16x256xf32>, vector<32x256xf32> -> vector<32x256xf32>
    %145 = arith.addf %138, %144 : vector<32x256xf32>
    %c0_129 = arith.constant 0 : index
    %c0_130 = arith.constant 0 : index
    %146 = vector.load %arg16[%c0_129, %c0_130] : memref<256x16xf32, #tpu.memory_space<vmem>>, vector<256x16xf32>
    %c0_131 = arith.constant 0 : index
    %c0_132 = arith.constant 0 : index
    %147 = vector.load %arg17[%c0_131, %c0_132] : memref<16x256xf32, #tpu.memory_space<vmem>>, vector<16x256xf32>
    %cst_133 = arith.constant dense<0.000000e+00> : vector<256xf32>
    %148 = vector.multi_reduction <add>, %145, %cst_133 [0] : vector<32x256xf32> to vector<256xf32>
    %149 = vector.shape_cast %148 : vector<256xf32> to vector<1x256xf32>
    %150 = arith.mulf %145, %145 : vector<32x256xf32>
    %cst_134 = arith.constant dense<0.000000e+00> : vector<256xf32>
    %151 = vector.multi_reduction <add>, %150, %cst_134 [0] : vector<32x256xf32> to vector<256xf32>
    %152 = vector.shape_cast %151 : vector<256xf32> to vector<1x256xf32>
    %cst_135 = arith.constant dense<0.000000e+00> : vector<1x16xf32>
    %153 = tpu.matmul %149, %146, %cst_135 {dimension_numbers = #tpu.dot_dimension_numbers<[1], [0], [0], [1], [0, 0, 1, 1], [], []>} : vector<1x256xf32>, vector<256x16xf32>, vector<1x16xf32> -> vector<1x16xf32>
    %cst_136 = arith.constant dense<0.000000e+00> : vector<1x16xf32>
    %154 = tpu.matmul %152, %146, %cst_136 {dimension_numbers = #tpu.dot_dimension_numbers<[1], [0], [0], [1], [0, 0, 1, 1], [], []>} : vector<1x256xf32>, vector<256x16xf32>, vector<1x16xf32> -> vector<1x16xf32>
    %cst_137 = arith.constant 5.120000e+02 : f32
    %155 = vector.broadcast %cst_137 : f32 to vector<1x16xf32>
    %156 = arith.divf %153, %155 : vector<1x16xf32>
    %cst_138 = arith.constant 5.120000e+02 : f32
    %157 = vector.broadcast %cst_138 : f32 to vector<1x16xf32>
    %158 = arith.divf %154, %157 : vector<1x16xf32>
    %159 = arith.mulf %156, %156 : vector<1x16xf32>
    %160 = arith.subf %158, %159 : vector<1x16xf32>
    %c0_139 = arith.constant 0 : index
    %c0_140 = arith.constant 0 : index
    %161 = vector.load %arg18[%c0_139, %c0_140] : memref<1x16xf32, #tpu.memory_space<vmem>>, vector<1x16xf32>
    %cst_141 = arith.constant 9.99999974E-6 : f32
    %162 = vector.broadcast %cst_141 : f32 to vector<1x16xf32>
    %163 = arith.addf %160, %162 : vector<1x16xf32>
    %164 = math.rsqrt %163 : vector<1x16xf32>
    %165 = arith.mulf %161, %164 : vector<1x16xf32>
    %c0_142 = arith.constant 0 : index
    %c0_143 = arith.constant 0 : index
    %166 = vector.load %arg19[%c0_142, %c0_143] : memref<1x16xf32, #tpu.memory_space<vmem>>, vector<1x16xf32>
    %167 = arith.mulf %156, %165 : vector<1x16xf32>
    %168 = arith.subf %166, %167 : vector<1x16xf32>
    %cst_144 = arith.constant dense<0.000000e+00> : vector<1x256xf32>
    %169 = tpu.matmul %165, %147, %cst_144 {dimension_numbers = #tpu.dot_dimension_numbers<[1], [0], [0], [1], [0, 0, 1, 1], [], []>} : vector<1x16xf32>, vector<16x256xf32>, vector<1x256xf32> -> vector<1x256xf32>
    %cst_145 = arith.constant dense<0.000000e+00> : vector<1x256xf32>
    %170 = tpu.matmul %168, %147, %cst_145 {dimension_numbers = #tpu.dot_dimension_numbers<[1], [0], [0], [1], [0, 0, 1, 1], [], []>} : vector<1x16xf32>, vector<16x256xf32>, vector<1x256xf32> -> vector<1x256xf32>
    %171 = vector.broadcast %169 : vector<1x256xf32> to vector<32x256xf32>
    %172 = arith.mulf %145, %171 : vector<32x256xf32>
    %173 = vector.broadcast %170 : vector<1x256xf32> to vector<32x256xf32>
    %174 = arith.addf %172, %173 : vector<32x256xf32>
    %cst_146 = arith.constant 0.000000e+00 : f32
    %175 = vector.broadcast %cst_146 : f32 to vector<32x256xf32>
    %176 = arith.maximumf %174, %175 : vector<32x256xf32>
    %177 = arith.truncf %176 : vector<32x256xf32> to vector<32x256xbf16>
    %c0_147 = arith.constant 0 : index
    %c0_148 = arith.constant 0 : index
    %c0_149 = arith.constant 0 : index
    %178 = vector.load %arg20[%c0_147, %c0_148, %c0_149] : memref<4x256x256xbf16, #tpu.memory_space<vmem>>, vector<1x256x256xbf16>
    %179 = vector.shape_cast %178 : vector<1x256x256xbf16> to vector<256x256xbf16>
    %cst_150 = arith.constant dense<0.000000e+00> : vector<32x256xf32>
    %180 = tpu.matmul %177, %179, %cst_150 {dimension_numbers = #tpu.dot_dimension_numbers<[1], [0], [0], [1], [0, 0, 1, 1], [], []>} : vector<32x256xbf16>, vector<256x256xbf16>, vector<32x256xf32> -> vector<32x256xf32>
    %c0_151 = arith.constant 0 : index
    %c0_152 = arith.constant 0 : index
    %c0_153 = arith.constant 0 : index
    %181 = vector.load %arg21[%c0_151, %c0_152, %c0_153] : memref<4x64x32xf32, #tpu.memory_space<vmem>>, vector<1x64x32xf32>
    %182 = vector.shape_cast %181 : vector<1x64x32xf32> to vector<64x32xf32>
    %cst_154 = arith.constant dense<0.000000e+00> : vector<64x256xf32>
    %183 = tpu.matmul %182, %180, %cst_154 {dimension_numbers = #tpu.dot_dimension_numbers<[1], [0], [0], [1], [0, 0, 1, 1], [], []>} : vector<64x32xf32>, vector<32x256xf32>, vector<64x256xf32> -> vector<64x256xf32>
    %c1_155 = arith.constant 1 : index
    %c0_156 = arith.constant 0 : index
    %c0_157 = arith.constant 0 : index
    %184 = vector.load %arg20[%c1_155, %c0_156, %c0_157] : memref<4x256x256xbf16, #tpu.memory_space<vmem>>, vector<1x256x256xbf16>
    %185 = vector.shape_cast %184 : vector<1x256x256xbf16> to vector<256x256xbf16>
    %cst_158 = arith.constant dense<0.000000e+00> : vector<32x256xf32>
    %186 = tpu.matmul %177, %185, %cst_158 {dimension_numbers = #tpu.dot_dimension_numbers<[1], [0], [0], [1], [0, 0, 1, 1], [], []>} : vector<32x256xbf16>, vector<256x256xbf16>, vector<32x256xf32> -> vector<32x256xf32>
    %c1_159 = arith.constant 1 : index
    %c0_160 = arith.constant 0 : index
    %c0_161 = arith.constant 0 : index
    %187 = vector.load %arg21[%c1_159, %c0_160, %c0_161] : memref<4x64x32xf32, #tpu.memory_space<vmem>>, vector<1x64x32xf32>
    %188 = vector.shape_cast %187 : vector<1x64x32xf32> to vector<64x32xf32>
    %cst_162 = arith.constant dense<0.000000e+00> : vector<64x256xf32>
    %189 = tpu.matmul %188, %186, %cst_162 {dimension_numbers = #tpu.dot_dimension_numbers<[1], [0], [0], [1], [0, 0, 1, 1], [], []>} : vector<64x32xf32>, vector<32x256xf32>, vector<64x256xf32> -> vector<64x256xf32>
    %190 = arith.addf %183, %189 : vector<64x256xf32>
    %c2_163 = arith.constant 2 : index
    %c0_164 = arith.constant 0 : index
    %c0_165 = arith.constant 0 : index
    %191 = vector.load %arg20[%c2_163, %c0_164, %c0_165] : memref<4x256x256xbf16, #tpu.memory_space<vmem>>, vector<1x256x256xbf16>
    %192 = vector.shape_cast %191 : vector<1x256x256xbf16> to vector<256x256xbf16>
    %cst_166 = arith.constant dense<0.000000e+00> : vector<32x256xf32>
    %193 = tpu.matmul %177, %192, %cst_166 {dimension_numbers = #tpu.dot_dimension_numbers<[1], [0], [0], [1], [0, 0, 1, 1], [], []>} : vector<32x256xbf16>, vector<256x256xbf16>, vector<32x256xf32> -> vector<32x256xf32>
    %c2_167 = arith.constant 2 : index
    %c0_168 = arith.constant 0 : index
    %c0_169 = arith.constant 0 : index
    %194 = vector.load %arg21[%c2_167, %c0_168, %c0_169] : memref<4x64x32xf32, #tpu.memory_space<vmem>>, vector<1x64x32xf32>
    %195 = vector.shape_cast %194 : vector<1x64x32xf32> to vector<64x32xf32>
    %cst_170 = arith.constant dense<0.000000e+00> : vector<64x256xf32>
    %196 = tpu.matmul %195, %193, %cst_170 {dimension_numbers = #tpu.dot_dimension_numbers<[1], [0], [0], [1], [0, 0, 1, 1], [], []>} : vector<64x32xf32>, vector<32x256xf32>, vector<64x256xf32> -> vector<64x256xf32>
    %197 = arith.addf %190, %196 : vector<64x256xf32>
    %c3_171 = arith.constant 3 : index
    %c0_172 = arith.constant 0 : index
    %c0_173 = arith.constant 0 : index
    %198 = vector.load %arg20[%c3_171, %c0_172, %c0_173] : memref<4x256x256xbf16, #tpu.memory_space<vmem>>, vector<1x256x256xbf16>
    %199 = vector.shape_cast %198 : vector<1x256x256xbf16> to vector<256x256xbf16>
    %cst_174 = arith.constant dense<0.000000e+00> : vector<32x256xf32>
    %200 = tpu.matmul %177, %199, %cst_174 {dimension_numbers = #tpu.dot_dimension_numbers<[1], [0], [0], [1], [0, 0, 1, 1], [], []>} : vector<32x256xbf16>, vector<256x256xbf16>, vector<32x256xf32> -> vector<32x256xf32>
    %c3_175 = arith.constant 3 : index
    %c0_176 = arith.constant 0 : index
    %c0_177 = arith.constant 0 : index
    %201 = vector.load %arg21[%c3_175, %c0_176, %c0_177] : memref<4x64x32xf32, #tpu.memory_space<vmem>>, vector<1x64x32xf32>
    %202 = vector.shape_cast %201 : vector<1x64x32xf32> to vector<64x32xf32>
    %cst_178 = arith.constant dense<0.000000e+00> : vector<64x256xf32>
    %203 = tpu.matmul %202, %200, %cst_178 {dimension_numbers = #tpu.dot_dimension_numbers<[1], [0], [0], [1], [0, 0, 1, 1], [], []>} : vector<64x32xf32>, vector<32x256xf32>, vector<64x256xf32> -> vector<64x256xf32>
    %204 = arith.addf %197, %203 : vector<64x256xf32>
    %c0_179 = arith.constant 0 : index
    %c0_180 = arith.constant 0 : index
    %205 = vector.load %arg22[%c0_179, %c0_180] : memref<256x8xf32, #tpu.memory_space<vmem>>, vector<256x8xf32>
    %c0_181 = arith.constant 0 : index
    %c0_182 = arith.constant 0 : index
    %206 = vector.load %arg23[%c0_181, %c0_182] : memref<8x256xf32, #tpu.memory_space<vmem>>, vector<8x256xf32>
    %cst_183 = arith.constant dense<0.000000e+00> : vector<256xf32>
    %207 = vector.multi_reduction <add>, %204, %cst_183 [0] : vector<64x256xf32> to vector<256xf32>
    %208 = vector.shape_cast %207 : vector<256xf32> to vector<1x256xf32>
    %209 = arith.mulf %204, %204 : vector<64x256xf32>
    %cst_184 = arith.constant dense<0.000000e+00> : vector<256xf32>
    %210 = vector.multi_reduction <add>, %209, %cst_184 [0] : vector<64x256xf32> to vector<256xf32>
    %211 = vector.shape_cast %210 : vector<256xf32> to vector<1x256xf32>
    %cst_185 = arith.constant dense<0.000000e+00> : vector<1x8xf32>
    %212 = tpu.matmul %208, %205, %cst_185 {dimension_numbers = #tpu.dot_dimension_numbers<[1], [0], [0], [1], [0, 0, 1, 1], [], []>} : vector<1x256xf32>, vector<256x8xf32>, vector<1x8xf32> -> vector<1x8xf32>
    %cst_186 = arith.constant dense<0.000000e+00> : vector<1x8xf32>
    %213 = tpu.matmul %211, %205, %cst_186 {dimension_numbers = #tpu.dot_dimension_numbers<[1], [0], [0], [1], [0, 0, 1, 1], [], []>} : vector<1x256xf32>, vector<256x8xf32>, vector<1x8xf32> -> vector<1x8xf32>
    %cst_187 = arith.constant 2.048000e+03 : f32
    %214 = vector.broadcast %cst_187 : f32 to vector<1x8xf32>
    %215 = arith.divf %212, %214 : vector<1x8xf32>
    %cst_188 = arith.constant 2.048000e+03 : f32
    %216 = vector.broadcast %cst_188 : f32 to vector<1x8xf32>
    %217 = arith.divf %213, %216 : vector<1x8xf32>
    %218 = arith.mulf %215, %215 : vector<1x8xf32>
    %219 = arith.subf %217, %218 : vector<1x8xf32>
    %c0_189 = arith.constant 0 : index
    %c0_190 = arith.constant 0 : index
    %220 = vector.load %arg24[%c0_189, %c0_190] : memref<1x8xf32, #tpu.memory_space<vmem>>, vector<1x8xf32>
    %cst_191 = arith.constant 9.99999974E-6 : f32
    %221 = vector.broadcast %cst_191 : f32 to vector<1x8xf32>
    %222 = arith.addf %219, %221 : vector<1x8xf32>
    %223 = math.rsqrt %222 : vector<1x8xf32>
    %224 = arith.mulf %220, %223 : vector<1x8xf32>
    %c0_192 = arith.constant 0 : index
    %c0_193 = arith.constant 0 : index
    %225 = vector.load %arg25[%c0_192, %c0_193] : memref<1x8xf32, #tpu.memory_space<vmem>>, vector<1x8xf32>
    %226 = arith.mulf %215, %224 : vector<1x8xf32>
    %227 = arith.subf %225, %226 : vector<1x8xf32>
    %cst_194 = arith.constant dense<0.000000e+00> : vector<1x256xf32>
    %228 = tpu.matmul %224, %206, %cst_194 {dimension_numbers = #tpu.dot_dimension_numbers<[1], [0], [0], [1], [0, 0, 1, 1], [], []>} : vector<1x8xf32>, vector<8x256xf32>, vector<1x256xf32> -> vector<1x256xf32>
    %cst_195 = arith.constant dense<0.000000e+00> : vector<1x256xf32>
    %229 = tpu.matmul %227, %206, %cst_195 {dimension_numbers = #tpu.dot_dimension_numbers<[1], [0], [0], [1], [0, 0, 1, 1], [], []>} : vector<1x8xf32>, vector<8x256xf32>, vector<1x256xf32> -> vector<1x256xf32>
    %230 = vector.broadcast %228 : vector<1x256xf32> to vector<64x256xf32>
    %231 = arith.mulf %204, %230 : vector<64x256xf32>
    %232 = vector.broadcast %229 : vector<1x256xf32> to vector<64x256xf32>
    %233 = arith.addf %231, %232 : vector<64x256xf32>
    %cst_196 = arith.constant 0.000000e+00 : f32
    %234 = vector.broadcast %cst_196 : f32 to vector<64x256xf32>
    %235 = arith.maximumf %233, %234 : vector<64x256xf32>
    %236 = arith.truncf %235 : vector<64x256xf32> to vector<64x256xbf16>
    %c0_197 = arith.constant 0 : index
    %c0_198 = arith.constant 0 : index
    %c0_199 = arith.constant 0 : index
    %237 = vector.load %arg26[%c0_197, %c0_198, %c0_199] : memref<4x256x192xbf16, #tpu.memory_space<vmem>>, vector<1x256x192xbf16>
    %238 = vector.shape_cast %237 : vector<1x256x192xbf16> to vector<256x192xbf16>
    %cst_200 = arith.constant dense<0.000000e+00> : vector<64x192xf32>
    %239 = tpu.matmul %236, %238, %cst_200 {dimension_numbers = #tpu.dot_dimension_numbers<[1], [0], [0], [1], [0, 0, 1, 1], [], []>} : vector<64x256xbf16>, vector<256x192xbf16>, vector<64x192xf32> -> vector<64x192xf32>
    %c0_201 = arith.constant 0 : index
    %c0_202 = arith.constant 0 : index
    %c0_203 = arith.constant 0 : index
    %240 = vector.load %arg27[%c0_201, %c0_202, %c0_203] : memref<4x128x64xf32, #tpu.memory_space<vmem>>, vector<1x128x64xf32>
    %241 = vector.shape_cast %240 : vector<1x128x64xf32> to vector<128x64xf32>
    %cst_204 = arith.constant dense<0.000000e+00> : vector<128x192xf32>
    %242 = tpu.matmul %241, %239, %cst_204 {dimension_numbers = #tpu.dot_dimension_numbers<[1], [0], [0], [1], [0, 0, 1, 1], [], []>} : vector<128x64xf32>, vector<64x192xf32>, vector<128x192xf32> -> vector<128x192xf32>
    %c1_205 = arith.constant 1 : index
    %c0_206 = arith.constant 0 : index
    %c0_207 = arith.constant 0 : index
    %243 = vector.load %arg26[%c1_205, %c0_206, %c0_207] : memref<4x256x192xbf16, #tpu.memory_space<vmem>>, vector<1x256x192xbf16>
    %244 = vector.shape_cast %243 : vector<1x256x192xbf16> to vector<256x192xbf16>
    %cst_208 = arith.constant dense<0.000000e+00> : vector<64x192xf32>
    %245 = tpu.matmul %236, %244, %cst_208 {dimension_numbers = #tpu.dot_dimension_numbers<[1], [0], [0], [1], [0, 0, 1, 1], [], []>} : vector<64x256xbf16>, vector<256x192xbf16>, vector<64x192xf32> -> vector<64x192xf32>
    %c1_209 = arith.constant 1 : index
    %c0_210 = arith.constant 0 : index
    %c0_211 = arith.constant 0 : index
    %246 = vector.load %arg27[%c1_209, %c0_210, %c0_211] : memref<4x128x64xf32, #tpu.memory_space<vmem>>, vector<1x128x64xf32>
    %247 = vector.shape_cast %246 : vector<1x128x64xf32> to vector<128x64xf32>
    %cst_212 = arith.constant dense<0.000000e+00> : vector<128x192xf32>
    %248 = tpu.matmul %247, %245, %cst_212 {dimension_numbers = #tpu.dot_dimension_numbers<[1], [0], [0], [1], [0, 0, 1, 1], [], []>} : vector<128x64xf32>, vector<64x192xf32>, vector<128x192xf32> -> vector<128x192xf32>
    %249 = arith.addf %242, %248 : vector<128x192xf32>
    %c2_213 = arith.constant 2 : index
    %c0_214 = arith.constant 0 : index
    %c0_215 = arith.constant 0 : index
    %250 = vector.load %arg26[%c2_213, %c0_214, %c0_215] : memref<4x256x192xbf16, #tpu.memory_space<vmem>>, vector<1x256x192xbf16>
    %251 = vector.shape_cast %250 : vector<1x256x192xbf16> to vector<256x192xbf16>
    %cst_216 = arith.constant dense<0.000000e+00> : vector<64x192xf32>
    %252 = tpu.matmul %236, %251, %cst_216 {dimension_numbers = #tpu.dot_dimension_numbers<[1], [0], [0], [1], [0, 0, 1, 1], [], []>} : vector<64x256xbf16>, vector<256x192xbf16>, vector<64x192xf32> -> vector<64x192xf32>
    %c2_217 = arith.constant 2 : index
    %c0_218 = arith.constant 0 : index
    %c0_219 = arith.constant 0 : index
    %253 = vector.load %arg27[%c2_217, %c0_218, %c0_219] : memref<4x128x64xf32, #tpu.memory_space<vmem>>, vector<1x128x64xf32>
    %254 = vector.shape_cast %253 : vector<1x128x64xf32> to vector<128x64xf32>
    %cst_220 = arith.constant dense<0.000000e+00> : vector<128x192xf32>
    %255 = tpu.matmul %254, %252, %cst_220 {dimension_numbers = #tpu.dot_dimension_numbers<[1], [0], [0], [1], [0, 0, 1, 1], [], []>} : vector<128x64xf32>, vector<64x192xf32>, vector<128x192xf32> -> vector<128x192xf32>
    %256 = arith.addf %249, %255 : vector<128x192xf32>
    %c3_221 = arith.constant 3 : index
    %c0_222 = arith.constant 0 : index
    %c0_223 = arith.constant 0 : index
    %257 = vector.load %arg26[%c3_221, %c0_222, %c0_223] : memref<4x256x192xbf16, #tpu.memory_space<vmem>>, vector<1x256x192xbf16>
    %258 = vector.shape_cast %257 : vector<1x256x192xbf16> to vector<256x192xbf16>
    %cst_224 = arith.constant dense<0.000000e+00> : vector<64x192xf32>
    %259 = tpu.matmul %236, %258, %cst_224 {dimension_numbers = #tpu.dot_dimension_numbers<[1], [0], [0], [1], [0, 0, 1, 1], [], []>} : vector<64x256xbf16>, vector<256x192xbf16>, vector<64x192xf32> -> vector<64x192xf32>
    %c3_225 = arith.constant 3 : index
    %c0_226 = arith.constant 0 : index
    %c0_227 = arith.constant 0 : index
    %260 = vector.load %arg27[%c3_225, %c0_226, %c0_227] : memref<4x128x64xf32, #tpu.memory_space<vmem>>, vector<1x128x64xf32>
    %261 = vector.shape_cast %260 : vector<1x128x64xf32> to vector<128x64xf32>
    %cst_228 = arith.constant dense<0.000000e+00> : vector<128x192xf32>
    %262 = tpu.matmul %261, %259, %cst_228 {dimension_numbers = #tpu.dot_dimension_numbers<[1], [0], [0], [1], [0, 0, 1, 1], [], []>} : vector<128x64xf32>, vector<64x192xf32>, vector<128x192xf32> -> vector<128x192xf32>
    %263 = arith.addf %256, %262 : vector<128x192xf32>
    %264 = math.tanh %263 : vector<128x192xf32>
    %c0_229 = arith.constant 0 : index
    %c0_230 = arith.constant 0 : index
    %265 = vector.load %arg28[%c0_229, %c0_230] : memref<128x192xf32, #tpu.memory_space<vmem>>, vector<128x192xf32>
    tpu.vector_store %arg28[%c0_229, %c0_230], %264 {strides = array<i32>} : memref<128x192xf32, #tpu.memory_space<vmem>>, vector<128x192xf32>,
    return
  }
  func.func @transform_0(%arg0: i32) -> (i32, i32) {
    %c0_i32 = arith.constant 0 : i32
    %c0_i32_0 = arith.constant 0 : i32
    %c0_i32_1 = arith.constant 0 : i32
    return %c0_i32, %c0_i32_0 : i32, i32
  }
  func.func @transform_1(%arg0: i32) -> (i32, i32, i32) {
    %c0_i32 = arith.constant 0 : i32
    %c0_i32_0 = arith.constant 0 : i32
    %c0_i32_1 = arith.constant 0 : i32
    %c0_i32_2 = arith.constant 0 : i32
    return %c0_i32, %c0_i32_0, %c0_i32_1 : i32, i32, i32
  }
  func.func @transform_2(%arg0: i32) -> (i32, i32, i32) {
    %c0_i32 = arith.constant 0 : i32
    %c0_i32_0 = arith.constant 0 : i32
    %c0_i32_1 = arith.constant 0 : i32
    %c0_i32_2 = arith.constant 0 : i32
    return %c0_i32, %c0_i32_0, %c0_i32_1 : i32, i32, i32
  }
  func.func @transform_3(%arg0: i32) -> (i32, i32) {
    %c0_i32 = arith.constant 0 : i32
    %c0_i32_0 = arith.constant 0 : i32
    %c0_i32_1 = arith.constant 0 : i32
    return %c0_i32, %c0_i32_0 : i32, i32
  }
  func.func @transform_4(%arg0: i32) -> (i32, i32) {
    %c0_i32 = arith.constant 0 : i32
    %c0_i32_0 = arith.constant 0 : i32
    %c0_i32_1 = arith.constant 0 : i32
    return %c0_i32, %c0_i32_0 : i32, i32
  }
  func.func @transform_5(%arg0: i32) -> (i32, i32) {
    %c0_i32 = arith.constant 0 : i32
    %c0_i32_0 = arith.constant 0 : i32
    %c0_i32_1 = arith.constant 0 : i32
    return %c0_i32, %c0_i32_0 : i32, i32
  }
  func.func @transform_6(%arg0: i32) -> (i32, i32) {
    %c0_i32 = arith.constant 0 : i32
    %c0_i32_0 = arith.constant 0 : i32
    %c0_i32_1 = arith.constant 0 : i32
    return %c0_i32, %c0_i32_0 : i32, i32
  }
  func.func @transform_7(%arg0: i32) -> (i32, i32, i32) {
    %c0_i32 = arith.constant 0 : i32
    %c0_i32_0 = arith.constant 0 : i32
    %c0_i32_1 = arith.constant 0 : i32
    %c0_i32_2 = arith.constant 0 : i32
    return %c0_i32, %c0_i32_0, %c0_i32_1 : i32, i32, i32
  }
  func.func @transform_8(%arg0: i32) -> (i32, i32, i32) {
    %c0_i32 = arith.constant 0 : i32
    %c0_i32_0 = arith.constant 0 : i32
    %c0_i32_1 = arith.constant 0 : i32
    %c0_i32_2 = arith.constant 0 : i32
    return %c0_i32, %c0_i32_0, %c0_i32_1 : i32, i32, i32
  }
  func.func @transform_9(%arg0: i32) -> (i32, i32) {
    %c0_i32 = arith.constant 0 : i32
    %c0_i32_0 = arith.constant 0 : i32
    %c0_i32_1 = arith.constant 0 : i32
    return %c0_i32, %c0_i32_0 : i32, i32
  }
  func.func @transform_10(%arg0: i32) -> (i32, i32) {
    %c0_i32 = arith.constant 0 : i32
    %c0_i32_0 = arith.constant 0 : i32
    %c0_i32_1 = arith.constant 0 : i32
    return %c0_i32, %c0_i32_0 : i32, i32
  }
  func.func @transform_11(%arg0: i32) -> (i32, i32) {
    %c0_i32 = arith.constant 0 : i32
    %c0_i32_0 = arith.constant 0 : i32
    %c0_i32_1 = arith.constant 0 : i32
    return %c0_i32, %c0_i32_0 : i32, i32
  }
  func.func @transform_12(%arg0: i32) -> (i32, i32) {
    %c0_i32 = arith.constant 0 : i32
    %c0_i32_0 = arith.constant 0 : i32
    %c0_i32_1 = arith.constant 0 : i32
    return %c0_i32, %c0_i32_0 : i32, i32
  }
  func.func @transform_13(%arg0: i32) -> (i32, i32, i32) {
    %c0_i32 = arith.constant 0 : i32
    %c0_i32_0 = arith.constant 0 : i32
    %c0_i32_1 = arith.constant 0 : i32
    %c0_i32_2 = arith.constant 0 : i32
    return %c0_i32, %c0_i32_0, %c0_i32_1 : i32, i32, i32
  }
  func.func @transform_14(%arg0: i32) -> (i32, i32, i32) {
    %c0_i32 = arith.constant 0 : i32
    %c0_i32_0 = arith.constant 0 : i32
    %c0_i32_1 = arith.constant 0 : i32
    %c0_i32_2 = arith.constant 0 : i32
    return %c0_i32, %c0_i32_0, %c0_i32_1 : i32, i32, i32
  }
  func.func @transform_15(%arg0: i32) -> (i32, i32) {
    %c0_i32 = arith.constant 0 : i32
    %c0_i32_0 = arith.constant 0 : i32
    %c0_i32_1 = arith.constant 0 : i32
    return %c0_i32, %c0_i32_0 : i32, i32
  }
  func.func @transform_16(%arg0: i32) -> (i32, i32) {
    %c0_i32 = arith.constant 0 : i32
    %c0_i32_0 = arith.constant 0 : i32
    %c0_i32_1 = arith.constant 0 : i32
    return %c0_i32, %c0_i32_0 : i32, i32
  }
  func.func @transform_17(%arg0: i32) -> (i32, i32) {
    %c0_i32 = arith.constant 0 : i32
    %c0_i32_0 = arith.constant 0 : i32
    %c0_i32_1 = arith.constant 0 : i32
    return %c0_i32, %c0_i32_0 : i32, i32
  }
  func.func @transform_18(%arg0: i32) -> (i32, i32) {
    %c0_i32 = arith.constant 0 : i32
    %c0_i32_0 = arith.constant 0 : i32
    %c0_i32_1 = arith.constant 0 : i32
    return %c0_i32, %c0_i32_0 : i32, i32
  }
  func.func @transform_19(%arg0: i32) -> (i32, i32, i32) {
    %c0_i32 = arith.constant 0 : i32
    %c0_i32_0 = arith.constant 0 : i32
    %c0_i32_1 = arith.constant 0 : i32
    %c0_i32_2 = arith.constant 0 : i32
    return %c0_i32, %c0_i32_0, %c0_i32_1 : i32, i32, i32
  }
  func.func @transform_20(%arg0: i32) -> (i32, i32, i32) {
    %c0_i32 = arith.constant 0 : i32
    %c0_i32_0 = arith.constant 0 : i32
    %c0_i32_1 = arith.constant 0 : i32
    %c0_i32_2 = arith.constant 0 : i32
    return %c0_i32, %c0_i32_0, %c0_i32_1 : i32, i32, i32
  }
  func.func @transform_21(%arg0: i32) -> (i32, i32) {
    %c0_i32 = arith.constant 0 : i32
    %c0_i32_0 = arith.constant 0 : i32
    %c0_i32_1 = arith.constant 0 : i32
    return %c0_i32, %c0_i32_0 : i32, i32
  }
  func.func @transform_22(%arg0: i32) -> (i32, i32) {
    %c0_i32 = arith.constant 0 : i32
    %c0_i32_0 = arith.constant 0 : i32
    %c0_i32_1 = arith.constant 0 : i32
    return %c0_i32, %c0_i32_0 : i32, i32
  }
  func.func @transform_23(%arg0: i32) -> (i32, i32) {
    %c0_i32 = arith.constant 0 : i32
    %c0_i32_0 = arith.constant 0 : i32
    %c0_i32_1 = arith.constant 0 : i32
    return %c0_i32, %c0_i32_0 : i32, i32
  }
  func.func @transform_24(%arg0: i32) -> (i32, i32) {
    %c0_i32 = arith.constant 0 : i32
    %c0_i32_0 = arith.constant 0 : i32
    %c0_i32_1 = arith.constant 0 : i32
    return %c0_i32, %c0_i32_0 : i32, i32
  }
  func.func @transform_25(%arg0: i32) -> (i32, i32, i32) {
    %c0_i32 = arith.constant 0 : i32
    %c0_i32_0 = arith.constant 0 : i32
    %c0_i32_1 = arith.constant 0 : i32
    %c0_i32_2 = arith.constant 0 : i32
    return %c0_i32, %c0_i32_0, %c0_i32_1 : i32, i32, i32
  }
  func.func @transform_26(%arg0: i32) -> (i32, i32, i32) {
    %c0_i32 = arith.constant 0 : i32
    %c0_i32_0 = arith.constant 0 : i32
    %c0_i32_1 = arith.constant 0 : i32
    %c0_i32_2 = arith.constant 0 : i32
    return %c0_i32, %c0_i32_0, %c0_i32_1 : i32, i32, i32
  }
  func.func @transform_27(%arg0: i32) -> (i32, i32) {
    %c0_i32 = arith.constant 0 : i32
    %c0_i32_0 = arith.constant 0 : i32
    %c0_i32_1 = arith.constant 0 : i32
    return %c0_i32, %c0_i32_0 : i32, i32
  }
}

</mosaic_0001>

<bundles_post_ra>
// kernel: generator_forward.1
= control target key start
LH: loop header
LB: loop body
LE: loop exit
PB: predicated region body
PF: predicated region fallthrough
CT: control target
= control target key end

     0   :  { %s14315_s0 = inlined_call_operand.vmem [shape: bf16[2,16], index: 0, kind: input, shape index: {}]   ;;  %s14316_s1 = inlined_call_operand.hbm [shape: bf16[4,16,256], index: 1, kind: input, shape index: {}]   ;;  %s14317_s2 = inlined_call_operand.vmem [shape: f32[4,8,2], index: 2, kind: input, shape index: {}]   ;;  %s14318_s3 = inlined_call_operand.vmem [shape: f32[256,64], index: 3, kind: input, shape index: {}]   ;;  %s14319_s4 = inlined_call_operand.hbm [shape: f32[64,256], index: 4, kind: input, shape index: {}]   ;;  %s14320_s5 = inlined_call_operand.hbm [shape: f32[1,64], index: 5, kind: input, shape index: {}]   ;;  %s14321_s6 = inlined_call_operand.hbm [shape: f32[1,64], index: 6, kind: input, shape index: {}]   ;;  %s14322_s7 = inlined_call_operand.hbm [shape: bf16[4,256,256], index: 7, kind: input, shape index: {}]   ;;  %s14323_s8 = inlined_call_operand.vmem [shape: f32[4,16,8], index: 8, kind: input, shape index: {}]   ;;  %s14324_s9 = inlined_call_operand.vmem [shape: f32[256,32], index: 9, kind: input, shape index: {}]   ;;  %s14325_s10 = inlined_call_operand.hbm [shape: f32[32,256], index: 10, kind: input, shape index: {}]   ;;  %s14326_s11 = inlined_call_operand.hbm [shape: f32[1,32], index: 11, kind: input, shape index: {}]   ;;  %s14327_s12 = inlined_call_operand.hbm [shape: f32[1,32], index: 12, kind: input, shape index: {}]   ;;  %s14328_s13 = inlined_call_operand.hbm [shape: bf16[4,256,256], index: 13, kind: input, shape index: {}]   ;;  %s14329_s14 = inlined_call_operand.vmem [shape: f32[4,32,16], index: 14, kind: input, shape index: {}]   ;;  %s14330_s15 = inlined_call_operand.vmem [shape: f32[256,16], index: 15, kind: input, shape index: {}]   ;;  %s14331_s16 = inlined_call_operand.hbm [shape: f32[16,256], index: 16, kind: input, shape index: {}]   ;;  %s14332_s17 = inlined_call_operand.hbm [shape: f32[1,16], index: 17, kind: input, shape index: {}]   ;;  %s14333_s18 = inlined_call_operand.hbm [shape: f32[1,16], index: 18, kind: input, shape index: {}]   ;;  %s14334_s19 = inlined_call_operand.hbm [shape: bf16[4,256,256], index: 19, kind: input, shape index: {}]   ;;  %s14335_s20 = inlined_call_operand.vmem [shape: f32[4,64,32], index: 20, kind: input, shape index: {}]   ;;  %s14336_s21 = inlined_call_operand.vmem [shape: f32[256,8], index: 21, kind: input, shape index: {}]   ;;  %s14337_s22 = inlined_call_operand.hbm [shape: f32[8,256], index: 22, kind: input, shape index: {}]   ;;  %s14338_s23 = inlined_call_operand.hbm [shape: f32[1,8], index: 23, kind: input, shape index: {}]   ;;  %s14339_s24 = inlined_call_operand.hbm [shape: f32[1,8], index: 24, kind: input, shape index: {}]   ;;  %s14340_s25 = inlined_call_operand.vmem [shape: bf16[4,256,192], index: 25, kind: input, shape index: {}]   ;;  %s14341_s26 = inlined_call_operand.vmem [shape: f32[4,128,64], index: 26, kind: input, shape index: {}]   ;;  %s14342_s27 = inlined_call_operand.vmem [shape: f32[128,192], index: 27, kind: output, shape index: {}]  }
   0x1   :  { %14357 = sst [smem:[#allocation36_spill]] %s14315_s0 }
   0x2   :  { %14358 = sst [smem:[#allocation37_spill]] %s14316_s1 }
   0x3   :  { %14359 = sst [smem:[#allocation38_spill]] %s14317_s2 }
   0x4   :  { %14360 = sst [smem:[#allocation39_spill]] %s14318_s3 }
   0x5   :  { %14361 = sst [smem:[#allocation40_spill]] %s14319_s4 }
   0x6   :  { %14362 = sst [smem:[#allocation41_spill]] %s14320_s5 }
   0x7   :  { %14363 = sst [smem:[#allocation42_spill]] %s14321_s6 }
   0x8   :  { %14364 = sst [smem:[#allocation43_spill]] %s14322_s7 }
   0x9   :  { %14365 = sst [smem:[#allocation44_spill]] %s14323_s8 }
   0xa   :  { %14366 = sst [smem:[#allocation45_spill]] %s14324_s9 }
   0xb   :  { %14367 = sst [smem:[#allocation46_spill]] %s14325_s10 }
   0xc   :  { %14368 = sst [smem:[#allocation47_spill]] %s14326_s11 }
   0xd   :  { %14369 = sst [smem:[#allocation48_spill]] %s14340_s25 }
   0xe   :  { %14370 = sst [smem:[#allocation49_spill]] %s14341_s26 }
   0xf   :  { %14371 = sst [smem:[#allocation50_spill]] %s14342_s27 }
  0x10   :  { %32 = vsyncpa [#allocation3], 0 }
  0x11   :  { %33 = vsyncpa [#allocation5], 0 }
  0x12   :  { %34 = vsyncpa [#allocation8], 0 }
  0x13   :  { %35 = vsyncpa [#allocation11], 0 }
  0x14   :  { %36 = vsyncpa [#allocation14], 0 }
  0x15   :  { %37 = vsyncpa [#allocation17], 0 }
  0x16   :  { %38 = vsyncpa [#allocation20], 0 }
  0x17   :  { %39 = vsyncpa [#allocation23], 0 }
  0x18   :  { %40 = vsyncpa [#allocation26], 0  ;;  %s11900_s7 = smov [#allocation4]   ;;  %s14372_s9 = sld [smem:[#allocation40_spill]] }
  0x19   :  { %s64_s4 = sshll.u32 %s11900_s7, 4  ;;  %s65_s4 = int_to_ptr.vmem [resolvable:$true] %s64_s4 }
  0x1e   :  { %s11530_s5 = scalar_lea.hbm %s14372_s9, 2048 }
  0x1f   :  { %p11531_p0 = scmp.ne.s32.totalorder %s14372_s9, %s11530_s5  ;;  %p11534_p1 = scmp.lt.u32.totalorder %s11530_s5, %s14372_s9 }
  0x21   :  { %p11536_p2 = pnand %p11534_p1, %p11531_p0 }
  0x23   :  { %11539 = shalt.err (!%p11536_p2)
}
  0x24   :  { %s11540_s1 = scalar_lea.vmem %s65_s4, 2048  ;;  %p11545_p4 = scmp.lt.s32.totalorder %s65_s4, %s65_s4 }
  0x25   :  { %p11541_p3 = scmp.ne.s32.totalorder %s65_s4, %s11540_s1  ;;  %p11546_p5 = scmp.lt.s32.totalorder %s11540_s1, %s11540_s1 }
  0x27   :  { %p11547_p6 = por %p11546_p5, %p11545_p4 }
  0x29   :  { %p11548_p7 = pnand %p11547_p6, %p11541_p3 }
  0x2b   :  { %11551 = shalt.err (!%p11548_p7)
}
  0x2c   :  { %s11901_s6 = smov 256   ;;  %s11902_s11 = smov 16  }
  0x2d   :  { %70 = dma.hbm_to_vmem [thread:$0]  %s14372_s9, 2048, %s65_s4, [#allocation5], %s11901_s6, %s11901_s6, %s11902_s11  }
  0x2e   :  { %s11903_s7 = smov [#allocation7]   ;;  %s11904_s30 = smov [#allocation10]  }
  0x2f   :  { %s87_s8 = sshll.u32 %s11903_s7, 4  ;;  %s112_s5 = sshll.u32 %s11904_s30, 4  ;;  %s88_s8 = int_to_ptr.vmem [resolvable:$true] %s87_s8  ;;  %s113_s5 = int_to_ptr.vmem [resolvable:$true] %s112_s5 }
  0x30   :  { %s14373_s10 = sld [smem:[#allocation42_spill]] }
  0x36   :  { %s11552_s29 = scalar_lea.hbm %s14373_s10, 16 }
  0x37   :  { %p11553_p8 = scmp.ne.s32.totalorder %s14373_s10, %s11552_s29  ;;  %p11556_p9 = scmp.lt.u32.totalorder %s11552_s29, %s14373_s10 }
  0x39   :  { %p11558_p10 = pnand %p11556_p9, %p11553_p8 }
  0x3b   :  { %11561 = shalt.err (!%p11558_p10)
}
  0x3c   :  { %s11562_s4 = scalar_lea.vmem %s88_s8, 16  ;;  %s11566_s9 = scalar_lea.vmem %s88_s8, 32 }
  0x3d   :  { %p11563_p11 = scmp.ne.s32.totalorder %s88_s8, %s11562_s4  ;;  %p11567_p12 = scmp.lt.s32.totalorder %s88_s8, %s88_s8 }
  0x3e   :  { %p11568_p13 = scmp.lt.s32.totalorder %s11566_s9, %s11562_s4 }
  0x40   :  { %p11569_p0 = por %p11568_p13, %p11567_p12 }
  0x42   :  { %p11570_p1 = pnand %p11569_p0, %p11563_p11 }
  0x44   :  { %11573 = shalt.err (!%p11570_p1)
}
  0x45   :  { %90 = dma.hbm_to_vmem [thread:$0]  %s14373_s10, 16, %s88_s8, [#allocation8]  }
  0x46   :  { %s14374_s30 = sld [smem:[#allocation46_spill]] }
  0x4c   :  { %s11574_s25 = scalar_lea.hbm %s14374_s30, 1024 }
  0x4d   :  { %p11575_p2 = scmp.ne.s32.totalorder %s14374_s30, %s11574_s25  ;;  %p11578_p3 = scmp.lt.u32.totalorder %s11574_s25, %s14374_s30 }
  0x4f   :  { %p11580_p4 = pnand %p11578_p3, %p11575_p2 }
  0x51   :  { %11583 = shalt.err (!%p11580_p4)
}
  0x52   :  { %s11584_s1 = scalar_lea.vmem %s113_s5, 1024  ;;  %p11589_p6 = scmp.lt.s32.totalorder %s113_s5, %s113_s5 }
  0x53   :  { %p11585_p5 = scmp.ne.s32.totalorder %s113_s5, %s11584_s1  ;;  %p11590_p7 = scmp.lt.s32.totalorder %s11584_s1, %s11584_s1 }
  0x55   :  { %p11591_p8 = por %p11590_p7, %p11589_p6 }
  0x57   :  { %p11592_p9 = pnand %p11591_p8, %p11585_p5 }
  0x59   :  { %11595 = shalt.err (!%p11592_p9)
}
  0x5a   :  { %118 = dma.hbm_to_vmem [thread:$0]  %s14374_s30, 1024, %s113_s5, [#allocation11], %s11901_s6, %s11901_s6, %s11902_s11  }
  0x5b   :  { %s11905_s4 = smov [#allocation13]   ;;  %s11906_s2 = smov [#allocation16]  }
  0x5c   :  { %s135_s9 = sshll.u32 %s11905_s4, 4  ;;  %s160_s3 = sshll.u32 %s11906_s2, 4  ;;  %s136_s9 = int_to_ptr.vmem [resolvable:$true] %s135_s9  ;;  %s161_s3 = int_to_ptr.vmem [resolvable:$true] %s160_s3 }
  0x5d   :  { %s11596_s25 = scalar_lea.hbm %s14327_s12, 16 }
  0x5e   :  { %p11597_p10 = scmp.ne.s32.totalorder %s14327_s12, %s11596_s25  ;;  %p11600_p11 = scmp.lt.u32.totalorder %s11596_s25, %s14327_s12 }
  0x60   :  { %p11602_p12 = pnand %p11600_p11, %p11597_p10 }
  0x62   :  { %11605 = shalt.err (!%p11602_p12)
}
  0x63   :  { %s11606_s5 = scalar_lea.vmem %s136_s9, 16  ;;  %s11610_s30 = scalar_lea.vmem %s136_s9, 32 }
  0x64   :  { %p11607_p13 = scmp.ne.s32.totalorder %s136_s9, %s11606_s5  ;;  %p11611_p0 = scmp.lt.s32.totalorder %s136_s9, %s136_s9 }
  0x65   :  { %p11612_p1 = scmp.lt.s32.totalorder %s11610_s30, %s11606_s5 }
  0x67   :  { %p11613_p2 = por %p11612_p1, %p11611_p0 }
  0x69   :  { %p11614_p3 = pnand %p11613_p2, %p11607_p13 }
  0x6b   :  { %11617 = shalt.err (!%p11614_p3)
}
  0x6c   :  { %138 = dma.hbm_to_vmem [thread:$0]  %s14327_s12, 16, %s136_s9, [#allocation14]  }
  0x6d   :  { %s11618_s2 = scalar_lea.hbm %s14331_s16, 512 }
  0x6e   :  { %p11619_p4 = scmp.ne.s32.totalorder %s14331_s16, %s11618_s2  ;;  %p11622_p5 = scmp.lt.u32.totalorder %s11618_s2, %s14331_s16 }
  0x70   :  { %p11624_p6 = pnand %p11622_p5, %p11619_p4 }
  0x72   :  { %11627 = shalt.err (!%p11624_p6)
}
  0x73   :  { %s11628_s28 = scalar_lea.vmem %s161_s3, 512  ;;  %p11633_p8 = scmp.lt.s32.totalorder %s161_s3, %s161_s3 }
  0x74   :  { %p11629_p7 = scmp.ne.s32.totalorder %s161_s3, %s11628_s28  ;;  %p11634_p9 = scmp.lt.s32.totalorder %s11628_s28, %s11628_s28 }
  0x76   :  { %p11635_p10 = por %p11634_p9, %p11633_p8 }
  0x78   :  { %p11636_p11 = pnand %p11635_p10, %p11629_p7 }
  0x7a   :  { %11639 = shalt.err (!%p11636_p11)
}
  0x7b   :  { %166 = dma.hbm_to_vmem [thread:$0]  %s14331_s16, 512, %s161_s3, [#allocation17], %s11901_s6, %s11901_s6, %s11902_s11  }
  0x7c   :  { %s11907_s0 = smov [#allocation19]   ;;  %s11908_s5 = smov [#allocation22]  }
  0x7d   :  { %s183_s29 = sshll.u32 %s11907_s0, 4  ;;  %s209_s30 = sshll.u32 %s11908_s5, 4  ;;  %s184_s29 = int_to_ptr.vmem [resolvable:$true] %s183_s29  ;;  %s210_s30 = int_to_ptr.vmem [resolvable:$true] %s209_s30 }
  0x7e   :  { %s11640_s10 = scalar_lea.hbm %s14333_s18, 16 }
  0x7f   :  { %p11641_p12 = scmp.ne.s32.totalorder %s14333_s18, %s11640_s10  ;;  %p11644_p13 = scmp.lt.u32.totalorder %s11640_s10, %s14333_s18 }
  0x81   :  { %p11646_p0 = pnand %p11644_p13, %p11641_p12 }
  0x83   :  { %11649 = shalt.err (!%p11646_p0)
}
  0x84   :  { %s11650_s16 = scalar_lea.vmem %s184_s29, 16  ;;  %s11654_s6 = scalar_lea.vmem %s184_s29, 32 }
  0x85   :  { %p11651_p1 = scmp.ne.s32.totalorder %s184_s29, %s11650_s16  ;;  %p11655_p2 = scmp.lt.s32.totalorder %s184_s29, %s184_s29 }
  0x86   :  { %p11656_p3 = scmp.lt.s32.totalorder %s11654_s6, %s11650_s16 }
  0x88   :  { %p11657_p4 = por %p11656_p3, %p11655_p2 }
  0x8a   :  { %p11658_p5 = pnand %p11657_p4, %p11651_p1 }
  0x8c   :  { %11661 = shalt.err (!%p11658_p5)
}
  0x8d   :  { %186 = dma.hbm_to_vmem [thread:$0]  %s14333_s18, 16, %s184_s29, [#allocation20]  }
  0x8e   :  { %s11662_s28 = scalar_lea.hbm %s14337_s22, 256 }
  0x8f   :  { %p11663_p6 = scmp.ne.s32.totalorder %s14337_s22, %s11662_s28  ;;  %p11666_p7 = scmp.lt.u32.totalorder %s11662_s28, %s14337_s22 }
  0x91   :  { %p11668_p8 = pnand %p11666_p7, %p11663_p6 }
  0x93   :  { %11671 = shalt.err (!%p11668_p8)
}
  0x94   :  { %s11672_s1 = scalar_lea.vmem %s210_s30, 256  ;;  %p11677_p10 = scmp.lt.s32.totalorder %s210_s30, %s210_s30 }
  0x95   :  { %p11673_p9 = scmp.ne.s32.totalorder %s210_s30, %s11672_s1  ;;  %p11678_p11 = scmp.lt.s32.totalorder %s11672_s1, %s11672_s1 }
  0x97   :  { %p11679_p12 = por %p11678_p11, %p11677_p10 }
  0x99   :  { %p11680_p13 = pnand %p11679_p12, %p11673_p9 }
  0x9b   :  { %11683 = shalt.err (!%p11680_p13)
}
  0x9c   :  { %212 = dma.hbm_to_vmem [thread:$0]  %s14337_s22, 256, %s210_s30, [#allocation23]  }
  0x9d   :  { %s11909_s8 = smov [#allocation2]   ;;  %s14375_s27 = sld [smem:[#allocation37_spill]] }
  0x9e   :  { %s48_s10 = sshll.u32 %s11909_s8, 4  ;;  %s49_s10 = int_to_ptr.vmem [resolvable:$true] %s48_s10 }
  0xa3   :  { %s11684_s7 = scalar_lea.hbm %s14375_s27, 1024 }
  0xa4   :  { %p11685_p0 = scmp.ne.s32.totalorder %s14375_s27, %s11684_s7  ;;  %p11688_p1 = scmp.lt.u32.totalorder %s11684_s7, %s14375_s27 }
  0xa6   :  { %p11690_p2 = pnand %p11688_p1, %p11685_p0 }
  0xa8   :  { %11693 = shalt.err (!%p11690_p2)
}
  0xa9   :  { %s11694_s25 = scalar_lea.vmem %s49_s10, 1024  ;;  %p11699_p4 = scmp.lt.s32.totalorder %s49_s10, %s49_s10 }
  0xaa   :  { %p11695_p3 = scmp.ne.s32.totalorder %s49_s10, %s11694_s25  ;;  %p11700_p5 = scmp.lt.s32.totalorder %s11694_s25, %s11694_s25 }
  0xac   :  { %p11701_p6 = por %p11700_p5, %p11699_p4 }
  0xae   :  { %p11702_p7 = pnand %p11701_p6, %p11695_p3 }
  0xb0   :  { %11705 = shalt.err (!%p11702_p7)
}
  0xb1   :  { %s11910_s22 = smov 128   ;;  %s11911_s30 = smov 8  }
  0xb2   :  { %54 = dma.hbm_to_vmem [thread:$0]  %s14375_s27, 1024, %s49_s10, [#allocation3], %s11910_s22, %s11910_s22, %s11911_s30  }
  0xb3   :  { %s11912_s12 = smov [#allocation6]   ;;  %s11913_s0 = smov [#allocation9]  }
  0xb4   :  { %s77_s9 = sshll.u32 %s11912_s12, 4  ;;  %s96_s5 = sshll.u32 %s11913_s0, 4  ;;  %s78_s9 = int_to_ptr.vmem [resolvable:$true] %s77_s9  ;;  %s12170_s5 = int_to_ptr.vmem [resolvable:$true] %s96_s5 }
  0xb5   :  { %s14376_s29 = sld [smem:[#allocation41_spill]] }
  0xbb   :  { %s11706_s8 = scalar_lea.hbm %s14376_s29, 16 }
  0xbc   :  { %p11707_p8 = scmp.ne.s32.totalorder %s14376_s29, %s11706_s8  ;;  %p11710_p9 = scmp.lt.u32.totalorder %s11706_s8, %s14376_s29 }
  0xbe   :  { %p11712_p10 = pnand %p11710_p9, %p11707_p8 }
  0xc0   :  { %11715 = shalt.err (!%p11712_p10)
}
  0xc1   :  { %s11716_s10 = scalar_lea.vmem %s78_s9, 16  ;;  %s11720_s27 = scalar_lea.vmem %s78_s9, 32 }
  0xc2   :  { %p11717_p11 = scmp.ne.s32.totalorder %s78_s9, %s11716_s10  ;;  %p11721_p12 = scmp.lt.s32.totalorder %s78_s9, %s78_s9 }
  0xc3   :  { %p11722_p13 = scmp.lt.s32.totalorder %s11720_s27, %s11716_s10 }
  0xc5   :  { %p11723_p0 = por %p11722_p13, %p11721_p12 }
  0xc7   :  { %p11724_p1 = pnand %p11723_p0, %p11717_p11 }
  0xc9   :  { %11727 = shalt.err (!%p11724_p1)
}
  0xca   :  { %80 = dma.hbm_to_vmem [thread:$0]  %s14376_s29, 16, %s78_s9, [#allocation5]  }
  0xcb   :  { %s14377_s26 = sld [smem:[#allocation43_spill]] }
  0xd1   :  { %s11728_s28 = scalar_lea.hbm %s14377_s26, 16384 }
  0xd2   :  { %p11729_p2 = scmp.ne.s32.totalorder %s14377_s26, %s11728_s28  ;;  %p11732_p3 = scmp.lt.u32.totalorder %s11728_s28, %s14377_s26 }
  0xd4   :  { %p11734_p4 = pnand %p11732_p3, %p11729_p2 }
  0xd6   :  { %11737 = shalt.err (!%p11734_p4)
}
  0xd7   :  { %s11738_s8 = scalar_lea.vmem %s12170_s5, 16384  ;;  %p11743_p6 = scmp.lt.s32.totalorder %s12170_s5, %s12170_s5 }
  0xd8   :  { %p11739_p5 = scmp.ne.s32.totalorder %s12170_s5, %s11738_s8  ;;  %p11744_p7 = scmp.lt.s32.totalorder %s11738_s8, %s11738_s8 }
  0xda   :  { %p11745_p8 = por %p11744_p7, %p11743_p6 }
  0xdc   :  { %p11746_p9 = pnand %p11745_p8, %p11739_p5 }
  0xde   :  { %11749 = shalt.err (!%p11746_p9)
}
  0xdf   :  { %102 = dma.hbm_to_vmem [thread:$0]  %s14377_s26, 16384, %s12170_s5, [#allocation8], %s11910_s22, %s11910_s22, %s11911_s30  }
  0xe0   :  { %s11914_s4 = smov [#allocation12]   ;;  %s11915_s7 = smov [#allocation15]  }
  0xe1   :  { %s125_s2 = sshll.u32 %s11914_s4, 4  ;;  %s144_s16 = sshll.u32 %s11915_s7, 4  ;;  %s126_s2 = int_to_ptr.vmem [resolvable:$true] %s125_s2  ;;  %s12204_s16 = int_to_ptr.vmem [resolvable:$true] %s144_s16 }
  0xe2   :  { %s14378_s6 = sld [smem:[#allocation47_spill]] }
  0xe8   :  { %s11750_s11 = scalar_lea.hbm %s14378_s6, 16 }
  0xe9   :  { %p11751_p10 = scmp.ne.s32.totalorder %s14378_s6, %s11750_s11  ;;  %p11754_p11 = scmp.lt.u32.totalorder %s11750_s11, %s14378_s6 }
  0xeb   :  { %p11756_p12 = pnand %p11754_p11, %p11751_p10 }
  0xed   :  { %11759 = shalt.err (!%p11756_p12)
}
  0xee   :  { %s11760_s5 = scalar_lea.vmem %s126_s2, 16  ;;  %s11764_s26 = scalar_lea.vmem %s126_s2, 32 }
  0xef   :  { %p11761_p13 = scmp.ne.s32.totalorder %s126_s2, %s11760_s5  ;;  %p11765_p0 = scmp.lt.s32.totalorder %s126_s2, %s126_s2 }
  0xf0   :  { %p11766_p1 = scmp.lt.s32.totalorder %s11764_s26, %s11760_s5 }
  0xf2   :  { %p11767_p2 = por %p11766_p1, %p11765_p0 }
  0xf4   :  { %p11768_p3 = pnand %p11767_p2, %p11761_p13 }
  0xf6   :  { %11771 = shalt.err (!%p11768_p3)
}
  0xf7   :  { %128 = dma.hbm_to_vmem [thread:$0]  %s14378_s6, 16, %s126_s2, [#allocation11]  }
  0xf8   :  { %s11772_s9 = scalar_lea.hbm %s14328_s13, 16384 }
  0xf9   :  { %p11773_p4 = scmp.ne.s32.totalorder %s14328_s13, %s11772_s9  ;;  %p11776_p5 = scmp.lt.u32.totalorder %s11772_s9, %s14328_s13 }
  0xfb   :  { %p11778_p6 = pnand %p11776_p5, %p11773_p4 }
  0xfd   :  { %11781 = shalt.err (!%p11778_p6)
}
  0xfe   :  { %s11782_s27 = scalar_lea.vmem %s12204_s16, 16384  ;;  %p11787_p8 = scmp.lt.s32.totalorder %s12204_s16, %s12204_s16 }
  0xff   :  { %p11783_p7 = scmp.ne.s32.totalorder %s12204_s16, %s11782_s27  ;;  %p11788_p9 = scmp.lt.s32.totalorder %s11782_s27, %s11782_s27 }
 0x101   :  { %p11789_p10 = por %p11788_p9, %p11787_p8 }
 0x103   :  { %p11790_p11 = pnand %p11789_p10, %p11783_p7 }
 0x105   :  { %11793 = shalt.err (!%p11790_p11)
}
 0x106   :  { %150 = dma.hbm_to_vmem [thread:$0]  %s14328_s13, 16384, %s12204_s16, [#allocation14], %s11910_s22, %s11910_s22, %s11911_s30  }
 0x107   :  { %s11916_s11 = smov [#allocation18]   ;;  %s11917_s25 = smov [#allocation21]  }
 0x108   :  { %s173_s3 = sshll.u32 %s11916_s11, 4  ;;  %s192_s28 = sshll.u32 %s11917_s25, 4  ;;  %s174_s3 = int_to_ptr.vmem [resolvable:$true] %s173_s3  ;;  %s12238_s28 = int_to_ptr.vmem [resolvable:$true] %s192_s28 }
 0x109   :  { %s11794_s26 = scalar_lea.hbm %s14332_s17, 16 }
 0x10a   :  { %p11795_p12 = scmp.ne.s32.totalorder %s14332_s17, %s11794_s26  ;;  %p11798_p13 = scmp.lt.u32.totalorder %s11794_s26, %s14332_s17 }
 0x10c   :  { %p11800_p0 = pnand %p11798_p13, %p11795_p12 }
 0x10e   :  { %11803 = shalt.err (!%p11800_p0)
}
 0x10f   :  { %s11804_s13 = scalar_lea.vmem %s174_s3, 16  ;;  %s11808_s16 = scalar_lea.vmem %s174_s3, 32 }
 0x110   :  { %p11805_p1 = scmp.ne.s32.totalorder %s174_s3, %s11804_s13  ;;  %p11809_p2 = scmp.lt.s32.totalorder %s174_s3, %s174_s3 }
 0x111   :  { %p11810_p3 = scmp.lt.s32.totalorder %s11808_s16, %s11804_s13 }
 0x113   :  { %p11811_p4 = por %p11810_p3, %p11809_p2 }
 0x115   :  { %p11812_p5 = pnand %p11811_p4, %p11805_p1 }
 0x117   :  { %11815 = shalt.err (!%p11812_p5)
}
 0x118   :  { %176 = dma.hbm_to_vmem [thread:$0]  %s14332_s17, 16, %s174_s3, [#allocation17]  }
 0x119   :  { %s11816_s10 = scalar_lea.hbm %s14334_s19, 16384 }
 0x11a   :  { %p11817_p6 = scmp.ne.s32.totalorder %s14334_s19, %s11816_s10  ;;  %p11820_p7 = scmp.lt.u32.totalorder %s11816_s10, %s14334_s19 }
 0x11c   :  { %p11822_p8 = pnand %p11820_p7, %p11817_p6 }
 0x11e   :  { %11825 = shalt.err (!%p11822_p8)
}
 0x11f   :  { %s11826_s25 = scalar_lea.vmem %s12238_s28, 16384  ;;  %p11831_p10 = scmp.lt.s32.totalorder %s12238_s28, %s12238_s28 }
 0x120   :  { %p11827_p9 = scmp.ne.s32.totalorder %s12238_s28, %s11826_s25  ;;  %p11832_p11 = scmp.lt.s32.totalorder %s11826_s25, %s11826_s25 }
 0x122   :  { %p11833_p12 = por %p11832_p11, %p11831_p10 }
 0x124   :  { %p11834_p13 = pnand %p11833_p12, %p11827_p9 }
 0x126   :  { %11837 = shalt.err (!%p11834_p13)
}
 0x127   :  { %198 = dma.hbm_to_vmem [thread:$0]  %s14334_s19, 16384, %s12238_s28, [#allocation20], %s11910_s22, %s11910_s22, %s11911_s30  }
 0x128   :  { %s11918_s12 = smov [#allocation24]   ;;  %s11919_s26 = smov [#allocation25]  }
 0x129   :  { %s219_s5 = sshll.u32 %s11918_s12, 4  ;;  %s229_s0 = sshll.u32 %s11919_s26, 4  ;;  %s220_s5 = int_to_ptr.vmem [resolvable:$true] %s219_s5  ;;  %s230_s0 = int_to_ptr.vmem [resolvable:$true] %s229_s0 }
 0x12a   :  { %s11838_s8 = scalar_lea.hbm %s14338_s23, 16 }
 0x12b   :  { %p11839_p0 = scmp.ne.s32.totalorder %s14338_s23, %s11838_s8  ;;  %p11842_p1 = scmp.lt.u32.totalorder %s11838_s8, %s14338_s23 }
 0x12d   :  { %p11844_p2 = pnand %p11842_p1, %p11839_p0 }
 0x12f   :  { %11847 = shalt.err (!%p11844_p2)
}
 0x130   :  { %s11848_s19 = scalar_lea.vmem %s220_s5, 16  ;;  %s11852_s22 = scalar_lea.vmem %s220_s5, 32 }
 0x131   :  { %p11849_p3 = scmp.ne.s32.totalorder %s220_s5, %s11848_s19  ;;  %p11853_p4 = scmp.lt.s32.totalorder %s220_s5, %s220_s5 }
 0x132   :  { %p11854_p5 = scmp.lt.s32.totalorder %s11852_s22, %s11848_s19 }
 0x134   :  { %p11855_p6 = por %p11854_p5, %p11853_p4 }
 0x136   :  { %p11856_p7 = pnand %p11855_p6, %p11849_p3 }
 0x138   :  { %11859 = shalt.err (!%p11856_p7)
}
 0x139   :  { %222 = dma.hbm_to_vmem [thread:$0]  %s14338_s23, 16, %s220_s5, [#allocation23]  }
 0x13a   :  { %s11860_s10 = scalar_lea.hbm %s14339_s24, 16 }
 0x13b   :  { %p11861_p8 = scmp.ne.s32.totalorder %s14339_s24, %s11860_s10  ;;  %p11864_p9 = scmp.lt.u32.totalorder %s11860_s10, %s14339_s24 }
 0x13d   :  { %p11866_p10 = pnand %p11864_p9, %p11861_p8 }
 0x13f   :  { %11869 = shalt.err (!%p11866_p10)
}
 0x140   :  { %s11870_s25 = scalar_lea.vmem %s230_s0, 16  ;;  %s11874_s17 = scalar_lea.vmem %s230_s0, 32 }
 0x141   :  { %p11871_p11 = scmp.ne.s32.totalorder %s230_s0, %s11870_s25  ;;  %p11875_p12 = scmp.lt.s32.totalorder %s230_s0, %s230_s0 }
 0x142   :  { %p11876_p13 = scmp.lt.s32.totalorder %s11874_s17, %s11870_s25 }
 0x144   :  { %p11877_p0 = por %p11876_p13, %p11875_p12 }
 0x146   :  { %p11878_p1 = pnand %p11877_p0, %p11871_p11 }
 0x148   :  { %11881 = shalt.err (!%p11878_p1)
}
 0x149   :  { %232 = dma.hbm_to_vmem [thread:$0]  %s14339_s24, 16, %s230_s0, [#allocation26]  }
 0x14a   :  { %11882 = dma.done.wait [#allocation3], 1024  }
 0x14b   :  { %11883 = vsyncadd [#allocation3], 4294966272 }
 0x14c   :  { %11884 = dma.done.wait [#allocation5], 2064  }
 0x14d   :  { %11885 = vsyncadd [#allocation5], 4294965232 }
 0x14e   :  { %11886 = dma.done.wait [#allocation8], 16400  }
 0x14f   :  { %11887 = vsyncadd [#allocation8], 4294950896 }
 0x150   :  { %11888 = dma.done.wait [#allocation11], 1040  }
 0x151   :  { %11889 = vsyncadd [#allocation11], 4294966256 }
 0x152   :  { %11890 = dma.done.wait [#allocation14], 16400  }
 0x153   :  { %11891 = vsyncadd [#allocation14], 4294950896 }
 0x154   :  { %11892 = dma.done.wait [#allocation17], 528  }
 0x155   :  { %11893 = vsyncadd [#allocation17], 4294966768 }
 0x156   :  { %11894 = dma.done.wait [#allocation20], 16400  }
 0x157   :  { %11895 = vsyncadd [#allocation20], 4294950896 }
 0x158   :  { %11896 = dma.done.wait [#allocation23], 272  }
 0x159   :  { %11897 = vsyncadd [#allocation23], 4294967024 }
 0x15a   :  { %11898 = dma.done.wait [#allocation26], 16  }
 0x15b   :  { %11899 = vsyncadd [#allocation26], 4294967280  ;;  %v11920_v0 = vmov 0   ;;  %v10678_v1 = vld [vmem:[#allocation2 + $0x4] ss:$8 sps:$4 sm:$0xff]   ;;  %s14379_s5 = sld [smem:[#allocation36_spill]] }
 0x15c   :  { %335 = vmatprep.mubr.bf16.mxu1 %v11920_v0  ;;  %v10680_v2 = vld [vmem:[#allocation2] ss:$8 sps:$4 sm:$0xff]   ;;  %303 = vmatprep.subr.bf16.mxu1 %v10678_v1  ;;  %v10683_v4 = vld [vmem:[#allocation2 + $0x14] ss:$8 sps:$4 sm:$0xff]   ;;  %vm299_vm0 = vcmask 130048   ;;  %v11921_v10 = vmov 0.0  }
 0x15d   :  { %304 = vmatpush1.bf16.msra.mxu1 %v10680_v2  ;;  %v10681_v5 = vld [vmem:[#allocation2 + $0x10] ss:$8 sps:$4 sm:$0xff]   ;;  %v10686_v6 = vld [vmem:[#allocation2 + $0x24] ss:$8 sps:$4 sm:$0xff]   ;;  %v10684_v7 = vld [vmem:[#allocation2 + $0x20] ss:$8 sps:$4 sm:$0xff]   ;;  %476 = vmatprep.mubr.f32.mxu0 %v11921_v10 }
 0x15e   :  { %358 = vmatprep.subr.bf16.mxu1 %v10683_v4  ;;  %v10689_v8 = vld [vmem:[#allocation2 + $0x34] ss:$8 sps:$4 sm:$0xff]   ;;  %v10687_v9 = vld [vmem:[#allocation2 + $0x30] ss:$8 sps:$4 sm:$0xff]   ;;  %s14380_s1 = sld [smem:[#allocation39_spill]]  ;;  %vm405_vm1 = vcmask 1041408  }
 0x15f   :  { %s14381_s4 = sld [smem:[#allocation38_spill]]  ;;  %vm401_vm2 = vcmask 15360   ;;  %vm1065_vm3 = vcmask 523264   ;;  %s14382_s3 = sld [smem:[#allocation44_spill]]  ;;  %vm1710_vm4 = vcmask 64512   ;;  %vm2749_vm5 = vcmask 261120  }
 0x160   :  { %s14383_s22 = sld [smem:[#allocation45_spill]]  ;;  %s14384_s25 = sld [smem:[#allocation48_spill]] }
 0x161   :  { %v286_v3 = vld [vmem:[%s14379_s5] sm:$0x1]  ;;  %s14385_s18 = sld [smem:[#allocation49_spill]]  ;;  %s14386_s11 = sld [smem:[#allocation50_spill]] }
 0x162   :  { %8915 = vmatmul.mubr.msk.bf16.vlgmr.msra.gmra.mrb[0].mxu1 %vm299_vm0, %v286_v3 }
 0x163   :  { %359 = vmatpush1.bf16.msra.mxu1 %v10681_v5  ;;  %390 = vmatprep.mubr.bf16.mxu1 %v11920_v0 }
 0x164   :  { %576 = vmatprep.subr.bf16.mxu1 %v10686_v6  ;;  %v855_v11 = vld [vmem:[%s14380_s1 + $0x80] sm:$0xff]  ;;  %v856_v12 = vld [vmem:[%s14380_s1 + $0x88] sm:$0xff]  ;;  %v857_v16 = vld [vmem:[%s14380_s1 + $0x90] sm:$0xff] }
 0x165   :  { %v839_v13 = vld [vmem:[%s14380_s1] sm:$0xff]  ;;  %v12313_v14 = vpack.c.bf16 %v856_v12, %v855_v11  ;;  %v840_v15 = vld [vmem:[%s14380_s1 + $0x8] sm:$0xff]  ;;  %v858_v17 = vld [vmem:[%s14380_s1 + $0x98] sm:$0xff] }
 0x166   :  { %v12324_v18 = vpack.c.bf16 %v840_v15, %v839_v13  ;;  %v12326_v19 = vpack.c.bf16 %v858_v17, %v857_v16  ;;  %v841_v20 = vld [vmem:[%s14380_s1 + $0x10] sm:$0xff]  ;;  %v842_v21 = vld [vmem:[%s14380_s1 + $0x18] sm:$0xff]  ;;  %v859_v23 = vld [vmem:[%s14380_s1 + $0xa0] sm:$0xff] }
 0x167   :  { %v10052_v22 = vpack.c.bf16 %v842_v21, %v841_v20  ;;  %v860_v24 = vld [vmem:[%s14380_s1 + $0xa8] sm:$0xff]  ;;  %v843_v25 = vld [vmem:[%s14380_s1 + $0x20] sm:$0xff]  ;;  %v861_v29 = vld [vmem:[%s14380_s1 + $0xb0] sm:$0xff] }
 0x168   :  { %v10054_v26 = vpack.c.bf16 %v860_v24, %v859_v23  ;;  %v844_v27 = vld [vmem:[%s14380_s1 + $0x28] sm:$0xff]  ;;  %v862_v30 = vld [vmem:[%s14380_s1 + $0xb8] sm:$0xff]  ;;  %v845_v31 = vld [vmem:[%s14380_s1 + $0x30] sm:$0xff] }
 0x169   :  { %v10056_v28 = vpack.c.bf16 %v844_v27, %v843_v25  ;;  %v10058_v32 = vpack.c.bf16 %v862_v30, %v861_v29  ;;  %v846_v33 = vld [vmem:[%s14380_s1 + $0x38] sm:$0xff]  ;;  %v863_v35 = vld [vmem:[%s14380_s1 + $0xc0] sm:$0xff]  ;;  %v864_v36 = vld [vmem:[%s14380_s1 + $0xc8] sm:$0xff] }
 0x16a   :  { %8918 = vmatmul.mubr.msk.bf16.vlgmr.msra.gmra.mrb[4].mxu1 %vm299_vm0, %v286_v3  ;;  %v10060_v34 = vpack.c.bf16 %v846_v33, %v845_v31  ;;  %v10062_v37 = vpack.c.bf16 %v864_v36, %v863_v35  ;;  %v8919_v44 = vld [vmem:[%s14381_s4 + $0x8] sm:$0xff]  ;;  %v344_v48 = vld [vmem:[%s14381_s4] sm:$0xff]  ;;  %v8929_v53 = vld [vmem:[%s14381_s4 + $0x10] sm:$0xff] }
 0x16b   :  { %577 = vmatpush1.bf16.msra.mxu1 %v10684_v7  ;;  %608 = vmatprep.mubr.bf16.mxu1 %v11920_v0  ;;  %v8936_v57 = vld [vmem:[%s14381_s4 + $0x18] sm:$0xff]  ;;  %v847_v58 = vld [vmem:[%s14380_s1 + $0x40] sm:$0xff]  ;;  %v848_v59 = vld [vmem:[%s14380_s1 + $0x48] sm:$0xff] }
 0x16c   :  { %714 = vmatprep.subr.bf16.mxu1 %v10689_v8  ;;  %v10064_v60 = vpack.c.bf16 %v848_v59, %v847_v58  ;;  %v865_v61 = vld [vmem:[%s14380_s1 + $0xd0] sm:$0xff]  ;;  %v866_v62 = vld [vmem:[%s14380_s1 + $0xd8] sm:$0xff]  ;;  %v868_v4 = vld [vmem:[%s14380_s1 + $0xe8] sm:$0xff] }
 0x16d   :  { %v10066_v63 = vpack.c.bf16 %v866_v62, %v865_v61  ;;  %v850_v1 = vld [vmem:[%s14380_s1 + $0x58] sm:$0xff]  ;;  %v851_v6 = vld [vmem:[%s14380_s1 + $0x60] sm:$0xff]  ;;  %v852_v7 = vld [vmem:[%s14380_s1 + $0x68] sm:$0xff] }
 0x16e   :  { %v10072_v8 = vpack.c.bf16 %v852_v7, %v851_v6  ;;  %v870_v11 = vld [vmem:[%s14380_s1 + $0xf8] sm:$0xff]  ;;  %v853_v12 = vld [vmem:[%s14380_s1 + $0x70] sm:$0xff]  ;;  %v879_v58 = vld [vmem:[#allocation4 + $0x40] sm:$0xff] }
 0x16f   :  { %v884_v61 = vld [vmem:[#allocation4 + $0x68] sm:$0xff]  ;;  %v886_v62 = vld [vmem:[#allocation4 + $0x78] sm:$0xff] }
 0x172   :  { %8928 = vmatmul.mubr.msk.bf16.vlgmr.msra.gmra.mrb[8].mxu1 %vm299_vm0, %v286_v3 }
 0x173   :  { %715 = vmatpush1.bf16.msra.mxu1 %v10687_v9  ;;  %746 = vmatprep.mubr.bf16.mxu1 %v11920_v0  ;;  %v849_v0 = vld [vmem:[%s14380_s1 + $0x50] sm:$0xff] }
 0x174   :  { %10047 = vmatprep.subr.bf16.mxu1 %v12313_v14  ;;  %v10068_v2 = vpack.c.bf16 %v850_v1, %v849_v0  ;;  %v869_v9 = vld [vmem:[%s14380_s1 + $0xf0] sm:$0xff]  ;;  %v10122_v0 = vpack.c.bf16 %v886_v62, %v884_v61  ;;  %v883_v1 = vld [vmem:[#allocation4 + $0x60] sm:$0xff] }
 0x175   :  { %v10074_v13 = vpack.c.bf16 %v870_v11, %v869_v9  ;;  %v10747_v61 = vld [vmem:[#allocation9 + $0x90] ss:$8 sps:$4 sm:$0xff]   ;;  %v10746_v62 = vld [vmem:[#allocation9 + $0x194] ss:$8 sps:$4 sm:$0xff]  }
 0x17a   :  { %8935 = vmatmul.mubr.msk.bf16.vlgmr.msra.gmra.mrb[12].mxu1 %vm299_vm0, %v286_v3  ;;  %v867_v3 = vld [vmem:[%s14380_s1 + $0xe0] sm:$0xff] }
 0x17b   :  { %10049 = vmatpush3.bf16.msra.mxu1 %v12324_v18  ;;  %v10070_v5 = vpack.c.bf16 %v868_v4, %v867_v3  ;;  %v10692_v4 = vld [vmem:[#allocation9 + $0x104] ss:$8 sps:$4 sm:$0xff]  }
 0x17c   :  { %10051 = vmatprep.subr.bf16.mxu1 %v12326_v19 }
 0x17f   :  { %10053 = vmatpush3.bf16.msra.mxu1 %v10052_v22 }
 0x180   :  { %10055 = vmatprep.subr.bf16.mxu1 %v10054_v26 }
 0x183   :  { %10057 = vmatpush3.bf16.msra.mxu1 %v10056_v28 }
 0x184   :  { %10059 = vmatprep.subr.bf16.mxu1 %v10058_v32 }
 0x187   :  { %10061 = vmatpush3.bf16.msra.mxu1 %v10060_v34 }
 0x188   :  { %10063 = vmatprep.subr.bf16.mxu1 %v10062_v37 }
 0x18b   :  { %10065 = vmatpush3.bf16.msra.mxu1 %v10064_v60 }
 0x18c   :  { %10067 = vmatprep.subr.bf16.mxu1 %v10066_v63 }
 0x18f   :  { %10069 = vmatpush3.bf16.msra.mxu1 %v10068_v2 }
 0x190   :  { %10071 = vmatprep.subr.bf16.mxu1 %v10070_v5 }
 0x193   :  { %10073 = vmatpush3.bf16.msra.mxu1 %v10072_v8 }
 0x194   :  { %10075 = vmatprep.subr.bf16.mxu1 %v10074_v13 }
 0x235   :  { %v337_v38 = vpop.f32.mrb[0].mxu1 }
 0x236   :  { %v339_v39 = vpop.f32.mrb[1].mxu1 }
 0x237   :  { %v341_v40 = vpop.f32.mrb[2].mxu1 }
 0x238   :  { %v342_v41 = vpop.f32.mrb[3].mxu1 }
 0x23d   :  { %v392_v42 = vpop.f32.mrb[4].mxu1 }
 0x23e   :  { %v394_v43 = vpop.f32.mrb[5].mxu1 }
 0x23f   :  { %v396_v45 = vpop.f32.mrb[6].mxu1  ;;  %8920 = vmatprep.subr.msk.mxu0 %vm405_vm1, %v394_v43 }
 0x240   :  { %v397_v46 = vpop.f32.mrb[7].mxu1  ;;  %8921 = vmatpush1.msk.msra.mxu0 %vm405_vm1, %v392_v42  ;;  %v874_v45 = vld [vmem:[#allocation4 + $0x18] sm:$0xff] }
 0x241   :  { %8922 = vmatmul.mubr.msk.f32.vlgmr.msra.gmra.mrb[0].mxu0 %vm401_vm2, %v8919_v44  ;;  %8923 = vmatprep.subr.msk.mxu0 %vm405_vm1, %v339_v39  ;;  %v872_v44 = vld [vmem:[#allocation4 + $0x8] sm:$0xff] }
 0x242   :  { %8924 = vmatpush1.msk.msra.mxu0 %vm405_vm1, %v337_v38  ;;  %556 = vmatprep.mubr.f32.mxu0 %v11921_v10  ;;  %v10110_v46 = vpack.c.bf16 %v874_v45, %v872_v44  ;;  %v10714_v44 = vld [vmem:[#allocation9 + $0x140] ss:$8 sps:$4 sm:$0xff]   ;;  %v10723_v45 = vld [vmem:[#allocation9 + $0x50] ss:$8 sps:$4 sm:$0xff]  }
 0x245   :  { %v610_v47 = vpop.f32.mrb[8].mxu1 }
 0x246   :  { %v612_v49 = vpop.f32.mrb[9].mxu1 }
 0x247   :  { %v614_v50 = vpop.f32.mrb[10].mxu1  ;;  %8930 = vmatprep.subr.msk.mxu0 %vm405_vm1, %v612_v49 }
 0x248   :  { %v615_v51 = vpop.f32.mrb[11].mxu1  ;;  %v876_v50 = vld [vmem:[#allocation4 + $0x28] sm:$0xff] }
 0x249   :  { %8925 = vmatmul.mubr.msk.f32.vlgmr.msra.gmra.mrb[0].mxu0 %vm401_vm2, %v344_v48  ;;  %v873_v48 = vld [vmem:[#allocation4 + $0x10] sm:$0xff]  ;;  %v878_v51 = vld [vmem:[#allocation4 + $0x38] sm:$0xff] }
 0x24a   :  { %8931 = vmatpush1.msk.msra.mxu0 %vm405_vm1, %v610_v47  ;;  %692 = vmatprep.mubr.f32.mxu0 %v11921_v10  ;;  %v871_v47 = vld [vmem:[#allocation4] sm:$0xff] }
 0x24b   :  { %v10112_v49 = vpack.c.bf16 %v873_v48, %v871_v47  ;;  %v10731_v47 = vld [vmem:[#allocation9 + $0x64] ss:$8 sps:$4 sm:$0xff]   ;;  %v10720_v48 = vld [vmem:[#allocation9 + $0x150] ss:$8 sps:$4 sm:$0xff]  }
 0x24d   :  { %v748_v52 = vpop.f32.mrb[12].mxu1 }
 0x24e   :  { %v750_v54 = vpop.f32.mrb[13].mxu1 }
 0x24f   :  { %v752_v55 = vpop.f32.mrb[14].mxu1  ;;  %8937 = vmatprep.subr.msk.mxu0 %vm405_vm1, %v750_v54  ;;  %v877_v54 = vld [vmem:[#allocation4 + $0x30] sm:$0xff] }
 0x250   :  { %v753_v56 = vpop.f32.mrb[15].mxu1 }
 0x251   :  { %8932 = vmatmul.mubr.msk.f32.vlgmr.msra.gmra.mrb[0].mxu0 %vm401_vm2, %v8929_v53  ;;  %v875_v53 = vld [vmem:[#allocation4 + $0x20] sm:$0xff]  ;;  %v880_v56 = vld [vmem:[#allocation4 + $0x48] sm:$0xff] }
 0x252   :  { %8938 = vmatpush1.msk.msra.mxu0 %vm405_vm1, %v748_v52  ;;  %830 = vmatprep.mubr.f32.mxu0 %v11921_v10  ;;  %v10114_v52 = vpack.c.bf16 %v878_v51, %v876_v50  ;;  %v10116_v55 = vpack.c.bf16 %v877_v54, %v875_v53  ;;  %v10728_v50 = vld [vmem:[#allocation9 + $0x164] ss:$8 sps:$4 sm:$0xff]   ;;  %v10737_v51 = vld [vmem:[#allocation9 + $0x74] ss:$8 sps:$4 sm:$0xff]   ;;  %v10735_v53 = vld [vmem:[#allocation9 + $0x70] ss:$8 sps:$4 sm:$0xff]  }
 0x253   :  { %10079 = vmatprep.subr.bf16.mxu0 %v12313_v14  ;;  %v854_v14 = vld [vmem:[%s14380_s1 + $0x78] sm:$0xff] }
 0x254   :  { %v10076_v15 = vpack.c.bf16 %v854_v14, %v853_v12  ;;  %v10734_v54 = vld [vmem:[#allocation9 + $0x174] ss:$8 sps:$4 sm:$0xff]  }
 0x256   :  { %10077 = vmatpush3.bf16.msra.mxu1 %v10076_v15 }
 0x257   :  { %10111 = vmatprep.subr.bf16.mxu1 %v10110_v46 }
 0x259   :  { %8939 = vmatmul.mubr.msk.f32.vlgmr.msra.gmra.mrb[0].mxu0 %vm401_vm2, %v8936_v57  ;;  %v882_v57 = vld [vmem:[#allocation4 + $0x58] sm:$0xff] }
 0x25a   :  { %10081 = vmatpush3.bf16.msra.mxu0 %v12324_v18  ;;  %v10118_v59 = vpack.c.bf16 %v882_v57, %v880_v56  ;;  %v10732_v56 = vld [vmem:[#allocation9 + $0x170] ss:$8 sps:$4 sm:$0xff]   ;;  %v10741_v57 = vld [vmem:[#allocation9 + $0x80] ss:$8 sps:$4 sm:$0xff]  }
 0x25b   :  { %10083 = vmatprep.subr.bf16.mxu0 %v12326_v19 }
 0x25e   :  { %10085 = vmatpush3.bf16.msra.mxu0 %v10052_v22 }
 0x25f   :  { %10087 = vmatprep.subr.bf16.mxu0 %v10054_v26 }
 0x262   :  { %10089 = vmatpush3.bf16.msra.mxu0 %v10056_v28 }
 0x263   :  { %10091 = vmatprep.subr.bf16.mxu0 %v10058_v32 }
 0x266   :  { %10093 = vmatpush3.bf16.msra.mxu0 %v10060_v34 }
 0x267   :  { %10095 = vmatprep.subr.bf16.mxu0 %v10062_v37 }
 0x26a   :  { %10097 = vmatpush3.bf16.msra.mxu0 %v10064_v60  ;;  %v881_v60 = vld [vmem:[#allocation4 + $0x50] sm:$0xff] }
 0x26b   :  { %10099 = vmatprep.subr.bf16.mxu0 %v10066_v63  ;;  %v10120_v63 = vpack.c.bf16 %v881_v60, %v879_v58  ;;  %v10740_v58 = vld [vmem:[#allocation9 + $0x184] ss:$8 sps:$4 sm:$0xff]   ;;  %v10738_v60 = vld [vmem:[#allocation9 + $0x180] ss:$8 sps:$4 sm:$0xff]  }
 0x26e   :  { %10101 = vmatpush3.bf16.msra.mxu0 %v10068_v2  ;;  %v885_v2 = vld [vmem:[#allocation4 + $0x70] sm:$0xff] }
 0x26f   :  { %10103 = vmatprep.subr.bf16.mxu0 %v10070_v5  ;;  %v10124_v3 = vpack.c.bf16 %v885_v2, %v883_v1  ;;  %v10695_v5 = vld [vmem:[#allocation9 + $0x4] ss:$8 sps:$4 sm:$0xff]   ;;  %v10753_v1 = vld [vmem:[#allocation9 + $0xa0] ss:$8 sps:$4 sm:$0xff]  }
 0x270   :  { %v10752_v2 = vld [vmem:[#allocation9 + $0x1a4] ss:$8 sps:$4 sm:$0xff]  }
 0x272   :  { %10105 = vmatpush3.bf16.msra.mxu0 %v10072_v8 }
 0x273   :  { %10107 = vmatprep.subr.bf16.mxu0 %v10074_v13 }
 0x276   :  { %10109 = vmatpush3.bf16.msra.mxu0 %v10076_v15 }
 0x277   :  { %10127 = vmatprep.subr.bf16.mxu0 %v10110_v46  ;;  %v10722_v46 = vld [vmem:[#allocation9 + $0x154] ss:$8 sps:$4 sm:$0xff]  }
 0x32c   :  { %v12439_v16 = vpop.f32.mrb[0].mxu0 }
 0x32d   :  { %v887_v17 = vrot.slane %v12439_v16, 4  ;;  %v899_v18 = vmul.f32 %v12439_v16, %v12439_v16  ;;  %v12444_v19 = vpop.f32.mrb[1].mxu0 }
 0x32e   :  { %v893_v20 = vrot.slane %v12444_v19, 4  ;;  %v900_v21 = vmul.f32 %v12444_v19, %v12444_v19 }
 0x32f   :  { %v888_v22 = vadd.f32 %v887_v17, %v12439_v16  ;;  %v901_v23 = vrot.slane %v899_v18, 4 }
 0x330   :  { %v894_v24 = vadd.f32 %v893_v20, %v12444_v19  ;;  %v907_v25 = vrot.slane %v900_v21, 4  ;;  %v1058_v20 = vld [vmem:[#allocation6] sm:$0x1] }
 0x331   :  { %v889_v26 = vrot.slane %v888_v22, 2  ;;  %v902_v27 = vadd.f32 %v901_v23, %v899_v18 }
 0x332   :  { %v895_v28 = vrot.slane %v894_v24, 2  ;;  %v908_v29 = vadd.f32 %v907_v25, %v900_v21  ;;  %v1062_v25 = vld [vmem:[#allocation7] sm:$0x1] }
 0x333   :  { %v890_v30 = vadd.f32 %v889_v26, %v888_v22  ;;  %v903_v31 = vrot.slane %v902_v27, 2  ;;  %v10693_v22 = vld [vmem:[#allocation9] ss:$8 sps:$4 sm:$0xff]  }
 0x334   :  { %v896_v32 = vadd.f32 %v895_v28, %v894_v24  ;;  %v909_v33 = vrot.slane %v908_v29, 2  ;;  %v10701_v24 = vld [vmem:[#allocation9 + $0x14] ss:$8 sps:$4 sm:$0xff]   ;;  %v10699_v28 = vld [vmem:[#allocation9 + $0x10] ss:$8 sps:$4 sm:$0xff]  }
 0x335   :  { %v891_v34 = vrot.slane %v890_v30, 1  ;;  %v904_v35 = vadd.f32 %v903_v31, %v902_v27  ;;  %v10690_v27 = vld [vmem:[#allocation9 + $0x100] ss:$8 sps:$4 sm:$0xff]   ;;  %v10707_v31 = vld [vmem:[#allocation9 + $0x24] ss:$8 sps:$4 sm:$0xff]  }
 0x336   :  { %v897_v36 = vrot.slane %v896_v32, 1  ;;  %v910_v37 = vadd.f32 %v909_v33, %v908_v29  ;;  %v10705_v33 = vld [vmem:[#allocation9 + $0x20] ss:$8 sps:$4 sm:$0xff]  }
 0x337   :  { %v905_v38 = vrot.slane %v904_v35, 1  ;;  %v892_v41 = vadd.f32 %v891_v34, %v890_v30  ;;  %v10698_v30 = vld [vmem:[#allocation9 + $0x114] ss:$8 sps:$4 sm:$0xff]   ;;  %v10704_v34 = vld [vmem:[#allocation9 + $0x124] ss:$8 sps:$4 sm:$0xff]  }
 0x338   :  { %v898_v39 = vadd.f32 %v897_v36, %v896_v32  ;;  %v911_v40 = vrot.slane %v910_v37, 1  ;;  %v10696_v32 = vld [vmem:[#allocation9 + $0x110] ss:$8 sps:$4 sm:$0xff]   ;;  %v10702_v36 = vld [vmem:[#allocation9 + $0x120] ss:$8 sps:$4 sm:$0xff]  }
 0x339   :  { %v906_v43 = vadd.f32 %v905_v38, %v904_v35  ;;  %v10713_v35 = vld [vmem:[#allocation9 + $0x34] ss:$8 sps:$4 sm:$0xff]  }
 0x33a   :  { %977 = vmatprep.mubr.f32.mxu1 %v898_v39  ;;  %v912_v42 = vadd.f32 %v911_v40, %v910_v37  ;;  %v10711_v37 = vld [vmem:[#allocation9 + $0x30] ss:$8 sps:$4 sm:$0xff]   ;;  %v10710_v38 = vld [vmem:[#allocation9 + $0x134] ss:$8 sps:$4 sm:$0xff]   ;;  %v10719_v39 = vld [vmem:[#allocation9 + $0x44] ss:$8 sps:$4 sm:$0xff]  }
 0x33b   :  { %978 = vmatmul.mubr.f32.vlgmr.msra.gmra.mrb[16].mxu1 %v892_v41  ;;  %v10708_v40 = vld [vmem:[#allocation9 + $0x130] ss:$8 sps:$4 sm:$0xff]   ;;  %v10717_v41 = vld [vmem:[#allocation9 + $0x40] ss:$8 sps:$4 sm:$0xff]  }
 0x33c   :  { %1047 = vmatprep.mubr.f32.mxu0 %v912_v42  ;;  %1133 = vmatprep.mubr.f32.mxu1 %v11921_v10  ;;  %v10716_v42 = vld [vmem:[#allocation9 + $0x144] ss:$8 sps:$4 sm:$0xff]  }
 0x33d   :  { %1048 = vmatmul.mubr.f32.vlgmr.msra.gmra.mrb[2].mxu0 %v906_v43  ;;  %10113 = vmatpush1.bf16.msra.mxu1 %v10112_v49  ;;  %v10725_v43 = vld [vmem:[#allocation9 + $0x54] ss:$8 sps:$4 sm:$0xff]  }
 0x33e   :  { %1207 = vmatprep.mubr.f32.mxu0 %v11921_v10  ;;  %10129 = vmatpush1.bf16.msra.mxu0 %v10112_v49  ;;  %v10729_v49 = vld [vmem:[#allocation9 + $0x60] ss:$8 sps:$4 sm:$0xff]  }
 0x33f   :  { %10115 = vmatprep.subr.bf16.mxu1 %v10114_v52  ;;  %10131 = vmatprep.subr.bf16.mxu0 %v10114_v52  ;;  %v10726_v52 = vld [vmem:[#allocation9 + $0x160] ss:$8 sps:$4 sm:$0xff]  }
 0x341   :  { %10117 = vmatpush1.bf16.msra.mxu1 %v10116_v55 }
 0x342   :  { %10133 = vmatpush1.bf16.msra.mxu0 %v10116_v55  ;;  %10119 = vmatprep.subr.bf16.mxu1 %v10118_v59  ;;  %v10743_v55 = vld [vmem:[#allocation9 + $0x84] ss:$8 sps:$4 sm:$0xff]  }
 0x343   :  { %10135 = vmatprep.subr.bf16.mxu0 %v10118_v59  ;;  %v10749_v59 = vld [vmem:[#allocation9 + $0x94] ss:$8 sps:$4 sm:$0xff]  }
 0x345   :  { %10121 = vmatpush1.bf16.msra.mxu1 %v10120_v63 }
 0x346   :  { %10137 = vmatpush1.bf16.msra.mxu0 %v10120_v63  ;;  %10123 = vmatprep.subr.bf16.mxu1 %v10122_v0  ;;  %v10755_v63 = vld [vmem:[#allocation9 + $0xa4] ss:$8 sps:$4 sm:$0xff]  }
 0x347   :  { %10139 = vmatprep.subr.bf16.mxu0 %v10122_v0  ;;  %v10744_v0 = vld [vmem:[#allocation9 + $0x190] ss:$8 sps:$4 sm:$0xff]  }
 0x349   :  { %10125 = vmatpush1.bf16.msra.mxu1 %v10124_v3 }
 0x34a   :  { %10141 = vmatpush1.bf16.msra.mxu0 %v10124_v3  ;;  %1430 = vmatprep.subr.bf16.mxu1 %v10695_v5  ;;  %v10761_v3 = vld [vmem:[#allocation9 + $0xb4] ss:$8 sps:$4 sm:$0xff]   ;;  %v10759_v5 = vld [vmem:[#allocation9 + $0xb0] ss:$8 sps:$4 sm:$0xff]  }
 0x34b   :  { %1666 = vmatprep.subr.bf16.mxu0 %v10692_v4  ;;  %v10750_v4 = vld [vmem:[#allocation9 + $0x1a0] ss:$8 sps:$4 sm:$0xff]  }
 0x40e   :  { %v9798_v6 = vpop.f32.mrb[16].mxu1 }
 0x40f   :  { %v9799_v7 = vpop.f32.mrb[17].mxu1 }
 0x410   :  { %v9800_v8 = vadd.f32 %v9799_v7, %v9798_v6  ;;  %v9833_v9 = vpop.f32.mrb[2].mxu0  ;;  %v10758_v6 = vld [vmem:[#allocation9 + $0x1b4] ss:$8 sps:$4 sm:$0xff]   ;;  %v10767_v7 = vld [vmem:[#allocation9 + $0xc4] ss:$8 sps:$4 sm:$0xff]  }
 0x411   :  { %v9834_v11 = vpop.f32.mrb[3].mxu0 }
 0x412   :  { %v1054_v12 = vmul.f32 0.03125, %v9800_v8  ;;  %v9835_v13 = vadd.f32 %v9834_v11, %v9833_v9  ;;  %v10756_v8 = vld [vmem:[#allocation9 + $0x1b0] ss:$8 sps:$4 sm:$0xff]   ;;  %v10765_v9 = vld [vmem:[#allocation9 + $0xc0] ss:$8 sps:$4 sm:$0xff]  }
 0x413   :  { %v10764_v11 = vld [vmem:[#allocation9 + $0x1c4] ss:$8 sps:$4 sm:$0xff]  }
 0x414   :  { %v1056_v14 = vmul.f32 %v1054_v12, %v1054_v12  ;;  %v1055_v15 = vmul.f32 0.03125, %v9835_v13  ;;  %v10770_v13 = vld [vmem:[#allocation9 + $0x1d4] ss:$8 sps:$4 sm:$0xff]  }
 0x416   :  { %v1057_v17 = vsub.f32 %v1055_v15, %v1056_v14  ;;  %v10768_v14 = vld [vmem:[#allocation9 + $0x1d0] ss:$8 sps:$4 sm:$0xff]   ;;  %v10773_v15 = vld [vmem:[#allocation9 + $0xd4] ss:$8 sps:$4 sm:$0xff]  }
 0x418   :  { %v1059_v18 = vadd.f32 1e-05, %v1057_v17  ;;  %v10771_v17 = vld [vmem:[#allocation9 + $0xd0] ss:$8 sps:$4 sm:$0xff]  }
 0x41a   :  { %11458 = vrsqrt.f32 %v1059_v18  ;;  %v10776_v18 = vld [vmem:[#allocation9 + $0x1e4] ss:$8 sps:$4 sm:$0xff]  }
 0x424   :  { %v11459_v21 = vpop.eup %11458 }
 0x425   :  { %v1061_v23 = vmul.f32 %v11459_v21, %v1058_v20  ;;  %v10774_v20 = vld [vmem:[#allocation9 + $0x1e0] ss:$8 sps:$4 sm:$0xff]   ;;  %v10779_v21 = vld [vmem:[#allocation9 + $0xe4] ss:$8 sps:$4 sm:$0xff]  }
 0x427   :  { %8940 = vmatmul.mubr.msk.f32.vlgmr.msra.gmra.mrb[18].mxu1 %vm1065_vm3, %v1061_v23  ;;  %v1063_v26 = vmul.f32 %v1061_v23, %v1054_v12  ;;  %v10762_v12 = vld [vmem:[#allocation9 + $0x1c0] ss:$8 sps:$4 sm:$0xff]   ;;  %v10782_v23 = vld [vmem:[#allocation9 + $0x1f4] ss:$8 sps:$4 sm:$0xff]  }
 0x428   :  { %1431 = vmatpush1.bf16.msra.mxu1 %v10693_v22  ;;  %v10777_v22 = vld [vmem:[#allocation9 + $0xe0] ss:$8 sps:$4 sm:$0xff]  }
 0x429   :  { %v1064_v29 = vsub.f32 %v1062_v25, %v1063_v26  ;;  %1432 = vmatprep.subr.bf16.mxu1 %v10701_v24  ;;  %v10780_v24 = vld [vmem:[#allocation9 + $0x1f0] ss:$8 sps:$4 sm:$0xff]   ;;  %v10785_v25 = vld [vmem:[#allocation9 + $0xf4] ss:$8 sps:$4 sm:$0xff]  }
 0x42a   :  { %v10783_v26 = vld [vmem:[#allocation9 + $0xf0] ss:$8 sps:$4 sm:$0xff]  }
 0x42b   :  { %8941 = vmatmul.mubr.msk.f32.vlgmr.msra.gmra.mrb[4].mxu0 %vm1065_vm3, %v1064_v29 }
 0x42c   :  { %1667 = vmatpush1.bf16.msra.mxu0 %v10690_v27  ;;  %1433 = vmatpush1.bf16.msra.mxu1 %v10699_v28  ;;  %v10788_v27 = vld [vmem:[#allocation9 + $0x204] ss:$8 sps:$4 sm:$0xff]   ;;  %v1214_v28 = vlaneseq }
 0x42d   :  { %1668 = vmatprep.subr.bf16.mxu0 %v10698_v30  ;;  %1434 = vmatprep.subr.bf16.mxu1 %v10707_v31 }
 0x42e   :  { %v1215_v29 = vshrl.u32 %v1214_v28, 7  ;;  %v10836_v28 = vld [vmem:[#allocation9 + $0x304] ss:$8 sps:$4 sm:$0xff]  }
 0x430   :  { %1669 = vmatpush1.bf16.msra.mxu0 %v10696_v32  ;;  %1435 = vmatpush1.bf16.msra.mxu1 %v10705_v33  ;;  %v12455_v30 = vsub.s32 0, %v1215_v29 }
 0x431   :  { %1670 = vmatprep.subr.bf16.mxu0 %v10704_v34  ;;  %1436 = vmatprep.subr.bf16.mxu1 %v10713_v35 }
 0x434   :  { %1671 = vmatpush1.bf16.msra.mxu0 %v10702_v36  ;;  %1437 = vmatpush1.bf16.msra.mxu1 %v10711_v37 }
 0x435   :  { %1672 = vmatprep.subr.bf16.mxu0 %v10710_v38  ;;  %1438 = vmatprep.subr.bf16.mxu1 %v10719_v39 }
 0x438   :  { %1673 = vmatpush1.bf16.msra.mxu0 %v10708_v40  ;;  %1439 = vmatpush1.bf16.msra.mxu1 %v10717_v41 }
 0x439   :  { %1674 = vmatprep.subr.bf16.mxu0 %v10716_v42  ;;  %1440 = vmatprep.subr.bf16.mxu1 %v10725_v43 }
 0x43c   :  { %1675 = vmatpush1.bf16.msra.mxu0 %v10714_v44  ;;  %1441 = vmatpush1.bf16.msra.mxu1 %v10723_v45 }
 0x43d   :  { %1676 = vmatprep.subr.bf16.mxu0 %v10722_v46  ;;  %1442 = vmatprep.subr.bf16.mxu1 %v10731_v47  ;;  %v10786_v46 = vld [vmem:[#allocation9 + $0x200] ss:$8 sps:$4 sm:$0xff]  }
 0x440   :  { %1677 = vmatpush1.bf16.msra.mxu0 %v10720_v48  ;;  %1443 = vmatpush1.bf16.msra.mxu1 %v10729_v49  ;;  %v10791_v48 = vld [vmem:[#allocation9 + $0x214] ss:$8 sps:$4 sm:$0xff]   ;;  %v10792_v49 = vld [vmem:[#allocation9 + $0x220] ss:$8 sps:$4 sm:$0xff]  }
 0x441   :  { %1678 = vmatprep.subr.bf16.mxu0 %v10728_v50  ;;  %1444 = vmatprep.subr.bf16.mxu1 %v10737_v51  ;;  %v10797_v50 = vld [vmem:[#allocation9 + $0x234] ss:$8 sps:$4 sm:$0xff]   ;;  %v10795_v51 = vld [vmem:[#allocation9 + $0x230] ss:$8 sps:$4 sm:$0xff]  }
 0x444   :  { %1679 = vmatpush1.bf16.msra.mxu0 %v10726_v52  ;;  %1445 = vmatpush1.bf16.msra.mxu1 %v10735_v53  ;;  %v10800_v52 = vld [vmem:[#allocation9 + $0x244] ss:$8 sps:$4 sm:$0xff]   ;;  %v10798_v53 = vld [vmem:[#allocation9 + $0x240] ss:$8 sps:$4 sm:$0xff]  }
 0x445   :  { %1680 = vmatprep.subr.bf16.mxu0 %v10734_v54  ;;  %1446 = vmatprep.subr.bf16.mxu1 %v10743_v55  ;;  %v10803_v54 = vld [vmem:[#allocation9 + $0x254] ss:$8 sps:$4 sm:$0xff]   ;;  %v10801_v55 = vld [vmem:[#allocation9 + $0x250] ss:$8 sps:$4 sm:$0xff]  }
 0x448   :  { %1681 = vmatpush1.bf16.msra.mxu0 %v10732_v56  ;;  %1447 = vmatpush1.bf16.msra.mxu1 %v10741_v57  ;;  %v10806_v56 = vld [vmem:[#allocation9 + $0x264] ss:$8 sps:$4 sm:$0xff]   ;;  %v10804_v57 = vld [vmem:[#allocation9 + $0x260] ss:$8 sps:$4 sm:$0xff]  }
 0x449   :  { %1682 = vmatprep.subr.bf16.mxu0 %v10740_v58  ;;  %1448 = vmatprep.subr.bf16.mxu1 %v10749_v59  ;;  %v10809_v58 = vld [vmem:[#allocation9 + $0x274] ss:$8 sps:$4 sm:$0xff]   ;;  %v10807_v59 = vld [vmem:[#allocation9 + $0x270] ss:$8 sps:$4 sm:$0xff]  }
 0x44c   :  { %1683 = vmatpush1.bf16.msra.mxu0 %v10738_v60  ;;  %1449 = vmatpush1.bf16.msra.mxu1 %v10747_v61  ;;  %v10812_v60 = vld [vmem:[#allocation9 + $0x284] ss:$8 sps:$4 sm:$0xff]   ;;  %v10810_v61 = vld [vmem:[#allocation9 + $0x280] ss:$8 sps:$4 sm:$0xff]  }
 0x44d   :  { %1684 = vmatprep.subr.bf16.mxu0 %v10746_v62  ;;  %1450 = vmatprep.subr.bf16.mxu1 %v10755_v63  ;;  %v10815_v62 = vld [vmem:[#allocation9 + $0x294] ss:$8 sps:$4 sm:$0xff]   ;;  %v10813_v63 = vld [vmem:[#allocation9 + $0x290] ss:$8 sps:$4 sm:$0xff]  }
 0x450   :  { %1685 = vmatpush1.bf16.msra.mxu0 %v10744_v0  ;;  %1451 = vmatpush1.bf16.msra.mxu1 %v10753_v1  ;;  %v10818_v0 = vld [vmem:[#allocation9 + $0x2a4] ss:$8 sps:$4 sm:$0xff]   ;;  %v10816_v1 = vld [vmem:[#allocation9 + $0x2a0] ss:$8 sps:$4 sm:$0xff]  }
 0x451   :  { %1686 = vmatprep.subr.bf16.mxu0 %v10752_v2  ;;  %1452 = vmatprep.subr.bf16.mxu1 %v10761_v3  ;;  %v10821_v2 = vld [vmem:[#allocation9 + $0x2b4] ss:$8 sps:$4 sm:$0xff]   ;;  %v10819_v3 = vld [vmem:[#allocation9 + $0x2b0] ss:$8 sps:$4 sm:$0xff]  }
 0x454   :  { %1687 = vmatpush1.bf16.msra.mxu0 %v10750_v4  ;;  %1453 = vmatpush1.bf16.msra.mxu1 %v10759_v5  ;;  %v10824_v4 = vld [vmem:[#allocation9 + $0x2c4] ss:$8 sps:$4 sm:$0xff]   ;;  %v10822_v5 = vld [vmem:[#allocation9 + $0x2c0] ss:$8 sps:$4 sm:$0xff]  }
 0x455   :  { %1688 = vmatprep.subr.bf16.mxu0 %v10758_v6  ;;  %1454 = vmatprep.subr.bf16.mxu1 %v10767_v7  ;;  %v10827_v6 = vld [vmem:[#allocation9 + $0x2d4] ss:$8 sps:$4 sm:$0xff]   ;;  %v10825_v7 = vld [vmem:[#allocation9 + $0x2d0] ss:$8 sps:$4 sm:$0xff]  }
 0x458   :  { %1689 = vmatpush1.bf16.msra.mxu0 %v10756_v8  ;;  %1455 = vmatpush1.bf16.msra.mxu1 %v10765_v9  ;;  %v10830_v8 = vld [vmem:[#allocation9 + $0x2e4] ss:$8 sps:$4 sm:$0xff]   ;;  %v10828_v9 = vld [vmem:[#allocation9 + $0x2e0] ss:$8 sps:$4 sm:$0xff]  }
 0x459   :  { %1690 = vmatprep.subr.bf16.mxu0 %v10764_v11  ;;  %1456 = vmatprep.subr.bf16.mxu1 %v10773_v15  ;;  %v10833_v11 = vld [vmem:[#allocation9 + $0x2f4] ss:$8 sps:$4 sm:$0xff]  }
 0x45c   :  { %1691 = vmatpush1.bf16.msra.mxu0 %v10762_v12  ;;  %1457 = vmatpush1.bf16.msra.mxu1 %v10771_v17  ;;  %v10831_v12 = vld [vmem:[#allocation9 + $0x2f0] ss:$8 sps:$4 sm:$0xff]  }
 0x45d   :  { %1692 = vmatprep.subr.bf16.mxu0 %v10770_v13  ;;  %1458 = vmatprep.subr.bf16.mxu1 %v10779_v21 }
 0x460   :  { %1693 = vmatpush1.bf16.msra.mxu0 %v10768_v14  ;;  %1459 = vmatpush1.bf16.msra.mxu1 %v10777_v22 }
 0x461   :  { %1694 = vmatprep.subr.bf16.mxu0 %v10776_v18  ;;  %1460 = vmatprep.subr.bf16.mxu1 %v10785_v25  ;;  %v9006_v18 = vld [vmem:[%s14382_s3 + $0x10] sm:$0xff]  ;;  %v1471_v25 = vld [vmem:[%s14382_s3] sm:$0xff] }
 0x464   :  { %1695 = vmatpush1.bf16.msra.mxu0 %v10774_v20  ;;  %1461 = vmatpush1.bf16.msra.mxu1 %v10783_v26  ;;  %v1472_v26 = vld [vmem:[%s14382_s3 + $0x8] sm:$0xff] }
 0x465   :  { %1696 = vmatprep.subr.bf16.mxu0 %v10782_v23 }
 0x468   :  { %1697 = vmatpush1.bf16.msra.mxu0 %v10780_v24  ;;  %v9007_v24 = vld [vmem:[%s14382_s3 + $0x18] sm:$0xff] }
 0x469   :  { %2070 = vmatprep.subr.bf16.mxu0 %v10788_v27 }
 0x4fa   :  { %v1135_v31 = vpop.f32.mrb[18].mxu1 }
 0x4fb   :  { %v1217_v32 = vrot.slane %v1135_v31, %v12455_v30  ;;  %v1137_v33 = vpop.f32.mrb[19].mxu1  ;;  %v9044_v31 = vld [vmem:[%s14382_s3 + $0x20] sm:$0xff] }
 0x4fc   :  { %v1221_v34 = vrot.slane %v1137_v33, %v12455_v30 }
 0x4fd   :  { %v1222_v35 = vmul.f32 %v1217_v32, %v12439_v16  ;;  %v10789_v16 = vld [vmem:[#allocation9 + $0x210] ss:$8 sps:$4 sm:$0xff]   ;;  %v10834_v32 = vld [vmem:[#allocation9 + $0x300] ss:$8 sps:$4 sm:$0xff]  }
 0x4fe   :  { %v1223_v36 = vmul.f32 %v1221_v34, %v12444_v19  ;;  %v1209_v37 = vpop.f32.mrb[4].mxu0  ;;  %v10794_v19 = vld [vmem:[#allocation9 + $0x224] ss:$8 sps:$4 sm:$0xff]   ;;  %v10839_v34 = vld [vmem:[#allocation9 + $0x314] ss:$8 sps:$4 sm:$0xff]  }
 0x4ff   :  { %v1227_v38 = vrot.slane %v1209_v37, %v12455_v30  ;;  %v1211_v39 = vpop.f32.mrb[5].mxu0  ;;  %v10837_v37 = vld [vmem:[#allocation9 + $0x310] ss:$8 sps:$4 sm:$0xff]  }
 0x500   :  { %v1231_v40 = vrot.slane %v1211_v39, %v12455_v30  ;;  %v10840_v39 = vld [vmem:[#allocation9 + $0x320] ss:$8 sps:$4 sm:$0xff]  }
 0x501   :  { %v1232_v41 = vadd.f32 %v1227_v38, %v1222_v35  ;;  %v10842_v38 = vld [vmem:[#allocation9 + $0x324] ss:$8 sps:$4 sm:$0xff]  }
 0x502   :  { %v1233_v42 = vadd.f32 %v1231_v40, %v1223_v36  ;;  %v9045_v36 = vld [vmem:[%s14382_s3 + $0x28] sm:$0xff]  ;;  %v10845_v40 = vld [vmem:[#allocation9 + $0x334] ss:$8 sps:$4 sm:$0xff]  }
 0x503   :  { %v1234_v43 = vmax.f32 %v1232_v41, 0.0  ;;  %v10843_v41 = vld [vmem:[#allocation9 + $0x330] ss:$8 sps:$4 sm:$0xff]  }
 0x504   :  { %v1235_v44 = vmax.f32 %v1233_v42, 0.0  ;;  %v10848_v42 = vld [vmem:[#allocation9 + $0x344] ss:$8 sps:$4 sm:$0xff]  }
 0x505   :  { %v12465_v47 = vpack.c.bf16 %v1234_v43, %v1234_v43  ;;  %v10846_v43 = vld [vmem:[#allocation9 + $0x340] ss:$8 sps:$4 sm:$0xff]  }
 0x506   :  { %v12463_v45 = vpack.c.bf16 %v1235_v44, %v1235_v44  ;;  %v10851_v44 = vld [vmem:[#allocation9 + $0x354] ss:$8 sps:$4 sm:$0xff]  }
 0x508   :  { %1462 = vmatprep.mubr.bf16.mxu1 %v12463_v45  ;;  %1698 = vmatprep.mubr.bf16.mxu0 %v12463_v45 }
 0x509   :  { %1463 = vmatmul.mubr.bf16.vlgmr.msra.gmra.mrb[20].mxu1 %v12465_v47  ;;  %1699 = vmatmul.mubr.bf16.vlgmr.msra.gmra.mrb[8].mxu0 %v12465_v47 }
 0x50a   :  { %2071 = vmatpush1.bf16.msra.mxu0 %v10786_v46  ;;  %2102 = vmatprep.mubr.bf16.mxu0 %v12463_v45  ;;  %v10849_v46 = vld [vmem:[#allocation9 + $0x350] ss:$8 sps:$4 sm:$0xff]  }
 0x50b   :  { %2072 = vmatprep.subr.bf16.mxu0 %v10791_v48  ;;  %1781 = vmatprep.mubr.f32.mxu1 %v11921_v10  ;;  %v10854_v48 = vld [vmem:[#allocation9 + $0x364] ss:$8 sps:$4 sm:$0xff]  }
 0x50e   :  { %2073 = vmatpush1.bf16.msra.mxu0 %v10789_v16  ;;  %v10852_v16 = vld [vmem:[#allocation9 + $0x360] ss:$8 sps:$4 sm:$0xff]  }
 0x50f   :  { %2074 = vmatprep.subr.bf16.mxu0 %v10794_v19  ;;  %v10857_v19 = vld [vmem:[#allocation9 + $0x374] ss:$8 sps:$4 sm:$0xff]  }
 0x512   :  { %2075 = vmatpush1.bf16.msra.mxu0 %v10792_v49  ;;  %v10860_v49 = vld [vmem:[#allocation9 + $0x384] ss:$8 sps:$4 sm:$0xff]  }
 0x513   :  { %2076 = vmatprep.subr.bf16.mxu0 %v10797_v50  ;;  %v10858_v50 = vld [vmem:[#allocation9 + $0x380] ss:$8 sps:$4 sm:$0xff]  }
 0x516   :  { %2077 = vmatpush1.bf16.msra.mxu0 %v10795_v51  ;;  %v10863_v51 = vld [vmem:[#allocation9 + $0x394] ss:$8 sps:$4 sm:$0xff]  }
 0x517   :  { %2078 = vmatprep.subr.bf16.mxu0 %v10800_v52  ;;  %v10861_v52 = vld [vmem:[#allocation9 + $0x390] ss:$8 sps:$4 sm:$0xff]  }
 0x51a   :  { %2079 = vmatpush1.bf16.msra.mxu0 %v10798_v53  ;;  %v10866_v53 = vld [vmem:[#allocation9 + $0x3a4] ss:$8 sps:$4 sm:$0xff]  }
 0x51b   :  { %2080 = vmatprep.subr.bf16.mxu0 %v10803_v54  ;;  %v10864_v54 = vld [vmem:[#allocation9 + $0x3a0] ss:$8 sps:$4 sm:$0xff]  }
 0x51e   :  { %2081 = vmatpush1.bf16.msra.mxu0 %v10801_v55  ;;  %v10869_v55 = vld [vmem:[#allocation9 + $0x3b4] ss:$8 sps:$4 sm:$0xff]  }
 0x51f   :  { %2082 = vmatprep.subr.bf16.mxu0 %v10806_v56  ;;  %v10867_v56 = vld [vmem:[#allocation9 + $0x3b0] ss:$8 sps:$4 sm:$0xff]  }
 0x522   :  { %2083 = vmatpush1.bf16.msra.mxu0 %v10804_v57  ;;  %v10872_v57 = vld [vmem:[#allocation9 + $0x3c4] ss:$8 sps:$4 sm:$0xff]  }
 0x523   :  { %2084 = vmatprep.subr.bf16.mxu0 %v10809_v58  ;;  %v10870_v58 = vld [vmem:[#allocation9 + $0x3c0] ss:$8 sps:$4 sm:$0xff]  }
 0x526   :  { %2085 = vmatpush1.bf16.msra.mxu0 %v10807_v59  ;;  %v10875_v59 = vld [vmem:[#allocation9 + $0x3d4] ss:$8 sps:$4 sm:$0xff]  }
 0x527   :  { %2086 = vmatprep.subr.bf16.mxu0 %v10812_v60  ;;  %v10873_v60 = vld [vmem:[#allocation9 + $0x3d0] ss:$8 sps:$4 sm:$0xff]  }
 0x52a   :  { %2087 = vmatpush1.bf16.msra.mxu0 %v10810_v61  ;;  %v10878_v61 = vld [vmem:[#allocation9 + $0x3e4] ss:$8 sps:$4 sm:$0xff]  }
 0x52b   :  { %2088 = vmatprep.subr.bf16.mxu0 %v10815_v62  ;;  %v10876_v62 = vld [vmem:[#allocation9 + $0x3e0] ss:$8 sps:$4 sm:$0xff]  }
 0x52e   :  { %2089 = vmatpush1.bf16.msra.mxu0 %v10813_v63  ;;  %v10881_v63 = vld [vmem:[#allocation9 + $0x3f4] ss:$8 sps:$4 sm:$0xff]  }
 0x52f   :  { %2090 = vmatprep.subr.bf16.mxu0 %v10818_v0  ;;  %v10879_v0 = vld [vmem:[#allocation9 + $0x3f0] ss:$8 sps:$4 sm:$0xff]  }
 0x532   :  { %2091 = vmatpush1.bf16.msra.mxu0 %v10816_v1  ;;  %v2541_v1 = vld [vmem:[%s14383_s22 + $0x80] sm:$0xff] }
 0x533   :  { %2092 = vmatprep.subr.bf16.mxu0 %v10821_v2  ;;  %v2542_v2 = vld [vmem:[%s14383_s22 + $0x88] sm:$0xff] }
 0x536   :  { %2093 = vmatpush1.bf16.msra.mxu0 %v10819_v3  ;;  %v2525_v3 = vld [vmem:[%s14383_s22] sm:$0xff] }
 0x537   :  { %2094 = vmatprep.subr.bf16.mxu0 %v10824_v4  ;;  %v10142_v4 = vpack.c.bf16 %v2542_v2, %v2541_v1 }
 0x53a   :  { %2095 = vmatpush1.bf16.msra.mxu0 %v10822_v5  ;;  %v2526_v5 = vld [vmem:[%s14383_s22 + $0x8] sm:$0xff] }
 0x53b   :  { %2096 = vmatprep.subr.bf16.mxu0 %v10827_v6  ;;  %v2544_v6 = vld [vmem:[%s14383_s22 + $0x98] sm:$0xff] }
 0x53e   :  { %2097 = vmatpush1.bf16.msra.mxu0 %v10825_v7  ;;  %v10144_v7 = vpack.c.bf16 %v2526_v5, %v2525_v3 }
 0x53f   :  { %2098 = vmatprep.subr.bf16.mxu0 %v10830_v8 }
 0x542   :  { %2099 = vmatpush1.bf16.msra.mxu0 %v10828_v9  ;;  %v2527_v9 = vld [vmem:[%s14383_s22 + $0x10] sm:$0xff] }
 0x543   :  { %2100 = vmatprep.subr.bf16.mxu0 %v10833_v11  ;;  %v2528_v11 = vld [vmem:[%s14383_s22 + $0x18] sm:$0xff] }
 0x546   :  { %2101 = vmatpush1.bf16.msra.mxu0 %v10831_v12  ;;  %v2545_v12 = vld [vmem:[%s14383_s22 + $0xa0] sm:$0xff] }
 0x547   :  { %10143 = vmatprep.subr.bf16.mxu0 %v10142_v4 }
 0x549   :  { %2103 = vmatmul.mubr.bf16.vlgmr.msra.gmra.mrb[12].mxu0 %v12465_v47 }
 0x54a   :  { %10145 = vmatpush3.bf16.msra.mxu0 %v10144_v7 }
 0x5dc   :  { %v1464_v13 = vpop.f32.mrb[20].mxu1  ;;  %v1700_v14 = vpop.f32.mrb[8].mxu0 }
 0x5dd   :  { %v1466_v15 = vpop.f32.mrb[21].mxu1  ;;  %v1702_v17 = vpop.f32.mrb[9].mxu0 }
 0x5de   :  { %v1468_v20 = vpop.f32.mrb[22].mxu1  ;;  %v1704_v21 = vpop.f32.mrb[10].mxu0  ;;  %1717 = vmatprep.subr.mxu1 %v1702_v17  ;;  %v2529_v17 = vld [vmem:[%s14383_s22 + $0x20] sm:$0xff] }
 0x5df   :  { %v1469_v22 = vpop.f32.mrb[23].mxu1  ;;  %v1705_v23 = vpop.f32.mrb[11].mxu0  ;;  %1718 = vmatpush1.msra.mxu1 %v1700_v14  ;;  %v10148_v14 = vpack.c.bf16 %v2528_v11, %v2527_v9 }
 0x5e0   :  { %1800 = vmatprep.subr.mxu1 %v1466_v15  ;;  %9008 = vmatmul.mubr.msk.f32.vlgmr.msra.gmra.mrb[24].mxu1 %vm1710_vm4, %v9006_v18  ;;  %v2530_v18 = vld [vmem:[%s14383_s22 + $0x28] sm:$0xff]  ;;  %v9080_v23 = vld [vmem:[%s14382_s3 + $0x30] sm:$0xff] }
 0x5e1   :  { %1801 = vmatpush1.msra.mxu1 %v1464_v13  ;;  %1787 = vmatprep.mubr.f32.mxu1 %v11921_v10  ;;  %v2546_v13 = vld [vmem:[%s14383_s22 + $0xa8] sm:$0xff]  ;;  %v10152_v20 = vpack.c.bf16 %v2530_v18, %v2529_v17 }
 0x5e2   :  { %v10150_v15 = vpack.c.bf16 %v2546_v13, %v2545_v12 }
 0x5e4   :  { %9009 = vmatmul.mubr.msk.f32.gmra.mrb[26].mxu1 %vm1710_vm4, %v9007_v24 }
 0x5e5   :  { %1864 = vmatprep.mubr.f32.mxu1 %v11921_v10 }
 0x5e8   :  { %9010 = vmatmul.mubr.msk.f32.vlgmr.msra.gmra.mrb[24].mxu1 %vm1710_vm4, %v1471_v25 }
 0x5e9   :  { %1870 = vmatprep.mubr.f32.mxu1 %v11921_v10 }
 0x5ec   :  { %9011 = vmatmul.mubr.msk.f32.gmra.mrb[26].mxu1 %vm1710_vm4, %v1472_v26  ;;  %v9081_v26 = vld [vmem:[%s14382_s3 + $0x38] sm:$0xff] }
 0x5ed   :  { %2184 = vmatprep.mubr.f32.mxu1 %v11921_v10 }
 0x61c   :  { %v2104_v27 = vpop.f32.mrb[12].mxu0 }
 0x61d   :  { %v2106_v29 = vpop.f32.mrb[13].mxu0 }
 0x61e   :  { %v2108_v33 = vpop.f32.mrb[14].mxu0  ;;  %2120 = vmatprep.subr.mxu1 %v2106_v29 }
 0x61f   :  { %v2109_v35 = vpop.f32.mrb[15].mxu0  ;;  %2121 = vmatpush1.msra.mxu1 %v2104_v27  ;;  %v2547_v27 = vld [vmem:[%s14383_s22 + $0xb0] sm:$0xff] }
 0x620   :  { %9046 = vmatmul.mubr.msk.f32.vlgmr.msra.gmra.mrb[24].mxu1 %vm1710_vm4, %v9044_v31  ;;  %2394 = vmatprep.subr.bf16.mxu1 %v10836_v28  ;;  %v2548_v28 = vld [vmem:[%s14383_s22 + $0xb8] sm:$0xff]  ;;  %v2531_v31 = vld [vmem:[%s14383_s22 + $0x30] sm:$0xff]  ;;  %v2550_v35 = vld [vmem:[%s14383_s22 + $0xc8] sm:$0xff] }
 0x621   :  { %2395 = vmatpush1.bf16.msra.mxu1 %v10834_v32  ;;  %2190 = vmatprep.mubr.f32.mxu1 %v11921_v10  ;;  %v10154_v29 = vpack.c.bf16 %v2548_v28, %v2547_v27  ;;  %v2532_v32 = vld [vmem:[%s14383_s22 + $0x38] sm:$0xff] }
 0x622   :  { %2396 = vmatprep.subr.bf16.mxu1 %v10839_v34  ;;  %v10156_v33 = vpack.c.bf16 %v2532_v32, %v2531_v31  ;;  %v2549_v34 = vld [vmem:[%s14383_s22 + $0xc0] sm:$0xff]  ;;  %v2558_v32 = vld [vmem:[#allocation10 + $0x8] sm:$0xff] }
 0x624   :  { %9047 = vmatmul.mubr.msk.f32.gmra.mrb[26].mxu1 %vm1710_vm4, %v9045_v36  ;;  %v10158_v36 = vpack.c.bf16 %v2550_v35, %v2549_v34  ;;  %v2557_v34 = vld [vmem:[#allocation10] sm:$0xff] }
 0x625   :  { %2397 = vmatpush1.bf16.msra.mxu1 %v10837_v37  ;;  %2426 = vmatprep.mubr.bf16.mxu1 %v12463_v45  ;;  %v10855_v45 = vld [vmem:[#allocation9 + $0x370] ss:$8 sps:$4 sm:$0xff]   ;;  %v2533_v37 = vld [vmem:[%s14383_s22 + $0x40] sm:$0xff] }
 0x626   :  { %2398 = vmatprep.subr.bf16.mxu1 %v10842_v38  ;;  %v2534_v38 = vld [vmem:[%s14383_s22 + $0x48] sm:$0xff] }
 0x629   :  { %2399 = vmatpush1.bf16.msra.mxu1 %v10840_v39  ;;  %v10160_v39 = vpack.c.bf16 %v2534_v38, %v2533_v37  ;;  %v2562_v37 = vld [vmem:[#allocation10 + $0x28] sm:$0xff]  ;;  %v2564_v38 = vld [vmem:[#allocation10 + $0x38] sm:$0xff] }
 0x62a   :  { %2400 = vmatprep.subr.bf16.mxu1 %v10845_v40  ;;  %v2551_v40 = vld [vmem:[%s14383_s22 + $0xd0] sm:$0xff] }
 0x62d   :  { %2401 = vmatpush1.bf16.msra.mxu1 %v10843_v41  ;;  %v2552_v41 = vld [vmem:[%s14383_s22 + $0xd8] sm:$0xff] }
 0x62e   :  { %2402 = vmatprep.subr.bf16.mxu1 %v10848_v42  ;;  %v10162_v42 = vpack.c.bf16 %v2552_v41, %v2551_v40  ;;  %v12634_v40 = vpack.c.bf16 %v2564_v38, %v2562_v37  ;;  %v2561_v41 = vld [vmem:[#allocation10 + $0x20] sm:$0xff]  ;;  %v10915_v38 = vld [vmem:[#allocation15 + $0x50] ss:$8 sps:$4 sm:$0xff]  }
 0x62f   :  { %v10917_v37 = vld [vmem:[#allocation15 + $0x54] ss:$8 sps:$4 sm:$0xff]  }
 0x631   :  { %2403 = vmatpush1.bf16.msra.mxu1 %v10846_v43  ;;  %v2535_v43 = vld [vmem:[%s14383_s22 + $0x50] sm:$0xff] }
 0x632   :  { %2404 = vmatprep.subr.bf16.mxu1 %v10851_v44  ;;  %v2536_v44 = vld [vmem:[%s14383_s22 + $0x58] sm:$0xff] }
 0x635   :  { %2405 = vmatpush1.bf16.msra.mxu1 %v10849_v46  ;;  %v10164_v46 = vpack.c.bf16 %v2536_v44, %v2535_v43  ;;  %v10882_v44 = vld [vmem:[#allocation15 + $0x100] ss:$8 sps:$4 sm:$0xff]  }
 0x636   :  { %2406 = vmatprep.subr.bf16.mxu1 %v10854_v48  ;;  %v2553_v48 = vld [vmem:[%s14383_s22 + $0xe0] sm:$0xff] }
 0x639   :  { %2407 = vmatpush1.bf16.msra.mxu1 %v10852_v16  ;;  %v2554_v16 = vld [vmem:[%s14383_s22 + $0xe8] sm:$0xff] }
 0x63a   :  { %2408 = vmatprep.subr.bf16.mxu1 %v10857_v19  ;;  %v10166_v19 = vpack.c.bf16 %v2554_v16, %v2553_v48  ;;  %v10890_v48 = vld [vmem:[#allocation15 + $0x114] ss:$8 sps:$4 sm:$0xff]   ;;  %v10888_v16 = vld [vmem:[#allocation15 + $0x110] ss:$8 sps:$4 sm:$0xff]  }
 0x63d   :  { %2409 = vmatpush1.bf16.msra.mxu1 %v10855_v45  ;;  %v2537_v45 = vld [vmem:[%s14383_s22 + $0x60] sm:$0xff] }
 0x63e   :  { %2410 = vmatprep.subr.bf16.mxu1 %v10860_v49  ;;  %v2538_v49 = vld [vmem:[%s14383_s22 + $0x68] sm:$0xff] }
 0x641   :  { %2411 = vmatpush1.bf16.msra.mxu1 %v10858_v50  ;;  %v10168_v50 = vpack.c.bf16 %v2538_v49, %v2537_v45  ;;  %v10894_v45 = vld [vmem:[#allocation15 + $0x120] ss:$8 sps:$4 sm:$0xff]   ;;  %v10902_v49 = vld [vmem:[#allocation15 + $0x134] ss:$8 sps:$4 sm:$0xff]  }
 0x642   :  { %2412 = vmatprep.subr.bf16.mxu1 %v10863_v51  ;;  %v2555_v51 = vld [vmem:[%s14383_s22 + $0xf0] sm:$0xff] }
 0x645   :  { %2413 = vmatpush1.bf16.msra.mxu1 %v10861_v52  ;;  %v2556_v52 = vld [vmem:[%s14383_s22 + $0xf8] sm:$0xff] }
 0x646   :  { %2414 = vmatprep.subr.bf16.mxu1 %v10866_v53  ;;  %v10170_v53 = vpack.c.bf16 %v2556_v52, %v2555_v51  ;;  %v10908_v51 = vld [vmem:[#allocation15 + $0x144] ss:$8 sps:$4 sm:$0xff]   ;;  %v10906_v52 = vld [vmem:[#allocation15 + $0x140] ss:$8 sps:$4 sm:$0xff]  }
 0x649   :  { %2415 = vmatpush1.bf16.msra.mxu1 %v10864_v54  ;;  %v2539_v54 = vld [vmem:[%s14383_s22 + $0x70] sm:$0xff] }
 0x64a   :  { %2416 = vmatprep.subr.bf16.mxu1 %v10869_v55  ;;  %v2540_v55 = vld [vmem:[%s14383_s22 + $0x78] sm:$0xff] }
 0x64d   :  { %2417 = vmatpush1.bf16.msra.mxu1 %v10867_v56  ;;  %v10172_v56 = vpack.c.bf16 %v2540_v55, %v2539_v54  ;;  %v10912_v54 = vld [vmem:[#allocation15 + $0x150] ss:$8 sps:$4 sm:$0xff]   ;;  %v10920_v55 = vld [vmem:[#allocation15 + $0x164] ss:$8 sps:$4 sm:$0xff]  }
 0x64e   :  { %2418 = vmatprep.subr.bf16.mxu1 %v10872_v57 }
 0x651   :  { %2419 = vmatpush1.bf16.msra.mxu1 %v10870_v58 }
 0x652   :  { %2420 = vmatprep.subr.bf16.mxu1 %v10875_v59 }
 0x655   :  { %2421 = vmatpush1.bf16.msra.mxu1 %v10873_v60 }
 0x656   :  { %2422 = vmatprep.subr.bf16.mxu1 %v10878_v61 }
 0x659   :  { %2423 = vmatpush1.bf16.msra.mxu1 %v10876_v62 }
 0x65a   :  { %2424 = vmatprep.subr.bf16.mxu1 %v10881_v63 }
 0x65d   :  { %2425 = vmatpush1.bf16.msra.mxu1 %v10879_v0 }
 0x660   :  { %2427 = vmatmul.mubr.bf16.vlgmr.msra.gmra.mrb[28].mxu1 %v12465_v47  ;;  %v2543_v47 = vld [vmem:[%s14383_s22 + $0x90] sm:$0xff] }
 0x661   :  { %2508 = vmatprep.mubr.f32.mxu1 %v11921_v10  ;;  %v10146_v8 = vpack.c.bf16 %v2544_v6, %v2543_v47 }
 0x663   :  { %10147 = vmatprep.subr.bf16.mxu0 %v10146_v8 }
 0x664   :  { %10149 = vmatpush3.bf16.msra.mxu0 %v10148_v14 }
 0x665   :  { %10151 = vmatprep.subr.bf16.mxu0 %v10150_v15 }
 0x668   :  { %10153 = vmatpush3.bf16.msra.mxu0 %v10152_v20 }
 0x669   :  { %10155 = vmatprep.subr.bf16.mxu0 %v10154_v29 }
 0x66c   :  { %10157 = vmatpush3.bf16.msra.mxu0 %v10156_v33 }
 0x66d   :  { %10159 = vmatprep.subr.bf16.mxu0 %v10158_v36 }
 0x670   :  { %10161 = vmatpush3.bf16.msra.mxu0 %v10160_v39 }
 0x671   :  { %10163 = vmatprep.subr.bf16.mxu0 %v10162_v42 }
 0x674   :  { %10165 = vmatpush3.bf16.msra.mxu0 %v10164_v46 }
 0x675   :  { %10167 = vmatprep.subr.bf16.mxu0 %v10166_v19 }
 0x678   :  { %10169 = vmatpush3.bf16.msra.mxu0 %v10168_v50 }
 0x679   :  { %10171 = vmatprep.subr.bf16.mxu0 %v10170_v53 }
 0x67c   :  { %10173 = vmatpush3.bf16.msra.mxu0 %v10172_v56 }
 0x733   :  { %v2428_v21 = vpop.f32.mrb[28].mxu1 }
 0x734   :  { %v2430_v22 = vpop.f32.mrb[29].mxu1 }
 0x735   :  { %v2432_v24 = vpop.f32.mrb[30].mxu1  ;;  %2444 = vmatprep.subr.mxu1 %v2430_v22 }
 0x736   :  { %v2433_v25 = vpop.f32.mrb[31].mxu1  ;;  %2445 = vmatpush1.msra.mxu1 %v2428_v21 }
 0x737   :  { %9082 = vmatmul.mubr.msk.f32.vlgmr.msra.gmra.mrb[24].mxu1 %vm1710_vm4, %v9080_v23  ;;  %10175 = vmatprep.subr.bf16.mxu1 %v10142_v4 }
 0x738   :  { %2514 = vmatprep.mubr.f32.mxu1 %v11921_v10  ;;  %10177 = vmatpush3.bf16.msra.mxu1 %v10144_v7 }
 0x739   :  { %10179 = vmatprep.subr.bf16.mxu1 %v10146_v8 }
 0x73b   :  { %9083 = vmatmul.mubr.msk.f32.gmra.mrb[26].mxu1 %vm1710_vm4, %v9081_v26 }
 0x73c   :  { %10181 = vmatpush3.bf16.msra.mxu1 %v10148_v14 }
 0x73d   :  { %10183 = vmatprep.subr.bf16.mxu1 %v10150_v15 }
 0x740   :  { %10185 = vmatpush3.bf16.msra.mxu1 %v10152_v20 }
 0x741   :  { %10187 = vmatprep.subr.bf16.mxu1 %v10154_v29 }
 0x744   :  { %10189 = vmatpush3.bf16.msra.mxu1 %v10156_v33  ;;  %v2560_v33 = vld [vmem:[#allocation10 + $0x18] sm:$0xff] }
 0x745   :  { %10191 = vmatprep.subr.bf16.mxu1 %v10158_v36  ;;  %v10206_v35 = vpack.c.bf16 %v2560_v33, %v2558_v32  ;;  %v2559_v36 = vld [vmem:[#allocation10 + $0x10] sm:$0xff]  ;;  %v10897_v32 = vld [vmem:[#allocation15 + $0x20] ss:$8 sps:$4 sm:$0xff]   ;;  %v10905_v33 = vld [vmem:[#allocation15 + $0x34] ss:$8 sps:$4 sm:$0xff]  }
 0x747   :  { %10207 = vmatprep.subr.bf16.mxu0 %v10206_v35 }
 0x748   :  { %10193 = vmatpush3.bf16.msra.mxu1 %v10160_v39  ;;  %v12632_v39 = vpack.c.bf16 %v2559_v36, %v2557_v34  ;;  %v10903_v34 = vld [vmem:[#allocation15 + $0x30] ss:$8 sps:$4 sm:$0xff]   ;;  %v10909_v36 = vld [vmem:[#allocation15 + $0x40] ss:$8 sps:$4 sm:$0xff]  }
 0x749   :  { %10195 = vmatprep.subr.bf16.mxu1 %v10162_v42  ;;  %v2563_v42 = vld [vmem:[#allocation10 + $0x30] sm:$0xff] }
 0x74a   :  { %v12637_v43 = vpack.c.bf16 %v2563_v42, %v2561_v41  ;;  %v10929_v41 = vld [vmem:[#allocation15 + $0x74] ss:$8 sps:$4 sm:$0xff]   ;;  %v10927_v42 = vld [vmem:[#allocation15 + $0x70] ss:$8 sps:$4 sm:$0xff]  }
 0x74c   :  { %10197 = vmatpush3.bf16.msra.mxu1 %v10164_v46  ;;  %v10884_v46 = vld [vmem:[#allocation15 + $0x104] ss:$8 sps:$4 sm:$0xff]  }
 0x74d   :  { %10199 = vmatprep.subr.bf16.mxu1 %v10166_v19  ;;  %v10896_v19 = vld [vmem:[#allocation15 + $0x124] ss:$8 sps:$4 sm:$0xff]  }
 0x750   :  { %10201 = vmatpush3.bf16.msra.mxu1 %v10168_v50  ;;  %v10900_v50 = vld [vmem:[#allocation15 + $0x130] ss:$8 sps:$4 sm:$0xff]  }
 0x751   :  { %10203 = vmatprep.subr.bf16.mxu1 %v10170_v53  ;;  %v10914_v53 = vld [vmem:[#allocation15 + $0x154] ss:$8 sps:$4 sm:$0xff]  }
 0x754   :  { %10205 = vmatpush3.bf16.msra.mxu1 %v10172_v56  ;;  %v10918_v56 = vld [vmem:[#allocation15 + $0x160] ss:$8 sps:$4 sm:$0xff]  }
 0x755   :  { %3360 = vmatprep.subr.bf16.mxu1 %v10884_v46  ;;  %v10941_v46 = vld [vmem:[#allocation15 + $0x94] ss:$8 sps:$4 sm:$0xff]  }
 0x80a   :  { %v12611_v57 = vpop.f32.mrb[24].mxu1 }
 0x80b   :  { %v12613_v58 = vpop.f32.mrb[25].mxu1  ;;  %v2579_v60 = vmul.f32 %v12611_v57, %v12611_v57 }
 0x80c   :  { %v2580_v0 = vmul.f32 %v12613_v58, %v12613_v58 }
 0x80e   :  { %v12615_v59 = vpop.f32.mrb[26].mxu1 }
 0x80f   :  { %v2565_v61 = vadd.f32 %v12615_v59, %v12611_v57  ;;  %v2581_v62 = vmul.f32 %v12615_v59, %v12615_v59  ;;  %v12623_v63 = vpop.f32.mrb[27].mxu1 }
 0x810   :  { %v2572_v1 = vadd.f32 %v12623_v63, %v12613_v58  ;;  %v2582_v2 = vmul.f32 %v12623_v63, %v12623_v63 }
 0x811   :  { %v2566_v3 = vrot.slane %v2565_v61, 4  ;;  %v2583_v4 = vadd.f32 %v2581_v62, %v2579_v60  ;;  %v10926_v60 = vld [vmem:[#allocation15 + $0x174] ss:$8 sps:$4 sm:$0xff]   ;;  %v10932_v62 = vld [vmem:[#allocation15 + $0x184] ss:$8 sps:$4 sm:$0xff]  }
 0x812   :  { %v2573_v5 = vrot.slane %v2572_v1, 4  ;;  %v2590_v47 = vadd.f32 %v2582_v2, %v2580_v0  ;;  %v10930_v0 = vld [vmem:[#allocation15 + $0x180] ss:$8 sps:$4 sm:$0xff]   ;;  %v10936_v2 = vld [vmem:[#allocation15 + $0x190] ss:$8 sps:$4 sm:$0xff]  }
 0x813   :  { %v2567_v6 = vadd.f32 %v2566_v3, %v2565_v61  ;;  %v2584_v7 = vrot.slane %v2583_v4, 4  ;;  %v10924_v61 = vld [vmem:[#allocation15 + $0x170] ss:$8 sps:$4 sm:$0xff]   ;;  %v10944_v3 = vld [vmem:[#allocation15 + $0x1a4] ss:$8 sps:$4 sm:$0xff]  }
 0x814   :  { %v2574_v8 = vadd.f32 %v2573_v5, %v2572_v1  ;;  %v2591_v9 = vrot.slane %v2590_v47, 4  ;;  %v10938_v1 = vld [vmem:[#allocation15 + $0x194] ss:$8 sps:$4 sm:$0xff]  }
 0x815   :  { %v2568_v11 = vrot.slane %v2567_v6, 2  ;;  %v2585_v12 = vadd.f32 %v2584_v7, %v2583_v4  ;;  %v10942_v4 = vld [vmem:[#allocation15 + $0x1a0] ss:$8 sps:$4 sm:$0xff]   ;;  %v10950_v5 = vld [vmem:[#allocation15 + $0x1b4] ss:$8 sps:$4 sm:$0xff]  }
 0x816   :  { %v2575_v13 = vrot.slane %v2574_v8, 2  ;;  %v2592_v14 = vadd.f32 %v2591_v9, %v2590_v47  ;;  %v10948_v47 = vld [vmem:[#allocation15 + $0x1b0] ss:$8 sps:$4 sm:$0xff]  }
 0x817   :  { %v2569_v15 = vadd.f32 %v2568_v11, %v2567_v6  ;;  %v2586_v17 = vrot.slane %v2585_v12, 2 }
 0x818   :  { %v2576_v18 = vadd.f32 %v2575_v13, %v2574_v8  ;;  %v2593_v20 = vrot.slane %v2592_v14, 2 }
 0x819   :  { %v2587_v21 = vadd.f32 %v2586_v17, %v2585_v12  ;;  %v2570_v22 = vrot.slane %v2569_v15, 1 }
 0x81a   :  { %v2577_v23 = vrot.slane %v2576_v18, 1  ;;  %v2594_v24 = vadd.f32 %v2593_v20, %v2592_v14  ;;  %v2742_v20 = vld [vmem:[#allocation12] sm:$0x1] }
 0x81b   :  { %v2588_v25 = vrot.slane %v2587_v21, 1  ;;  %v2571_v28 = vadd.f32 %v2570_v22, %v2569_v15 }
 0x81c   :  { %v2578_v26 = vadd.f32 %v2577_v23, %v2576_v18  ;;  %v2595_v27 = vrot.slane %v2594_v24, 1 }
 0x81d   :  { %v2589_v31 = vadd.f32 %v2588_v25, %v2587_v21  ;;  %v2746_v25 = vld [vmem:[#allocation13] sm:$0x1] }
 0x81e   :  { %2661 = vmatprep.mubr.f32.mxu0 %v2578_v26  ;;  %v2596_v29 = vadd.f32 %v2595_v27, %v2594_v24  ;;  %v10887_v24 = vld [vmem:[#allocation15 + $0x4] ss:$8 sps:$4 sm:$0xff]   ;;  %v10885_v26 = vld [vmem:[#allocation15] ss:$8 sps:$4 sm:$0xff]  }
 0x81f   :  { %2662 = vmatmul.mubr.f32.vlgmr.msra.gmra.mrb[6].mxu0 %v2571_v28  ;;  %v10893_v28 = vld [vmem:[#allocation15 + $0x14] ss:$8 sps:$4 sm:$0xff]  }
 0x820   :  { %2731 = vmatprep.mubr.f32.mxu1 %v2596_v29  ;;  %2817 = vmatprep.mubr.f32.mxu0 %v11921_v10  ;;  %v10891_v29 = vld [vmem:[#allocation15 + $0x10] ss:$8 sps:$4 sm:$0xff]  }
 0x821   :  { %2732 = vmatmul.mubr.f32.vlgmr.msra.gmra.mrb[32].mxu1 %v2589_v31  ;;  %10209 = vmatpush1.bf16.msra.mxu0 %v12632_v39  ;;  %v10899_v31 = vld [vmem:[#allocation15 + $0x24] ss:$8 sps:$4 sm:$0xff]  }
 0x822   :  { %10211 = vmatprep.subr.bf16.mxu0 %v12634_v40  ;;  %3361 = vmatpush1.bf16.msra.mxu1 %v10882_v44  ;;  %v10933_v44 = vld [vmem:[#allocation15 + $0x80] ss:$8 sps:$4 sm:$0xff]  }
 0x823   :  { %3362 = vmatprep.subr.bf16.mxu1 %v10890_v48  ;;  %v10939_v48 = vld [vmem:[#allocation15 + $0x90] ss:$8 sps:$4 sm:$0xff]  }
 0x825   :  { %10213 = vmatpush1.bf16.msra.mxu0 %v12637_v43 }
 0x826   :  { %10215 = vmatprep.subr.bf16.mxu0 %v10206_v35  ;;  %3363 = vmatpush1.bf16.msra.mxu1 %v10888_v16  ;;  %v10911_v35 = vld [vmem:[#allocation15 + $0x44] ss:$8 sps:$4 sm:$0xff]  }
 0x827   :  { %3364 = vmatprep.subr.bf16.mxu1 %v10896_v19  ;;  %v10947_v16 = vld [vmem:[#allocation15 + $0xa4] ss:$8 sps:$4 sm:$0xff]   ;;  %v10945_v19 = vld [vmem:[#allocation15 + $0xa0] ss:$8 sps:$4 sm:$0xff]  }
 0x82a   :  { %3365 = vmatpush1.bf16.msra.mxu1 %v10894_v45  ;;  %v10953_v45 = vld [vmem:[#allocation15 + $0xb4] ss:$8 sps:$4 sm:$0xff]  }
 0x82b   :  { %3366 = vmatprep.subr.bf16.mxu1 %v10902_v49  ;;  %v10951_v49 = vld [vmem:[#allocation15 + $0xb0] ss:$8 sps:$4 sm:$0xff]  }
 0x82e   :  { %3367 = vmatpush1.bf16.msra.mxu1 %v10900_v50  ;;  %v10956_v50 = vld [vmem:[#allocation15 + $0x1c4] ss:$8 sps:$4 sm:$0xff]  }
 0x82f   :  { %3368 = vmatprep.subr.bf16.mxu1 %v10908_v51  ;;  %v10954_v51 = vld [vmem:[#allocation15 + $0x1c0] ss:$8 sps:$4 sm:$0xff]  }
 0x832   :  { %3369 = vmatpush1.bf16.msra.mxu1 %v10906_v52  ;;  %v10959_v52 = vld [vmem:[#allocation15 + $0xc4] ss:$8 sps:$4 sm:$0xff]  }
 0x833   :  { %3370 = vmatprep.subr.bf16.mxu1 %v10914_v53  ;;  %v10957_v53 = vld [vmem:[#allocation15 + $0xc0] ss:$8 sps:$4 sm:$0xff]  }
 0x836   :  { %3371 = vmatpush1.bf16.msra.mxu1 %v10912_v54  ;;  %v10960_v54 = vld [vmem:[#allocation15 + $0x1d0] ss:$8 sps:$4 sm:$0xff]  }
 0x837   :  { %3372 = vmatprep.subr.bf16.mxu1 %v10920_v55  ;;  %v10962_v55 = vld [vmem:[#allocation15 + $0x1d4] ss:$8 sps:$4 sm:$0xff]  }
 0x83a   :  { %3373 = vmatpush1.bf16.msra.mxu1 %v10918_v56  ;;  %v10963_v56 = vld [vmem:[#allocation15 + $0xd0] ss:$8 sps:$4 sm:$0xff]  }
 0x83b   :  { %3374 = vmatprep.subr.bf16.mxu1 %v10926_v60  ;;  %v10965_v60 = vld [vmem:[#allocation15 + $0xd4] ss:$8 sps:$4 sm:$0xff]  }
 0x83e   :  { %3375 = vmatpush1.bf16.msra.mxu1 %v10924_v61  ;;  %v10968_v61 = vld [vmem:[#allocation15 + $0x1e4] ss:$8 sps:$4 sm:$0xff]  }
 0x83f   :  { %3376 = vmatprep.subr.bf16.mxu1 %v10932_v62  ;;  %v10966_v62 = vld [vmem:[#allocation15 + $0x1e0] ss:$8 sps:$4 sm:$0xff]  }
 0x842   :  { %3377 = vmatpush1.bf16.msra.mxu1 %v10930_v0  ;;  %v10971_v0 = vld [vmem:[#allocation15 + $0xe4] ss:$8 sps:$4 sm:$0xff]  }
 0x843   :  { %3378 = vmatprep.subr.bf16.mxu1 %v10938_v1  ;;  %v10969_v1 = vld [vmem:[#allocation15 + $0xe0] ss:$8 sps:$4 sm:$0xff]  }
 0x846   :  { %3379 = vmatpush1.bf16.msra.mxu1 %v10936_v2  ;;  %v10974_v2 = vld [vmem:[#allocation15 + $0x1f4] ss:$8 sps:$4 sm:$0xff]  }
 0x847   :  { %3380 = vmatprep.subr.bf16.mxu1 %v10944_v3  ;;  %v10972_v3 = vld [vmem:[#allocation15 + $0x1f0] ss:$8 sps:$4 sm:$0xff]  }
 0x84a   :  { %3381 = vmatpush1.bf16.msra.mxu1 %v10942_v4  ;;  %v10977_v4 = vld [vmem:[#allocation15 + $0xf4] ss:$8 sps:$4 sm:$0xff]  }
 0x84b   :  { %3382 = vmatprep.subr.bf16.mxu1 %v10950_v5  ;;  %v10975_v5 = vld [vmem:[#allocation15 + $0xf0] ss:$8 sps:$4 sm:$0xff]  }
 0x84e   :  { %3383 = vmatpush1.bf16.msra.mxu1 %v10948_v47  ;;  %v10980_v47 = vld [vmem:[#allocation15 + $0x204] ss:$8 sps:$4 sm:$0xff]  }
 0x84f   :  { %3384 = vmatprep.subr.bf16.mxu1 %v10956_v50  ;;  %v11016_v50 = vld [vmem:[#allocation15 + $0x2c4] ss:$8 sps:$4 sm:$0xff]  }
 0x852   :  { %3385 = vmatpush1.bf16.msra.mxu1 %v10954_v51  ;;  %v11014_v51 = vld [vmem:[#allocation15 + $0x2c0] ss:$8 sps:$4 sm:$0xff]  }
 0x853   :  { %3386 = vmatprep.subr.bf16.mxu1 %v10962_v55  ;;  %v11020_v55 = vld [vmem:[#allocation15 + $0x2e0] ss:$8 sps:$4 sm:$0xff]  }
 0x856   :  { %3387 = vmatpush1.bf16.msra.mxu1 %v10960_v54  ;;  %v11022_v54 = vld [vmem:[#allocation15 + $0x2e4] ss:$8 sps:$4 sm:$0xff]  }
 0x857   :  { %3388 = vmatprep.subr.bf16.mxu1 %v10968_v61 }
 0x85a   :  { %3389 = vmatpush1.bf16.msra.mxu1 %v10966_v62 }
 0x85b   :  { %3390 = vmatprep.subr.bf16.mxu1 %v10974_v2 }
 0x85e   :  { %3391 = vmatpush1.bf16.msra.mxu1 %v10972_v3 }
 0x85f   :  { %3803 = vmatprep.subr.bf16.mxu1 %v10980_v47 }
 0x8f2   :  { %v9868_v6 = vpop.f32.mrb[6].mxu0 }
 0x8f3   :  { %v9869_v7 = vpop.f32.mrb[7].mxu0 }
 0x8f4   :  { %v9870_v8 = vadd.f32 %v9869_v7, %v9868_v6  ;;  %v9903_v9 = vpop.f32.mrb[32].mxu1 }
 0x8f5   :  { %v9904_v11 = vpop.f32.mrb[33].mxu1 }
 0x8f6   :  { %v2738_v12 = vmul.f32 0.0078125, %v9870_v8  ;;  %v9905_v13 = vadd.f32 %v9904_v11, %v9903_v9 }
 0x8f8   :  { %v2740_v14 = vmul.f32 %v2738_v12, %v2738_v12  ;;  %v2739_v15 = vmul.f32 0.0078125, %v9905_v13 }
 0x8fa   :  { %v2741_v17 = vsub.f32 %v2739_v15, %v2740_v14 }
 0x8fc   :  { %v2743_v18 = vadd.f32 1e-05, %v2741_v17 }
 0x8fe   :  { %11460 = vrsqrt.f32 %v2743_v18 }
 0x908   :  { %v11461_v21 = vpop.eup %11460 }
 0x909   :  { %v2745_v22 = vmul.f32 %v11461_v21, %v2742_v20 }
 0x90b   :  { %9084 = vmatmul.mubr.msk.f32.vlgmr.msra.gmra.mrb[16].mxu0 %vm2749_vm5, %v2745_v22  ;;  %v2747_v23 = vmul.f32 %v2745_v22, %v2738_v12 }
 0x90c   :  { %10217 = vmatpush1.bf16.msra.mxu0 %v12632_v39  ;;  %2891 = vmatprep.mubr.f32.mxu0 %v11921_v10  ;;  %v10923_v39 = vld [vmem:[#allocation15 + $0x64] ss:$8 sps:$4 sm:$0xff]  }
 0x90d   :  { %10219 = vmatprep.subr.bf16.mxu0 %v12634_v40  ;;  %v2748_v27 = vsub.f32 %v2746_v25, %v2747_v23  ;;  %v10921_v40 = vld [vmem:[#allocation15 + $0x60] ss:$8 sps:$4 sm:$0xff]  }
 0x910   :  { %10221 = vmatpush1.bf16.msra.mxu0 %v12637_v43  ;;  %v10935_v43 = vld [vmem:[#allocation15 + $0x84] ss:$8 sps:$4 sm:$0xff]  }
 0x911   :  { %3120 = vmatprep.subr.bf16.mxu0 %v10887_v24 }
 0x913   :  { %9085 = vmatmul.mubr.msk.f32.vlgmr.msra.gmra.mrb[18].mxu0 %vm2749_vm5, %v2748_v27 }
 0x914   :  { %3121 = vmatpush1.bf16.msra.mxu0 %v10885_v26 }
 0x915   :  { %3122 = vmatprep.subr.bf16.mxu0 %v10893_v28 }
 0x918   :  { %3123 = vmatpush1.bf16.msra.mxu0 %v10891_v29  ;;  %v10981_v29 = vld [vmem:[#allocation15 + $0x210] ss:$8 sps:$4 sm:$0xff]  }
 0x919   :  { %3124 = vmatprep.subr.bf16.mxu0 %v10899_v31  ;;  %v10986_v31 = vld [vmem:[#allocation15 + $0x224] ss:$8 sps:$4 sm:$0xff]  }
 0x91c   :  { %3125 = vmatpush1.bf16.msra.mxu0 %v10897_v32  ;;  %v10984_v32 = vld [vmem:[#allocation15 + $0x220] ss:$8 sps:$4 sm:$0xff]  }
 0x91d   :  { %3126 = vmatprep.subr.bf16.mxu0 %v10905_v33  ;;  %v10989_v33 = vld [vmem:[#allocation15 + $0x234] ss:$8 sps:$4 sm:$0xff]  }
 0x920   :  { %3127 = vmatpush1.bf16.msra.mxu0 %v10903_v34  ;;  %v10987_v34 = vld [vmem:[#allocation15 + $0x230] ss:$8 sps:$4 sm:$0xff]  }
 0x921   :  { %3128 = vmatprep.subr.bf16.mxu0 %v10911_v35  ;;  %v10992_v35 = vld [vmem:[#allocation15 + $0x244] ss:$8 sps:$4 sm:$0xff]  }
 0x924   :  { %3129 = vmatpush1.bf16.msra.mxu0 %v10909_v36  ;;  %v10990_v36 = vld [vmem:[#allocation15 + $0x240] ss:$8 sps:$4 sm:$0xff]  }
 0x925   :  { %3130 = vmatprep.subr.bf16.mxu0 %v10917_v37  ;;  %v10995_v37 = vld [vmem:[#allocation15 + $0x254] ss:$8 sps:$4 sm:$0xff]  }
 0x928   :  { %3131 = vmatpush1.bf16.msra.mxu0 %v10915_v38  ;;  %v10993_v38 = vld [vmem:[#allocation15 + $0x250] ss:$8 sps:$4 sm:$0xff]  }
 0x929   :  { %3132 = vmatprep.subr.bf16.mxu0 %v10923_v39  ;;  %v10998_v39 = vld [vmem:[#allocation15 + $0x264] ss:$8 sps:$4 sm:$0xff]  }
 0x92c   :  { %3133 = vmatpush1.bf16.msra.mxu0 %v10921_v40  ;;  %v10996_v40 = vld [vmem:[#allocation15 + $0x260] ss:$8 sps:$4 sm:$0xff]  }
 0x92d   :  { %3134 = vmatprep.subr.bf16.mxu0 %v10929_v41  ;;  %v11001_v41 = vld [vmem:[#allocation15 + $0x274] ss:$8 sps:$4 sm:$0xff]  }
 0x930   :  { %3135 = vmatpush1.bf16.msra.mxu0 %v10927_v42  ;;  %v10999_v42 = vld [vmem:[#allocation15 + $0x270] ss:$8 sps:$4 sm:$0xff]  }
 0x931   :  { %3136 = vmatprep.subr.bf16.mxu0 %v10935_v43  ;;  %v11004_v43 = vld [vmem:[#allocation15 + $0x284] ss:$8 sps:$4 sm:$0xff]  }
 0x934   :  { %3137 = vmatpush1.bf16.msra.mxu0 %v10933_v44  ;;  %v11002_v44 = vld [vmem:[#allocation15 + $0x280] ss:$8 sps:$4 sm:$0xff]  }
 0x935   :  { %3138 = vmatprep.subr.bf16.mxu0 %v10941_v46  ;;  %v11007_v46 = vld [vmem:[#allocation15 + $0x294] ss:$8 sps:$4 sm:$0xff]  }
 0x938   :  { %3139 = vmatpush1.bf16.msra.mxu0 %v10939_v48  ;;  %v11005_v48 = vld [vmem:[#allocation15 + $0x290] ss:$8 sps:$4 sm:$0xff]  }
 0x939   :  { %3140 = vmatprep.subr.bf16.mxu0 %v10947_v16  ;;  %v11010_v16 = vld [vmem:[#allocation15 + $0x2a4] ss:$8 sps:$4 sm:$0xff]  }
 0x93c   :  { %3141 = vmatpush1.bf16.msra.mxu0 %v10945_v19  ;;  %v11008_v19 = vld [vmem:[#allocation15 + $0x2a0] ss:$8 sps:$4 sm:$0xff]  }
 0x93d   :  { %3142 = vmatprep.subr.bf16.mxu0 %v10953_v45  ;;  %v11013_v45 = vld [vmem:[#allocation15 + $0x2b4] ss:$8 sps:$4 sm:$0xff]  }
 0x940   :  { %3143 = vmatpush1.bf16.msra.mxu0 %v10951_v49  ;;  %v11011_v49 = vld [vmem:[#allocation15 + $0x2b0] ss:$8 sps:$4 sm:$0xff]  }
 0x941   :  { %3144 = vmatprep.subr.bf16.mxu0 %v10959_v52  ;;  %v11019_v52 = vld [vmem:[#allocation15 + $0x2d4] ss:$8 sps:$4 sm:$0xff]  }
 0x944   :  { %3145 = vmatpush1.bf16.msra.mxu0 %v10957_v53  ;;  %v11017_v53 = vld [vmem:[#allocation15 + $0x2d0] ss:$8 sps:$4 sm:$0xff]  }
 0x945   :  { %3146 = vmatprep.subr.bf16.mxu0 %v10965_v60  ;;  %v11023_v60 = vld [vmem:[#allocation15 + $0x2f0] ss:$8 sps:$4 sm:$0xff]  }
 0x948   :  { %3147 = vmatpush1.bf16.msra.mxu0 %v10963_v56  ;;  %v11025_v56 = vld [vmem:[#allocation15 + $0x2f4] ss:$8 sps:$4 sm:$0xff]  }
 0x949   :  { %3148 = vmatprep.subr.bf16.mxu0 %v10971_v0 }
 0x94c   :  { %3149 = vmatpush1.bf16.msra.mxu0 %v10969_v1 }
 0x94d   :  { %3150 = vmatprep.subr.bf16.mxu0 %v10977_v4 }
 0x950   :  { %3151 = vmatpush1.bf16.msra.mxu0 %v10975_v5 }
 0x9de   :  { %v2819_v6 = vpop.f32.mrb[16].mxu0 }
 0x9df   :  { %v2901_v7 = vrot.slane %v2819_v6, %v12455_v30  ;;  %v2821_v8 = vpop.f32.mrb[17].mxu0 }
 0x9e0   :  { %v2905_v9 = vrot.slane %v2821_v8, %v12455_v30 }
 0x9e1   :  { %v2906_v11 = vmul.f32 %v2901_v7, %v12611_v57  ;;  %v2908_v12 = vmul.f32 %v2901_v7, %v12615_v59 }
 0x9e2   :  { %v2907_v13 = vmul.f32 %v2905_v9, %v12613_v58  ;;  %v2909_v14 = vmul.f32 %v2905_v9, %v12623_v63  ;;  %v10978_v58 = vld [vmem:[#allocation15 + $0x200] ss:$8 sps:$4 sm:$0xff]   ;;  %v10983_v63 = vld [vmem:[#allocation15 + $0x214] ss:$8 sps:$4 sm:$0xff]  }
 0x9e3   :  { %v9150_v9 = vld [vmem:[%s14329_s14 + $0x20] sm:$0xff] }
 0x9e6   :  { %v2893_v15 = vpop.f32.mrb[18].mxu0 }
 0x9e7   :  { %v2913_v17 = vrot.slane %v2893_v15, %v12455_v30  ;;  %v2895_v18 = vpop.f32.mrb[19].mxu0  ;;  %v3164_v15 = vld [vmem:[%s14329_s14 + $0x8] sm:$0xff] }
 0x9e8   :  { %v2917_v20 = vrot.slane %v2895_v18, %v12455_v30  ;;  %v3166_v18 = vld [vmem:[%s14329_s14 + $0x18] sm:$0xff] }
 0x9e9   :  { %v2918_v21 = vadd.f32 %v2913_v17, %v2906_v11  ;;  %v2920_v22 = vadd.f32 %v2913_v17, %v2908_v12  ;;  %v9151_v11 = vld [vmem:[%s14329_s14 + $0x28] sm:$0xff]  ;;  %v9152_v12 = vld [vmem:[%s14329_s14 + $0x30] sm:$0xff] }
 0x9ea   :  { %v2919_v23 = vadd.f32 %v2917_v20, %v2907_v13  ;;  %v2921_v24 = vadd.f32 %v2917_v20, %v2909_v14  ;;  %v9153_v13 = vld [vmem:[%s14329_s14 + $0x38] sm:$0xff]  ;;  %v3163_v14 = vld [vmem:[%s14329_s14] sm:$0xff]  ;;  %v3165_v17 = vld [vmem:[%s14329_s14 + $0x10] sm:$0xff] }
 0x9eb   :  { %v2922_v25 = vmax.f32 %v2918_v21, 0.0  ;;  %v2924_v26 = vmax.f32 %v2920_v22, 0.0 }
 0x9ec   :  { %v2923_v27 = vmax.f32 %v2919_v23, 0.0  ;;  %v2925_v57 = vmax.f32 %v2921_v24, 0.0 }
 0x9ed   :  { %v12655_v28 = vpack.c.bf16 %v2924_v26, %v2922_v25  ;;  %v11028_v26 = vld [vmem:[#allocation15 + $0x304] ss:$8 sps:$4 sm:$0xff]  }
 0x9ee   :  { %v12657_v59 = vpack.c.bf16 %v2925_v57, %v2923_v27  ;;  %v9194_v27 = vld [vmem:[%s14329_s14 + $0x40] sm:$0xff]  ;;  %v11026_v57 = vld [vmem:[#allocation15 + $0x300] ss:$8 sps:$4 sm:$0xff]  }
 0x9f0   :  { %3152 = vmatprep.mubr.bf16.mxu0 %v12657_v59  ;;  %3392 = vmatprep.mubr.bf16.mxu1 %v12657_v59 }
 0x9f1   :  { %3153 = vmatmul.mubr.bf16.vlgmr.msra.gmra.mrb[20].mxu0 %v12655_v28  ;;  %3393 = vmatmul.mubr.bf16.vlgmr.msra.gmra.mrb[36].mxu1 %v12655_v28 }
 0x9f2   :  { %3804 = vmatpush1.bf16.msra.mxu1 %v10978_v58  ;;  %3835 = vmatprep.mubr.bf16.mxu1 %v12657_v59  ;;  %v11031_v58 = vld [vmem:[#allocation15 + $0x314] ss:$8 sps:$4 sm:$0xff]  }
 0x9f3   :  { %3805 = vmatprep.subr.bf16.mxu1 %v10983_v63  ;;  %3484 = vmatprep.mubr.f32.mxu0 %v11921_v10  ;;  %v9195_v63 = vld [vmem:[%s14329_s14 + $0x48] sm:$0xff] }
 0x9f6   :  { %3806 = vmatpush1.bf16.msra.mxu1 %v10981_v29  ;;  %v11029_v29 = vld [vmem:[#allocation15 + $0x310] ss:$8 sps:$4 sm:$0xff]  }
 0x9f7   :  { %3807 = vmatprep.subr.bf16.mxu1 %v10986_v31  ;;  %v11034_v31 = vld [vmem:[#allocation15 + $0x324] ss:$8 sps:$4 sm:$0xff]  }
 0x9fa   :  { %3808 = vmatpush1.bf16.msra.mxu1 %v10984_v32  ;;  %v9196_v32 = vld [vmem:[%s14329_s14 + $0x50] sm:$0xff] }
 0x9fb   :  { %3809 = vmatprep.subr.bf16.mxu1 %v10989_v33  ;;  %v11032_v33 = vld [vmem:[#allocation15 + $0x320] ss:$8 sps:$4 sm:$0xff]  }
 0x9fe   :  { %3810 = vmatpush1.bf16.msra.mxu1 %v10987_v34  ;;  %v11037_v34 = vld [vmem:[#allocation15 + $0x334] ss:$8 sps:$4 sm:$0xff]  }
 0x9ff   :  { %3811 = vmatprep.subr.bf16.mxu1 %v10992_v35  ;;  %v9197_v35 = vld [vmem:[%s14329_s14 + $0x58] sm:$0xff] }
 0xa02   :  { %3812 = vmatpush1.bf16.msra.mxu1 %v10990_v36  ;;  %v11035_v36 = vld [vmem:[#allocation15 + $0x330] ss:$8 sps:$4 sm:$0xff]  }
 0xa03   :  { %3813 = vmatprep.subr.bf16.mxu1 %v10995_v37  ;;  %v11040_v37 = vld [vmem:[#allocation15 + $0x344] ss:$8 sps:$4 sm:$0xff]  }
 0xa06   :  { %3814 = vmatpush1.bf16.msra.mxu1 %v10993_v38  ;;  %v11038_v38 = vld [vmem:[#allocation15 + $0x340] ss:$8 sps:$4 sm:$0xff]  }
 0xa07   :  { %3815 = vmatprep.subr.bf16.mxu1 %v10998_v39  ;;  %v11043_v39 = vld [vmem:[#allocation15 + $0x354] ss:$8 sps:$4 sm:$0xff]  }
 0xa0a   :  { %3816 = vmatpush1.bf16.msra.mxu1 %v10996_v40  ;;  %v11041_v40 = vld [vmem:[#allocation15 + $0x350] ss:$8 sps:$4 sm:$0xff]  }
 0xa0b   :  { %3817 = vmatprep.subr.bf16.mxu1 %v11001_v41  ;;  %v11046_v41 = vld [vmem:[#allocation15 + $0x364] ss:$8 sps:$4 sm:$0xff]  }
 0xa0e   :  { %3818 = vmatpush1.bf16.msra.mxu1 %v10999_v42  ;;  %v11044_v42 = vld [vmem:[#allocation15 + $0x360] ss:$8 sps:$4 sm:$0xff]  }
 0xa0f   :  { %3819 = vmatprep.subr.bf16.mxu1 %v11004_v43  ;;  %v11049_v43 = vld [vmem:[#allocation15 + $0x374] ss:$8 sps:$4 sm:$0xff]  }
 0xa12   :  { %3820 = vmatpush1.bf16.msra.mxu1 %v11002_v44  ;;  %v11047_v44 = vld [vmem:[#allocation15 + $0x370] ss:$8 sps:$4 sm:$0xff]  }
 0xa13   :  { %3821 = vmatprep.subr.bf16.mxu1 %v11007_v46  ;;  %v11052_v46 = vld [vmem:[#allocation15 + $0x384] ss:$8 sps:$4 sm:$0xff]  }
 0xa16   :  { %3822 = vmatpush1.bf16.msra.mxu1 %v11005_v48  ;;  %v11050_v48 = vld [vmem:[#allocation15 + $0x380] ss:$8 sps:$4 sm:$0xff]  }
 0xa17   :  { %3823 = vmatprep.subr.bf16.mxu1 %v11010_v16  ;;  %v11055_v16 = vld [vmem:[#allocation15 + $0x394] ss:$8 sps:$4 sm:$0xff]  }
 0xa1a   :  { %3824 = vmatpush1.bf16.msra.mxu1 %v11008_v19  ;;  %v11058_v19 = vld [vmem:[#allocation15 + $0x3a4] ss:$8 sps:$4 sm:$0xff]  }
 0xa1b   :  { %3825 = vmatprep.subr.bf16.mxu1 %v11013_v45  ;;  %v11056_v45 = vld [vmem:[#allocation15 + $0x3a0] ss:$8 sps:$4 sm:$0xff]  }
 0xa1e   :  { %3826 = vmatpush1.bf16.msra.mxu1 %v11011_v49  ;;  %v11061_v49 = vld [vmem:[#allocation15 + $0x3b4] ss:$8 sps:$4 sm:$0xff]  }
 0xa1f   :  { %3827 = vmatprep.subr.bf16.mxu1 %v11016_v50  ;;  %v11059_v50 = vld [vmem:[#allocation15 + $0x3b0] ss:$8 sps:$4 sm:$0xff]  }
 0xa22   :  { %3828 = vmatpush1.bf16.msra.mxu1 %v11014_v51  ;;  %v11064_v51 = vld [vmem:[#allocation15 + $0x3c4] ss:$8 sps:$4 sm:$0xff]  }
 0xa23   :  { %3829 = vmatprep.subr.bf16.mxu1 %v11019_v52  ;;  %v11062_v52 = vld [vmem:[#allocation15 + $0x3c0] ss:$8 sps:$4 sm:$0xff]  }
 0xa26   :  { %3830 = vmatpush1.bf16.msra.mxu1 %v11017_v53  ;;  %v11067_v53 = vld [vmem:[#allocation15 + $0x3d4] ss:$8 sps:$4 sm:$0xff]  }
 0xa27   :  { %3831 = vmatprep.subr.bf16.mxu1 %v11022_v54  ;;  %v11065_v54 = vld [vmem:[#allocation15 + $0x3d0] ss:$8 sps:$4 sm:$0xff]  }
 0xa2a   :  { %3832 = vmatpush1.bf16.msra.mxu1 %v11020_v55  ;;  %v11070_v55 = vld [vmem:[#allocation15 + $0x3e4] ss:$8 sps:$4 sm:$0xff]  }
 0xa2b   :  { %3833 = vmatprep.subr.bf16.mxu1 %v11025_v56  ;;  %v11068_v56 = vld [vmem:[#allocation15 + $0x3e0] ss:$8 sps:$4 sm:$0xff]  }
 0xa2e   :  { %3834 = vmatpush1.bf16.msra.mxu1 %v11023_v60  ;;  %v11073_v60 = vld [vmem:[#allocation15 + $0x3f4] ss:$8 sps:$4 sm:$0xff]  }
 0xa31   :  { %3836 = vmatmul.mubr.bf16.vlgmr.msra.gmra.mrb[40].mxu1 %v12655_v28 }
 0xac4   :  { %v3154_v61 = vpop.f32.mrb[20].mxu0  ;;  %v3394_v62 = vpop.f32.mrb[36].mxu1 }
 0xac5   :  { %v3156_v0 = vpop.f32.mrb[21].mxu0  ;;  %v3396_v1 = vpop.f32.mrb[37].mxu1 }
 0xac6   :  { %v3158_v2 = vpop.f32.mrb[22].mxu0  ;;  %v3398_v3 = vpop.f32.mrb[38].mxu1 }
 0xac7   :  { %v10228_v4 = vpack.c.bf16 %v3158_v2, %v3154_v61  ;;  %v10224_v5 = vpack.c.bf16 %v3398_v3, %v3394_v62  ;;  %v3160_v47 = vpop.f32.mrb[23].mxu0  ;;  %v3400_v6 = vpop.f32.mrb[39].mxu1  ;;  %v11071_v61 = vld [vmem:[#allocation15 + $0x3f0] ss:$8 sps:$4 sm:$0xff]  }
 0xac8   :  { %v10226_v7 = vpack.c.bf16 %v3160_v47, %v3156_v0  ;;  %v10222_v8 = vpack.c.bf16 %v3400_v6, %v3396_v1  ;;  %v4326_v62 = vld [vmem:[%s14330_s15 + $0x80] sm:$0xff]  ;;  %v4327_v0 = vld [vmem:[%s14330_s15 + $0x88] sm:$0xff] }
 0xac9   :  { %v4310_v1 = vld [vmem:[%s14330_s15] sm:$0xff]  ;;  %v12737_v2 = vpack.c.bf16 %v4327_v0, %v4326_v62 }
 0xaca   :  { %10223 = vmatprep.subr.bf16.mxu0 %v10222_v8 }
 0xacb   :  { %10225 = vmatpush1.bf16.msra.mxu0 %v10224_v5  ;;  %10239 = vmatprep.subr.bf16.mxu1 %v12737_v2 }
 0xacc   :  { %10227 = vmatprep.subr.bf16.mxu0 %v10226_v7 }
 0xace   :  { %9154 = vmatmul.mubr.msk.f32.vlgmr.msra.gmra.mrb[24].mxu0 %vm299_vm0, %v9150_v9  ;;  %v9234_v9 = vld [vmem:[%s14329_s14 + $0x60] sm:$0xff] }
 0xacf   :  { %10229 = vmatpush1.bf16.msra.mxu0 %v10228_v4  ;;  %3490 = vmatprep.mubr.f32.mxu0 %v11921_v10 }
 0xad2   :  { %9155 = vmatmul.mubr.msk.f32.gmra.mrb[26].mxu0 %vm299_vm0, %v9151_v11  ;;  %v9235_v11 = vld [vmem:[%s14329_s14 + $0x68] sm:$0xff] }
 0xad3   :  { %3496 = vmatprep.mubr.f32.mxu0 %v11921_v10 }
 0xad6   :  { %9156 = vmatmul.mubr.msk.f32.gmra.mrb[28].mxu0 %vm299_vm0, %v9152_v12  ;;  %v9236_v12 = vld [vmem:[%s14329_s14 + $0x70] sm:$0xff] }
 0xad7   :  { %3502 = vmatprep.mubr.f32.mxu0 %v11921_v10 }
 0xada   :  { %9157 = vmatmul.mubr.msk.f32.gmra.mrb[30].mxu0 %vm299_vm0, %v9153_v13  ;;  %v9237_v13 = vld [vmem:[%s14329_s14 + $0x78] sm:$0xff] }
 0xadb   :  { %3585 = vmatprep.mubr.f32.mxu0 %v11921_v10 }
 0xade   :  { %9158 = vmatmul.mubr.msk.f32.vlgmr.msra.gmra.mrb[24].mxu0 %vm299_vm0, %v3163_v14  ;;  %v4328_v14 = vld [vmem:[%s14330_s15 + $0x90] sm:$0xff] }
 0xadf   :  { %3591 = vmatprep.mubr.f32.mxu0 %v11921_v10 }
 0xae2   :  { %9159 = vmatmul.mubr.msk.f32.gmra.mrb[26].mxu0 %vm299_vm0, %v3164_v15  ;;  %v4329_v15 = vld [vmem:[%s14330_s15 + $0x98] sm:$0xff] }
 0xae3   :  { %3597 = vmatprep.mubr.f32.mxu0 %v11921_v10 }
 0xae6   :  { %9160 = vmatmul.mubr.msk.f32.gmra.mrb[28].mxu0 %vm299_vm0, %v3165_v17  ;;  %v12772_v17 = vpack.c.bf16 %v4329_v15, %v4328_v14 }
 0xae7   :  { %3603 = vmatprep.mubr.f32.mxu0 %v11921_v10 }
 0xaea   :  { %9161 = vmatmul.mubr.msk.f32.gmra.mrb[30].mxu0 %vm299_vm0, %v3166_v18  ;;  %v4312_v18 = vld [vmem:[%s14330_s15 + $0x10] sm:$0xff] }
 0xaeb   :  { %3927 = vmatprep.mubr.f32.mxu0 %v11921_v10 }
 0xb04   :  { %v3837_v20 = vpop.f32.mrb[40].mxu1 }
 0xb05   :  { %v3839_v21 = vpop.f32.mrb[41].mxu1 }
 0xb06   :  { %v3841_v22 = vpop.f32.mrb[42].mxu1 }
 0xb07   :  { %v10232_v23 = vpack.c.bf16 %v3841_v22, %v3837_v20  ;;  %v3843_v24 = vpop.f32.mrb[43].mxu1  ;;  %v4313_v20 = vld [vmem:[%s14330_s15 + $0x18] sm:$0xff]  ;;  %v4330_v22 = vld [vmem:[%s14330_s15 + $0xa0] sm:$0xff] }
 0xb08   :  { %v10230_v25 = vpack.c.bf16 %v3843_v24, %v3839_v21  ;;  %v12780_v21 = vpack.c.bf16 %v4313_v20, %v4312_v18 }
 0xb0a   :  { %10231 = vmatprep.subr.bf16.mxu0 %v10230_v25  ;;  %v4314_v25 = vld [vmem:[%s14330_s15 + $0x20] sm:$0xff] }
 0xb0b   :  { %10233 = vmatpush1.bf16.msra.mxu0 %v10232_v23  ;;  %v4331_v23 = vld [vmem:[%s14330_s15 + $0xa8] sm:$0xff] }
 0xb0c   :  { %4153 = vmatprep.subr.bf16.mxu0 %v11028_v26  ;;  %v12790_v24 = vpack.c.bf16 %v4331_v23, %v4330_v22  ;;  %v4315_v26 = vld [vmem:[%s14330_s15 + $0x28] sm:$0xff] }
 0xb0e   :  { %9198 = vmatmul.mubr.msk.f32.vlgmr.msra.gmra.mrb[24].mxu0 %vm299_vm0, %v9194_v27  ;;  %v12798_v27 = vpack.c.bf16 %v4315_v26, %v4314_v25 }
 0xb0f   :  { %4154 = vmatpush1.bf16.msra.mxu0 %v11026_v57  ;;  %3933 = vmatprep.mubr.f32.mxu0 %v11921_v10  ;;  %v4332_v57 = vld [vmem:[%s14330_s15 + $0xb0] sm:$0xff] }
 0xb10   :  { %4155 = vmatprep.subr.bf16.mxu0 %v11031_v58  ;;  %v4333_v58 = vld [vmem:[%s14330_s15 + $0xb8] sm:$0xff] }
 0xb12   :  { %9199 = vmatmul.mubr.msk.f32.gmra.mrb[26].mxu0 %vm299_vm0, %v9195_v63  ;;  %v12808_v63 = vpack.c.bf16 %v4333_v58, %v4332_v57 }
 0xb13   :  { %4156 = vmatpush1.bf16.msra.mxu0 %v11029_v29  ;;  %3939 = vmatprep.mubr.f32.mxu0 %v11921_v10  ;;  %v4316_v29 = vld [vmem:[%s14330_s15 + $0x30] sm:$0xff] }
 0xb14   :  { %4157 = vmatprep.subr.bf16.mxu0 %v11034_v31  ;;  %v4317_v31 = vld [vmem:[%s14330_s15 + $0x38] sm:$0xff] }
 0xb16   :  { %9200 = vmatmul.mubr.msk.f32.gmra.mrb[28].mxu0 %vm299_vm0, %v9196_v32  ;;  %v12816_v32 = vpack.c.bf16 %v4317_v31, %v4316_v29 }
 0xb17   :  { %4158 = vmatpush1.bf16.msra.mxu0 %v11032_v33  ;;  %3945 = vmatprep.mubr.f32.mxu0 %v11921_v10  ;;  %v4334_v33 = vld [vmem:[%s14330_s15 + $0xc0] sm:$0xff] }
 0xb18   :  { %4159 = vmatprep.subr.bf16.mxu0 %v11037_v34  ;;  %v4335_v34 = vld [vmem:[%s14330_s15 + $0xc8] sm:$0xff] }
 0xb1a   :  { %9201 = vmatmul.mubr.msk.f32.gmra.mrb[30].mxu0 %vm299_vm0, %v9197_v35  ;;  %v12826_v35 = vpack.c.bf16 %v4335_v34, %v4334_v33 }
 0xb1b   :  { %4160 = vmatpush1.bf16.msra.mxu0 %v11035_v36  ;;  %4185 = vmatprep.mubr.bf16.mxu0 %v12657_v59  ;;  %v11053_v59 = vld [vmem:[#allocation15 + $0x390] ss:$8 sps:$4 sm:$0xff]  }
 0xb1c   :  { %4161 = vmatprep.subr.bf16.mxu0 %v11040_v37  ;;  %v4318_v36 = vld [vmem:[%s14330_s15 + $0x40] sm:$0xff]  ;;  %v4319_v37 = vld [vmem:[%s14330_s15 + $0x48] sm:$0xff] }
 0xb1f   :  { %4162 = vmatpush1.bf16.msra.mxu0 %v11038_v38  ;;  %v12834_v38 = vpack.c.bf16 %v4319_v37, %v4318_v36 }
 0xb20   :  { %4163 = vmatprep.subr.bf16.mxu0 %v11043_v39  ;;  %v4336_v39 = vld [vmem:[%s14330_s15 + $0xd0] sm:$0xff] }
 0xb23   :  { %4164 = vmatpush1.bf16.msra.mxu0 %v11041_v40  ;;  %v4337_v40 = vld [vmem:[%s14330_s15 + $0xd8] sm:$0xff] }
 0xb24   :  { %4165 = vmatprep.subr.bf16.mxu0 %v11046_v41  ;;  %v12844_v41 = vpack.c.bf16 %v4337_v40, %v4336_v39 }
 0xb27   :  { %4166 = vmatpush1.bf16.msra.mxu0 %v11044_v42  ;;  %v4320_v42 = vld [vmem:[%s14330_s15 + $0x50] sm:$0xff] }
 0xb28   :  { %4167 = vmatprep.subr.bf16.mxu0 %v11049_v43  ;;  %v4321_v43 = vld [vmem:[%s14330_s15 + $0x58] sm:$0xff] }
 0xb2b   :  { %4168 = vmatpush1.bf16.msra.mxu0 %v11047_v44  ;;  %v12852_v44 = vpack.c.bf16 %v4321_v43, %v4320_v42 }
 0xb2c   :  { %4169 = vmatprep.subr.bf16.mxu0 %v11052_v46  ;;  %v4338_v46 = vld [vmem:[%s14330_s15 + $0xe0] sm:$0xff] }
 0xb2f   :  { %4170 = vmatpush1.bf16.msra.mxu0 %v11050_v48  ;;  %v4339_v48 = vld [vmem:[%s14330_s15 + $0xe8] sm:$0xff] }
 0xb30   :  { %4171 = vmatprep.subr.bf16.mxu0 %v11055_v16  ;;  %v12862_v16 = vpack.c.bf16 %v4339_v48, %v4338_v46 }
 0xb33   :  { %4172 = vmatpush1.bf16.msra.mxu0 %v11053_v59  ;;  %v4322_v59 = vld [vmem:[%s14330_s15 + $0x60] sm:$0xff] }
 0xb34   :  { %4173 = vmatprep.subr.bf16.mxu0 %v11058_v19  ;;  %v4323_v19 = vld [vmem:[%s14330_s15 + $0x68] sm:$0xff] }
 0xb37   :  { %4174 = vmatpush1.bf16.msra.mxu0 %v11056_v45  ;;  %v12870_v45 = vpack.c.bf16 %v4323_v19, %v4322_v59 }
 0xb38   :  { %4175 = vmatprep.subr.bf16.mxu0 %v11061_v49  ;;  %v4340_v49 = vld [vmem:[%s14330_s15 + $0xf0] sm:$0xff] }
 0xb3b   :  { %4176 = vmatpush1.bf16.msra.mxu0 %v11059_v50  ;;  %v4341_v50 = vld [vmem:[%s14330_s15 + $0xf8] sm:$0xff] }
 0xb3c   :  { %4177 = vmatprep.subr.bf16.mxu0 %v11064_v51  ;;  %v4324_v51 = vld [vmem:[%s14330_s15 + $0x70] sm:$0xff] }
 0xb3f   :  { %4178 = vmatpush1.bf16.msra.mxu0 %v11062_v52  ;;  %v12883_v52 = vpack.c.bf16 %v4341_v50, %v4340_v49 }
 0xb40   :  { %4179 = vmatprep.subr.bf16.mxu0 %v11067_v53  ;;  %v4325_v53 = vld [vmem:[%s14330_s15 + $0x78] sm:$0xff] }
 0xb43   :  { %4180 = vmatpush1.bf16.msra.mxu0 %v11065_v54  ;;  %v12888_v54 = vpack.c.bf16 %v4325_v53, %v4324_v51 }
 0xb44   :  { %4181 = vmatprep.subr.bf16.mxu0 %v11070_v55 }
 0xb47   :  { %4182 = vmatpush1.bf16.msra.mxu0 %v11068_v56 }
 0xb48   :  { %4183 = vmatprep.subr.bf16.mxu0 %v11073_v60 }
 0xb4b   :  { %4184 = vmatpush1.bf16.msra.mxu0 %v11071_v61 }
 0xb4e   :  { %4186 = vmatmul.mubr.bf16.vlgmr.msra.gmra.mrb[32].mxu0 %v12655_v28  ;;  %v4311_v28 = vld [vmem:[%s14330_s15 + $0x8] sm:$0xff] }
 0xb4f   :  { %4277 = vmatprep.mubr.f32.mxu0 %v11921_v10  ;;  %v12742_v3 = vpack.c.bf16 %v4311_v28, %v4310_v1 }
 0xb51   :  { %10241 = vmatpush3.bf16.msra.mxu1 %v12742_v3 }
 0xb52   :  { %10243 = vmatprep.subr.bf16.mxu1 %v12772_v17 }
 0xb55   :  { %10245 = vmatpush3.bf16.msra.mxu1 %v12780_v21 }
 0xb56   :  { %10247 = vmatprep.subr.bf16.mxu1 %v12790_v24 }
 0xb59   :  { %10249 = vmatpush3.bf16.msra.mxu1 %v12798_v27 }
 0xb5a   :  { %10251 = vmatprep.subr.bf16.mxu1 %v12808_v63 }
 0xb5d   :  { %10253 = vmatpush3.bf16.msra.mxu1 %v12816_v32 }
 0xb5e   :  { %10255 = vmatprep.subr.bf16.mxu1 %v12826_v35 }
 0xb61   :  { %10257 = vmatpush3.bf16.msra.mxu1 %v12834_v38 }
 0xb62   :  { %10259 = vmatprep.subr.bf16.mxu1 %v12844_v41 }
 0xb65   :  { %10261 = vmatpush3.bf16.msra.mxu1 %v12852_v44 }
 0xb66   :  { %10263 = vmatprep.subr.bf16.mxu1 %v12862_v16 }
 0xb69   :  { %10265 = vmatpush3.bf16.msra.mxu1 %v12870_v45 }
 0xb6a   :  { %10267 = vmatprep.subr.bf16.mxu1 %v12883_v52 }
 0xb6d   :  { %10269 = vmatpush3.bf16.msra.mxu1 %v12888_v54 }
 0xb6e   :  { %10271 = vmatprep.subr.bf16.mxu1 %v12737_v2 }
 0xc21   :  { %v4187_v4 = vpop.f32.mrb[32].mxu0 }
 0xc22   :  { %v4189_v5 = vpop.f32.mrb[33].mxu0 }
 0xc23   :  { %v4191_v47 = vpop.f32.mrb[34].mxu0 }
 0xc24   :  { %v10236_v6 = vpack.c.bf16 %v4191_v47, %v4187_v4  ;;  %v4193_v7 = vpop.f32.mrb[35].mxu0 }
 0xc25   :  { %v10234_v8 = vpack.c.bf16 %v4193_v7, %v4189_v5 }
 0xc27   :  { %10235 = vmatprep.subr.bf16.mxu0 %v10234_v8 }
 0xc28   :  { %10237 = vmatpush1.bf16.msra.mxu0 %v10236_v6 }
 0xc2b   :  { %9238 = vmatmul.mubr.msk.f32.vlgmr.msra.gmra.mrb[24].mxu0 %vm299_vm0, %v9234_v9 }
 0xc2c   :  { %4283 = vmatprep.mubr.f32.mxu0 %v11921_v10 }
 0xc2f   :  { %9239 = vmatmul.mubr.msk.f32.gmra.mrb[26].mxu0 %vm299_vm0, %v9235_v11 }
 0xc30   :  { %4289 = vmatprep.mubr.f32.mxu0 %v11921_v10 }
 0xc33   :  { %9240 = vmatmul.mubr.msk.f32.gmra.mrb[28].mxu0 %vm299_vm0, %v9236_v12 }
 0xc34   :  { %4295 = vmatprep.mubr.f32.mxu0 %v11921_v10 }
 0xc37   :  { %9241 = vmatmul.mubr.msk.f32.gmra.mrb[30].mxu0 %vm299_vm0, %v9237_v13 }
 0xc38   :  { %4609 = vmatprep.mubr.f32.mxu0 %v11921_v10 }
 0xcfe   :  { %v12893_v55 = vpop.f32.mrb[24].mxu0 }
 0xcff   :  { %v12895_v56 = vpop.f32.mrb[25].mxu0  ;;  %v4364_v61 = vmul.f32 %v12893_v55, %v12893_v55 }
 0xd00   :  { %v4365_v2 = vmul.f32 %v12895_v56, %v12895_v56 }
 0xd02   :  { %v12897_v60 = vpop.f32.mrb[26].mxu0 }
 0xd03   :  { %v4346_v62 = vadd.f32 %v12897_v60, %v12893_v55  ;;  %v4366_v0 = vmul.f32 %v12897_v60, %v12897_v60  ;;  %v12905_v1 = vpop.f32.mrb[27].mxu0 }
 0xd04   :  { %v4355_v28 = vadd.f32 %v12905_v1, %v12895_v56  ;;  %v4367_v4 = vmul.f32 %v12905_v1, %v12905_v1 }
 0xd05   :  { %v4372_v5 = vadd.f32 %v4366_v0, %v4364_v61  ;;  %v11094_v0 = vld [vmem:[#allocation21 + $0x134] ss:$8 sps:$4 sm:$0xff]  }
 0xd06   :  { %v4381_v47 = vadd.f32 %v4367_v4, %v4365_v2  ;;  %v12913_v6 = vpop.f32.mrb[28].mxu0  ;;  %v11092_v2 = vld [vmem:[#allocation21 + $0x130] ss:$8 sps:$4 sm:$0xff]   ;;  %v11098_v4 = vld [vmem:[#allocation21 + $0x140] ss:$8 sps:$4 sm:$0xff]  }
 0xd07   :  { %v4347_v7 = vadd.f32 %v4346_v62, %v12913_v6  ;;  %v4368_v8 = vmul.f32 %v12913_v6, %v12913_v6  ;;  %v12918_v9 = vpop.f32.mrb[29].mxu0  ;;  %v11086_v62 = vld [vmem:[#allocation21 + $0x120] ss:$8 sps:$4 sm:$0xff]  }
 0xd08   :  { %v4356_v11 = vadd.f32 %v4355_v28, %v12918_v9  ;;  %v4369_v12 = vmul.f32 %v12918_v9, %v12918_v9  ;;  %v11100_v28 = vld [vmem:[#allocation21 + $0x144] ss:$8 sps:$4 sm:$0xff]  }
 0xd09   :  { %v4373_v13 = vadd.f32 %v4372_v5, %v4368_v8  ;;  %v11106_v5 = vld [vmem:[#allocation21 + $0x154] ss:$8 sps:$4 sm:$0xff]   ;;  %v11110_v8 = vld [vmem:[#allocation21 + $0x160] ss:$8 sps:$4 sm:$0xff]  }
 0xd0a   :  { %v4382_v14 = vadd.f32 %v4381_v47, %v4369_v12  ;;  %v12923_v15 = vpop.f32.mrb[30].mxu0  ;;  %v11104_v47 = vld [vmem:[#allocation21 + $0x150] ss:$8 sps:$4 sm:$0xff]  }
 0xd0b   :  { %v4348_v18 = vadd.f32 %v4347_v7, %v12923_v15  ;;  %v4370_v20 = vmul.f32 %v12923_v15, %v12923_v15  ;;  %v12928_v22 = vpop.f32.mrb[31].mxu0  ;;  %v11112_v7 = vld [vmem:[#allocation21 + $0x164] ss:$8 sps:$4 sm:$0xff]   ;;  %v11116_v12 = vld [vmem:[#allocation21 + $0x170] ss:$8 sps:$4 sm:$0xff]  }
 0xd0c   :  { %v4357_v23 = vadd.f32 %v4356_v11, %v12928_v22  ;;  %v4371_v25 = vmul.f32 %v12928_v22, %v12928_v22  ;;  %v11118_v11 = vld [vmem:[#allocation21 + $0x174] ss:$8 sps:$4 sm:$0xff]  }
 0xd0d   :  { %v4349_v26 = vrot.slane %v4348_v18, 4  ;;  %v4374_v57 = vadd.f32 %v4373_v13, %v4370_v20  ;;  %v11124_v13 = vld [vmem:[#allocation21 + $0x184] ss:$8 sps:$4 sm:$0xff]   ;;  %v11128_v20 = vld [vmem:[#allocation21 + $0x190] ss:$8 sps:$4 sm:$0xff]  }
 0xd0e   :  { %v4358_v58 = vrot.slane %v4357_v23, 4  ;;  %v4383_v29 = vadd.f32 %v4382_v14, %v4371_v25  ;;  %v11122_v14 = vld [vmem:[#allocation21 + $0x180] ss:$8 sps:$4 sm:$0xff]  }
 0xd0f   :  { %v4350_v31 = vadd.f32 %v4349_v26, %v4348_v18  ;;  %v4375_v53 = vrot.slane %v4374_v57, 4  ;;  %v11130_v18 = vld [vmem:[#allocation21 + $0x194] ss:$8 sps:$4 sm:$0xff]   ;;  %v11134_v25 = vld [vmem:[#allocation21 + $0x1a0] ss:$8 sps:$4 sm:$0xff]  }
 0xd10   :  { %v4359_v33 = vadd.f32 %v4358_v58, %v4357_v23  ;;  %v4384_v34 = vrot.slane %v4383_v29, 4  ;;  %v11136_v23 = vld [vmem:[#allocation21 + $0x1a4] ss:$8 sps:$4 sm:$0xff]   ;;  %v11142_v26 = vld [vmem:[#allocation21 + $0x1b4] ss:$8 sps:$4 sm:$0xff]  }
 0xd11   :  { %v4351_v36 = vrot.slane %v4350_v31, 2  ;;  %v4376_v61 = vadd.f32 %v4375_v53, %v4374_v57  ;;  %v11140_v57 = vld [vmem:[#allocation21 + $0x1b0] ss:$8 sps:$4 sm:$0xff]   ;;  %v11148_v58 = vld [vmem:[#allocation21 + $0x1c4] ss:$8 sps:$4 sm:$0xff]  }
 0xd12   :  { %v4360_v37 = vrot.slane %v4359_v33, 2  ;;  %v4385_v39 = vadd.f32 %v4384_v34, %v4383_v29  ;;  %v11146_v29 = vld [vmem:[#allocation21 + $0x1c0] ss:$8 sps:$4 sm:$0xff]  }
 0xd13   :  { %v4352_v40 = vadd.f32 %v4351_v36, %v4350_v31 }
 0xd14   :  { %v4361_v42 = vadd.f32 %v4360_v37, %v4359_v33  ;;  %v4386_v43 = vrot.slane %v4385_v39, 2 }
 0xd15   :  { %v4353_v46 = vrot.slane %v4352_v40, 1 }
 0xd16   :  { %v4362_v48 = vrot.slane %v4361_v42, 1  ;;  %v4387_v59 = vadd.f32 %v4386_v43, %v4385_v39 }
 0xd17   :  { %v4354_v50 = vadd.f32 %v4353_v46, %v4352_v40 }
 0xd18   :  { %v4363_v19 = vadd.f32 %v4362_v48, %v4361_v42  ;;  %v4388_v49 = vrot.slane %v4387_v59, 1 }
 0xd1a   :  { %4454 = vmatprep.mubr.f32.mxu1 %v4363_v19  ;;  %v4389_v51 = vadd.f32 %v4388_v49, %v4387_v59  ;;  %v4535_v59 = vld [vmem:[#allocation18] sm:$0x1] }
 0xd1b   :  { %4455 = vmatmul.mubr.f32.vlgmr.msra.gmra.mrb[34].mxu1 %v4354_v50  ;;  %v11079_v50 = vld [vmem:[#allocation21 + $0x4] ss:$8 sps:$4 sm:$0xff]  }
 0xd1c   :  { %10273 = vmatpush3.bf16.msra.mxu1 %v12742_v3  ;;  %4524 = vmatprep.mubr.f32.mxu1 %v4389_v51  ;;  %v4377_v3 = vrot.slane %v4376_v61, 2  ;;  %v4539_v51 = vld [vmem:[#allocation19] sm:$0x1] }
 0xd1d   :  { %10275 = vmatprep.subr.bf16.mxu1 %v12772_v17 }
 0xd1e   :  { %v4378_v17 = vadd.f32 %v4377_v3, %v4376_v61  ;;  %v11077_v61 = vld [vmem:[#allocation21] ss:$8 sps:$4 sm:$0xff]  }
 0xd20   :  { %10277 = vmatpush3.bf16.msra.mxu1 %v12780_v21  ;;  %v4379_v21 = vrot.slane %v4378_v17, 1 }
 0xd21   :  { %10279 = vmatprep.subr.bf16.mxu1 %v12790_v24 }
 0xd22   :  { %v4380_v24 = vadd.f32 %v4379_v21, %v4378_v17  ;;  %v11085_v17 = vld [vmem:[#allocation21 + $0x14] ss:$8 sps:$4 sm:$0xff]   ;;  %v11083_v21 = vld [vmem:[#allocation21 + $0x10] ss:$8 sps:$4 sm:$0xff]  }
 0xd24   :  { %10281 = vmatpush3.bf16.msra.mxu1 %v12798_v27  ;;  %v4343_v27 = vld [vmem:[#allocation16 + $0x8] sm:$0xff] }
 0xd25   :  { %10283 = vmatprep.subr.bf16.mxu1 %v12808_v63  ;;  %v4345_v63 = vld [vmem:[#allocation16 + $0x18] sm:$0xff] }
 0xd28   :  { %10285 = vmatpush3.bf16.msra.mxu1 %v12816_v32  ;;  %v10302_v32 = vpack.c.bf16 %v4345_v63, %v4343_v27  ;;  %v11089_v27 = vld [vmem:[#allocation21 + $0x20] ss:$8 sps:$4 sm:$0xff]   ;;  %v11097_v63 = vld [vmem:[#allocation21 + $0x34] ss:$8 sps:$4 sm:$0xff]  }
 0xd29   :  { %10287 = vmatprep.subr.bf16.mxu1 %v12826_v35  ;;  %v4342_v35 = vld [vmem:[#allocation16] sm:$0xff] }
 0xd2a   :  { %10303 = vmatprep.subr.bf16.mxu0 %v10302_v32 }
 0xd2c   :  { %10289 = vmatpush3.bf16.msra.mxu1 %v12834_v38  ;;  %v4344_v38 = vld [vmem:[#allocation16 + $0x10] sm:$0xff] }
 0xd2d   :  { %10291 = vmatprep.subr.bf16.mxu1 %v12844_v41  ;;  %v12948_v41 = vpack.c.bf16 %v4344_v38, %v4342_v35  ;;  %v11103_v35 = vld [vmem:[#allocation21 + $0x44] ss:$8 sps:$4 sm:$0xff]   ;;  %v11101_v38 = vld [vmem:[#allocation21 + $0x40] ss:$8 sps:$4 sm:$0xff]  }
 0xd2f   :  { %10305 = vmatpush1.bf16.msra.mxu0 %v12948_v41 }
 0xd30   :  { %10293 = vmatpush3.bf16.msra.mxu1 %v12852_v44  ;;  %10307 = vmatprep.subr.bf16.mxu0 %v10302_v32  ;;  %v11074_v44 = vld [vmem:[#allocation21 + $0x100] ss:$8 sps:$4 sm:$0xff]   ;;  %v11095_v32 = vld [vmem:[#allocation21 + $0x30] ss:$8 sps:$4 sm:$0xff]  }
 0xd31   :  { %10295 = vmatprep.subr.bf16.mxu1 %v12862_v16  ;;  %v11076_v16 = vld [vmem:[#allocation21 + $0x104] ss:$8 sps:$4 sm:$0xff]  }
 0xd34   :  { %10297 = vmatpush3.bf16.msra.mxu1 %v12870_v45  ;;  %v11082_v45 = vld [vmem:[#allocation21 + $0x114] ss:$8 sps:$4 sm:$0xff]  }
 0xd35   :  { %10299 = vmatprep.subr.bf16.mxu1 %v12883_v52  ;;  %v11080_v52 = vld [vmem:[#allocation21 + $0x110] ss:$8 sps:$4 sm:$0xff]  }
 0xd38   :  { %10301 = vmatpush3.bf16.msra.mxu1 %v12888_v54  ;;  %v11088_v54 = vld [vmem:[#allocation21 + $0x124] ss:$8 sps:$4 sm:$0xff]  }
 0xd39   :  { %5180 = vmatprep.subr.bf16.mxu1 %v11076_v16  ;;  %v11115_v16 = vld [vmem:[#allocation21 + $0x64] ss:$8 sps:$4 sm:$0xff]  }
 0xd3b   :  { %4525 = vmatmul.mubr.f32.vlgmr.msra.gmra.mrb[44].mxu1 %v4380_v24  ;;  %v11091_v24 = vld [vmem:[#allocation21 + $0x24] ss:$8 sps:$4 sm:$0xff]  }
 0xd3c   :  { %5181 = vmatpush1.bf16.msra.mxu1 %v11074_v44  ;;  %v11107_v44 = vld [vmem:[#allocation21 + $0x50] ss:$8 sps:$4 sm:$0xff]  }
 0xd3d   :  { %5182 = vmatprep.subr.bf16.mxu1 %v11082_v45  ;;  %v11113_v45 = vld [vmem:[#allocation21 + $0x60] ss:$8 sps:$4 sm:$0xff]  }
 0xd40   :  { %5183 = vmatpush1.bf16.msra.mxu1 %v11080_v52  ;;  %v11121_v52 = vld [vmem:[#allocation21 + $0x74] ss:$8 sps:$4 sm:$0xff]  }
 0xd41   :  { %5184 = vmatprep.subr.bf16.mxu1 %v11088_v54  ;;  %v11119_v54 = vld [vmem:[#allocation21 + $0x70] ss:$8 sps:$4 sm:$0xff]  }
 0xd44   :  { %5185 = vmatpush1.bf16.msra.mxu1 %v11086_v62  ;;  %v11127_v62 = vld [vmem:[#allocation21 + $0x84] ss:$8 sps:$4 sm:$0xff]  }
 0xd45   :  { %5186 = vmatprep.subr.bf16.mxu1 %v11094_v0  ;;  %v11125_v0 = vld [vmem:[#allocation21 + $0x80] ss:$8 sps:$4 sm:$0xff]  }
 0xd48   :  { %5187 = vmatpush1.bf16.msra.mxu1 %v11092_v2  ;;  %v11133_v2 = vld [vmem:[#allocation21 + $0x94] ss:$8 sps:$4 sm:$0xff]  }
 0xd49   :  { %5188 = vmatprep.subr.bf16.mxu1 %v11100_v28  ;;  %v11131_v28 = vld [vmem:[#allocation21 + $0x90] ss:$8 sps:$4 sm:$0xff]  }
 0xd4c   :  { %5189 = vmatpush1.bf16.msra.mxu1 %v11098_v4  ;;  %v11139_v4 = vld [vmem:[#allocation21 + $0xa4] ss:$8 sps:$4 sm:$0xff]  }
 0xd4d   :  { %5190 = vmatprep.subr.bf16.mxu1 %v11106_v5  ;;  %v11137_v5 = vld [vmem:[#allocation21 + $0xa0] ss:$8 sps:$4 sm:$0xff]  }
 0xd50   :  { %5191 = vmatpush1.bf16.msra.mxu1 %v11104_v47  ;;  %v11145_v47 = vld [vmem:[#allocation21 + $0xb4] ss:$8 sps:$4 sm:$0xff]  }
 0xd51   :  { %5192 = vmatprep.subr.bf16.mxu1 %v11112_v7  ;;  %v11143_v7 = vld [vmem:[#allocation21 + $0xb0] ss:$8 sps:$4 sm:$0xff]  }
 0xd54   :  { %5193 = vmatpush1.bf16.msra.mxu1 %v11110_v8  ;;  %v11151_v8 = vld [vmem:[#allocation21 + $0xc4] ss:$8 sps:$4 sm:$0xff]  }
 0xd55   :  { %5194 = vmatprep.subr.bf16.mxu1 %v11118_v11  ;;  %v11149_v11 = vld [vmem:[#allocation21 + $0xc0] ss:$8 sps:$4 sm:$0xff]  }
 0xd58   :  { %5195 = vmatpush1.bf16.msra.mxu1 %v11116_v12  ;;  %v11154_v12 = vld [vmem:[#allocation21 + $0x1d4] ss:$8 sps:$4 sm:$0xff]  }
 0xd59   :  { %5196 = vmatprep.subr.bf16.mxu1 %v11124_v13  ;;  %v11152_v13 = vld [vmem:[#allocation21 + $0x1d0] ss:$8 sps:$4 sm:$0xff]  }
 0xd5c   :  { %5197 = vmatpush1.bf16.msra.mxu1 %v11122_v14  ;;  %v11157_v14 = vld [vmem:[#allocation21 + $0xd4] ss:$8 sps:$4 sm:$0xff]  }
 0xd5d   :  { %5198 = vmatprep.subr.bf16.mxu1 %v11130_v18  ;;  %v11155_v18 = vld [vmem:[#allocation21 + $0xd0] ss:$8 sps:$4 sm:$0xff]  }
 0xd60   :  { %5199 = vmatpush1.bf16.msra.mxu1 %v11128_v20  ;;  %v11160_v20 = vld [vmem:[#allocation21 + $0x1e4] ss:$8 sps:$4 sm:$0xff]  }
 0xd61   :  { %5200 = vmatprep.subr.bf16.mxu1 %v11136_v23  ;;  %v11158_v23 = vld [vmem:[#allocation21 + $0x1e0] ss:$8 sps:$4 sm:$0xff]  }
 0xd64   :  { %5201 = vmatpush1.bf16.msra.mxu1 %v11134_v25  ;;  %v11163_v25 = vld [vmem:[#allocation21 + $0xe4] ss:$8 sps:$4 sm:$0xff]  }
 0xd65   :  { %5202 = vmatprep.subr.bf16.mxu1 %v11142_v26  ;;  %v11161_v26 = vld [vmem:[#allocation21 + $0xe0] ss:$8 sps:$4 sm:$0xff]  }
 0xd68   :  { %5203 = vmatpush1.bf16.msra.mxu1 %v11140_v57  ;;  %v11166_v57 = vld [vmem:[#allocation21 + $0x1f4] ss:$8 sps:$4 sm:$0xff]  }
 0xd69   :  { %5204 = vmatprep.subr.bf16.mxu1 %v11148_v58  ;;  %v11164_v58 = vld [vmem:[#allocation21 + $0x1f0] ss:$8 sps:$4 sm:$0xff]  }
 0xd6c   :  { %5205 = vmatpush1.bf16.msra.mxu1 %v11146_v29  ;;  %v11169_v29 = vld [vmem:[#allocation21 + $0xf4] ss:$8 sps:$4 sm:$0xff]  }
 0xd6d   :  { %5206 = vmatprep.subr.bf16.mxu1 %v11154_v12  ;;  %v11193_v12 = vld [vmem:[#allocation21 + $0x274] ss:$8 sps:$4 sm:$0xff]  }
 0xd70   :  { %5207 = vmatpush1.bf16.msra.mxu1 %v11152_v13  ;;  %v11191_v13 = vld [vmem:[#allocation21 + $0x270] ss:$8 sps:$4 sm:$0xff]  }
 0xd71   :  { %5208 = vmatprep.subr.bf16.mxu1 %v11160_v20  ;;  %v11199_v20 = vld [vmem:[#allocation21 + $0x294] ss:$8 sps:$4 sm:$0xff]  }
 0xd74   :  { %5209 = vmatpush1.bf16.msra.mxu1 %v11158_v23  ;;  %v11197_v23 = vld [vmem:[#allocation21 + $0x290] ss:$8 sps:$4 sm:$0xff]  }
 0xd75   :  { %5210 = vmatprep.subr.bf16.mxu1 %v11166_v57  ;;  %v11205_v57 = vld [vmem:[#allocation21 + $0x2b4] ss:$8 sps:$4 sm:$0xff]  }
 0xd78   :  { %5211 = vmatpush1.bf16.msra.mxu1 %v11164_v58  ;;  %v11203_v58 = vld [vmem:[#allocation21 + $0x2b0] ss:$8 sps:$4 sm:$0xff]  }
 0xdee   :  { %v9938_v31 = vpop.f32.mrb[34].mxu1 }
 0xdef   :  { %v9939_v33 = vpop.f32.mrb[35].mxu1 }
 0xdf0   :  { %v9940_v34 = vadd.f32 %v9939_v33, %v9938_v31  ;;  %v11167_v31 = vld [vmem:[#allocation21 + $0xf0] ss:$8 sps:$4 sm:$0xff]   ;;  %v11172_v33 = vld [vmem:[#allocation21 + $0x204] ss:$8 sps:$4 sm:$0xff]  }
 0xdf1   :  { %5709 = vmatprep.subr.bf16.mxu1 %v11172_v33  ;;  %v11211_v33 = vld [vmem:[#allocation21 + $0x2d4] ss:$8 sps:$4 sm:$0xff]  }
 0xdf2   :  { %v4531_v36 = vmul.f32 0.001953125, %v9940_v34 }
 0xdf4   :  { %v4533_v42 = vmul.f32 %v4531_v36, %v4531_v36 }
 0xe0e   :  { %v9973_v37 = vpop.f32.mrb[44].mxu1 }
 0xe0f   :  { %v9974_v39 = vpop.f32.mrb[45].mxu1 }
 0xe10   :  { %v9975_v40 = vadd.f32 %v9974_v39, %v9973_v37 }
 0xe12   :  { %v4532_v43 = vmul.f32 0.001953125, %v9975_v40 }
 0xe14   :  { %v4534_v46 = vsub.f32 %v4532_v43, %v4533_v42 }
 0xe16   :  { %v4536_v48 = vadd.f32 1e-05, %v4534_v46 }
 0xe18   :  { %11462 = vrsqrt.f32 %v4536_v48 }
 0xe22   :  { %v11463_v19 = vpop.eup %11462 }
 0xe23   :  { %v4538_v49 = vmul.f32 %v11463_v19, %v4535_v59 }
 0xe25   :  { %9242 = vmatmul.mubr.msk.f32.vlgmr.msra.gmra.mrb[36].mxu0 %vm299_vm0, %v4538_v49  ;;  %v4540_v53 = vmul.f32 %v4538_v49, %v4531_v36 }
 0xe26   :  { %10309 = vmatpush1.bf16.msra.mxu0 %v12948_v41  ;;  %4683 = vmatprep.mubr.f32.mxu0 %v11921_v10  ;;  %v11109_v41 = vld [vmem:[#allocation21 + $0x54] ss:$8 sps:$4 sm:$0xff]  }
 0xe27   :  { %v4541_v3 = vsub.f32 %v4539_v51, %v4540_v53  ;;  %4926 = vmatprep.subr.bf16.mxu0 %v11079_v50 }
 0xe29   :  { %9243 = vmatmul.mubr.msk.f32.vlgmr.msra.gmra.mrb[38].mxu0 %vm299_vm0, %v4541_v3 }
 0xe2a   :  { %4927 = vmatpush1.bf16.msra.mxu0 %v11077_v61 }
 0xe2b   :  { %4928 = vmatprep.subr.bf16.mxu0 %v11085_v17 }
 0xe2e   :  { %4929 = vmatpush1.bf16.msra.mxu0 %v11083_v21 }
 0xe2f   :  { %4930 = vmatprep.subr.bf16.mxu0 %v11091_v24 }
 0xe32   :  { %4931 = vmatpush1.bf16.msra.mxu0 %v11089_v27 }
 0xe33   :  { %4932 = vmatprep.subr.bf16.mxu0 %v11097_v63 }
 0xe36   :  { %4933 = vmatpush1.bf16.msra.mxu0 %v11095_v32 }
 0xe37   :  { %4934 = vmatprep.subr.bf16.mxu0 %v11103_v35 }
 0xe3a   :  { %4935 = vmatpush1.bf16.msra.mxu0 %v11101_v38 }
 0xe3b   :  { %4936 = vmatprep.subr.bf16.mxu0 %v11109_v41 }
 0xe3e   :  { %4937 = vmatpush1.bf16.msra.mxu0 %v11107_v44 }
 0xe3f   :  { %4938 = vmatprep.subr.bf16.mxu0 %v11115_v16  ;;  %v11170_v16 = vld [vmem:[#allocation21 + $0x200] ss:$8 sps:$4 sm:$0xff]  }
 0xe42   :  { %4939 = vmatpush1.bf16.msra.mxu0 %v11113_v45 }
 0xe43   :  { %4940 = vmatprep.subr.bf16.mxu0 %v11121_v52  ;;  %v11175_v52 = vld [vmem:[#allocation21 + $0x214] ss:$8 sps:$4 sm:$0xff]  }
 0xe46   :  { %4941 = vmatpush1.bf16.msra.mxu0 %v11119_v54  ;;  %v11173_v54 = vld [vmem:[#allocation21 + $0x210] ss:$8 sps:$4 sm:$0xff]  }
 0xe47   :  { %4942 = vmatprep.subr.bf16.mxu0 %v11127_v62  ;;  %v11178_v62 = vld [vmem:[#allocation21 + $0x224] ss:$8 sps:$4 sm:$0xff]  }
 0xe4a   :  { %4943 = vmatpush1.bf16.msra.mxu0 %v11125_v0  ;;  %v11176_v0 = vld [vmem:[#allocation21 + $0x220] ss:$8 sps:$4 sm:$0xff]  }
 0xe4b   :  { %4944 = vmatprep.subr.bf16.mxu0 %v11133_v2  ;;  %v11181_v2 = vld [vmem:[#allocation21 + $0x234] ss:$8 sps:$4 sm:$0xff]  }
 0xe4e   :  { %4945 = vmatpush1.bf16.msra.mxu0 %v11131_v28  ;;  %v11179_v28 = vld [vmem:[#allocation21 + $0x230] ss:$8 sps:$4 sm:$0xff]  }
 0xe4f   :  { %4946 = vmatprep.subr.bf16.mxu0 %v11139_v4  ;;  %v11184_v4 = vld [vmem:[#allocation21 + $0x244] ss:$8 sps:$4 sm:$0xff]  }
 0xe52   :  { %4947 = vmatpush1.bf16.msra.mxu0 %v11137_v5  ;;  %v11182_v5 = vld [vmem:[#allocation21 + $0x240] ss:$8 sps:$4 sm:$0xff]  }
 0xe53   :  { %4948 = vmatprep.subr.bf16.mxu0 %v11145_v47  ;;  %v11187_v47 = vld [vmem:[#allocation21 + $0x254] ss:$8 sps:$4 sm:$0xff]  }
 0xe56   :  { %4949 = vmatpush1.bf16.msra.mxu0 %v11143_v7  ;;  %v11185_v7 = vld [vmem:[#allocation21 + $0x250] ss:$8 sps:$4 sm:$0xff]  }
 0xe57   :  { %4950 = vmatprep.subr.bf16.mxu0 %v11151_v8  ;;  %v11190_v8 = vld [vmem:[#allocation21 + $0x264] ss:$8 sps:$4 sm:$0xff]  }
 0xe5a   :  { %4951 = vmatpush1.bf16.msra.mxu0 %v11149_v11  ;;  %v11188_v11 = vld [vmem:[#allocation21 + $0x260] ss:$8 sps:$4 sm:$0xff]  }
 0xe5b   :  { %4952 = vmatprep.subr.bf16.mxu0 %v11157_v14  ;;  %v11196_v14 = vld [vmem:[#allocation21 + $0x284] ss:$8 sps:$4 sm:$0xff]  }
 0xe5e   :  { %4953 = vmatpush1.bf16.msra.mxu0 %v11155_v18  ;;  %v11194_v18 = vld [vmem:[#allocation21 + $0x280] ss:$8 sps:$4 sm:$0xff]  }
 0xe5f   :  { %4954 = vmatprep.subr.bf16.mxu0 %v11163_v25  ;;  %v11202_v25 = vld [vmem:[#allocation21 + $0x2a4] ss:$8 sps:$4 sm:$0xff]  }
 0xe62   :  { %4955 = vmatpush1.bf16.msra.mxu0 %v11161_v26  ;;  %v11200_v26 = vld [vmem:[#allocation21 + $0x2a0] ss:$8 sps:$4 sm:$0xff]  }
 0xe63   :  { %4956 = vmatprep.subr.bf16.mxu0 %v11169_v29  ;;  %v11208_v29 = vld [vmem:[#allocation21 + $0x2c4] ss:$8 sps:$4 sm:$0xff]  }
 0xe66   :  { %4957 = vmatpush1.bf16.msra.mxu0 %v11167_v31  ;;  %v11206_v31 = vld [vmem:[#allocation21 + $0x2c0] ss:$8 sps:$4 sm:$0xff]  }
 0xef8   :  { %v4611_v34 = vpop.f32.mrb[36].mxu0 }
 0xef9   :  { %v4693_v36 = vrot.slane %v4611_v34, %v12455_v30  ;;  %v4613_v37 = vpop.f32.mrb[37].mxu0  ;;  %v11209_v34 = vld [vmem:[#allocation21 + $0x2d0] ss:$8 sps:$4 sm:$0xff]  }
 0xefa   :  { %v4697_v39 = vrot.slane %v4613_v37, %v12455_v30  ;;  %v11212_v37 = vld [vmem:[#allocation21 + $0x2e0] ss:$8 sps:$4 sm:$0xff]  }
 0xefb   :  { %v4698_v40 = vmul.f32 %v4693_v36, %v12893_v55  ;;  %v4700_v42 = vmul.f32 %v4693_v36, %v12897_v60  ;;  %v4702_v43 = vmul.f32 %v4693_v36, %v12913_v6  ;;  %v4704_v46 = vmul.f32 %v4693_v36, %v12923_v15  ;;  %v11214_v36 = vld [vmem:[#allocation21 + $0x2e4] ss:$8 sps:$4 sm:$0xff]  }
 0xefc   :  { %v4699_v48 = vmul.f32 %v4697_v39, %v12895_v56  ;;  %v4701_v59 = vmul.f32 %v4697_v39, %v12905_v1  ;;  %v4703_v19 = vmul.f32 %v4697_v39, %v12918_v9  ;;  %v4705_v49 = vmul.f32 %v4697_v39, %v12928_v22  ;;  %v4685_v50 = vpop.f32.mrb[38].mxu0  ;;  %v11217_v39 = vld [vmem:[#allocation21 + $0x2f4] ss:$8 sps:$4 sm:$0xff]  }
 0xefd   :  { %v4709_v51 = vrot.slane %v4685_v50, %v12455_v30  ;;  %v4687_v53 = vpop.f32.mrb[39].mxu0  ;;  %v11227_v50 = vld [vmem:[#allocation21 + $0x330] ss:$8 sps:$4 sm:$0xff]  }
 0xefe   :  { %v4713_v55 = vrot.slane %v4687_v53, %v12455_v30  ;;  %v11230_v53 = vld [vmem:[#allocation21 + $0x340] ss:$8 sps:$4 sm:$0xff]  }
 0xeff   :  { %v4714_v61 = vadd.f32 %v4709_v51, %v4698_v40  ;;  %v4716_v60 = vadd.f32 %v4709_v51, %v4700_v42  ;;  %v4718_v3 = vadd.f32 %v4709_v51, %v4702_v43  ;;  %v4720_v6 = vadd.f32 %v4709_v51, %v4704_v46  ;;  %v11215_v40 = vld [vmem:[#allocation21 + $0x2f0] ss:$8 sps:$4 sm:$0xff]   ;;  %v11220_v42 = vld [vmem:[#allocation21 + $0x304] ss:$8 sps:$4 sm:$0xff]   ;;  %v11218_v43 = vld [vmem:[#allocation21 + $0x300] ss:$8 sps:$4 sm:$0xff]  }
 0xf00   :  { %v4715_v17 = vadd.f32 %v4713_v55, %v4699_v48  ;;  %v4717_v15 = vadd.f32 %v4713_v55, %v4701_v59  ;;  %v4719_v21 = vadd.f32 %v4713_v55, %v4703_v19  ;;  %v4721_v56 = vadd.f32 %v4713_v55, %v4705_v49  ;;  %v11223_v46 = vld [vmem:[#allocation21 + $0x314] ss:$8 sps:$4 sm:$0xff]   ;;  %v11221_v48 = vld [vmem:[#allocation21 + $0x310] ss:$8 sps:$4 sm:$0xff]   ;;  %v11226_v59 = vld [vmem:[#allocation21 + $0x324] ss:$8 sps:$4 sm:$0xff]  }
 0xf01   :  { %v4722_v24 = vmax.f32 %v4714_v61, 0.0  ;;  %v4724_v1 = vmax.f32 %v4716_v60, 0.0  ;;  %v4726_v27 = vmax.f32 %v4718_v3, 0.0  ;;  %v4728_v9 = vmax.f32 %v4720_v6, 0.0  ;;  %v11224_v19 = vld [vmem:[#allocation21 + $0x320] ss:$8 sps:$4 sm:$0xff]  }
 0xf02   :  { %v4723_v63 = vmax.f32 %v4715_v17, 0.0  ;;  %v4725_v22 = vmax.f32 %v4717_v15, 0.0  ;;  %v4727_v32 = vmax.f32 %v4719_v21, 0.0  ;;  %v4729_v35 = vmax.f32 %v4721_v56, 0.0  ;;  %v11229_v49 = vld [vmem:[#allocation21 + $0x334] ss:$8 sps:$4 sm:$0xff]  }
 0xf03   :  { %v12967_v38 = vpack.c.bf16 %v4724_v1, %v4722_v24  ;;  %v12969_v41 = vpack.c.bf16 %v4728_v9, %v4726_v27  ;;  %v11232_v51 = vld [vmem:[#allocation21 + $0x344] ss:$8 sps:$4 sm:$0xff]   ;;  %v11235_v55 = vld [vmem:[#allocation21 + $0x354] ss:$8 sps:$4 sm:$0xff]   ;;  %v11233_v61 = vld [vmem:[#allocation21 + $0x350] ss:$8 sps:$4 sm:$0xff]  }
 0xf04   :  { %v12971_v44 = vpack.c.bf16 %v4725_v22, %v4723_v63  ;;  %v12973_v45 = vpack.c.bf16 %v4729_v35, %v4727_v32  ;;  %v11238_v60 = vld [vmem:[#allocation21 + $0x364] ss:$8 sps:$4 sm:$0xff]   ;;  %v11236_v3 = vld [vmem:[#allocation21 + $0x360] ss:$8 sps:$4 sm:$0xff]   ;;  %v11241_v6 = vld [vmem:[#allocation21 + $0x374] ss:$8 sps:$4 sm:$0xff]  }
 0xf05   :  { %v11239_v17 = vld [vmem:[#allocation21 + $0x370] ss:$8 sps:$4 sm:$0xff]   ;;  %v11244_v15 = vld [vmem:[#allocation21 + $0x384] ss:$8 sps:$4 sm:$0xff]   ;;  %v11242_v21 = vld [vmem:[#allocation21 + $0x380] ss:$8 sps:$4 sm:$0xff]  }
 0xf06   :  { %4958 = vmatprep.mubr.bf16.mxu0 %v12971_v44  ;;  %5212 = vmatprep.mubr.bf16.mxu1 %v12971_v44  ;;  %v11247_v56 = vld [vmem:[#allocation21 + $0x394] ss:$8 sps:$4 sm:$0xff]   ;;  %v11245_v24 = vld [vmem:[#allocation21 + $0x390] ss:$8 sps:$4 sm:$0xff]   ;;  %v11250_v1 = vld [vmem:[#allocation21 + $0x3a4] ss:$8 sps:$4 sm:$0xff]  }
 0xf07   :  { %4959 = vmatmul.mubr.bf16.vlgmr.msra.gmra.mrb[40].mxu0 %v12967_v38  ;;  %5213 = vmatmul.mubr.bf16.vlgmr.msra.gmra.mrb[48].mxu1 %v12967_v38  ;;  %v11248_v27 = vld [vmem:[#allocation21 + $0x3a0] ss:$8 sps:$4 sm:$0xff]   ;;  %v11253_v9 = vld [vmem:[#allocation21 + $0x3b4] ss:$8 sps:$4 sm:$0xff]   ;;  %v11251_v63 = vld [vmem:[#allocation21 + $0x3b0] ss:$8 sps:$4 sm:$0xff]  }
 0xf08   :  { %5710 = vmatpush1.bf16.msra.mxu1 %v11170_v16  ;;  %4968 = vmatprep.mubr.bf16.mxu0 %v12973_v45  ;;  %v11256_v22 = vld [vmem:[#allocation21 + $0x3c4] ss:$8 sps:$4 sm:$0xff]   ;;  %v11254_v32 = vld [vmem:[#allocation21 + $0x3c0] ss:$8 sps:$4 sm:$0xff]   ;;  %v11259_v35 = vld [vmem:[#allocation21 + $0x3d4] ss:$8 sps:$4 sm:$0xff]  }
 0xf09   :  { %5222 = vmatprep.mubr.bf16.mxu1 %v12973_v45  ;;  %5711 = vmatprep.subr.bf16.mxu1 %v11175_v52  ;;  %v11262_v16 = vld [vmem:[#allocation21 + $0x3e4] ss:$8 sps:$4 sm:$0xff]   ;;  %v11260_v52 = vld [vmem:[#allocation21 + $0x3e0] ss:$8 sps:$4 sm:$0xff]  }
 0xf0c   :  { %5712 = vmatpush1.bf16.msra.mxu1 %v11173_v54  ;;  %v11265_v54 = vld [vmem:[#allocation21 + $0x3f4] ss:$8 sps:$4 sm:$0xff]  }
 0xf0d   :  { %5713 = vmatprep.subr.bf16.mxu1 %v11178_v62  ;;  %v11263_v62 = vld [vmem:[#allocation21 + $0x3f0] ss:$8 sps:$4 sm:$0xff]  }
 0xf0f   :  { %4969 = vmatmul.mubr.bf16.gmra.mrb[44].mxu0 %v12969_v41  ;;  %5223 = vmatmul.mubr.bf16.gmra.mrb[52].mxu1 %v12969_v41 }
 0xf10   :  { %5714 = vmatpush1.bf16.msra.mxu1 %v11176_v0  ;;  %5741 = vmatprep.mubr.bf16.mxu1 %v12971_v44 }
 0xf11   :  { %5715 = vmatprep.subr.bf16.mxu1 %v11181_v2  ;;  %5330 = vmatprep.mubr.f32.mxu0 %v11921_v10 }
 0xf14   :  { %5716 = vmatpush1.bf16.msra.mxu1 %v11179_v28 }
 0xf15   :  { %5717 = vmatprep.subr.bf16.mxu1 %v11184_v4 }
 0xf18   :  { %5718 = vmatpush1.bf16.msra.mxu1 %v11182_v5 }
 0xf19   :  { %5719 = vmatprep.subr.bf16.mxu1 %v11187_v47 }
 0xf1c   :  { %5720 = vmatpush1.bf16.msra.mxu1 %v11185_v7 }
 0xf1d   :  { %5721 = vmatprep.subr.bf16.mxu1 %v11190_v8 }
 0xf20   :  { %5722 = vmatpush1.bf16.msra.mxu1 %v11188_v11 }
 0xf21   :  { %5723 = vmatprep.subr.bf16.mxu1 %v11193_v12 }
 0xf24   :  { %5724 = vmatpush1.bf16.msra.mxu1 %v11191_v13 }
 0xf25   :  { %5725 = vmatprep.subr.bf16.mxu1 %v11196_v14 }
 0xf28   :  { %5726 = vmatpush1.bf16.msra.mxu1 %v11194_v18 }
 0xf29   :  { %5727 = vmatprep.subr.bf16.mxu1 %v11199_v20 }
 0xf2c   :  { %5728 = vmatpush1.bf16.msra.mxu1 %v11197_v23 }
 0xf2d   :  { %5729 = vmatprep.subr.bf16.mxu1 %v11202_v25 }
 0xf30   :  { %5730 = vmatpush1.bf16.msra.mxu1 %v11200_v26 }
 0xf31   :  { %5731 = vmatprep.subr.bf16.mxu1 %v11205_v57 }
 0xf34   :  { %5732 = vmatpush1.bf16.msra.mxu1 %v11203_v58 }
 0xf35   :  { %5733 = vmatprep.subr.bf16.mxu1 %v11208_v29 }
 0xf38   :  { %5734 = vmatpush1.bf16.msra.mxu1 %v11206_v31 }
 0xf39   :  { %5735 = vmatprep.subr.bf16.mxu1 %v11211_v33  ;;  %v9308_v33 = vld [vmem:[%s14335_s20 + $0x40] sm:$0xff] }
 0xf3c   :  { %5736 = vmatpush1.bf16.msra.mxu1 %v11209_v34  ;;  %v9309_v34 = vld [vmem:[%s14335_s20 + $0x48] sm:$0xff] }
 0xf3d   :  { %5737 = vmatprep.subr.bf16.mxu1 %v11214_v36  ;;  %v9310_v36 = vld [vmem:[%s14335_s20 + $0x50] sm:$0xff] }
 0xf40   :  { %5738 = vmatpush1.bf16.msra.mxu1 %v11212_v37  ;;  %v9311_v37 = vld [vmem:[%s14335_s20 + $0x58] sm:$0xff] }
 0xf41   :  { %5739 = vmatprep.subr.bf16.mxu1 %v11217_v39  ;;  %v9312_v39 = vld [vmem:[%s14335_s20 + $0x60] sm:$0xff] }
 0xf44   :  { %5740 = vmatpush1.bf16.msra.mxu1 %v11215_v40  ;;  %v9313_v40 = vld [vmem:[%s14335_s20 + $0x68] sm:$0xff] }
 0xf45   :  { %6117 = vmatprep.subr.bf16.mxu1 %v11220_v42  ;;  %v9314_v42 = vld [vmem:[%s14335_s20 + $0x70] sm:$0xff] }
 0xf47   :  { %5742 = vmatmul.mubr.bf16.vlgmr.msra.gmra.mrb[56].mxu1 %v12967_v38 }
 0xf48   :  { %5751 = vmatprep.mubr.bf16.mxu1 %v12973_v45  ;;  %6118 = vmatpush1.bf16.msra.mxu1 %v11218_v43  ;;  %v9315_v43 = vld [vmem:[%s14335_s20 + $0x78] sm:$0xff] }
 0xf49   :  { %6119 = vmatprep.subr.bf16.mxu1 %v11223_v46  ;;  %v4979_v46 = vld [vmem:[%s14335_s20] sm:$0xff] }
 0xf4c   :  { %6120 = vmatpush1.bf16.msra.mxu1 %v11221_v48  ;;  %v4980_v48 = vld [vmem:[%s14335_s20 + $0x8] sm:$0xff] }
 0xf4d   :  { %6121 = vmatprep.subr.bf16.mxu1 %v11226_v59  ;;  %v4981_v59 = vld [vmem:[%s14335_s20 + $0x10] sm:$0xff] }
 0xf4f   :  { %5752 = vmatmul.mubr.bf16.gmra.mrb[60].mxu1 %v12969_v41 }
 0xf50   :  { %6122 = vmatpush1.bf16.msra.mxu1 %v11224_v19  ;;  %6149 = vmatprep.mubr.bf16.mxu1 %v12971_v44  ;;  %v11257_v44 = vld [vmem:[#allocation21 + $0x3d0] ss:$8 sps:$4 sm:$0xff]  }
 0xf51   :  { %6123 = vmatprep.subr.bf16.mxu1 %v11229_v49  ;;  %v4982_v19 = vld [vmem:[%s14335_s20 + $0x18] sm:$0xff]  ;;  %v4983_v49 = vld [vmem:[%s14335_s20 + $0x20] sm:$0xff] }
 0xf54   :  { %6124 = vmatpush1.bf16.msra.mxu1 %v11227_v50 }
 0xf55   :  { %6125 = vmatprep.subr.bf16.mxu1 %v11232_v51 }
 0xf58   :  { %6126 = vmatpush1.bf16.msra.mxu1 %v11230_v53 }
 0xf59   :  { %6127 = vmatprep.subr.bf16.mxu1 %v11235_v55 }
 0xf5c   :  { %6128 = vmatpush1.bf16.msra.mxu1 %v11233_v61 }
 0xf5d   :  { %6129 = vmatprep.subr.bf16.mxu1 %v11238_v60  ;;  %v4984_v60 = vld [vmem:[%s14335_s20 + $0x28] sm:$0xff] }
 0xf60   :  { %6130 = vmatpush1.bf16.msra.mxu1 %v11236_v3 }
 0xf61   :  { %6131 = vmatprep.subr.bf16.mxu1 %v11241_v6  ;;  %v4985_v6 = vld [vmem:[%s14335_s20 + $0x30] sm:$0xff] }
 0xf64   :  { %6132 = vmatpush1.bf16.msra.mxu1 %v11239_v17 }
 0xf65   :  { %6133 = vmatprep.subr.bf16.mxu1 %v11244_v15 }
 0xf68   :  { %6134 = vmatpush1.bf16.msra.mxu1 %v11242_v21 }
 0xf69   :  { %6135 = vmatprep.subr.bf16.mxu1 %v11247_v56 }
 0xf6c   :  { %6136 = vmatpush1.bf16.msra.mxu1 %v11245_v24 }
 0xf6d   :  { %6137 = vmatprep.subr.bf16.mxu1 %v11250_v1  ;;  %v4986_v1 = vld [vmem:[%s14335_s20 + $0x38] sm:$0xff] }
 0xf70   :  { %6138 = vmatpush1.bf16.msra.mxu1 %v11248_v27 }
 0xf71   :  { %6139 = vmatprep.subr.bf16.mxu1 %v11253_v9  ;;  %v9364_v9 = vld [vmem:[%s14335_s20 + $0x80] sm:$0xff] }
 0xf74   :  { %6140 = vmatpush1.bf16.msra.mxu1 %v11251_v63  ;;  %v9365_v63 = vld [vmem:[%s14335_s20 + $0x88] sm:$0xff] }
 0xf75   :  { %6141 = vmatprep.subr.bf16.mxu1 %v11256_v22  ;;  %v9366_v22 = vld [vmem:[%s14335_s20 + $0x90] sm:$0xff] }
 0xf78   :  { %6142 = vmatpush1.bf16.msra.mxu1 %v11254_v32  ;;  %v9367_v32 = vld [vmem:[%s14335_s20 + $0x98] sm:$0xff] }
 0xf79   :  { %6143 = vmatprep.subr.bf16.mxu1 %v11259_v35  ;;  %v9368_v35 = vld [vmem:[%s14335_s20 + $0xa0] sm:$0xff] }
 0xf7c   :  { %6144 = vmatpush1.bf16.msra.mxu1 %v11257_v44  ;;  %v9369_v44 = vld [vmem:[%s14335_s20 + $0xa8] sm:$0xff] }
 0xf7d   :  { %6145 = vmatprep.subr.bf16.mxu1 %v11262_v16  ;;  %v9370_v16 = vld [vmem:[%s14335_s20 + $0xb0] sm:$0xff] }
 0xf80   :  { %6146 = vmatpush1.bf16.msra.mxu1 %v11260_v52  ;;  %v9371_v52 = vld [vmem:[%s14335_s20 + $0xb8] sm:$0xff] }
 0xf81   :  { %6147 = vmatprep.subr.bf16.mxu1 %v11265_v54 }
 0xf84   :  { %6148 = vmatpush1.bf16.msra.mxu1 %v11263_v62 }
 0xf87   :  { %6150 = vmatmul.mubr.bf16.vlgmr.msra.gmra.mrb[64].mxu1 %v12967_v38 }
 0xf88   :  { %6159 = vmatprep.mubr.bf16.mxu1 %v12973_v45 }
 0xf8f   :  { %6160 = vmatmul.mubr.bf16.gmra.mrb[68].mxu1 %v12969_v41 }
 0xfda   :  { %v4960_v0 = vpop.f32.mrb[40].mxu0  ;;  %v5214_v2 = vpop.f32.mrb[48].mxu1 }
 0xfdb   :  { %v4962_v28 = vpop.f32.mrb[41].mxu0  ;;  %v5216_v4 = vpop.f32.mrb[49].mxu1 }
 0xfdc   :  { %v4964_v5 = vpop.f32.mrb[42].mxu0  ;;  %v5218_v47 = vpop.f32.mrb[50].mxu1 }
 0xfdd   :  { %v10320_v7 = vpack.c.bf16 %v4964_v5, %v4960_v0  ;;  %v10312_v8 = vpack.c.bf16 %v5218_v47, %v5214_v2  ;;  %v4966_v11 = vpop.f32.mrb[43].mxu0  ;;  %v5220_v12 = vpop.f32.mrb[51].mxu1 }
 0xfde   :  { %v10318_v13 = vpack.c.bf16 %v4966_v11, %v4962_v28  ;;  %v10310_v14 = vpack.c.bf16 %v5220_v12, %v5216_v4 }
 0xfe0   :  { %10311 = vmatprep.subr.bf16.mxu0 %v10310_v14  ;;  %v9413_v14 = vld [vmem:[%s14335_s20 + $0xc8] sm:$0xff] }
 0xfe1   :  { %10313 = vmatpush1.bf16.msra.mxu0 %v10312_v8 }
 0xfe2   :  { %v4970_v18 = vpop.f32.mrb[44].mxu0  ;;  %v5224_v38 = vpop.f32.mrb[52].mxu1 }
 0xfe3   :  { %v4972_v20 = vpop.f32.mrb[45].mxu0  ;;  %v5226_v45 = vpop.f32.mrb[53].mxu1 }
 0xfe4   :  { %v4974_v23 = vpop.f32.mrb[46].mxu0  ;;  %v5228_v41 = vpop.f32.mrb[54].mxu1 }
 0xfe5   :  { %v10324_v25 = vpack.c.bf16 %v4974_v23, %v4970_v18  ;;  %v10316_v26 = vpack.c.bf16 %v5228_v41, %v5224_v38  ;;  %v4976_v57 = vpop.f32.mrb[47].mxu0  ;;  %v5230_v58 = vpop.f32.mrb[55].mxu1  ;;  %v9414_v18 = vld [vmem:[%s14335_s20 + $0xd0] sm:$0xff]  ;;  %v9415_v38 = vld [vmem:[%s14335_s20 + $0xd8] sm:$0xff] }
 0xfe6   :  { %v10322_v29 = vpack.c.bf16 %v4976_v57, %v4972_v20  ;;  %v10314_v31 = vpack.c.bf16 %v5230_v58, %v5226_v45  ;;  %v9416_v20 = vld [vmem:[%s14335_s20 + $0xe0] sm:$0xff]  ;;  %v9417_v45 = vld [vmem:[%s14335_s20 + $0xe8] sm:$0xff]  ;;  %v9418_v23 = vld [vmem:[%s14335_s20 + $0xf0] sm:$0xff] }
 0xfe7   :  { %v9419_v41 = vld [vmem:[%s14335_s20 + $0xf8] sm:$0xff]  ;;  %v6332_v58 = vld [vmem:[%s14336_s21] sm:$0xff] }
 0xfe8   :  { %10315 = vmatprep.subr.bf16.mxu0 %v10314_v31 }
 0xfe9   :  { %10317 = vmatpush1.bf16.msra.mxu0 %v10316_v26  ;;  %v6349_v26 = vld [vmem:[%s14336_s21 + $0x88] sm:$0xff] }
 0xfea   :  { %10319 = vmatprep.subr.bf16.mxu0 %v10318_v13  ;;  %v9412_v13 = vld [vmem:[%s14335_s20 + $0xc0] sm:$0xff] }
 0xfec   :  { %9316 = vmatmul.mubr.msk.f32.vlgmr.msra.gmra.mrb[48].mxu0 %vm2749_vm5, %v9308_v33  ;;  %v6350_v33 = vld [vmem:[%s14336_s21 + $0x90] sm:$0xff] }
 0xfed   :  { %10321 = vmatpush1.bf16.msra.mxu0 %v10320_v7  ;;  %5336 = vmatprep.mubr.f32.mxu0 %v11921_v10 }
 0xfee   :  { %10323 = vmatprep.subr.bf16.mxu0 %v10322_v29  ;;  %v6333_v29 = vld [vmem:[%s14336_s21 + $0x8] sm:$0xff] }
 0xfef   :  { %v10344_v31 = vpack.c.bf16 %v6333_v29, %v6332_v58 }
 0xff0   :  { %9317 = vmatmul.mubr.msk.f32.gmra.mrb[50].mxu0 %vm2749_vm5, %v9309_v34  ;;  %v6351_v34 = vld [vmem:[%s14336_s21 + $0x98] sm:$0xff] }
 0xff1   :  { %10325 = vmatpush1.bf16.msra.mxu0 %v10324_v25  ;;  %5342 = vmatprep.mubr.f32.mxu0 %v11921_v10  ;;  %v6348_v25 = vld [vmem:[%s14336_s21 + $0x80] sm:$0xff] }
 0xff2   :  { %v10342_v57 = vpack.c.bf16 %v6349_v26, %v6348_v25 }
 0xff4   :  { %9318 = vmatmul.mubr.msk.f32.gmra.mrb[52].mxu0 %vm2749_vm5, %v9310_v36  ;;  %10375 = vmatprep.subr.bf16.mxu1 %v10342_v57  ;;  %v10346_v36 = vpack.c.bf16 %v6351_v34, %v6350_v33 }
 0xff5   :  { %5348 = vmatprep.mubr.f32.mxu0 %v11921_v10  ;;  %10377 = vmatpush3.bf16.msra.mxu1 %v10344_v31 }
 0xff6   :  { %10379 = vmatprep.subr.bf16.mxu1 %v10346_v36 }
 0xff8   :  { %9319 = vmatmul.mubr.msk.f32.gmra.mrb[54].mxu0 %vm2749_vm5, %v9311_v37  ;;  %v6334_v37 = vld [vmem:[%s14336_s21 + $0x10] sm:$0xff] }
 0xff9   :  { %5354 = vmatprep.mubr.f32.mxu0 %v11921_v10 }
 0xffc   :  { %9320 = vmatmul.mubr.msk.f32.gmra.mrb[56].mxu0 %vm2749_vm5, %v9312_v39  ;;  %v6335_v39 = vld [vmem:[%s14336_s21 + $0x18] sm:$0xff] }
 0xffd   :  { %5360 = vmatprep.mubr.f32.mxu0 %v11921_v10 }
0x1000   :  { %9321 = vmatmul.mubr.msk.f32.gmra.mrb[58].mxu0 %vm2749_vm5, %v9313_v40  ;;  %v10348_v40 = vpack.c.bf16 %v6335_v39, %v6334_v37 }
0x1001   :  { %5366 = vmatprep.mubr.f32.mxu0 %v11921_v10 }
0x1002   :  { %10381 = vmatpush3.bf16.msra.mxu1 %v10348_v40 }
0x1004   :  { %9322 = vmatmul.mubr.msk.f32.gmra.mrb[60].mxu0 %vm2749_vm5, %v9314_v42  ;;  %v6352_v42 = vld [vmem:[%s14336_s21 + $0xa0] sm:$0xff] }
0x1005   :  { %5372 = vmatprep.mubr.f32.mxu0 %v11921_v10 }
0x1008   :  { %9323 = vmatmul.mubr.msk.f32.gmra.mrb[62].mxu0 %vm2749_vm5, %v9315_v43  ;;  %v6353_v43 = vld [vmem:[%s14336_s21 + $0xa8] sm:$0xff] }
0x1009   :  { %5467 = vmatprep.mubr.f32.mxu0 %v11921_v10 }
0x100c   :  { %9324 = vmatmul.mubr.msk.f32.vlgmr.msra.gmra.mrb[48].mxu0 %vm2749_vm5, %v4979_v46  ;;  %v10350_v46 = vpack.c.bf16 %v6353_v43, %v6352_v42 }
0x100d   :  { %5473 = vmatprep.mubr.f32.mxu0 %v11921_v10 }
0x100e   :  { %10383 = vmatprep.subr.bf16.mxu1 %v10350_v46 }
0x1010   :  { %9325 = vmatmul.mubr.msk.f32.gmra.mrb[50].mxu0 %vm2749_vm5, %v4980_v48  ;;  %v6336_v48 = vld [vmem:[%s14336_s21 + $0x20] sm:$0xff] }
0x1011   :  { %5479 = vmatprep.mubr.f32.mxu0 %v11921_v10 }
0x1014   :  { %9326 = vmatmul.mubr.msk.f32.gmra.mrb[52].mxu0 %vm2749_vm5, %v4981_v59  ;;  %v6337_v59 = vld [vmem:[%s14336_s21 + $0x28] sm:$0xff] }
0x1015   :  { %5485 = vmatprep.mubr.f32.mxu0 %v11921_v10 }
0x1018   :  { %9327 = vmatmul.mubr.msk.f32.gmra.mrb[54].mxu0 %vm2749_vm5, %v4982_v19  ;;  %v10352_v19 = vpack.c.bf16 %v6337_v59, %v6336_v48 }
0x1019   :  { %5491 = vmatprep.mubr.f32.mxu0 %v11921_v10 }
0x101a   :  { %v5743_v50 = vpop.f32.mrb[56].mxu1  ;;  %10385 = vmatpush3.bf16.msra.mxu1 %v10352_v19 }
0x101b   :  { %v5745_v51 = vpop.f32.mrb[57].mxu1 }
0x101c   :  { %v5747_v53 = vpop.f32.mrb[58].mxu1  ;;  %9328 = vmatmul.mubr.msk.f32.gmra.mrb[56].mxu0 %vm2749_vm5, %v4983_v49  ;;  %v6354_v49 = vld [vmem:[%s14336_s21 + $0xb0] sm:$0xff] }
0x101d   :  { %v10328_v55 = vpack.c.bf16 %v5747_v53, %v5743_v50  ;;  %v5749_v61 = vpop.f32.mrb[59].mxu1  ;;  %5497 = vmatprep.mubr.f32.mxu0 %v11921_v10  ;;  %v6355_v50 = vld [vmem:[%s14336_s21 + $0xb8] sm:$0xff]  ;;  %v6338_v53 = vld [vmem:[%s14336_s21 + $0x30] sm:$0xff] }
0x101e   :  { %v10326_v3 = vpack.c.bf16 %v5749_v61, %v5745_v51  ;;  %v10354_v51 = vpack.c.bf16 %v6355_v50, %v6354_v49 }
0x1020   :  { %10327 = vmatprep.subr.bf16.mxu0 %v10326_v3  ;;  %9329 = vmatmul.mubr.msk.f32.gmra.mrb[58].mxu0 %vm2749_vm5, %v4984_v60  ;;  %v6356_v60 = vld [vmem:[%s14336_s21 + $0xc0] sm:$0xff]  ;;  %v6357_v3 = vld [vmem:[%s14336_s21 + $0xc8] sm:$0xff] }
0x1021   :  { %10329 = vmatpush1.bf16.msra.mxu0 %v10328_v55  ;;  %5503 = vmatprep.mubr.f32.mxu0 %v11921_v10  ;;  %v6339_v55 = vld [vmem:[%s14336_s21 + $0x38] sm:$0xff] }
0x1022   :  { %v5753_v17 = vpop.f32.mrb[60].mxu1  ;;  %v10356_v61 = vpack.c.bf16 %v6339_v55, %v6338_v53  ;;  %10387 = vmatprep.subr.bf16.mxu1 %v10354_v51 }
0x1023   :  { %v5755_v15 = vpop.f32.mrb[61].mxu1 }
0x1024   :  { %v5757_v21 = vpop.f32.mrb[62].mxu1  ;;  %9330 = vmatmul.mubr.msk.f32.gmra.mrb[60].mxu0 %vm2749_vm5, %v4985_v6  ;;  %10389 = vmatpush3.bf16.msra.mxu1 %v10356_v61  ;;  %v10358_v6 = vpack.c.bf16 %v6357_v3, %v6356_v60 }
0x1025   :  { %v10332_v56 = vpack.c.bf16 %v5757_v21, %v5753_v17  ;;  %v5759_v24 = vpop.f32.mrb[63].mxu1  ;;  %5509 = vmatprep.mubr.f32.mxu0 %v11921_v10  ;;  %v6340_v17 = vld [vmem:[%s14336_s21 + $0x40] sm:$0xff] }
0x1026   :  { %v10330_v27 = vpack.c.bf16 %v5759_v24, %v5755_v15  ;;  %v6341_v15 = vld [vmem:[%s14336_s21 + $0x48] sm:$0xff]  ;;  %10391 = vmatprep.subr.bf16.mxu1 %v10358_v6  ;;  %v6359_v24 = vld [vmem:[%s14336_s21 + $0xd8] sm:$0xff] }
0x1027   :  { %v10360_v21 = vpack.c.bf16 %v6341_v15, %v6340_v17 }
0x1028   :  { %10331 = vmatprep.subr.bf16.mxu0 %v10330_v27  ;;  %9331 = vmatmul.mubr.msk.f32.gmra.mrb[62].mxu0 %vm2749_vm5, %v4986_v1  ;;  %v6342_v27 = vld [vmem:[%s14336_s21 + $0x50] sm:$0xff] }
0x1029   :  { %10333 = vmatpush1.bf16.msra.mxu0 %v10332_v56  ;;  %5859 = vmatprep.mubr.f32.mxu0 %v11921_v10  ;;  %v6358_v56 = vld [vmem:[%s14336_s21 + $0xd0] sm:$0xff] }
0x102a   :  { %10393 = vmatpush3.bf16.msra.mxu1 %v10360_v21  ;;  %v10362_v1 = vpack.c.bf16 %v6359_v24, %v6358_v56 }
0x102c   :  { %9372 = vmatmul.mubr.msk.f32.vlgmr.msra.gmra.mrb[48].mxu0 %vm2749_vm5, %v9364_v9  ;;  %v6343_v9 = vld [vmem:[%s14336_s21 + $0x58] sm:$0xff]  ;;  %10395 = vmatprep.subr.bf16.mxu1 %v10362_v1 }
0x102d   :  { %5865 = vmatprep.mubr.f32.mxu0 %v11921_v10 }
0x1030   :  { %9373 = vmatmul.mubr.msk.f32.gmra.mrb[50].mxu0 %vm2749_vm5, %v9365_v63  ;;  %v10364_v63 = vpack.c.bf16 %v6343_v9, %v6342_v27 }
0x1031   :  { %5871 = vmatprep.mubr.f32.mxu0 %v11921_v10 }
0x1032   :  { %10397 = vmatpush3.bf16.msra.mxu1 %v10364_v63 }
0x1034   :  { %9374 = vmatmul.mubr.msk.f32.gmra.mrb[52].mxu0 %vm2749_vm5, %v9366_v22  ;;  %v6360_v22 = vld [vmem:[%s14336_s21 + $0xe0] sm:$0xff] }
0x1035   :  { %5877 = vmatprep.mubr.f32.mxu0 %v11921_v10 }
0x1038   :  { %9375 = vmatmul.mubr.msk.f32.gmra.mrb[54].mxu0 %vm2749_vm5, %v9367_v32  ;;  %v6361_v32 = vld [vmem:[%s14336_s21 + $0xe8] sm:$0xff] }
0x1039   :  { %5883 = vmatprep.mubr.f32.mxu0 %v11921_v10 }
0x103c   :  { %9376 = vmatmul.mubr.msk.f32.gmra.mrb[56].mxu0 %vm2749_vm5, %v9368_v35  ;;  %v10366_v35 = vpack.c.bf16 %v6361_v32, %v6360_v22 }
0x103d   :  { %5889 = vmatprep.mubr.f32.mxu0 %v11921_v10 }
0x103e   :  { %10399 = vmatprep.subr.bf16.mxu1 %v10366_v35 }
0x1040   :  { %9377 = vmatmul.mubr.msk.f32.gmra.mrb[58].mxu0 %vm2749_vm5, %v9369_v44  ;;  %v6344_v44 = vld [vmem:[%s14336_s21 + $0x60] sm:$0xff] }
0x1041   :  { %5895 = vmatprep.mubr.f32.mxu0 %v11921_v10 }
0x1044   :  { %9378 = vmatmul.mubr.msk.f32.gmra.mrb[60].mxu0 %vm2749_vm5, %v9370_v16  ;;  %v6345_v16 = vld [vmem:[%s14336_s21 + $0x68] sm:$0xff] }
0x1045   :  { %5901 = vmatprep.mubr.f32.mxu0 %v11921_v10 }
0x1048   :  { %9379 = vmatmul.mubr.msk.f32.gmra.mrb[62].mxu0 %vm2749_vm5, %v9371_v52  ;;  %v10368_v52 = vpack.c.bf16 %v6345_v16, %v6344_v44 }
0x1049   :  { %6267 = vmatprep.mubr.f32.mxu0 %v11921_v10 }
0x104a   :  { %10401 = vmatpush3.bf16.msra.mxu1 %v10368_v52 }
0x105a   :  { %v6151_v54 = vpop.f32.mrb[64].mxu1 }
0x105b   :  { %v6153_v62 = vpop.f32.mrb[65].mxu1 }
0x105c   :  { %v6155_v0 = vpop.f32.mrb[66].mxu1 }
0x105d   :  { %v10336_v2 = vpack.c.bf16 %v6155_v0, %v6151_v54  ;;  %v6157_v28 = vpop.f32.mrb[67].mxu1  ;;  %v6362_v54 = vld [vmem:[%s14336_s21 + $0xf0] sm:$0xff] }
0x105e   :  { %v10334_v4 = vpack.c.bf16 %v6157_v28, %v6153_v62  ;;  %v6363_v62 = vld [vmem:[%s14336_s21 + $0xf8] sm:$0xff] }
0x105f   :  { %v10370_v0 = vpack.c.bf16 %v6363_v62, %v6362_v54  ;;  %v6347_v28 = vld [vmem:[%s14336_s21 + $0x78] sm:$0xff] }
0x1060   :  { %10335 = vmatprep.subr.bf16.mxu0 %v10334_v4 }
0x1061   :  { %10337 = vmatpush1.bf16.msra.mxu0 %v10336_v2  ;;  %v6346_v2 = vld [vmem:[%s14336_s21 + $0x70] sm:$0xff]  ;;  %10403 = vmatprep.subr.bf16.mxu1 %v10370_v0 }
0x1062   :  { %v6161_v5 = vpop.f32.mrb[68].mxu1  ;;  %v10372_v4 = vpack.c.bf16 %v6347_v28, %v6346_v2 }
0x1063   :  { %v6163_v47 = vpop.f32.mrb[69].mxu1 }
0x1064   :  { %v6165_v7 = vpop.f32.mrb[70].mxu1  ;;  %10405 = vmatpush3.bf16.msra.mxu1 %v10372_v4 }
0x1065   :  { %v10340_v8 = vpack.c.bf16 %v6165_v7, %v6161_v5  ;;  %v6167_v11 = vpop.f32.mrb[71].mxu1 }
0x1066   :  { %v10338_v12 = vpack.c.bf16 %v6167_v11, %v6163_v47 }
0x1068   :  { %10339 = vmatprep.subr.bf16.mxu0 %v10338_v12 }
0x1069   :  { %10341 = vmatpush1.bf16.msra.mxu0 %v10340_v8 }
0x106a   :  { %10343 = vmatprep.subr.bf16.mxu0 %v10342_v57 }
0x106c   :  { %9420 = vmatmul.mubr.msk.f32.vlgmr.msra.gmra.mrb[48].mxu0 %vm2749_vm5, %v9412_v13 }
0x106d   :  { %6273 = vmatprep.mubr.f32.mxu0 %v11921_v10  ;;  %10345 = vmatpush3.bf16.msra.mxu0 %v10344_v31 }
0x106e   :  { %10347 = vmatprep.subr.bf16.mxu0 %v10346_v36 }
0x1070   :  { %9421 = vmatmul.mubr.msk.f32.gmra.mrb[50].mxu0 %vm2749_vm5, %v9413_v14 }
0x1071   :  { %6279 = vmatprep.mubr.f32.mxu0 %v11921_v10  ;;  %10349 = vmatpush3.bf16.msra.mxu0 %v10348_v40 }
0x1072   :  { %10351 = vmatprep.subr.bf16.mxu0 %v10350_v46 }
0x1074   :  { %9422 = vmatmul.mubr.msk.f32.gmra.mrb[52].mxu0 %vm2749_vm5, %v9414_v18 }
0x1075   :  { %6285 = vmatprep.mubr.f32.mxu0 %v11921_v10  ;;  %10353 = vmatpush3.bf16.msra.mxu0 %v10352_v19 }
0x1076   :  { %10355 = vmatprep.subr.bf16.mxu0 %v10354_v51 }
0x1078   :  { %9423 = vmatmul.mubr.msk.f32.gmra.mrb[54].mxu0 %vm2749_vm5, %v9415_v38 }
0x1079   :  { %6291 = vmatprep.mubr.f32.mxu0 %v11921_v10  ;;  %10357 = vmatpush3.bf16.msra.mxu0 %v10356_v61 }
0x107a   :  { %10359 = vmatprep.subr.bf16.mxu0 %v10358_v6 }
0x107c   :  { %9424 = vmatmul.mubr.msk.f32.gmra.mrb[56].mxu0 %vm2749_vm5, %v9416_v20 }
0x107d   :  { %6297 = vmatprep.mubr.f32.mxu0 %v11921_v10  ;;  %10361 = vmatpush3.bf16.msra.mxu0 %v10360_v21 }
0x107e   :  { %10363 = vmatprep.subr.bf16.mxu0 %v10362_v1 }
0x1080   :  { %9425 = vmatmul.mubr.msk.f32.gmra.mrb[58].mxu0 %vm2749_vm5, %v9417_v45 }
0x1081   :  { %6303 = vmatprep.mubr.f32.mxu0 %v11921_v10  ;;  %10365 = vmatpush3.bf16.msra.mxu0 %v10364_v63 }
0x1082   :  { %10367 = vmatprep.subr.bf16.mxu0 %v10366_v35 }
0x1084   :  { %9426 = vmatmul.mubr.msk.f32.gmra.mrb[60].mxu0 %vm2749_vm5, %v9418_v23 }
0x1085   :  { %6309 = vmatprep.mubr.f32.mxu0 %v11921_v10  ;;  %10369 = vmatpush3.bf16.msra.mxu0 %v10368_v52 }
0x1086   :  { %10371 = vmatprep.subr.bf16.mxu0 %v10370_v0 }
0x1088   :  { %9427 = vmatmul.mubr.msk.f32.gmra.mrb[62].mxu0 %vm2749_vm5, %v9419_v41 }
0x1089   :  { %10373 = vmatpush3.bf16.msra.mxu0 %v10372_v4 }
0x113f   :  { %v13247_v5 = vpop.f32.mrb[48].mxu0 }
0x1140   :  { %v13249_v47 = vpop.f32.mrb[49].mxu0  ;;  %v6392_v8 = vmul.f32 %v13247_v5, %v13247_v5 }
0x1141   :  { %v6393_v14 = vmul.f32 %v13249_v47, %v13249_v47 }
0x1143   :  { %v13251_v7 = vpop.f32.mrb[50].mxu0 }
0x1144   :  { %v6366_v11 = vadd.f32 %v13251_v7, %v13247_v5  ;;  %v6394_v12 = vmul.f32 %v13251_v7, %v13251_v7  ;;  %v13259_v13 = vpop.f32.mrb[51].mxu0 }
0x1145   :  { %v6379_v18 = vadd.f32 %v13259_v13, %v13249_v47  ;;  %v6395_v38 = vmul.f32 %v13259_v13, %v13259_v13 }
0x1146   :  { %v6408_v20 = vadd.f32 %v6394_v12, %v6392_v8 }
0x1147   :  { %v6421_v45 = vadd.f32 %v6395_v38, %v6393_v14  ;;  %v13267_v23 = vpop.f32.mrb[52].mxu0 }
0x1148   :  { %v6367_v41 = vadd.f32 %v6366_v11, %v13267_v23  ;;  %v6396_v25 = vmul.f32 %v13267_v23, %v13267_v23  ;;  %v13272_v26 = vpop.f32.mrb[53].mxu0 }
0x1149   :  { %v6380_v57 = vadd.f32 %v6379_v18, %v13272_v26  ;;  %v6397_v58 = vmul.f32 %v13272_v26, %v13272_v26 }
0x114a   :  { %v6409_v29 = vadd.f32 %v6408_v20, %v6396_v25 }
0x114b   :  { %v6422_v31 = vadd.f32 %v6421_v45, %v6397_v58  ;;  %v13277_v33 = vpop.f32.mrb[54].mxu0 }
0x114c   :  { %v6368_v34 = vadd.f32 %v6367_v41, %v13277_v33  ;;  %v6398_v36 = vmul.f32 %v13277_v33, %v13277_v33  ;;  %v13282_v37 = vpop.f32.mrb[55].mxu0 }
0x114d   :  { %v6381_v39 = vadd.f32 %v6380_v57, %v13282_v37  ;;  %v6399_v40 = vmul.f32 %v13282_v37, %v13282_v37 }
0x114e   :  { %v6410_v42 = vadd.f32 %v6409_v29, %v6398_v36 }
0x114f   :  { %v6423_v43 = vadd.f32 %v6422_v31, %v6399_v40  ;;  %v13287_v46 = vpop.f32.mrb[56].mxu0 }
0x1150   :  { %v6369_v48 = vadd.f32 %v6368_v34, %v13287_v46  ;;  %v6400_v59 = vmul.f32 %v13287_v46, %v13287_v46  ;;  %v13292_v19 = vpop.f32.mrb[57].mxu0 }
0x1151   :  { %v6382_v49 = vadd.f32 %v6381_v39, %v13292_v19  ;;  %v6401_v50 = vmul.f32 %v13292_v19, %v13292_v19 }
0x1152   :  { %v6411_v51 = vadd.f32 %v6410_v42, %v6400_v59 }
0x1153   :  { %v6424_v53 = vadd.f32 %v6423_v43, %v6401_v50  ;;  %v13297_v55 = vpop.f32.mrb[58].mxu0  ;;  %v13328_v50 = vld [vmem:[#allocation22] sm:$0xff] }
0x1154   :  { %v6370_v61 = vadd.f32 %v6369_v48, %v13297_v55  ;;  %v6402_v60 = vmul.f32 %v13297_v55, %v13297_v55  ;;  %v13302_v3 = vpop.f32.mrb[59].mxu0 }
0x1155   :  { %v6383_v6 = vadd.f32 %v6382_v49, %v13302_v3  ;;  %v6403_v17 = vmul.f32 %v13302_v3, %v13302_v3  ;;  %v6365_v49 = vld [vmem:[#allocation22 + $0x8] sm:$0xff] }
0x1156   :  { %v6412_v15 = vadd.f32 %v6411_v51, %v6402_v60  ;;  %6589 = vmatprep.subr.mxu0 %v6365_v49  ;;  %v11269_v51 = vld [vmem:[%s14384_s25 + $0x100] ss:$8 sps:$4 sm:$0xff]   ;;  %v11275_v60 = vld [vmem:[%s14384_s25 + $0x110] ss:$8 sps:$4 sm:$0xff]  }
0x1157   :  { %v6425_v21 = vadd.f32 %v6424_v53, %v6403_v17  ;;  %v13307_v56 = vpop.f32.mrb[60].mxu0  ;;  %v11271_v53 = vld [vmem:[%s14384_s25 + $0x104] ss:$8 sps:$4 sm:$0xff]   ;;  %v11281_v17 = vld [vmem:[%s14384_s25 + $0x120] ss:$8 sps:$4 sm:$0xff]  }
0x1158   :  { %v6371_v24 = vadd.f32 %v6370_v61, %v13307_v56  ;;  %v6404_v1 = vmul.f32 %v13307_v56, %v13307_v56  ;;  %v13312_v27 = vpop.f32.mrb[61].mxu0  ;;  %v11277_v61 = vld [vmem:[%s14384_s25 + $0x114] ss:$8 sps:$4 sm:$0xff]   ;;  %7280 = vmatprep.subr.bf16.mxu1 %v11271_v53  ;;  %v11272_v53 = vld [vmem:[%s14384_s25 + $0x10] ss:$8 sps:$4 sm:$0xff]  }
0x1159   :  { %v6384_v9 = vadd.f32 %v6383_v6, %v13312_v27  ;;  %v6405_v63 = vmul.f32 %v13312_v27, %v13312_v27  ;;  %v11283_v6 = vld [vmem:[%s14384_s25 + $0x124] ss:$8 sps:$4 sm:$0xff]  }
0x115a   :  { %v6413_v22 = vadd.f32 %v6412_v15, %v6404_v1  ;;  %v11289_v15 = vld [vmem:[%s14384_s25 + $0x134] ss:$8 sps:$4 sm:$0xff]   ;;  %v11293_v1 = vld [vmem:[%s14384_s25 + $0x140] ss:$8 sps:$4 sm:$0xff]  }
0x115b   :  { %v6426_v32 = vadd.f32 %v6425_v21, %v6405_v63  ;;  %v13317_v35 = vpop.f32.mrb[62].mxu0  ;;  %v11287_v21 = vld [vmem:[%s14384_s25 + $0x130] ss:$8 sps:$4 sm:$0xff]  }
0x115c   :  { %v6372_v44 = vadd.f32 %v6371_v24, %v13317_v35  ;;  %v6406_v16 = vmul.f32 %v13317_v35, %v13317_v35  ;;  %v13322_v52 = vpop.f32.mrb[63].mxu0  ;;  %v11295_v24 = vld [vmem:[%s14384_s25 + $0x144] ss:$8 sps:$4 sm:$0xff]   ;;  %v11299_v63 = vld [vmem:[%s14384_s25 + $0x150] ss:$8 sps:$4 sm:$0xff]  }
0x115d   :  { %v6385_v54 = vadd.f32 %v6384_v9, %v13322_v52  ;;  %v6407_v62 = vmul.f32 %v13322_v52, %v13322_v52  ;;  %v11301_v9 = vld [vmem:[%s14384_s25 + $0x154] ss:$8 sps:$4 sm:$0xff]  }
0x115e   :  { %v6373_v0 = vrot.slane %v6372_v44, 4  ;;  %v6414_v2 = vadd.f32 %v6413_v22, %v6406_v16  ;;  %v11307_v22 = vld [vmem:[%s14384_s25 + $0x164] ss:$8 sps:$4 sm:$0xff]   ;;  %v11311_v16 = vld [vmem:[%s14384_s25 + $0x170] ss:$8 sps:$4 sm:$0xff]  }
0x115f   :  { %v6386_v28 = vrot.slane %v6385_v54, 4  ;;  %v6427_v4 = vadd.f32 %v6426_v32, %v6407_v62  ;;  %v11305_v32 = vld [vmem:[%s14384_s25 + $0x160] ss:$8 sps:$4 sm:$0xff]  }
0x1160   :  { %v6374_v8 = vadd.f32 %v6373_v0, %v6372_v44  ;;  %v6415_v11 = vrot.slane %v6414_v2, 4  ;;  %v11313_v44 = vld [vmem:[%s14384_s25 + $0x174] ss:$8 sps:$4 sm:$0xff]   ;;  %v11317_v62 = vld [vmem:[%s14384_s25 + $0x180] ss:$8 sps:$4 sm:$0xff]  }
0x1161   :  { %v6387_v12 = vadd.f32 %v6386_v28, %v6385_v54  ;;  %v6428_v14 = vrot.slane %v6427_v4, 4  ;;  %v11319_v54 = vld [vmem:[%s14384_s25 + $0x184] ss:$8 sps:$4 sm:$0xff]   ;;  %v11325_v0 = vld [vmem:[%s14384_s25 + $0x194] ss:$8 sps:$4 sm:$0xff]  }
0x1162   :  { %v6375_v18 = vrot.slane %v6374_v8, 2  ;;  %v6416_v38 = vadd.f32 %v6415_v11, %v6414_v2  ;;  %v11323_v2 = vld [vmem:[%s14384_s25 + $0x190] ss:$8 sps:$4 sm:$0xff]   ;;  %v11331_v28 = vld [vmem:[%s14384_s25 + $0x1a4] ss:$8 sps:$4 sm:$0xff]  }
0x1163   :  { %v6388_v20 = vrot.slane %v6387_v12, 2  ;;  %v6429_v45 = vadd.f32 %v6428_v14, %v6427_v4  ;;  %v11329_v4 = vld [vmem:[%s14384_s25 + $0x1a0] ss:$8 sps:$4 sm:$0xff]   ;;  %v11335_v11 = vld [vmem:[%s14384_s25 + $0x1b0] ss:$8 sps:$4 sm:$0xff]  }
0x1164   :  { %v6376_v41 = vadd.f32 %v6375_v18, %v6374_v8  ;;  %v6417_v25 = vrot.slane %v6416_v38, 2  ;;  %v11337_v8 = vld [vmem:[%s14384_s25 + $0x1b4] ss:$8 sps:$4 sm:$0xff]   ;;  %v11341_v14 = vld [vmem:[%s14384_s25 + $0x1c0] ss:$8 sps:$4 sm:$0xff]  }
0x1165   :  { %v6389_v57 = vadd.f32 %v6388_v20, %v6387_v12  ;;  %v6430_v58 = vrot.slane %v6429_v45, 2  ;;  %v11343_v12 = vld [vmem:[%s14384_s25 + $0x1c4] ss:$8 sps:$4 sm:$0xff]  }
0x1166   :  { %v6377_v29 = vrot.slane %v6376_v41, 1  ;;  %v6418_v31 = vadd.f32 %v6417_v25, %v6416_v38 }
0x1167   :  { %v6390_v34 = vrot.slane %v6389_v57, 1  ;;  %v6431_v36 = vadd.f32 %v6430_v58, %v6429_v45 }
0x1168   :  { %v6419_v39 = vrot.slane %v6418_v31, 1  ;;  %v6378_v43 = vadd.f32 %v6377_v29, %v6376_v41 }
0x1169   :  { %v6391_v40 = vadd.f32 %v6390_v34, %v6389_v57  ;;  %v6432_v42 = vrot.slane %v6431_v36, 1 }
0x116a   :  { %v6420_v59 = vadd.f32 %v6419_v39, %v6418_v31 }
0x116b   :  { %6498 = vmatprep.mubr.f32.mxu0 %v6391_v40  ;;  %v6433_v48 = vadd.f32 %v6432_v42, %v6431_v36  ;;  %v6579_v36 = vld [vmem:[#allocation24] sm:$0x1]  ;;  %v11268_v42 = vld [vmem:[%s14384_s25 + $0x4] ss:$8 sps:$4 sm:$0xff]  }
0x116c   :  { %6499 = vmatmul.mubr.f32.vlgmr.msra.gmra.mrb[64].mxu0 %v6378_v43  ;;  %v6583_v43 = vld [vmem:[#allocation25] sm:$0x1] }
0x116d   :  { %6568 = vmatprep.mubr.f32.mxu1 %v6433_v48  ;;  %6653 = vmatprep.mubr.f32.mxu0 %v11921_v10 }
0x116e   :  { %6569 = vmatmul.mubr.f32.vlgmr.msra.gmra.mrb[46].mxu1 %v6420_v59  ;;  %6590 = vmatpush1.msra.mxu0 %v13328_v50  ;;  %v11266_v59 = vld [vmem:[%s14384_s25] ss:$8 sps:$4 sm:$0xff]  }
0x116f   :  { %6663 = vmatprep.subr.mxu0 %v6365_v49  ;;  %7281 = vmatpush1.bf16.msra.mxu1 %v11269_v51  ;;  %v11274_v51 = vld [vmem:[%s14384_s25 + $0x14] ss:$8 sps:$4 sm:$0xff]  }
0x1170   :  { %7282 = vmatprep.subr.bf16.mxu1 %v11277_v61  ;;  %v11278_v61 = vld [vmem:[%s14384_s25 + $0x20] ss:$8 sps:$4 sm:$0xff]  }
0x1173   :  { %7283 = vmatpush1.bf16.msra.mxu1 %v11275_v60  ;;  %v11286_v60 = vld [vmem:[%s14384_s25 + $0x34] ss:$8 sps:$4 sm:$0xff]  }
0x1174   :  { %7284 = vmatprep.subr.bf16.mxu1 %v11283_v6  ;;  %v11284_v6 = vld [vmem:[%s14384_s25 + $0x30] ss:$8 sps:$4 sm:$0xff]  }
0x1177   :  { %7285 = vmatpush1.bf16.msra.mxu1 %v11281_v17  ;;  %v11292_v17 = vld [vmem:[%s14384_s25 + $0x44] ss:$8 sps:$4 sm:$0xff]  }
0x1178   :  { %7286 = vmatprep.subr.bf16.mxu1 %v11289_v15  ;;  %v11290_v15 = vld [vmem:[%s14384_s25 + $0x40] ss:$8 sps:$4 sm:$0xff]  }
0x117b   :  { %7287 = vmatpush1.bf16.msra.mxu1 %v11287_v21  ;;  %v11298_v21 = vld [vmem:[%s14384_s25 + $0x54] ss:$8 sps:$4 sm:$0xff]  }
0x117c   :  { %7288 = vmatprep.subr.bf16.mxu1 %v11295_v24  ;;  %v11296_v24 = vld [vmem:[%s14384_s25 + $0x50] ss:$8 sps:$4 sm:$0xff]  }
0x117f   :  { %7289 = vmatpush1.bf16.msra.mxu1 %v11293_v1  ;;  %v11304_v1 = vld [vmem:[%s14384_s25 + $0x64] ss:$8 sps:$4 sm:$0xff]  }
0x1180   :  { %7290 = vmatprep.subr.bf16.mxu1 %v11301_v9  ;;  %v11302_v9 = vld [vmem:[%s14384_s25 + $0x60] ss:$8 sps:$4 sm:$0xff]  }
0x1183   :  { %7291 = vmatpush1.bf16.msra.mxu1 %v11299_v63  ;;  %v11310_v63 = vld [vmem:[%s14384_s25 + $0x74] ss:$8 sps:$4 sm:$0xff]  }
0x1184   :  { %7292 = vmatprep.subr.bf16.mxu1 %v11307_v22  ;;  %v11308_v22 = vld [vmem:[%s14384_s25 + $0x70] ss:$8 sps:$4 sm:$0xff]  }
0x1187   :  { %7293 = vmatpush1.bf16.msra.mxu1 %v11305_v32  ;;  %v11316_v32 = vld [vmem:[%s14384_s25 + $0x84] ss:$8 sps:$4 sm:$0xff]  }
0x1188   :  { %7294 = vmatprep.subr.bf16.mxu1 %v11313_v44  ;;  %v11314_v44 = vld [vmem:[%s14384_s25 + $0x80] ss:$8 sps:$4 sm:$0xff]  }
0x118b   :  { %7295 = vmatpush1.bf16.msra.mxu1 %v11311_v16  ;;  %v11322_v16 = vld [vmem:[%s14384_s25 + $0x94] ss:$8 sps:$4 sm:$0xff]  }
0x118c   :  { %7296 = vmatprep.subr.bf16.mxu1 %v11319_v54  ;;  %v11320_v54 = vld [vmem:[%s14384_s25 + $0x90] ss:$8 sps:$4 sm:$0xff]  }
0x118f   :  { %7297 = vmatpush1.bf16.msra.mxu1 %v11317_v62  ;;  %v11328_v62 = vld [vmem:[%s14384_s25 + $0xa4] ss:$8 sps:$4 sm:$0xff]  }
0x1190   :  { %7298 = vmatprep.subr.bf16.mxu1 %v11325_v0  ;;  %v11326_v0 = vld [vmem:[%s14384_s25 + $0xa0] ss:$8 sps:$4 sm:$0xff]  }
0x1193   :  { %7299 = vmatpush1.bf16.msra.mxu1 %v11323_v2  ;;  %v11334_v2 = vld [vmem:[%s14384_s25 + $0xb4] ss:$8 sps:$4 sm:$0xff]  }
0x1194   :  { %7300 = vmatprep.subr.bf16.mxu1 %v11331_v28  ;;  %v11332_v28 = vld [vmem:[%s14384_s25 + $0xb0] ss:$8 sps:$4 sm:$0xff]  }
0x1197   :  { %7301 = vmatpush1.bf16.msra.mxu1 %v11329_v4  ;;  %v11340_v4 = vld [vmem:[%s14384_s25 + $0xc4] ss:$8 sps:$4 sm:$0xff]  }
0x1198   :  { %7302 = vmatprep.subr.bf16.mxu1 %v11337_v8  ;;  %v11338_v8 = vld [vmem:[%s14384_s25 + $0xc0] ss:$8 sps:$4 sm:$0xff]  }
0x119b   :  { %7303 = vmatpush1.bf16.msra.mxu1 %v11335_v11  ;;  %v11346_v11 = vld [vmem:[%s14384_s25 + $0xd4] ss:$8 sps:$4 sm:$0xff]  }
0x119c   :  { %7304 = vmatprep.subr.bf16.mxu1 %v11343_v12  ;;  %v11349_v12 = vld [vmem:[%s14384_s25 + $0x1d4] ss:$8 sps:$4 sm:$0xff]  }
0x119f   :  { %7305 = vmatpush1.bf16.msra.mxu1 %v11341_v14  ;;  %v11344_v14 = vld [vmem:[%s14384_s25 + $0xd0] ss:$8 sps:$4 sm:$0xff]  }
0x11a0   :  { %7306 = vmatprep.subr.bf16.mxu1 %v11349_v12 }
0x123f   :  { %v10008_v18 = vpop.f32.mrb[64].mxu0 }
0x1240   :  { %v10009_v38 = vpop.f32.mrb[65].mxu0 }
0x1241   :  { %v10010_v20 = vadd.f32 %v10009_v38, %v10008_v18  ;;  %v10043_v45 = vpop.f32.mrb[46].mxu1  ;;  %v11347_v18 = vld [vmem:[%s14384_s25 + $0x1d0] ss:$8 sps:$4 sm:$0xff]   ;;  %v11352_v38 = vld [vmem:[%s14384_s25 + $0xe4] ss:$8 sps:$4 sm:$0xff]  }
0x1242   :  { %v10044_v41 = vpop.f32.mrb[47].mxu1  ;;  %7307 = vmatpush1.bf16.msra.mxu1 %v11347_v18 }
0x1243   :  { %v6575_v25 = vmul.f32 0.00048828125, %v10010_v20  ;;  %v10045_v57 = vadd.f32 %v10044_v41, %v10043_v45  ;;  %v11355_v20 = vld [vmem:[%s14384_s25 + $0x1e4] ss:$8 sps:$4 sm:$0xff]   ;;  %v11350_v45 = vld [vmem:[%s14384_s25 + $0xe0] ss:$8 sps:$4 sm:$0xff]  }
0x1244   :  { %v11353_v41 = vld [vmem:[%s14384_s25 + $0x1e0] ss:$8 sps:$4 sm:$0xff]   ;;  %7308 = vmatprep.subr.bf16.mxu1 %v11355_v20 }
0x1245   :  { %v6577_v58 = vmul.f32 %v6575_v25, %v6575_v25  ;;  %v6576_v29 = vmul.f32 0.00048828125, %v10045_v57  ;;  %v11361_v57 = vld [vmem:[%s14384_s25 + $0x1f4] ss:$8 sps:$4 sm:$0xff]  }
0x1246   :  { %7309 = vmatpush1.bf16.msra.mxu1 %v11353_v41 }
0x1247   :  { %v6578_v31 = vsub.f32 %v6576_v29, %v6577_v58  ;;  %v11356_v58 = vld [vmem:[%s14384_s25 + $0xf0] ss:$8 sps:$4 sm:$0xff]   ;;  %7310 = vmatprep.subr.bf16.mxu1 %v11361_v57 }
0x1248   :  { %v11359_v29 = vld [vmem:[%s14384_s25 + $0x1f0] ss:$8 sps:$4 sm:$0xff]  }
0x1249   :  { %v6580_v34 = vadd.f32 1e-05, %v6578_v31 }
0x124a   :  { %7311 = vmatpush1.bf16.msra.mxu1 %v11359_v29 }
0x124b   :  { %11464 = vrsqrt.f32 %v6580_v34 }
0x1255   :  { %v11465_v39 = vpop.eup %11464 }
0x1256   :  { %v6582_v40 = vmul.f32 %v11465_v39, %v6579_v36 }
0x1258   :  { %9428 = vmatmul.mubr.msk.f32.vlgmr.msra.gmra.mrb[66].mxu0 %vm1710_vm4, %v6582_v40  ;;  %v6584_v48 = vmul.f32 %v6582_v40, %v6575_v25  ;;  %v11358_v25 = vld [vmem:[%s14384_s25 + $0xf4] ss:$8 sps:$4 sm:$0xff]  }
0x1259   :  { %6664 = vmatpush1.msra.mxu0 %v13328_v50  ;;  %6727 = vmatprep.mubr.f32.mxu0 %v11921_v10  ;;  %v11280_v50 = vld [vmem:[%s14384_s25 + $0x24] ss:$8 sps:$4 sm:$0xff]  }
0x125a   :  { %v6585_v49 = vsub.f32 %v6583_v43, %v6584_v48  ;;  %6998 = vmatprep.subr.bf16.mxu0 %v11268_v42 }
0x125c   :  { %9429 = vmatmul.mubr.msk.f32.vlgmr.msra.gmra.mrb[68].mxu0 %vm1710_vm4, %v6585_v49 }
0x125d   :  { %6999 = vmatpush1.bf16.msra.mxu0 %v11266_v59 }
0x125e   :  { %7000 = vmatprep.subr.bf16.mxu0 %v11274_v51 }
0x1261   :  { %7001 = vmatpush1.bf16.msra.mxu0 %v11272_v53 }
0x1262   :  { %7002 = vmatprep.subr.bf16.mxu0 %v11280_v50 }
0x1265   :  { %7003 = vmatpush1.bf16.msra.mxu0 %v11278_v61 }
0x1266   :  { %7004 = vmatprep.subr.bf16.mxu0 %v11286_v60 }
0x1269   :  { %7005 = vmatpush1.bf16.msra.mxu0 %v11284_v6 }
0x126a   :  { %7006 = vmatprep.subr.bf16.mxu0 %v11292_v17 }
0x126d   :  { %7007 = vmatpush1.bf16.msra.mxu0 %v11290_v15 }
0x126e   :  { %7008 = vmatprep.subr.bf16.mxu0 %v11298_v21 }
0x1271   :  { %7009 = vmatpush1.bf16.msra.mxu0 %v11296_v24 }
0x1272   :  { %7010 = vmatprep.subr.bf16.mxu0 %v11304_v1 }
0x1275   :  { %7011 = vmatpush1.bf16.msra.mxu0 %v11302_v9 }
0x1276   :  { %7012 = vmatprep.subr.bf16.mxu0 %v11310_v63 }
0x1279   :  { %7013 = vmatpush1.bf16.msra.mxu0 %v11308_v22 }
0x127a   :  { %7014 = vmatprep.subr.bf16.mxu0 %v11316_v32 }
0x127d   :  { %7015 = vmatpush1.bf16.msra.mxu0 %v11314_v44 }
0x127e   :  { %7016 = vmatprep.subr.bf16.mxu0 %v11322_v16 }
0x1281   :  { %7017 = vmatpush1.bf16.msra.mxu0 %v11320_v54 }
0x1282   :  { %7018 = vmatprep.subr.bf16.mxu0 %v11328_v62 }
0x1285   :  { %7019 = vmatpush1.bf16.msra.mxu0 %v11326_v0 }
0x1286   :  { %7020 = vmatprep.subr.bf16.mxu0 %v11334_v2 }
0x1289   :  { %7021 = vmatpush1.bf16.msra.mxu0 %v11332_v28 }
0x128a   :  { %7022 = vmatprep.subr.bf16.mxu0 %v11340_v4 }
0x128d   :  { %7023 = vmatpush1.bf16.msra.mxu0 %v11338_v8 }
0x128e   :  { %7024 = vmatprep.subr.bf16.mxu0 %v11346_v11 }
0x1291   :  { %7025 = vmatpush1.bf16.msra.mxu0 %v11344_v14 }
0x1292   :  { %7026 = vmatprep.subr.bf16.mxu0 %v11352_v38 }
0x1295   :  { %7027 = vmatpush1.bf16.msra.mxu0 %v11350_v45 }
0x1296   :  { %7028 = vmatprep.subr.bf16.mxu0 %v11358_v25 }
0x1299   :  { %7029 = vmatpush1.bf16.msra.mxu0 %v11356_v58 }
0x132b   :  { %v6655_v31 = vpop.f32.mrb[66].mxu0 }
0x132c   :  { %v6737_v34 = vrot.slane %v6655_v31, %v12455_v30  ;;  %v6657_v36 = vpop.f32.mrb[67].mxu0 }
0x132d   :  { %v6741_v39 = vrot.slane %v6657_v36, %v12455_v30 }
0x132e   :  { %v6742_v40 = vmul.f32 %v6737_v34, %v13247_v5  ;;  %v6744_v42 = vmul.f32 %v6737_v34, %v13251_v7  ;;  %v6746_v43 = vmul.f32 %v6737_v34, %v13267_v23  ;;  %v6748_v48 = vmul.f32 %v6737_v34, %v13277_v33 }
0x132f   :  { %v6729_v59 = vpop.f32.mrb[68].mxu0  ;;  %v6743_v49 = vmul.f32 %v6741_v39, %v13249_v47  ;;  %v6745_v51 = vmul.f32 %v6741_v39, %v13259_v13  ;;  %v6747_v53 = vmul.f32 %v6741_v39, %v13272_v26  ;;  %v6749_v50 = vmul.f32 %v6741_v39, %v13282_v37 }
0x1330   :  { %v6761_v61 = vrot.slane %v6729_v59, %v12455_v30  ;;  %v6731_v60 = vpop.f32.mrb[69].mxu0  ;;  %v6751_v5 = vmul.f32 %v6741_v39, %v13292_v19  ;;  %v6753_v7 = vmul.f32 %v6741_v39, %v13302_v3  ;;  %v6750_v23 = vmul.f32 %v6737_v34, %v13287_v46 }
0x1331   :  { %v6765_v33 = vrot.slane %v6731_v60, %v12455_v30  ;;  %v6752_v6 = vmul.f32 %v6737_v34, %v13297_v55  ;;  %v6755_v47 = vmul.f32 %v6741_v39, %v13312_v27  ;;  %v6757_v13 = vmul.f32 %v6741_v39, %v13322_v52 }
0x1332   :  { %v6766_v26 = vadd.f32 %v6761_v61, %v6742_v40  ;;  %v6768_v17 = vadd.f32 %v6761_v61, %v6744_v42  ;;  %v6770_v37 = vadd.f32 %v6761_v61, %v6746_v43  ;;  %v6772_v15 = vadd.f32 %v6761_v61, %v6748_v48 }
0x1333   :  { %v6767_v21 = vadd.f32 %v6765_v33, %v6743_v49  ;;  %v6769_v24 = vadd.f32 %v6765_v33, %v6745_v51  ;;  %v6771_v1 = vadd.f32 %v6765_v33, %v6747_v53  ;;  %v6773_v19 = vadd.f32 %v6765_v33, %v6749_v50 }
0x1334   :  { %v6782_v9 = vmax.f32 %v6766_v26, 0.0  ;;  %v6784_v3 = vmax.f32 %v6768_v17, 0.0  ;;  %v6786_v63 = vmax.f32 %v6770_v37, 0.0  ;;  %v6788_v46 = vmax.f32 %v6772_v15, 0.0 }
0x1335   :  { %v6783_v22 = vmax.f32 %v6767_v21, 0.0  ;;  %v6785_v30 = vmax.f32 %v6769_v24, 0.0  ;;  %v6787_v32 = vmax.f32 %v6771_v1, 0.0  ;;  %v6789_v55 = vmax.f32 %v6773_v19, 0.0 }
0x1336   :  { %v13545_v44 = vpack.c.bf16 %v6784_v3, %v6782_v9  ;;  %v13547_v27 = vpack.c.bf16 %v6788_v46, %v6786_v63  ;;  %v6775_v52 = vadd.f32 %v6765_v33, %v6751_v5  ;;  %v6777_v16 = vadd.f32 %v6765_v33, %v6753_v7 }
0x1337   :  { %v13549_v54 = vpack.c.bf16 %v6785_v30, %v6783_v22  ;;  %v13551_v62 = vpack.c.bf16 %v6789_v55, %v6787_v32  ;;  %v6774_v0 = vadd.f32 %v6761_v61, %v6750_v23  ;;  %v6776_v2 = vadd.f32 %v6761_v61, %v6752_v6 }
0x1338   :  { %v6791_v28 = vmax.f32 %v6775_v52, 0.0  ;;  %v6793_v4 = vmax.f32 %v6777_v16, 0.0  ;;  %v6779_v8 = vadd.f32 %v6765_v33, %v6755_v47  ;;  %v6781_v11 = vadd.f32 %v6765_v33, %v6757_v13 }
0x1339   :  { %7030 = vmatprep.mubr.bf16.mxu0 %v13549_v54  ;;  %7312 = vmatprep.mubr.bf16.mxu1 %v13549_v54  ;;  %v6790_v12 = vmax.f32 %v6774_v0, 0.0  ;;  %v6792_v14 = vmax.f32 %v6776_v2, 0.0  ;;  %v6754_v18 = vmul.f32 %v6737_v34, %v13307_v56  ;;  %v6756_v38 = vmul.f32 %v6737_v34, %v13317_v35 }
0x133a   :  { %7031 = vmatmul.mubr.bf16.vlgmr.msra.gmra.mrb[72].mxu0 %v13545_v44  ;;  %7313 = vmatmul.mubr.bf16.vlgmr.msra.gmra.mrb[72].mxu1 %v13545_v44  ;;  %v13559_v20 = vpack.c.bf16 %v6793_v4, %v6791_v28  ;;  %v6795_v45 = vmax.f32 %v6779_v8, 0.0  ;;  %v6797_v41 = vmax.f32 %v6781_v11, 0.0 }
0x133b   :  { %7040 = vmatprep.mubr.bf16.mxu0 %v13551_v62  ;;  %7322 = vmatprep.mubr.bf16.mxu1 %v13551_v62  ;;  %v13563_v25 = vpack.c.bf16 %v6792_v14, %v6790_v12  ;;  %v6778_v57 = vadd.f32 %v6761_v61, %v6754_v18  ;;  %v6780_v58 = vadd.f32 %v6761_v61, %v6756_v38  ;;  %v11364_v38 = vld [vmem:[%s14384_s25 + $0x204] ss:$8 sps:$4 sm:$0xff]  }
0x133c   :  { %v13565_v29 = vpack.c.bf16 %v6797_v41, %v6795_v45  ;;  %v9526_v45 = vld [vmem:[%s14385_s18 + $0x80] sm:$0xff] }
0x133d   :  { %v6794_v56 = vmax.f32 %v6778_v57, 0.0  ;;  %v6796_v35 = vmax.f32 %v6780_v58, 0.0  ;;  %v11362_v41 = vld [vmem:[%s14384_s25 + $0x200] ss:$8 sps:$4 sm:$0xff]   ;;  %v11367_v57 = vld [vmem:[%s14384_s25 + $0x214] ss:$8 sps:$4 sm:$0xff]  }
0x133e   :  { %v9527_v58 = vld [vmem:[%s14385_s18 + $0x88] sm:$0xff] }
0x133f   :  { %v13567_v31 = vpack.c.bf16 %v6796_v35, %v6794_v56  ;;  %v11365_v56 = vld [vmem:[%s14384_s25 + $0x210] ss:$8 sps:$4 sm:$0xff]   ;;  %v11370_v35 = vld [vmem:[%s14384_s25 + $0x224] ss:$8 sps:$4 sm:$0xff]  }
0x1342   :  { %7041 = vmatmul.mubr.bf16.gmra.mrb[76].mxu0 %v13547_v27  ;;  %7323 = vmatmul.mubr.bf16.gmra.mrb[76].mxu1 %v13547_v27 }
0x1343   :  { %7050 = vmatprep.mubr.bf16.mxu0 %v13559_v20  ;;  %7332 = vmatprep.mubr.bf16.mxu1 %v13559_v20 }
0x134a   :  { %7051 = vmatmul.mubr.bf16.gmra.mrb[80].mxu0 %v13563_v25  ;;  %7333 = vmatmul.mubr.bf16.gmra.mrb[80].mxu1 %v13563_v25 }
0x134b   :  { %7060 = vmatprep.mubr.bf16.mxu0 %v13565_v29  ;;  %7342 = vmatprep.mubr.bf16.mxu1 %v13565_v29 }
0x1352   :  { %7061 = vmatmul.mubr.bf16.gmra.mrb[84].mxu0 %v13567_v31  ;;  %7343 = vmatmul.mubr.bf16.gmra.mrb[84].mxu1 %v13567_v31 }
0x1353   :  { %7482 = vmatprep.mubr.f32.mxu1 %v11921_v10  ;;  %7691 = vmatprep.mubr.f32.mxu0 %v11921_v10 }
0x140d   :  { %v7032_v34 = vpop.f32.mrb[72].mxu0  ;;  %v7314_v36 = vpop.f32.mrb[72].mxu1 }
0x140e   :  { %v7034_v39 = vpop.f32.mrb[73].mxu0  ;;  %v7316_v40 = vpop.f32.mrb[73].mxu1 }
0x140f   :  { %v7036_v42 = vpop.f32.mrb[74].mxu0  ;;  %v7318_v43 = vpop.f32.mrb[74].mxu1 }
0x1410   :  { %v10424_v48 = vpack.c.bf16 %v7036_v42, %v7032_v34  ;;  %v10408_v59 = vpack.c.bf16 %v7318_v43, %v7314_v36  ;;  %v7038_v49 = vpop.f32.mrb[75].mxu0  ;;  %v7320_v51 = vpop.f32.mrb[75].mxu1  ;;  %v9528_v34 = vld [vmem:[%s14385_s18 + $0x90] sm:$0xff]  ;;  %v11368_v36 = vld [vmem:[%s14384_s25 + $0x220] ss:$8 sps:$4 sm:$0xff]  }
0x1411   :  { %v10422_v53 = vpack.c.bf16 %v7038_v49, %v7034_v39  ;;  %v10406_v50 = vpack.c.bf16 %v7320_v51, %v7316_v40  ;;  %v11373_v39 = vld [vmem:[%s14384_s25 + $0x234] ss:$8 sps:$4 sm:$0xff]   ;;  %v11371_v42 = vld [vmem:[%s14384_s25 + $0x230] ss:$8 sps:$4 sm:$0xff]   ;;  %v11376_v43 = vld [vmem:[%s14384_s25 + $0x244] ss:$8 sps:$4 sm:$0xff]  }
0x1412   :  { %v9529_v40 = vld [vmem:[%s14385_s18 + $0x98] sm:$0xff]  ;;  %v9531_v51 = vld [vmem:[%s14385_s18 + $0xa8] sm:$0xff] }
0x1413   :  { %10407 = vmatprep.subr.bf16.mxu1 %v10406_v50  ;;  %10423 = vmatprep.subr.bf16.mxu0 %v10422_v53  ;;  %v11379_v49 = vld [vmem:[%s14384_s25 + $0x254] ss:$8 sps:$4 sm:$0xff]   ;;  %v11377_v53 = vld [vmem:[%s14384_s25 + $0x250] ss:$8 sps:$4 sm:$0xff]   ;;  %v11382_v50 = vld [vmem:[%s14384_s25 + $0x264] ss:$8 sps:$4 sm:$0xff]  }
0x1414   :  { %10409 = vmatpush1.bf16.msra.mxu1 %v10408_v59  ;;  %10425 = vmatpush1.bf16.msra.mxu0 %v10424_v48  ;;  %v9530_v48 = vld [vmem:[%s14385_s18 + $0xa0] sm:$0xff] }
0x1415   :  { %v7042_v61 = vpop.f32.mrb[76].mxu0  ;;  %v7324_v60 = vpop.f32.mrb[76].mxu1  ;;  %v11374_v59 = vld [vmem:[%s14384_s25 + $0x240] ss:$8 sps:$4 sm:$0xff]  }
0x1416   :  { %v7044_v5 = vpop.f32.mrb[77].mxu0  ;;  %v7326_v7 = vpop.f32.mrb[77].mxu1 }
0x1417   :  { %v7046_v23 = vpop.f32.mrb[78].mxu0  ;;  %v7328_v33 = vpop.f32.mrb[78].mxu1 }
0x1418   :  { %v10428_v6 = vpack.c.bf16 %v7046_v23, %v7042_v61  ;;  %v10412_v47 = vpack.c.bf16 %v7328_v33, %v7324_v60  ;;  %v7048_v13 = vpop.f32.mrb[79].mxu0  ;;  %v7330_v26 = vpop.f32.mrb[79].mxu1  ;;  %v9532_v61 = vld [vmem:[%s14385_s18 + $0xb0] sm:$0xff]  ;;  %v11380_v60 = vld [vmem:[%s14384_s25 + $0x260] ss:$8 sps:$4 sm:$0xff]  }
0x1419   :  { %v10426_v17 = vpack.c.bf16 %v7048_v13, %v7044_v5  ;;  %v10410_v37 = vpack.c.bf16 %v7330_v26, %v7326_v7  ;;  %v11385_v5 = vld [vmem:[%s14384_s25 + $0x274] ss:$8 sps:$4 sm:$0xff]   ;;  %v11383_v23 = vld [vmem:[%s14384_s25 + $0x270] ss:$8 sps:$4 sm:$0xff]   ;;  %v11388_v33 = vld [vmem:[%s14384_s25 + $0x284] ss:$8 sps:$4 sm:$0xff]  }
0x141a   :  { %v9533_v7 = vld [vmem:[%s14385_s18 + $0xb8] sm:$0xff]  ;;  %v9535_v26 = vld [vmem:[%s14385_s18 + $0xc8] sm:$0xff] }
0x141b   :  { %10411 = vmatprep.subr.bf16.mxu1 %v10410_v37  ;;  %10427 = vmatprep.subr.bf16.mxu0 %v10426_v17  ;;  %v11391_v13 = vld [vmem:[%s14384_s25 + $0x294] ss:$8 sps:$4 sm:$0xff]   ;;  %v11389_v17 = vld [vmem:[%s14384_s25 + $0x290] ss:$8 sps:$4 sm:$0xff]   ;;  %v11394_v37 = vld [vmem:[%s14384_s25 + $0x2a4] ss:$8 sps:$4 sm:$0xff]  }
0x141c   :  { %10413 = vmatpush1.bf16.msra.mxu1 %v10412_v47  ;;  %10429 = vmatpush1.bf16.msra.mxu0 %v10428_v6  ;;  %v9534_v6 = vld [vmem:[%s14385_s18 + $0xc0] sm:$0xff] }
0x141d   :  { %v7052_v15 = vpop.f32.mrb[80].mxu0  ;;  %v7334_v21 = vpop.f32.mrb[80].mxu1  ;;  %v11386_v47 = vld [vmem:[%s14384_s25 + $0x280] ss:$8 sps:$4 sm:$0xff]  }
0x141e   :  { %v7054_v24 = vpop.f32.mrb[81].mxu0  ;;  %v7336_v1 = vpop.f32.mrb[81].mxu1 }
0x141f   :  { %v7056_v19 = vpop.f32.mrb[82].mxu0  ;;  %v7338_v9 = vpop.f32.mrb[82].mxu1 }
0x1420   :  { %v10432_v3 = vpack.c.bf16 %v7056_v19, %v7052_v15  ;;  %v10416_v63 = vpack.c.bf16 %v7338_v9, %v7334_v21  ;;  %v7058_v46 = vpop.f32.mrb[83].mxu0  ;;  %v7340_v22 = vpop.f32.mrb[83].mxu1  ;;  %v9536_v15 = vld [vmem:[%s14385_s18 + $0xd0] sm:$0xff]  ;;  %v11392_v21 = vld [vmem:[%s14384_s25 + $0x2a0] ss:$8 sps:$4 sm:$0xff]  }
0x1421   :  { %v10430_v30 = vpack.c.bf16 %v7058_v46, %v7054_v24  ;;  %v10414_v32 = vpack.c.bf16 %v7340_v22, %v7336_v1  ;;  %v11397_v24 = vld [vmem:[%s14384_s25 + $0x2b4] ss:$8 sps:$4 sm:$0xff]   ;;  %v11395_v19 = vld [vmem:[%s14384_s25 + $0x2b0] ss:$8 sps:$4 sm:$0xff]   ;;  %v11400_v9 = vld [vmem:[%s14384_s25 + $0x2c4] ss:$8 sps:$4 sm:$0xff]  }
0x1422   :  { %v9537_v1 = vld [vmem:[%s14385_s18 + $0xd8] sm:$0xff]  ;;  %v9539_v22 = vld [vmem:[%s14385_s18 + $0xe8] sm:$0xff] }
0x1423   :  { %10415 = vmatprep.subr.bf16.mxu1 %v10414_v32  ;;  %10431 = vmatprep.subr.bf16.mxu0 %v10430_v30  ;;  %v11403_v46 = vld [vmem:[%s14384_s25 + $0x2d4] ss:$8 sps:$4 sm:$0xff]   ;;  %v11401_v30 = vld [vmem:[%s14384_s25 + $0x2d0] ss:$8 sps:$4 sm:$0xff]   ;;  %v11406_v32 = vld [vmem:[%s14384_s25 + $0x2e4] ss:$8 sps:$4 sm:$0xff]  }
0x1424   :  { %10417 = vmatpush1.bf16.msra.mxu1 %v10416_v63  ;;  %10433 = vmatpush1.bf16.msra.mxu0 %v10432_v3  ;;  %v9538_v3 = vld [vmem:[%s14385_s18 + $0xe0] sm:$0xff] }
0x1425   :  { %v7062_v55 = vpop.f32.mrb[84].mxu0  ;;  %v7344_v52 = vpop.f32.mrb[84].mxu1  ;;  %v11398_v63 = vld [vmem:[%s14384_s25 + $0x2c0] ss:$8 sps:$4 sm:$0xff]  }
0x1426   :  { %v7064_v16 = vpop.f32.mrb[85].mxu0  ;;  %v7346_v0 = vpop.f32.mrb[85].mxu1 }
0x1427   :  { %v7066_v2 = vpop.f32.mrb[86].mxu0  ;;  %v7348_v28 = vpop.f32.mrb[86].mxu1 }
0x1428   :  { %v10436_v4 = vpack.c.bf16 %v7066_v2, %v7062_v55  ;;  %v10420_v8 = vpack.c.bf16 %v7348_v28, %v7344_v52  ;;  %v7068_v11 = vpop.f32.mrb[87].mxu0  ;;  %v7350_v12 = vpop.f32.mrb[87].mxu1  ;;  %v9540_v55 = vld [vmem:[%s14385_s18 + $0xf0] sm:$0xff]  ;;  %v11404_v52 = vld [vmem:[%s14384_s25 + $0x2e0] ss:$8 sps:$4 sm:$0xff]  }
0x1429   :  { %v10434_v14 = vpack.c.bf16 %v7068_v11, %v7064_v16  ;;  %v10418_v18 = vpack.c.bf16 %v7350_v12, %v7346_v0  ;;  %v11409_v16 = vld [vmem:[%s14384_s25 + $0x2f4] ss:$8 sps:$4 sm:$0xff]   ;;  %v11407_v2 = vld [vmem:[%s14384_s25 + $0x2f0] ss:$8 sps:$4 sm:$0xff]   ;;  %v11412_v28 = vld [vmem:[%s14384_s25 + $0x304] ss:$8 sps:$4 sm:$0xff]  }
0x142a   :  { %v9541_v0 = vld [vmem:[%s14385_s18 + $0xf8] sm:$0xff]  ;;  %v11418_v12 = vld [vmem:[%s14384_s25 + $0x324] ss:$8 sps:$4 sm:$0xff]  }
0x142b   :  { %10419 = vmatprep.subr.bf16.mxu1 %v10418_v18  ;;  %10435 = vmatprep.subr.bf16.mxu0 %v10434_v14  ;;  %v11413_v11 = vld [vmem:[%s14384_s25 + $0x310] ss:$8 sps:$4 sm:$0xff]   ;;  %v11416_v14 = vld [vmem:[%s14384_s25 + $0x320] ss:$8 sps:$4 sm:$0xff]   ;;  %v11421_v18 = vld [vmem:[%s14384_s25 + $0x334] ss:$8 sps:$4 sm:$0xff]  }
0x142c   :  { %10421 = vmatpush1.bf16.msra.mxu1 %v10420_v8  ;;  %10437 = vmatpush1.bf16.msra.mxu0 %v10436_v4  ;;  %v11410_v4 = vld [vmem:[%s14384_s25 + $0x300] ss:$8 sps:$4 sm:$0xff]   ;;  %v11415_v8 = vld [vmem:[%s14384_s25 + $0x314] ss:$8 sps:$4 sm:$0xff]  }
0x142d   :  { %7981 = vmatprep.subr.bf16.mxu1 %v11364_v38  ;;  %v11419_v38 = vld [vmem:[%s14384_s25 + $0x330] ss:$8 sps:$4 sm:$0xff]  }
0x142f   :  { %9542 = vmatmul.mubr.msk.f32.vlgmr.msra.gmra.mrb[88].mxu1 %vm1065_vm3, %v9526_v45  ;;  %v11424_v45 = vld [vmem:[%s14384_s25 + $0x344] ss:$8 sps:$4 sm:$0xff]  }
0x1430   :  { %7982 = vmatpush1.bf16.msra.mxu1 %v11362_v41  ;;  %7488 = vmatprep.mubr.f32.mxu1 %v11921_v10  ;;  %v11422_v41 = vld [vmem:[%s14384_s25 + $0x340] ss:$8 sps:$4 sm:$0xff]  }
0x1431   :  { %7983 = vmatprep.subr.bf16.mxu1 %v11367_v57  ;;  %v11427_v57 = vld [vmem:[%s14384_s25 + $0x354] ss:$8 sps:$4 sm:$0xff]  }
0x1433   :  { %9543 = vmatmul.mubr.msk.f32.gmra.mrb[90].mxu1 %vm1065_vm3, %v9527_v58  ;;  %v11425_v58 = vld [vmem:[%s14384_s25 + $0x350] ss:$8 sps:$4 sm:$0xff]  }
0x1434   :  { %7984 = vmatpush1.bf16.msra.mxu1 %v11365_v56  ;;  %7494 = vmatprep.mubr.f32.mxu1 %v11921_v10  ;;  %v11430_v56 = vld [vmem:[%s14384_s25 + $0x364] ss:$8 sps:$4 sm:$0xff]  }
0x1435   :  { %7985 = vmatprep.subr.bf16.mxu1 %v11370_v35  ;;  %v11428_v35 = vld [vmem:[%s14384_s25 + $0x360] ss:$8 sps:$4 sm:$0xff]  }
0x1437   :  { %9544 = vmatmul.mubr.msk.f32.gmra.mrb[92].mxu1 %vm1065_vm3, %v9528_v34  ;;  %v11433_v34 = vld [vmem:[%s14384_s25 + $0x374] ss:$8 sps:$4 sm:$0xff]  }
0x1438   :  { %7986 = vmatpush1.bf16.msra.mxu1 %v11368_v36  ;;  %7500 = vmatprep.mubr.f32.mxu1 %v11921_v10  ;;  %v11431_v36 = vld [vmem:[%s14384_s25 + $0x370] ss:$8 sps:$4 sm:$0xff]  }
0x1439   :  { %7987 = vmatprep.subr.bf16.mxu1 %v11373_v39  ;;  %v11436_v39 = vld [vmem:[%s14384_s25 + $0x384] ss:$8 sps:$4 sm:$0xff]  }
0x143b   :  { %9545 = vmatmul.mubr.msk.f32.gmra.mrb[94].mxu1 %vm1065_vm3, %v9529_v40  ;;  %v11434_v40 = vld [vmem:[%s14384_s25 + $0x380] ss:$8 sps:$4 sm:$0xff]  }
0x143c   :  { %7988 = vmatpush1.bf16.msra.mxu1 %v11371_v42  ;;  %7506 = vmatprep.mubr.f32.mxu1 %v11921_v10  ;;  %v11439_v42 = vld [vmem:[%s14384_s25 + $0x394] ss:$8 sps:$4 sm:$0xff]  }
0x143d   :  { %7989 = vmatprep.subr.bf16.mxu1 %v11376_v43  ;;  %v11442_v43 = vld [vmem:[%s14384_s25 + $0x3a4] ss:$8 sps:$4 sm:$0xff]  }
0x143f   :  { %9546 = vmatmul.mubr.msk.f32.gmra.mrb[96].mxu1 %vm1065_vm3, %v9530_v48  ;;  %v11440_v48 = vld [vmem:[%s14384_s25 + $0x3a0] ss:$8 sps:$4 sm:$0xff]  }
0x1440   :  { %7990 = vmatpush1.bf16.msra.mxu1 %v11374_v59  ;;  %7512 = vmatprep.mubr.f32.mxu1 %v11921_v10  ;;  %v11445_v59 = vld [vmem:[%s14384_s25 + $0x3b4] ss:$8 sps:$4 sm:$0xff]  }
0x1441   :  { %7991 = vmatprep.subr.bf16.mxu1 %v11379_v49  ;;  %v11443_v49 = vld [vmem:[%s14384_s25 + $0x3b0] ss:$8 sps:$4 sm:$0xff]  }
0x1443   :  { %9547 = vmatmul.mubr.msk.f32.gmra.mrb[98].mxu1 %vm1065_vm3, %v9531_v51  ;;  %v11448_v51 = vld [vmem:[%s14384_s25 + $0x3c4] ss:$8 sps:$4 sm:$0xff]  }
0x1444   :  { %7992 = vmatpush1.bf16.msra.mxu1 %v11377_v53  ;;  %7518 = vmatprep.mubr.f32.mxu1 %v11921_v10  ;;  %v11446_v53 = vld [vmem:[%s14384_s25 + $0x3c0] ss:$8 sps:$4 sm:$0xff]  }
0x1445   :  { %7993 = vmatprep.subr.bf16.mxu1 %v11382_v50  ;;  %v11451_v50 = vld [vmem:[%s14384_s25 + $0x3d4] ss:$8 sps:$4 sm:$0xff]  }
0x1447   :  { %9548 = vmatmul.mubr.msk.f32.gmra.mrb[100].mxu1 %vm1065_vm3, %v9532_v61  ;;  %v11449_v61 = vld [vmem:[%s14384_s25 + $0x3d0] ss:$8 sps:$4 sm:$0xff]  }
0x1448   :  { %7994 = vmatpush1.bf16.msra.mxu1 %v11380_v60  ;;  %7524 = vmatprep.mubr.f32.mxu1 %v11921_v10  ;;  %v11454_v60 = vld [vmem:[%s14384_s25 + $0x3e4] ss:$8 sps:$4 sm:$0xff]  }
0x1449   :  { %7995 = vmatprep.subr.bf16.mxu1 %v11385_v5  ;;  %v7071_v5 = vld [vmem:[%s14385_s18] sm:$0xff] }
0x144a   :  { %9558 = vmatmul.mubr.msk.f32.vlgmr.msra.gmra.mrb[70].mxu0 %vm1065_vm3, %v7071_v5 }
0x144b   :  { %9549 = vmatmul.mubr.msk.f32.gmra.mrb[102].mxu1 %vm1065_vm3, %v9533_v7  ;;  %v11452_v7 = vld [vmem:[%s14384_s25 + $0x3e0] ss:$8 sps:$4 sm:$0xff]   ;;  %7697 = vmatprep.mubr.f32.mxu0 %v11921_v10 }
0x144c   :  { %7996 = vmatpush1.bf16.msra.mxu1 %v11383_v23  ;;  %7530 = vmatprep.mubr.f32.mxu1 %v11921_v10  ;;  %v11457_v23 = vld [vmem:[%s14384_s25 + $0x3f4] ss:$8 sps:$4 sm:$0xff]  }
0x144d   :  { %7997 = vmatprep.subr.bf16.mxu1 %v11388_v33  ;;  %v7072_v33 = vld [vmem:[%s14385_s18 + $0x8] sm:$0xff] }
0x144e   :  { %9559 = vmatmul.mubr.msk.f32.gmra.mrb[88].mxu0 %vm1065_vm3, %v7072_v33 }
0x144f   :  { %9550 = vmatmul.mubr.msk.f32.gmra.mrb[104].mxu1 %vm1065_vm3, %v9534_v6  ;;  %v11455_v6 = vld [vmem:[%s14384_s25 + $0x3f0] ss:$8 sps:$4 sm:$0xff]   ;;  %7703 = vmatprep.mubr.f32.mxu0 %v11921_v10 }
0x1450   :  { %7998 = vmatpush1.bf16.msra.mxu1 %v11386_v47  ;;  %7536 = vmatprep.mubr.f32.mxu1 %v11921_v10  ;;  %v7073_v47 = vld [vmem:[%s14385_s18 + $0x10] sm:$0xff] }
0x1451   :  { %7999 = vmatprep.subr.bf16.mxu1 %v11391_v13  ;;  %v7074_v13 = vld [vmem:[%s14385_s18 + $0x18] sm:$0xff] }
0x1452   :  { %9560 = vmatmul.mubr.msk.f32.gmra.mrb[90].mxu0 %vm1065_vm3, %v7073_v47 }
0x1453   :  { %9551 = vmatmul.mubr.msk.f32.gmra.mrb[106].mxu1 %vm1065_vm3, %v9535_v26  ;;  %7709 = vmatprep.mubr.f32.mxu0 %v11921_v10  ;;  %v7075_v26 = vld [vmem:[%s14385_s18 + $0x20] sm:$0xff] }
0x1454   :  { %8000 = vmatpush1.bf16.msra.mxu1 %v11389_v17  ;;  %7542 = vmatprep.mubr.f32.mxu1 %v11921_v10  ;;  %v7082_v17 = vld [vmem:[%s14385_s18 + $0x58] sm:$0xff] }
0x1455   :  { %8001 = vmatprep.subr.bf16.mxu1 %v11394_v37  ;;  %v7084_v37 = vld [vmem:[%s14385_s18 + $0x68] sm:$0xff] }
0x1456   :  { %9561 = vmatmul.mubr.msk.f32.gmra.mrb[92].mxu0 %vm1065_vm3, %v7074_v13 }
0x1457   :  { %9552 = vmatmul.mubr.msk.f32.gmra.mrb[108].mxu1 %vm1065_vm3, %v9536_v15  ;;  %7715 = vmatprep.mubr.f32.mxu0 %v11921_v10  ;;  %v7085_v15 = vld [vmem:[%s14385_s18 + $0x70] sm:$0xff] }
0x1458   :  { %8002 = vmatpush1.bf16.msra.mxu1 %v11392_v21  ;;  %7548 = vmatprep.mubr.f32.mxu1 %v11921_v10  ;;  %v7086_v21 = vld [vmem:[%s14385_s18 + $0x78] sm:$0xff] }
0x1459   :  { %8003 = vmatprep.subr.bf16.mxu1 %v11397_v24 }
0x145a   :  { %9562 = vmatmul.mubr.msk.f32.gmra.mrb[94].mxu0 %vm1065_vm3, %v7075_v26 }
0x145b   :  { %9553 = vmatmul.mubr.msk.f32.gmra.mrb[110].mxu1 %vm1065_vm3, %v9537_v1  ;;  %7721 = vmatprep.mubr.f32.mxu0 %v11921_v10 }
0x145c   :  { %8004 = vmatpush1.bf16.msra.mxu1 %v11395_v19  ;;  %7554 = vmatprep.mubr.f32.mxu1 %v11921_v10 }
0x145d   :  { %8005 = vmatprep.subr.bf16.mxu1 %v11400_v9 }
0x145f   :  { %9554 = vmatmul.mubr.msk.f32.gmra.mrb[112].mxu1 %vm1065_vm3, %v9538_v3 }
0x1460   :  { %8006 = vmatpush1.bf16.msra.mxu1 %v11398_v63  ;;  %7560 = vmatprep.mubr.f32.mxu1 %v11921_v10 }
0x1461   :  { %8007 = vmatprep.subr.bf16.mxu1 %v11403_v46 }
0x1463   :  { %9555 = vmatmul.mubr.msk.f32.gmra.mrb[114].mxu1 %vm1065_vm3, %v9539_v22 }
0x1464   :  { %8008 = vmatpush1.bf16.msra.mxu1 %v11401_v30  ;;  %7566 = vmatprep.mubr.f32.mxu1 %v11921_v10 }
0x1465   :  { %8009 = vmatprep.subr.bf16.mxu1 %v11406_v32 }
0x1467   :  { %9556 = vmatmul.mubr.msk.f32.gmra.mrb[116].mxu1 %vm1065_vm3, %v9540_v55 }
0x1468   :  { %8010 = vmatpush1.bf16.msra.mxu1 %v11404_v52  ;;  %7572 = vmatprep.mubr.f32.mxu1 %v11921_v10 }
0x1469   :  { %8011 = vmatprep.subr.bf16.mxu1 %v11409_v16 }
0x146b   :  { %9557 = vmatmul.mubr.msk.f32.gmra.mrb[118].mxu1 %vm1065_vm3, %v9541_v0 }
0x146c   :  { %8012 = vmatpush1.bf16.msra.mxu1 %v11407_v2  ;;  %8013 = vmatprep.mubr.bf16.mxu1 %v13549_v54 }
0x146d   :  { %8505 = vmatprep.subr.bf16.mxu1 %v11412_v28 }
0x146f   :  { %8014 = vmatmul.mubr.bf16.vlgmr.msra.gmra.mrb[120].mxu1 %v13545_v44 }
0x1470   :  { %8023 = vmatprep.mubr.bf16.mxu1 %v13551_v62  ;;  %8506 = vmatpush1.bf16.msra.mxu1 %v11410_v4 }
0x1471   :  { %8507 = vmatprep.subr.bf16.mxu1 %v11415_v8 }
0x1474   :  { %8508 = vmatpush1.bf16.msra.mxu1 %v11413_v11 }
0x1475   :  { %8509 = vmatprep.subr.bf16.mxu1 %v11418_v12 }
0x1477   :  { %8024 = vmatmul.mubr.bf16.gmra.mrb[124].mxu1 %v13547_v27 }
0x1478   :  { %8033 = vmatprep.mubr.bf16.mxu1 %v13559_v20  ;;  %8510 = vmatpush1.bf16.msra.mxu1 %v11416_v14 }
0x1479   :  { %8511 = vmatprep.subr.bf16.mxu1 %v11421_v18 }
0x147c   :  { %8512 = vmatpush1.bf16.msra.mxu1 %v11419_v38 }
0x147d   :  { %8513 = vmatprep.subr.bf16.mxu1 %v11424_v45 }
0x147f   :  { %8034 = vmatmul.mubr.bf16.gmra.mrb[128].mxu1 %v13563_v25 }
0x1480   :  { %8043 = vmatprep.mubr.bf16.mxu1 %v13565_v29  ;;  %8514 = vmatpush1.bf16.msra.mxu1 %v11422_v41 }
0x1481   :  { %8515 = vmatprep.subr.bf16.mxu1 %v11427_v57 }
0x1484   :  { %8516 = vmatpush1.bf16.msra.mxu1 %v11425_v58 }
0x1485   :  { %8517 = vmatprep.subr.bf16.mxu1 %v11430_v56 }
0x1487   :  { %8044 = vmatmul.mubr.bf16.gmra.mrb[132].mxu1 %v13567_v31 }
0x1488   :  { %8518 = vmatpush1.bf16.msra.mxu1 %v11428_v35  ;;  %8537 = vmatprep.mubr.bf16.mxu1 %v13549_v54  ;;  %v11437_v54 = vld [vmem:[%s14384_s25 + $0x390] ss:$8 sps:$4 sm:$0xff]  }
0x1489   :  { %8519 = vmatprep.subr.bf16.mxu1 %v11433_v34 }
0x148c   :  { %8520 = vmatpush1.bf16.msra.mxu1 %v11431_v36 }
0x148d   :  { %8521 = vmatprep.subr.bf16.mxu1 %v11436_v39 }
0x1490   :  { %8522 = vmatpush1.bf16.msra.mxu1 %v11434_v40 }
0x1491   :  { %8523 = vmatprep.subr.bf16.mxu1 %v11439_v42 }
0x1494   :  { %8524 = vmatpush1.bf16.msra.mxu1 %v11437_v54 }
0x1495   :  { %8525 = vmatprep.subr.bf16.mxu1 %v11442_v43 }
0x1498   :  { %8526 = vmatpush1.bf16.msra.mxu1 %v11440_v48 }
0x1499   :  { %8527 = vmatprep.subr.bf16.mxu1 %v11445_v59 }
0x149c   :  { %8528 = vmatpush1.bf16.msra.mxu1 %v11443_v49 }
0x149d   :  { %8529 = vmatprep.subr.bf16.mxu1 %v11448_v51 }
0x14a0   :  { %8530 = vmatpush1.bf16.msra.mxu1 %v11446_v53 }
0x14a1   :  { %8531 = vmatprep.subr.bf16.mxu1 %v11451_v50 }
0x14a4   :  { %8532 = vmatpush1.bf16.msra.mxu1 %v11449_v61 }
0x14a5   :  { %8533 = vmatprep.subr.bf16.mxu1 %v11454_v60 }
0x14a8   :  { %8534 = vmatpush1.bf16.msra.mxu1 %v11452_v7 }
0x14a9   :  { %8535 = vmatprep.subr.bf16.mxu1 %v11457_v23 }
0x14ac   :  { %8536 = vmatpush1.bf16.msra.mxu1 %v11455_v6 }
0x14af   :  { %8538 = vmatmul.mubr.bf16.vlgmr.msra.gmra.mrb[136].mxu1 %v13545_v44  ;;  %v7076_v44 = vld [vmem:[%s14385_s18 + $0x28] sm:$0xff] }
0x14b0   :  { %8547 = vmatprep.mubr.bf16.mxu1 %v13551_v62  ;;  %9563 = vmatmul.mubr.msk.f32.gmra.mrb[96].mxu0 %vm1065_vm3, %v7076_v44  ;;  %v7077_v62 = vld [vmem:[%s14385_s18 + $0x30] sm:$0xff] }
0x14b1   :  { %7727 = vmatprep.mubr.f32.mxu0 %v11921_v10 }
0x14b4   :  { %9564 = vmatmul.mubr.msk.f32.gmra.mrb[98].mxu0 %vm1065_vm3, %v7077_v62 }
0x14b5   :  { %7733 = vmatprep.mubr.f32.mxu0 %v11921_v10 }
0x14b7   :  { %8548 = vmatmul.mubr.bf16.gmra.mrb[140].mxu1 %v13547_v27  ;;  %v7078_v27 = vld [vmem:[%s14385_s18 + $0x38] sm:$0xff] }
0x14b8   :  { %8557 = vmatprep.mubr.bf16.mxu1 %v13559_v20  ;;  %9565 = vmatmul.mubr.msk.f32.gmra.mrb[100].mxu0 %vm1065_vm3, %v7078_v27  ;;  %v7079_v20 = vld [vmem:[%s14385_s18 + $0x40] sm:$0xff] }
0x14b9   :  { %7739 = vmatprep.mubr.f32.mxu0 %v11921_v10 }
0x14bc   :  { %9566 = vmatmul.mubr.msk.f32.gmra.mrb[102].mxu0 %vm1065_vm3, %v7079_v20 }
0x14bd   :  { %7745 = vmatprep.mubr.f32.mxu0 %v11921_v10 }
0x14bf   :  { %8558 = vmatmul.mubr.bf16.gmra.mrb[144].mxu1 %v13563_v25  ;;  %v7080_v25 = vld [vmem:[%s14385_s18 + $0x48] sm:$0xff] }
0x14c0   :  { %8567 = vmatprep.mubr.bf16.mxu1 %v13565_v29  ;;  %9567 = vmatmul.mubr.msk.f32.gmra.mrb[104].mxu0 %vm1065_vm3, %v7080_v25  ;;  %v7081_v29 = vld [vmem:[%s14385_s18 + $0x50] sm:$0xff]  ;;  %v9638_v25 = vld [vmem:[%s14385_s18 + $0x100] sm:$0xff] }
0x14c1   :  { %7751 = vmatprep.mubr.f32.mxu0 %v11921_v10 }
0x14c4   :  { %9568 = vmatmul.mubr.msk.f32.gmra.mrb[106].mxu0 %vm1065_vm3, %v7081_v29  ;;  %v9639_v29 = vld [vmem:[%s14385_s18 + $0x108] sm:$0xff] }
0x14c5   :  { %7757 = vmatprep.mubr.f32.mxu0 %v11921_v10 }
0x14c7   :  { %8568 = vmatmul.mubr.bf16.gmra.mrb[148].mxu1 %v13567_v31  ;;  %v7083_v31 = vld [vmem:[%s14385_s18 + $0x60] sm:$0xff] }
0x14c8   :  { %9569 = vmatmul.mubr.msk.f32.gmra.mrb[108].mxu0 %vm1065_vm3, %v7082_v17  ;;  %v9640_v17 = vld [vmem:[%s14385_s18 + $0x110] sm:$0xff] }
0x14c9   :  { %7763 = vmatprep.mubr.f32.mxu0 %v11921_v10 }
0x14cc   :  { %9570 = vmatmul.mubr.msk.f32.gmra.mrb[110].mxu0 %vm1065_vm3, %v7083_v31  ;;  %v9641_v31 = vld [vmem:[%s14385_s18 + $0x118] sm:$0xff] }
0x14cd   :  { %7769 = vmatprep.mubr.f32.mxu0 %v11921_v10 }
0x14d0   :  { %9571 = vmatmul.mubr.msk.f32.gmra.mrb[112].mxu0 %vm1065_vm3, %v7084_v37  ;;  %v9642_v37 = vld [vmem:[%s14385_s18 + $0x120] sm:$0xff] }
0x14d1   :  { %7775 = vmatprep.mubr.f32.mxu0 %v11921_v10 }
0x14d4   :  { %9572 = vmatmul.mubr.msk.f32.gmra.mrb[114].mxu0 %vm1065_vm3, %v7085_v15  ;;  %v9643_v15 = vld [vmem:[%s14385_s18 + $0x128] sm:$0xff] }
0x14d5   :  { %7781 = vmatprep.mubr.f32.mxu0 %v11921_v10 }
0x14d8   :  { %9573 = vmatmul.mubr.msk.f32.gmra.mrb[116].mxu0 %vm1065_vm3, %v7086_v21  ;;  %v9644_v21 = vld [vmem:[%s14385_s18 + $0x130] sm:$0xff] }
0x14d9   :  { %8183 = vmatprep.mubr.f32.mxu0 %v11921_v10 }
0x1502   :  { %v13948_v24 = vpop.f32.mrb[88].mxu1 }
0x1503   :  { %v13950_v1 = vpop.f32.mrb[89].mxu1 }
0x1506   :  { %v13952_v19 = vpop.f32.mrb[90].mxu1 }
0x1507   :  { %v13954_v9 = vpop.f32.mrb[91].mxu1 }
0x150a   :  { %v13956_v3 = vpop.f32.mrb[92].mxu1 }
0x150b   :  { %v13958_v63 = vpop.f32.mrb[93].mxu1 }
0x150e   :  { %v13960_v46 = vpop.f32.mrb[94].mxu1 }
0x150f   :  { %v13962_v22 = vpop.f32.mrb[95].mxu1 }
0x1512   :  { %v13964_v30 = vpop.f32.mrb[96].mxu1 }
0x1513   :  { %v13966_v32 = vpop.f32.mrb[97].mxu1 }
0x1516   :  { %v13968_v55 = vpop.f32.mrb[98].mxu1 }
0x1517   :  { %v13970_v52 = vpop.f32.mrb[99].mxu1 }
0x151a   :  { %v13972_v16 = vpop.f32.mrb[100].mxu1 }
0x151b   :  { %v13974_v0 = vpop.f32.mrb[101].mxu1 }
0x151e   :  { %v13976_v2 = vpop.f32.mrb[102].mxu1 }
0x151f   :  { %v13978_v28 = vpop.f32.mrb[103].mxu1 }
0x1522   :  { %v13980_v4 = vpop.f32.mrb[104].mxu1 }
0x1523   :  { %v13982_v8 = vpop.f32.mrb[105].mxu1 }
0x1526   :  { %v13984_v11 = vpop.f32.mrb[106].mxu1 }
0x1527   :  { %v13986_v12 = vpop.f32.mrb[107].mxu1 }
0x152a   :  { %v13988_v14 = vpop.f32.mrb[108].mxu1 }
0x152b   :  { %v13990_v18 = vpop.f32.mrb[109].mxu1 }
0x152e   :  { %v13992_v38 = vpop.f32.mrb[110].mxu1 }
0x152f   :  { %v13994_v45 = vpop.f32.mrb[111].mxu1 }
0x1532   :  { %v13996_v41 = vpop.f32.mrb[112].mxu1 }
0x1533   :  { %v13998_v57 = vpop.f32.mrb[113].mxu1 }
0x1536   :  { %v14000_v58 = vpop.f32.mrb[114].mxu1 }
0x1537   :  { %v14002_v56 = vpop.f32.mrb[115].mxu1 }
0x153a   :  { %v14004_v35 = vpop.f32.mrb[116].mxu1 }
0x153b   :  { %v14006_v34 = vpop.f32.mrb[117].mxu1 }
0x153e   :  { %v14008_v36 = vpop.f32.mrb[118].mxu1 }
0x153f   :  { %v14010_v39 = vpop.f32.mrb[119].mxu1 }
0x1542   :  { %v8015_v40 = vpop.f32.mrb[120].mxu1 }
0x1543   :  { %v8017_v42 = vpop.f32.mrb[121].mxu1 }
0x1544   :  { %v8019_v54 = vpop.f32.mrb[122].mxu1 }
0x1545   :  { %v10440_v43 = vpack.c.bf16 %v8019_v54, %v8015_v40  ;;  %v8021_v48 = vpop.f32.mrb[123].mxu1  ;;  %v9645_v40 = vld [vmem:[%s14385_s18 + $0x138] sm:$0xff] }
0x1546   :  { %v10438_v59 = vpack.c.bf16 %v8021_v48, %v8017_v42  ;;  %v9646_v42 = vld [vmem:[%s14385_s18 + $0x140] sm:$0xff] }
0x1548   :  { %10439 = vmatprep.subr.bf16.mxu0 %v10438_v59 }
0x1549   :  { %10441 = vmatpush1.bf16.msra.mxu0 %v10440_v43 }
0x154a   :  { %v8025_v49 = vpop.f32.mrb[124].mxu1 }
0x154b   :  { %v8027_v51 = vpop.f32.mrb[125].mxu1 }
0x154c   :  { %v8029_v53 = vpop.f32.mrb[126].mxu1 }
0x154d   :  { %v10444_v50 = vpack.c.bf16 %v8029_v53, %v8025_v49  ;;  %v8031_v61 = vpop.f32.mrb[127].mxu1 }
0x154e   :  { %v10442_v60 = vpack.c.bf16 %v8031_v61, %v8027_v51  ;;  %v9647_v51 = vld [vmem:[%s14385_s18 + $0x148] sm:$0xff] }
0x1550   :  { %10443 = vmatprep.subr.bf16.mxu0 %v10442_v60 }
0x1551   :  { %10445 = vmatpush1.bf16.msra.mxu0 %v10444_v50  ;;  %v9648_v50 = vld [vmem:[%s14385_s18 + $0x150] sm:$0xff] }
0x1552   :  { %v8035_v5 = vpop.f32.mrb[128].mxu1 }
0x1553   :  { %v8037_v7 = vpop.f32.mrb[129].mxu1 }
0x1554   :  { %v8039_v23 = vpop.f32.mrb[130].mxu1 }
0x1555   :  { %v10448_v33 = vpack.c.bf16 %v8039_v23, %v8035_v5  ;;  %v8041_v6 = vpop.f32.mrb[131].mxu1 }
0x1556   :  { %v10446_v47 = vpack.c.bf16 %v8041_v6, %v8037_v7 }
0x1558   :  { %10447 = vmatprep.subr.bf16.mxu0 %v10446_v47  ;;  %v9650_v47 = vld [vmem:[%s14385_s18 + $0x160] sm:$0xff] }
0x1559   :  { %10449 = vmatpush1.bf16.msra.mxu0 %v10448_v33  ;;  %v9649_v33 = vld [vmem:[%s14385_s18 + $0x158] sm:$0xff] }
0x155a   :  { %v8045_v13 = vpop.f32.mrb[132].mxu1 }
0x155b   :  { %v8047_v26 = vpop.f32.mrb[133].mxu1 }
0x155c   :  { %v8049_v44 = vpop.f32.mrb[134].mxu1 }
0x155d   :  { %v10452_v62 = vpack.c.bf16 %v8049_v44, %v8045_v13  ;;  %v8051_v27 = vpop.f32.mrb[135].mxu1 }
0x155e   :  { %v10450_v20 = vpack.c.bf16 %v8051_v27, %v8047_v26 }
0x1560   :  { %10451 = vmatprep.subr.bf16.mxu0 %v10450_v20  ;;  %v9651_v20 = vld [vmem:[%s14385_s18 + $0x168] sm:$0xff] }
0x1561   :  { %10453 = vmatpush1.bf16.msra.mxu0 %v10452_v62 }
0x1564   :  { %9654 = vmatmul.mubr.msk.f32.vlgmr.msra.gmra.mrb[70].mxu0 %vm1065_vm3, %v9638_v25 }
0x1565   :  { %8189 = vmatprep.mubr.f32.mxu0 %v11921_v10 }
0x1568   :  { %9655 = vmatmul.mubr.msk.f32.gmra.mrb[88].mxu0 %vm1065_vm3, %v9639_v29  ;;  %v9652_v29 = vld [vmem:[%s14385_s18 + $0x170] sm:$0xff] }
0x1569   :  { %8195 = vmatprep.mubr.f32.mxu0 %v11921_v10 }
0x156c   :  { %9656 = vmatmul.mubr.msk.f32.gmra.mrb[90].mxu0 %vm1065_vm3, %v9640_v17 }
0x156d   :  { %8201 = vmatprep.mubr.f32.mxu0 %v11921_v10 }
0x1570   :  { %9657 = vmatmul.mubr.msk.f32.gmra.mrb[92].mxu0 %vm1065_vm3, %v9641_v31 }
0x1571   :  { %8207 = vmatprep.mubr.f32.mxu0 %v11921_v10 }
0x1574   :  { %9658 = vmatmul.mubr.msk.f32.gmra.mrb[94].mxu0 %vm1065_vm3, %v9642_v37 }
0x1575   :  { %8213 = vmatprep.mubr.f32.mxu0 %v11921_v10 }
0x1578   :  { %9659 = vmatmul.mubr.msk.f32.gmra.mrb[96].mxu0 %vm1065_vm3, %v9643_v15 }
0x1579   :  { %8219 = vmatprep.mubr.f32.mxu0 %v11921_v10 }
0x157c   :  { %9660 = vmatmul.mubr.msk.f32.gmra.mrb[98].mxu0 %vm1065_vm3, %v9644_v21 }
0x157d   :  { %8225 = vmatprep.mubr.f32.mxu0 %v11921_v10 }
0x1580   :  { %9661 = vmatmul.mubr.msk.f32.gmra.mrb[100].mxu0 %vm1065_vm3, %v9645_v40  ;;  %v9653_v40 = vld [vmem:[%s14385_s18 + $0x178] sm:$0xff] }
0x1581   :  { %8231 = vmatprep.mubr.f32.mxu0 %v11921_v10 }
0x1582   :  { %v8539_v54 = vpop.f32.mrb[136].mxu1 }
0x1583   :  { %v8541_v43 = vpop.f32.mrb[137].mxu1 }
0x1584   :  { %9662 = vmatmul.mubr.msk.f32.gmra.mrb[102].mxu0 %vm1065_vm3, %v9646_v42  ;;  %v8543_v48 = vpop.f32.mrb[138].mxu1 }
0x1585   :  { %v10456_v59 = vpack.c.bf16 %v8543_v48, %v8539_v54  ;;  %v8545_v49 = vpop.f32.mrb[139].mxu1  ;;  %8237 = vmatprep.mubr.f32.mxu0 %v11921_v10  ;;  %v9734_v54 = vld [vmem:[%s14385_s18 + $0x180] sm:$0xff]  ;;  %v9736_v48 = vld [vmem:[%s14385_s18 + $0x190] sm:$0xff] }
0x1586   :  { %v10454_v53 = vpack.c.bf16 %v8545_v49, %v8541_v43  ;;  %v9735_v43 = vld [vmem:[%s14385_s18 + $0x188] sm:$0xff]  ;;  %v9738_v49 = vld [vmem:[%s14385_s18 + $0x1a0] sm:$0xff] }
0x1588   :  { %9663 = vmatmul.mubr.msk.f32.gmra.mrb[104].mxu0 %vm1065_vm3, %v9647_v51  ;;  %10455 = vmatprep.subr.bf16.mxu0 %v10454_v53  ;;  %v9739_v51 = vld [vmem:[%s14385_s18 + $0x1a8] sm:$0xff]  ;;  %v9740_v53 = vld [vmem:[%s14385_s18 + $0x1b0] sm:$0xff] }
0x1589   :  { %10457 = vmatpush1.bf16.msra.mxu0 %v10456_v59  ;;  %8243 = vmatprep.mubr.f32.mxu0 %v11921_v10  ;;  %v9737_v59 = vld [vmem:[%s14385_s18 + $0x198] sm:$0xff] }
0x158a   :  { %v8549_v61 = vpop.f32.mrb[140].mxu1 }
0x158b   :  { %v8551_v60 = vpop.f32.mrb[141].mxu1 }
0x158c   :  { %9664 = vmatmul.mubr.msk.f32.gmra.mrb[106].mxu0 %vm1065_vm3, %v9648_v50  ;;  %v8553_v5 = vpop.f32.mrb[142].mxu1  ;;  %v9741_v50 = vld [vmem:[%s14385_s18 + $0x1b8] sm:$0xff] }
0x158d   :  { %v10460_v7 = vpack.c.bf16 %v8553_v5, %v8549_v61  ;;  %v8555_v23 = vpop.f32.mrb[143].mxu1  ;;  %8249 = vmatprep.mubr.f32.mxu0 %v11921_v10  ;;  %v9742_v61 = vld [vmem:[%s14385_s18 + $0x1c0] sm:$0xff]  ;;  %v9744_v5 = vld [vmem:[%s14385_s18 + $0x1d0] sm:$0xff] }
0x158e   :  { %v10458_v6 = vpack.c.bf16 %v8555_v23, %v8551_v60  ;;  %v9743_v60 = vld [vmem:[%s14385_s18 + $0x1c8] sm:$0xff]  ;;  %v9746_v23 = vld [vmem:[%s14385_s18 + $0x1e0] sm:$0xff] }
0x1590   :  { %9665 = vmatmul.mubr.msk.f32.gmra.mrb[108].mxu0 %vm1065_vm3, %v9649_v33  ;;  %10459 = vmatprep.subr.bf16.mxu0 %v10458_v6  ;;  %v9747_v33 = vld [vmem:[%s14385_s18 + $0x1e8] sm:$0xff]  ;;  %v9748_v6 = vld [vmem:[%s14385_s18 + $0x1f0] sm:$0xff] }
0x1591   :  { %10461 = vmatpush1.bf16.msra.mxu0 %v10460_v7  ;;  %8255 = vmatprep.mubr.f32.mxu0 %v11921_v10  ;;  %v9745_v7 = vld [vmem:[%s14385_s18 + $0x1d8] sm:$0xff] }
0x1592   :  { %v8559_v13 = vpop.f32.mrb[144].mxu1 }
0x1593   :  { %v8561_v26 = vpop.f32.mrb[145].mxu1 }
0x1594   :  { %9666 = vmatmul.mubr.msk.f32.gmra.mrb[110].mxu0 %vm1065_vm3, %v9650_v47  ;;  %v8563_v44 = vpop.f32.mrb[146].mxu1  ;;  %v9749_v47 = vld [vmem:[%s14385_s18 + $0x1f8] sm:$0xff] }
0x1595   :  { %v10464_v62 = vpack.c.bf16 %v8563_v44, %v8559_v13  ;;  %v8565_v27 = vpop.f32.mrb[147].mxu1  ;;  %8261 = vmatprep.mubr.f32.mxu0 %v11921_v10 }
0x1596   :  { %v10462_v25 = vpack.c.bf16 %v8565_v27, %v8561_v26 }
0x1598   :  { %9667 = vmatmul.mubr.msk.f32.gmra.mrb[112].mxu0 %vm1065_vm3, %v9651_v20  ;;  %10463 = vmatprep.subr.bf16.mxu0 %v10462_v25 }
0x1599   :  { %10465 = vmatpush1.bf16.msra.mxu0 %v10464_v62  ;;  %8267 = vmatprep.mubr.f32.mxu0 %v11921_v10 }
0x159a   :  { %v8569_v17 = vpop.f32.mrb[148].mxu1 }
0x159b   :  { %v8571_v31 = vpop.f32.mrb[149].mxu1 }
0x159c   :  { %9668 = vmatmul.mubr.msk.f32.gmra.mrb[114].mxu0 %vm1065_vm3, %v9652_v29  ;;  %v8573_v37 = vpop.f32.mrb[150].mxu1 }
0x159d   :  { %v10468_v15 = vpack.c.bf16 %v8573_v37, %v8569_v17  ;;  %v8575_v21 = vpop.f32.mrb[151].mxu1  ;;  %8273 = vmatprep.mubr.f32.mxu0 %v11921_v10 }
0x159e   :  { %v10466_v42 = vpack.c.bf16 %v8575_v21, %v8571_v31 }
0x15a0   :  { %9669 = vmatmul.mubr.msk.f32.gmra.mrb[116].mxu0 %vm1065_vm3, %v9653_v40  ;;  %10467 = vmatprep.subr.bf16.mxu0 %v10466_v42 }
0x15a1   :  { %10469 = vmatpush1.bf16.msra.mxu0 %v10468_v15  ;;  %8707 = vmatprep.mubr.f32.mxu0 %v11921_v10 }
0x15a4   :  { %9750 = vmatmul.mubr.msk.f32.vlgmr.msra.gmra.mrb[70].mxu0 %vm1065_vm3, %v9734_v54 }
0x15a5   :  { %8713 = vmatprep.mubr.f32.mxu0 %v11921_v10 }
0x15a8   :  { %9751 = vmatmul.mubr.msk.f32.gmra.mrb[88].mxu0 %vm1065_vm3, %v9735_v43 }
0x15a9   :  { %8719 = vmatprep.mubr.f32.mxu0 %v11921_v10 }
0x15ac   :  { %9752 = vmatmul.mubr.msk.f32.gmra.mrb[90].mxu0 %vm1065_vm3, %v9736_v48 }
0x15ad   :  { %8725 = vmatprep.mubr.f32.mxu0 %v11921_v10 }
0x15b0   :  { %9753 = vmatmul.mubr.msk.f32.gmra.mrb[92].mxu0 %vm1065_vm3, %v9737_v59 }
0x15b1   :  { %8731 = vmatprep.mubr.f32.mxu0 %v11921_v10 }
0x15b4   :  { %9754 = vmatmul.mubr.msk.f32.gmra.mrb[94].mxu0 %vm1065_vm3, %v9738_v49 }
0x15b5   :  { %8737 = vmatprep.mubr.f32.mxu0 %v11921_v10 }
0x15b8   :  { %9755 = vmatmul.mubr.msk.f32.gmra.mrb[96].mxu0 %vm1065_vm3, %v9739_v51 }
0x15b9   :  { %8743 = vmatprep.mubr.f32.mxu0 %v11921_v10 }
0x15bc   :  { %9756 = vmatmul.mubr.msk.f32.gmra.mrb[98].mxu0 %vm1065_vm3, %v9740_v53 }
0x15bd   :  { %8749 = vmatprep.mubr.f32.mxu0 %v11921_v10 }
0x15c0   :  { %9757 = vmatmul.mubr.msk.f32.gmra.mrb[100].mxu0 %vm1065_vm3, %v9741_v50 }
0x15c1   :  { %8755 = vmatprep.mubr.f32.mxu0 %v11921_v10 }
0x15c4   :  { %9758 = vmatmul.mubr.msk.f32.gmra.mrb[102].mxu0 %vm1065_vm3, %v9742_v61 }
0x15c5   :  { %8761 = vmatprep.mubr.f32.mxu0 %v11921_v10 }
0x15c8   :  { %9759 = vmatmul.mubr.msk.f32.gmra.mrb[104].mxu0 %vm1065_vm3, %v9743_v60 }
0x15c9   :  { %8767 = vmatprep.mubr.f32.mxu0 %v11921_v10 }
0x15cc   :  { %9760 = vmatmul.mubr.msk.f32.gmra.mrb[106].mxu0 %vm1065_vm3, %v9744_v5 }
0x15cd   :  { %8773 = vmatprep.mubr.f32.mxu0 %v11921_v10 }
0x15d0   :  { %9761 = vmatmul.mubr.msk.f32.gmra.mrb[108].mxu0 %vm1065_vm3, %v9745_v7 }
0x15d1   :  { %8779 = vmatprep.mubr.f32.mxu0 %v11921_v10 }
0x15d4   :  { %9762 = vmatmul.mubr.msk.f32.gmra.mrb[110].mxu0 %vm1065_vm3, %v9746_v23 }
0x15d5   :  { %8785 = vmatprep.mubr.f32.mxu0 %v11921_v10 }
0x15d8   :  { %9763 = vmatmul.mubr.msk.f32.gmra.mrb[112].mxu0 %vm1065_vm3, %v9747_v33 }
0x15d9   :  { %8791 = vmatprep.mubr.f32.mxu0 %v11921_v10 }
0x15dc   :  { %9764 = vmatmul.mubr.msk.f32.gmra.mrb[114].mxu0 %vm1065_vm3, %v9748_v6 }
0x15dd   :  { %8797 = vmatprep.mubr.f32.mxu0 %v11921_v10 }
0x15e0   :  { %9765 = vmatmul.mubr.msk.f32.gmra.mrb[116].mxu0 %vm1065_vm3, %v9749_v47 }
0x1677   :  { %v8709_v13 = vpop.f32.mrb[70].mxu0 }
0x1678   :  { %v10470_v26 = vadd.f32 %v8709_v13, %v13948_v24  ;;  %v8711_v44 = vpop.f32.mrb[71].mxu0 }
0x1679   :  { %v10471_v62 = vadd.f32 %v8711_v44, %v13950_v1 }
0x167a   :  { %11466 = vtanh.f32 %v10470_v26 }
0x167b   :  { %11468 = vtanh.f32 %v10471_v62  ;;  %v8715_v27 = vpop.f32.mrb[88].mxu0 }
0x167c   :  { %v10472_v20 = vadd.f32 %v8715_v27, %v13952_v19  ;;  %v8717_v25 = vpop.f32.mrb[89].mxu0 }
0x167d   :  { %v10473_v10 = vadd.f32 %v8717_v25, %v13954_v9 }
0x167e   :  { %11470 = vtanh.f32 %v10472_v20 }
0x167f   :  { %11472 = vtanh.f32 %v10473_v10  ;;  %v8721_v29 = vpop.f32.mrb[90].mxu0 }
0x1680   :  { %v10474_v17 = vadd.f32 %v8721_v29, %v13956_v3  ;;  %v8723_v31 = vpop.f32.mrb[91].mxu0 }
0x1681   :  { %v10475_v37 = vadd.f32 %v8723_v31, %v13958_v63 }
0x1682   :  { %11474 = vtanh.f32 %v10474_v17 }
0x1683   :  { %11476 = vtanh.f32 %v10475_v37  ;;  %v8727_v24 = vpop.f32.mrb[92].mxu0 }
0x1684   :  { %v11467_v1 = vpop.eup %11466  ;;  %v10476_v15 = vadd.f32 %v8727_v24, %v13960_v46  ;;  %v8729_v21 = vpop.f32.mrb[93].mxu0 }
0x1685   :  { %v11469_v40 = vpop.eup %11468  ;;  %8868 = vst [vmem:[%s14386_s11] sm:$0xff] %v11467_v1  ;;  %v10477_v19 = vadd.f32 %v8729_v21, %v13962_v22 }
0x1686   :  { %8869 = vst.msk [vmem:[%s14386_s11 + $0x8] sm:$0xff] %vm1065_vm3, %v11469_v40  ;;  %11478 = vtanh.f32 %v10476_v15 }
0x1687   :  { %11480 = vtanh.f32 %v10477_v19  ;;  %v8733_v9 = vpop.f32.mrb[94].mxu0 }
0x1688   :  { %v11471_v3 = vpop.eup %11470  ;;  %v10478_v63 = vadd.f32 %v8733_v9, %v13964_v30  ;;  %v8735_v46 = vpop.f32.mrb[95].mxu0 }
0x1689   :  { %v11473_v42 = vpop.eup %11472  ;;  %8870 = vst [vmem:[%s14386_s11 + $0x10] sm:$0xff] %v11471_v3  ;;  %v10479_v54 = vadd.f32 %v8735_v46, %v13966_v32 }
0x168a   :  { %8871 = vst.msk [vmem:[%s14386_s11 + $0x18] sm:$0xff] %vm1065_vm3, %v11473_v42  ;;  %11482 = vtanh.f32 %v10478_v63 }
0x168b   :  { %11484 = vtanh.f32 %v10479_v54  ;;  %v8739_v22 = vpop.f32.mrb[96].mxu0 }
0x168c   :  { %v11475_v43 = vpop.eup %11474  ;;  %v10480_v48 = vadd.f32 %v8739_v22, %v13968_v55  ;;  %v8741_v30 = vpop.f32.mrb[97].mxu0 }
0x168d   :  { %v11477_v59 = vpop.eup %11476  ;;  %8872 = vst [vmem:[%s14386_s11 + $0x20] sm:$0xff] %v11475_v43  ;;  %v10481_v49 = vadd.f32 %v8741_v30, %v13970_v52 }
0x168e   :  { %8873 = vst.msk [vmem:[%s14386_s11 + $0x28] sm:$0xff] %vm1065_vm3, %v11477_v59  ;;  %11486 = vtanh.f32 %v10480_v48 }
0x168f   :  { %11488 = vtanh.f32 %v10481_v49  ;;  %v8745_v32 = vpop.f32.mrb[98].mxu0 }
0x1690   :  { %v11479_v51 = vpop.eup %11478  ;;  %v10482_v53 = vadd.f32 %v8745_v32, %v13972_v16  ;;  %v8747_v55 = vpop.f32.mrb[99].mxu0 }
0x1691   :  { %v11481_v50 = vpop.eup %11480  ;;  %8874 = vst [vmem:[%s14386_s11 + $0x30] sm:$0xff] %v11479_v51  ;;  %v10483_v61 = vadd.f32 %v8747_v55, %v13974_v0 }
0x1692   :  { %8875 = vst.msk [vmem:[%s14386_s11 + $0x38] sm:$0xff] %vm1065_vm3, %v11481_v50  ;;  %11490 = vtanh.f32 %v10482_v53 }
0x1693   :  { %11492 = vtanh.f32 %v10483_v61  ;;  %v8751_v52 = vpop.f32.mrb[100].mxu0 }
0x1694   :  { %v11483_v60 = vpop.eup %11482  ;;  %v10484_v5 = vadd.f32 %v8751_v52, %v13976_v2  ;;  %v8753_v16 = vpop.f32.mrb[101].mxu0 }
0x1695   :  { %v11485_v7 = vpop.eup %11484  ;;  %8876 = vst [vmem:[%s14386_s11 + $0x40] sm:$0xff] %v11483_v60  ;;  %v10485_v23 = vadd.f32 %v8753_v16, %v13978_v28 }
0x1696   :  { %8877 = vst.msk [vmem:[%s14386_s11 + $0x48] sm:$0xff] %vm1065_vm3, %v11485_v7  ;;  %11494 = vtanh.f32 %v10484_v5 }
0x1697   :  { %11496 = vtanh.f32 %v10485_v23  ;;  %v8757_v0 = vpop.f32.mrb[102].mxu0 }
0x1698   :  { %v11487_v33 = vpop.eup %11486  ;;  %v10486_v6 = vadd.f32 %v8757_v0, %v13980_v4  ;;  %v8759_v2 = vpop.f32.mrb[103].mxu0 }
0x1699   :  { %v11489_v47 = vpop.eup %11488  ;;  %8878 = vst [vmem:[%s14386_s11 + $0x50] sm:$0xff] %v11487_v33  ;;  %v10487_v13 = vadd.f32 %v8759_v2, %v13982_v8 }
0x169a   :  { %8879 = vst.msk [vmem:[%s14386_s11 + $0x58] sm:$0xff] %vm1065_vm3, %v11489_v47  ;;  %11498 = vtanh.f32 %v10486_v6 }
0x169b   :  { %11500 = vtanh.f32 %v10487_v13  ;;  %v8763_v28 = vpop.f32.mrb[104].mxu0 }
0x169c   :  { %v11491_v26 = vpop.eup %11490  ;;  %v10488_v44 = vadd.f32 %v8763_v28, %v13984_v11  ;;  %v8765_v4 = vpop.f32.mrb[105].mxu0 }
0x169d   :  { %v11493_v62 = vpop.eup %11492  ;;  %8880 = vst [vmem:[%s14386_s11 + $0x60] sm:$0xff] %v11491_v26  ;;  %v10489_v27 = vadd.f32 %v8765_v4, %v13986_v12 }
0x169e   :  { %8881 = vst.msk [vmem:[%s14386_s11 + $0x68] sm:$0xff] %vm1065_vm3, %v11493_v62  ;;  %11502 = vtanh.f32 %v10488_v44 }
0x169f   :  { %11504 = vtanh.f32 %v10489_v27  ;;  %v8769_v8 = vpop.f32.mrb[106].mxu0 }
0x16a0   :  { %v11495_v20 = vpop.eup %11494  ;;  %v10490_v25 = vadd.f32 %v8769_v8, %v13988_v14  ;;  %v8771_v11 = vpop.f32.mrb[107].mxu0 }
0x16a1   :  { %v11497_v10 = vpop.eup %11496  ;;  %8882 = vst [vmem:[%s14386_s11 + $0x70] sm:$0xff] %v11495_v20  ;;  %v10491_v29 = vadd.f32 %v8771_v11, %v13990_v18 }
0x16a2   :  { %8883 = vst.msk [vmem:[%s14386_s11 + $0x78] sm:$0xff] %vm1065_vm3, %v11497_v10  ;;  %11506 = vtanh.f32 %v10490_v25 }
0x16a3   :  { %11508 = vtanh.f32 %v10491_v29  ;;  %v8775_v12 = vpop.f32.mrb[108].mxu0 }
0x16a4   :  { %v11499_v17 = vpop.eup %11498  ;;  %v10492_v31 = vadd.f32 %v8775_v12, %v13992_v38  ;;  %v8777_v14 = vpop.f32.mrb[109].mxu0 }
0x16a5   :  { %v11501_v37 = vpop.eup %11500  ;;  %8884 = vst [vmem:[%s14386_s11 + $0x80] sm:$0xff] %v11499_v17  ;;  %v10493_v24 = vadd.f32 %v8777_v14, %v13994_v45 }
0x16a6   :  { %8885 = vst.msk [vmem:[%s14386_s11 + $0x88] sm:$0xff] %vm1065_vm3, %v11501_v37  ;;  %11510 = vtanh.f32 %v10492_v31 }
0x16a7   :  { %11512 = vtanh.f32 %v10493_v24  ;;  %v8781_v18 = vpop.f32.mrb[110].mxu0 }
0x16a8   :  { %v11503_v1 = vpop.eup %11502  ;;  %v10494_v15 = vadd.f32 %v8781_v18, %v13996_v41  ;;  %v8783_v38 = vpop.f32.mrb[111].mxu0 }
0x16a9   :  { %v11505_v21 = vpop.eup %11504  ;;  %8886 = vst [vmem:[%s14386_s11 + $0x90] sm:$0xff] %v11503_v1  ;;  %v10495_v40 = vadd.f32 %v8783_v38, %v13998_v57 }
0x16aa   :  { %8887 = vst.msk [vmem:[%s14386_s11 + $0x98] sm:$0xff] %vm1065_vm3, %v11505_v21  ;;  %11514 = vtanh.f32 %v10494_v15 }
0x16ab   :  { %11516 = vtanh.f32 %v10495_v40  ;;  %v8787_v45 = vpop.f32.mrb[112].mxu0 }
0x16ac   :  { %v11507_v19 = vpop.eup %11506  ;;  %v10496_v9 = vadd.f32 %v8787_v45, %v14000_v58  ;;  %v8789_v41 = vpop.f32.mrb[113].mxu0 }
0x16ad   :  { %v11509_v3 = vpop.eup %11508  ;;  %8888 = vst [vmem:[%s14386_s11 + $0xa0] sm:$0xff] %v11507_v19  ;;  %v10497_v63 = vadd.f32 %v8789_v41, %v14002_v56 }
0x16ae   :  { %8889 = vst.msk [vmem:[%s14386_s11 + $0xa8] sm:$0xff] %vm1065_vm3, %v11509_v3  ;;  %11518 = vtanh.f32 %v10496_v9 }
0x16af   :  { %11520 = vtanh.f32 %v10497_v63  ;;  %v8793_v57 = vpop.f32.mrb[114].mxu0 }
0x16b0   :  { %v11511_v46 = vpop.eup %11510  ;;  %v10498_v42 = vadd.f32 %v8793_v57, %v14004_v35  ;;  %v8795_v58 = vpop.f32.mrb[115].mxu0 }
0x16b1   :  { %v11513_v54 = vpop.eup %11512  ;;  %8890 = vst [vmem:[%s14386_s11 + $0xb0] sm:$0xff] %v11511_v46  ;;  %v10499_v22 = vadd.f32 %v8795_v58, %v14006_v34 }
0x16b2   :  { %8891 = vst.msk [vmem:[%s14386_s11 + $0xb8] sm:$0xff] %vm1065_vm3, %v11513_v54  ;;  %11522 = vtanh.f32 %v10498_v42 }
0x16b3   :  { %11524 = vtanh.f32 %v10499_v22  ;;  %v8799_v56 = vpop.f32.mrb[116].mxu0 }
0x16b4   :  { %v11515_v43 = vpop.eup %11514  ;;  %v10500_v48 = vadd.f32 %v8799_v56, %v14008_v36  ;;  %v8801_v35 = vpop.f32.mrb[117].mxu0 }
0x16b5   :  { %v11517_v30 = vpop.eup %11516  ;;  %8892 = vst [vmem:[%s14386_s11 + $0xc0] sm:$0xff] %v11515_v43  ;;  %v10501_v59 = vadd.f32 %v8801_v35, %v14010_v39 }
0x16b6   :  { %8893 = vst.msk [vmem:[%s14386_s11 + $0xc8] sm:$0xff] %vm1065_vm3, %v11517_v30  ;;  %11526 = vtanh.f32 %v10500_v48 }
0x16b7   :  { %11528 = vtanh.f32 %v10501_v59 }
0x16b8   :  { %v11519_v34 = vpop.eup %11518 }
0x16b9   :  { %v11521_v49 = vpop.eup %11520  ;;  %8894 = vst [vmem:[%s14386_s11 + $0xd0] sm:$0xff] %v11519_v34 }
0x16ba   :  { %8895 = vst.msk [vmem:[%s14386_s11 + $0xd8] sm:$0xff] %vm1065_vm3, %v11521_v49 }
0x16bc   :  { %v11523_v36 = vpop.eup %11522 }
0x16bd   :  { %v11525_v39 = vpop.eup %11524  ;;  %8896 = vst [vmem:[%s14386_s11 + $0xe0] sm:$0xff] %v11523_v36 }
0x16be   :  { %8897 = vst.msk [vmem:[%s14386_s11 + $0xe8] sm:$0xff] %vm1065_vm3, %v11525_v39 }
0x16c0   :  { %v11527_v32 = vpop.eup %11526 }
0x16c1   :  { %v11529_v51 = vpop.eup %11528  ;;  %8898 = vst [vmem:[%s14386_s11 + $0xf0] sm:$0xff] %v11527_v32 }
0x16c2   :  { %8899 = vst.msk [vmem:[%s14386_s11 + $0xf8] sm:$0xff] %vm1065_vm3, %v11529_v51 }
0x16c3   :  { %8904 = vsyncpa [#allocation3], 1 }
0x16c4   :  { %8905 = vsyncpa [#allocation5], 1 }
0x16c5   :  { %8906 = vsyncpa [#allocation8], 1 }
0x16c6   :  { %8907 = vsyncpa [#allocation11], 1 }
0x16c7   :  { %8908 = vsyncpa [#allocation14], 1 }
0x16c8   :  { %8909 = vsyncpa [#allocation17], 1 }
0x16c9   :  { %8910 = vsyncpa [#allocation20], 1 }
0x16ca   :  { %8911 = vsyncpa [#allocation23], 1 }
0x16cb   :  { %8912 = vsyncpa [#allocation26], 1 }

</bundles_post_ra>
